<compile_context>
chip_gen: v7x
topology: tpu7x:2x2x1
jax: 0.10.0
libtpu: 0.0.40
codegen_flags: <defaults>
</compile_context>

<pallas_src>
import functools

import jax
import jax.numpy as jnp
from jax.experimental import pallas as pl
from jax.experimental.pallas import tpu as pltpu

NUM_GROUPS = 32
EPS = 1e-5
VMEM_LIMIT_BYTES = 32 * 1024 * 1024     # safe on v5e/v6e (128 MiB) and v7x (64 MiB)
TILE_BUDGET_BYTES = 4 * 1024 * 1024     # target footprint of one activation tile


# --------------------------------------------------------------------------- #
# Pass 1 (block input only): per-channel sum / sum-of-squares, frame-tiled.    #
# --------------------------------------------------------------------------- #
def _stats_kernel(x_ref, sum_ref, sq_ref):
    @pl.when(pl.program_id(1) == 0)
    def _init():
        sum_ref[...] = jnp.zeros_like(sum_ref)
        sq_ref[...] = jnp.zeros_like(sq_ref)

    x = x_ref[0].astype(jnp.float32)            # (TS, HW, C)
    x = x.reshape(-1, x.shape[-1])              # (TS*HW, C)
    sum_ref[0] += jnp.sum(x, axis=0, keepdims=True)
    sq_ref[0] += jnp.sum(x * x, axis=0, keepdims=True)


def _channel_stats(x, *, frames_per_tile):
    B, T, HW, C = x.shape
    ts = frames_per_tile
    tile_spec = pl.BlockSpec((1, ts, HW, C), lambda b, j: (b, j, 0, 0))
    acc_spec = pl.BlockSpec((1, 1, C), lambda b, j: (b, 0, 0))
    return pl.pallas_call(
        _stats_kernel,
        out_shape=(jax.ShapeDtypeStruct((B, 1, C), jnp.float32),
                   jax.ShapeDtypeStruct((B, 1, C), jnp.float32)),
        grid=(B, T // ts),
        in_specs=[tile_spec],
        out_specs=(acc_spec, acc_spec),
        compiler_params=pltpu.CompilerParams(
            dimension_semantics=("parallel", "arbitrary"),
            vmem_limit_bytes=VMEM_LIMIT_BYTES),
    )(x)


def _fold_group_norm(chan_sum, chan_sq, gamma, beta, count):
    """Tiny JAX epilogue: channel sums -> per-(batch, channel) scale/shift."""
    B, _, C = chan_sum.shape
    gs = C // NUM_GROUPS
    g_sum = chan_sum.reshape(B, NUM_GROUPS, gs).sum(axis=-1)
    g_sq = chan_sq.reshape(B, NUM_GROUPS, gs).sum(axis=-1)
    mean = g_sum / count
    var = jnp.maximum(g_sq / count - mean * mean, 0.0)   # clamp cancellation
    rstd = jax.lax.rsqrt(var + EPS)
    mean_c = jnp.repeat(mean, gs, axis=-1)               # (B, C)
    rstd_c = jnp.repeat(rstd, gs, axis=-1)
    scale = gamma.reshape(1, C) * rstd_c                 # (B, C)
    shift = beta.reshape(1, C) - mean_c * scale
    return scale.reshape(B, 1, C), shift.reshape(B, 1, C)


# --------------------------------------------------------------------------- #
# Pass 2: normalize + SiLU + temporal Conv3d(3,1,1), frame-tiled with a halo,  #
#         optionally emitting per-channel stats of its own output (for the     #
#         next layer's GroupNorm) and/or adding the block residual.            #
# --------------------------------------------------------------------------- #
def _apply_kernel(*refs, tf, with_residual, emit_stats):
    (xc_ref, xp_ref, xn_ref, scale_ref, shift_ref, w_ref, bias_ref) = refs[:7]
    idx = 7
    res_ref = None
    if with_residual:
        res_ref = refs[idx]
        idx += 1
    o_ref = refs[idx]
    idx += 1
    sum_ref = sq_ref = None
    if emit_stats:
        sum_ref, sq_ref = refs[idx], refs[idx + 1]

    j = pl.program_id(1)
    last_j = pl.num_programs(1) - 1

    if emit_stats:
        @pl.when(j == 0)
        def _init():
            sum_ref[...] = jnp.zeros_like(sum_ref)
            sq_ref[...] = jnp.zeros_like(sq_ref)

    HW = xc_ref.shape[2]
    scale = scale_ref[0]                        # (1, C) f32 (GN affine folded in)
    shift = shift_ref[0]
    cdt = w_ref.dtype                           # MXU input dtype (bf16 or f32)

    def norm_silu(v):                           # GroupNorm (folded) + SiLU, in f32
        h = v.astype(jnp.float32) * scale + shift
        return h * jax.nn.sigmoid(h)
        # (Dropout is identity in inference mode.)

    hc = norm_silu(xc_ref[0]).astype(cdt)       # (TF, HW, C)
    hc2 = hc.reshape(tf * HW, hc.shape[-1])     # stack frames -> big MXU M dim

    # Halo frames.  The conv is zero-padded in time, so the clamped fetch is
    # zeroed at the sequence boundaries via a scalar mask.
    pmask = jnp.where(j > 0, 1.0, 0.0)
    nmask = jnp.where(j < last_j, 1.0, 0.0)
    hp = (norm_silu(xp_ref[0, 0]) * pmask).astype(cdt)   # frame t0-1   (HW, C)
    hn = (norm_silu(xn_ref[0, 0]) * nmask).astype(cdt)   # frame t0+TF  (HW, C)

    w_prev = w_ref[0]                           # (C, C)
    w_cur = w_ref[1]
    w_next = w_ref[2]
    bias = bias_ref[...]                        # (1, C) f32

    # Tile-stacked matmuls (no wasted rows: slice off the frames whose
    # prev/next contribution is never consumed inside this tile).
    yc = jnp.dot(hc2, w_cur, preferred_element_type=jnp.float32)       # (TF*HW, C)
    zp = zn = None
    if tf > 1:
        zp = jnp.dot(hc2[: (tf - 1) * HW], w_prev,
                     preferred_element_type=jnp.float32)               # frames 0..TF-2
        zn = jnp.dot(hc2[HW:], w_next,
                     preferred_element_type=jnp.float32)               # frames 1..TF-1
    p_halo = jnp.dot(hp, w_prev, preferred_element_type=jnp.float32)   # -> out[0]
    n_halo = jnp.dot(hn, w_next, preferred_element_type=jnp.float32)   # -> out[TF-1]

    tile_sum = tile_sq = None
    for f in range(tf):                         # unrolled at trace time
        out = yc[f * HW:(f + 1) * HW] + bias
        out = out + (p_halo if f == 0 else zp[(f - 1) * HW: f * HW])
        out = out + (n_halo if f == tf - 1 else zn[f * HW:(f + 1) * HW])
        if with_residual:
            out = out + res_ref[0, f].astype(jnp.float32)
        stored = out.astype(o_ref.dtype)
        o_ref[0, f] = stored
        if emit_stats:                          # stats of the *stored* activation
            sf = stored.astype(jnp.float32)
            s = jnp.sum(sf, axis=0, keepdims=True)
            q = jnp.sum(sf * sf, axis=0, keepdims=True)
            tile_sum = s if tile_sum is None else tile_sum + s
            tile_sq = q if tile_sq is None else tile_sq + q

    if emit_stats:
        sum_ref[0] += tile_sum
        sq_ref[0] += tile_sq


def _gn_silu_tconv(x, scale, shift, w, bias, *, frames_per_tile, out_dtype,
                   residual=None, emit_stats=False):
    """One conv_layer: GroupNorm(folded) -> SiLU -> Conv3d(3,1,1) [+ residual].

    When emit_stats, also returns per-channel (sum, sum_sq) of the output,
    i.e. the GroupNorm statistics of the NEXT layer -- saves one full HBM read.
    """
    B, T, HW, C = x.shape
    tf = frames_per_tile
    kernel = functools.partial(_apply_kernel, tf=tf,
                               with_residual=residual is not None,
                               emit_stats=emit_stats)

    tile = lambda b, j: (b, j, 0, 0)
    cur_spec = pl.BlockSpec((1, tf, HW, C), tile)
    prev_spec = pl.BlockSpec((1, 1, HW, C),
                             lambda b, j: (b, jnp.maximum(j * tf - 1, 0), 0, 0))
    next_spec = pl.BlockSpec((1, 1, HW, C),
                             lambda b, j: (b, jnp.minimum(j * tf + tf, T - 1), 0, 0))
    vec_spec = pl.BlockSpec((1, 1, C), lambda b, j: (b, 0, 0))
    w_spec = pl.BlockSpec((3, C, C), lambda b, j: (0, 0, 0))
    bias_spec = pl.BlockSpec((1, C), lambda b, j: (0, 0))
    # TODO(synk): single-buffer the constant-index weight block
    # (pipeline_mode=pl.Buffered(1)) to halve its VMEM footprint at C=1280.

    in_specs = [cur_spec, prev_spec, next_spec, vec_spec, vec_spec, w_spec,
                bias_spec]
    args = [x, x, x, scale, shift, w, bias]
    if residual is not None:
        in_specs.append(pl.BlockSpec((1, tf, HW, C), tile))
        args.append(residual)

    o_spec = pl.BlockSpec((1, tf, HW, C), tile)
    if emit_stats:
        acc_spec = pl.BlockSpec((1, 1, C), lambda b, j: (b, 0, 0))
        out_specs = (o_spec, acc_spec, acc_spec)
        out_shape = (jax.ShapeDtypeStruct((B, T, HW, C), out_dtype),
                     jax.ShapeDtypeStruct((B, 1, C), jnp.float32),
                     jax.ShapeDtypeStruct((B, 1, C), jnp.float32))
        dims = ("parallel", "arbitrary")        # stats accumulate along frames
    else:
        out_specs = o_spec
        out_shape = jax.ShapeDtypeStruct((B, T, HW, C), out_dtype)
        dims = ("parallel", "parallel")

    return pl.pallas_call(
        kernel,
        out_shape=out_shape,
        grid=(B, T // tf),
        in_specs=in_specs,
        out_specs=out_specs,
        compiler_params=pltpu.CompilerParams(
            dimension_semantics=dims,
            vmem_limit_bytes=VMEM_LIMIT_BYTES),
    )(*args)


# --------------------------------------------------------------------------- #
# TemporalConvBlock forward                                                    #
# --------------------------------------------------------------------------- #
def _pick_frames_per_tile(T, HW, C):
    """Largest divisor of T whose tile (+ halo + f32 matmul temps) fits budget."""
    best = 1
    unit = HW * C * 4
    for tf in range(1, T + 1):
        if T % tf != 0:
            continue
        approx = (tf + 2) * unit + tf * unit + 3 * tf * unit
        if approx <= TILE_BUDGET_BYTES:
            best = tf
    return best


def temporal_conv_block_forward(x, params, *, frames_per_tile=None,
                                compute_dtype=jnp.bfloat16,
                                act_dtype=jnp.bfloat16):
    """inp: (B, T, HW, C) f32.  Returns inp + conv4(conv3(conv2(conv1(inp))))."""
    B, T, HW, C = x.shape
    assert C % NUM_GROUPS == 0, "GroupNorm(32) needs C % 32 == 0"
    assert HW % 8 == 0, "keep the per-frame row count sublane-aligned"
    # TODO(synk): widths like C=320 should be padded group-aware to 384 for a
    # fully lane-dense layout; 640/1280 are already multiples of 128.
    tf = frames_per_tile or _pick_frames_per_tile(T, HW, C)
    count = float(T * HW * (C // NUM_GROUPS))   # elements per (sample, group)

    inp = x
    # Stats of the block input feed layer 1's GroupNorm; layers 2..4 get their
    # stats fused into the previous layer's apply pass.
    chan_sum, chan_sq = _channel_stats(x, frames_per_tile=tf)

    h = x
    for i, p in enumerate(params):
        last = i == len(params) - 1
        scale, shift = _fold_group_norm(chan_sum, chan_sq, p["gamma"], p["beta"],
                                        count)
        outs = _gn_silu_tconv(
            h, scale, shift,
            p["w"].astype(compute_dtype),              # bf16 weights for the MXU
            p["b"].astype(jnp.float32),
            frames_per_tile=tf,
            out_dtype=jnp.float32 if last else act_dtype,  # bf16 between layers
            residual=inp if last else None,
            emit_stats=not last)
        if last:
            h = outs
        else:
            h, chan_sum, chan_sq = outs
    return h


def init_params(key, C):
    params = []
    for _ in range(4):
        key, k1, k2, k3, k4 = jax.random.split(key, 5)
        params.append(dict(
            gamma=1.0 + 0.1 * jax.random.normal(k1, (1, C), jnp.float32),
            beta=0.1 * jax.random.normal(k2, (1, C), jnp.float32),
            # w[dt, ci, co] == torch_conv3d_weight[co, ci, dt, 0, 0]
            w=jax.random.normal(k3, (3, C, C), jnp.float32) / jnp.sqrt(3.0 * C),
            b=0.02 * jax.random.normal(k4, (1, C), jnp.float32),
        ))
    return params


def _reference_block(x, params):
    """Pure-JAX f32 reference, x: (B, T, HW, C)."""
    B, T, HW, C = x.shape
    gs = C // NUM_GROUPS
    hi = jax.lax.Precision.HIGHEST

    def layer(h, p):
        hr = h.reshape(B, T, HW, NUM_GROUPS, gs)
        mean = hr.mean(axis=(1, 2, 4), keepdims=True)
        var = hr.var(axis=(1, 2, 4), keepdims=True)
        hn = ((hr - mean) * jax.lax.rsqrt(var + EPS)).reshape(B, T, HW, C)
        a = hn * p["gamma"][0] + p["beta"][0]
        a = a * jax.nn.sigmoid(a)
        zero = jnp.zeros((B, 1, HW, C), jnp.float32)
        a_prev = jnp.concatenate([zero, a[:, :-1]], axis=1)
        a_next = jnp.concatenate([a[:, 1:], zero], axis=1)
        return (jnp.einsum("bthc,cd->bthd", a_prev, p["w"][0], precision=hi)
                + jnp.einsum("bthc,cd->bthd", a, p["w"][1], precision=hi)
                + jnp.einsum("bthc,cd->bthd", a_next, p["w"][2], precision=hi)
                + p["b"][0])

    h = x
    for p in params:
        h = layer(h, p)
    return x + h


if __name__ == "__main__":
    # Small but representative: C=128 keeps the lane axis dense and exercises
    # grouped stats (4 channels/group); T=8 frames, 8x8 spatial.
    B, C, T, H, W = 2, 128, 8, 8, 8
    HW = H * W

    key = jax.random.PRNGKey(0)
    key, kx = jax.random.split(key)
    x_ncthw = jax.random.normal(kx, (B, C, T, H, W), jnp.float32)  # PyTorch NCDHW
    params = init_params(key, C)

    # NCDHW -> channels-last (B, T, HW, C)
    x = jnp.transpose(x_ncthw, (0, 2, 3, 4, 1)).reshape(B, T, HW, C)

    ref = _reference_block(x, params)

    # f32 path (heuristic frame tiling) -- structural correctness check.
    f32_fwd = jax.jit(functools.partial(temporal_conv_block_forward,
                                        compute_dtype=jnp.float32,
                                        act_dtype=jnp.float32))
    out_f32 = jax.block_until_ready(f32_fwd(x, params))
    err_f32 = float(jnp.max(jnp.abs(out_f32 - ref)))
    assert jnp.allclose(out_f32, ref, atol=2e-2, rtol=2e-2), err_f32

    # bf16 fast path (bf16 MXU inputs + bf16 inter-layer activations) with an
    # explicit 2-frame tile so the cross-tile halo path and the fused-stats
    # accumulation across frame tiles are exercised.
    bf16_fwd = jax.jit(functools.partial(temporal_conv_block_forward,
                                         frames_per_tile=2))
    out = jax.block_until_ready(bf16_fwd(x, params))
    err_bf16 = float(jnp.max(jnp.abs(out - ref)))
    assert out.dtype == jnp.float32
    assert jnp.allclose(out, ref, atol=6e-2, rtol=6e-2), err_bf16

    # back to the module's NCDHW output layout
    out_ncthw = out.reshape(B, T, H, W, C).transpose(0, 4, 1, 2, 3)
    assert out_ncthw.shape == x_ncthw.shape
    print("KERNEL_OK")
</pallas_src>

<mosaic_0001>
module attributes {stable_mosaic.version = 11 : i64} {
  func.func @_stats_kernel(%arg0: i32, %arg1: i32, %arg2: memref<1x8x64x128xf32, #tpu.memory_space<vmem>>, %arg3: memref<1x1x128xf32, #tpu.memory_space<vmem>>, %arg4: memref<1x1x128xf32, #tpu.memory_space<vmem>>) attributes {dimension_semantics = [#tpu.dimension_semantics<parallel>, #tpu.dimension_semantics<arbitrary>], iteration_bounds = array<i64: 2, 1>, scalar_prefetch = 0 : i64, scratch_operands = 0 : i64, tpu.core_type = #tpu.core_type<tc>, window_params = [{transform_indices = @transform_0, window_bounds = array<i64: 1, 8, 64, 128>}, {transform_indices = @transform_1, window_bounds = array<i64: 1, 1, 128>}, {transform_indices = @transform_2, window_bounds = array<i64: 1, 1, 128>}]} {
    %c0_i32 = arith.constant 0 : i32
    %0 = arith.cmpi eq, %arg1, %c0_i32 : i32
    %1 = arith.extui %0 : i1 to i32
    %c0_i32_0 = arith.constant 0 : i32
    %2 = arith.cmpi ne, %1, %c0_i32_0 : i32
    scf.if %2 {
      %cst_17 = arith.constant 0.000000e+00 : f32
      %23 = vector.broadcast %cst_17 : f32 to vector<1x1x128xf32>
      %c0_18 = arith.constant 0 : index
      %c0_19 = arith.constant 0 : index
      %c0_20 = arith.constant 0 : index
      %24 = vector.load %arg3[%c0_18, %c0_19, %c0_20] : memref<1x1x128xf32, #tpu.memory_space<vmem>>, vector<1x1x128xf32>
      tpu.vector_store %arg3[%c0_18, %c0_19, %c0_20], %23 {strides = array<i32>} : memref<1x1x128xf32, #tpu.memory_space<vmem>>, vector<1x1x128xf32>,
      %cst_21 = arith.constant 0.000000e+00 : f32
      %25 = vector.broadcast %cst_21 : f32 to vector<1x1x128xf32>
      %c0_22 = arith.constant 0 : index
      %c0_23 = arith.constant 0 : index
      %c0_24 = arith.constant 0 : index
      %26 = vector.load %arg4[%c0_22, %c0_23, %c0_24] : memref<1x1x128xf32, #tpu.memory_space<vmem>>, vector<1x1x128xf32>
      tpu.vector_store %arg4[%c0_22, %c0_23, %c0_24], %25 {strides = array<i32>} : memref<1x1x128xf32, #tpu.memory_space<vmem>>, vector<1x1x128xf32>,
    } else {
    }
    %c0 = arith.constant 0 : index
    %c0_1 = arith.constant 0 : index
    %c0_2 = arith.constant 0 : index
    %c0_3 = arith.constant 0 : index
    %3 = vector.load %arg2[%c0, %c0_1, %c0_2, %c0_3] : memref<1x8x64x128xf32, #tpu.memory_space<vmem>>, vector<1x8x64x128xf32>
    %4 = vector.shape_cast %3 : vector<1x8x64x128xf32> to vector<8x64x128xf32>
    %5 = vector.shape_cast %4 : vector<8x64x128xf32> to vector<512x128xf32>
    %c0_4 = arith.constant 0 : index
    %c0_5 = arith.constant 0 : index
    %c0_6 = arith.constant 0 : index
    %6 = vector.load %arg3[%c0_4, %c0_5, %c0_6] : memref<1x1x128xf32, #tpu.memory_space<vmem>>, vector<1x1x128xf32>
    %7 = vector.shape_cast %6 : vector<1x1x128xf32> to vector<1x128xf32>
    %cst = arith.constant dense<0.000000e+00> : vector<128xf32>
    %8 = vector.multi_reduction <add>, %5, %cst [0] : vector<512x128xf32> to vector<128xf32>
    %9 = vector.shape_cast %8 : vector<128xf32> to vector<1x128xf32>
    %10 = arith.addf %7, %9 : vector<1x128xf32>
    %c0_7 = arith.constant 0 : index
    %c0_8 = arith.constant 0 : index
    %c0_9 = arith.constant 0 : index
    %11 = vector.load %arg3[%c0_7, %c0_8, %c0_9] : memref<1x1x128xf32, #tpu.memory_space<vmem>>, vector<1x1x128xf32>
    %12 = vector.shape_cast %11 : vector<1x1x128xf32> to vector<1x128xf32>
    %13 = vector.shape_cast %10 : vector<1x128xf32> to vector<1x1x128xf32>
    tpu.vector_store %arg3[%c0_7, %c0_8, %c0_9], %13 {strides = array<i32>} : memref<1x1x128xf32, #tpu.memory_space<vmem>>, vector<1x1x128xf32>,
    %c0_10 = arith.constant 0 : index
    %c0_11 = arith.constant 0 : index
    %c0_12 = arith.constant 0 : index
    %14 = vector.load %arg4[%c0_10, %c0_11, %c0_12] : memref<1x1x128xf32, #tpu.memory_space<vmem>>, vector<1x1x128xf32>
    %15 = vector.shape_cast %14 : vector<1x1x128xf32> to vector<1x128xf32>
    %16 = arith.mulf %5, %5 : vector<512x128xf32>
    %cst_13 = arith.constant dense<0.000000e+00> : vector<128xf32>
    %17 = vector.multi_reduction <add>, %16, %cst_13 [0] : vector<512x128xf32> to vector<128xf32>
    %18 = vector.shape_cast %17 : vector<128xf32> to vector<1x128xf32>
    %19 = arith.addf %15, %18 : vector<1x128xf32>
    %c0_14 = arith.constant 0 : index
    %c0_15 = arith.constant 0 : index
    %c0_16 = arith.constant 0 : index
    %20 = vector.load %arg4[%c0_14, %c0_15, %c0_16] : memref<1x1x128xf32, #tpu.memory_space<vmem>>, vector<1x1x128xf32>
    %21 = vector.shape_cast %20 : vector<1x1x128xf32> to vector<1x128xf32>
    %22 = vector.shape_cast %19 : vector<1x128xf32> to vector<1x1x128xf32>
    tpu.vector_store %arg4[%c0_14, %c0_15, %c0_16], %22 {strides = array<i32>} : memref<1x1x128xf32, #tpu.memory_space<vmem>>, vector<1x1x128xf32>,
    return
  }
  func.func @transform_0(%arg0: i32, %arg1: i32) -> (i32, i32, i32, i32) {
    %c0_i32 = arith.constant 0 : i32
    %c0_i32_0 = arith.constant 0 : i32
    %c0_i32_1 = arith.constant 0 : i32
    return %arg0, %arg1, %c0_i32, %c0_i32_0 : i32, i32, i32, i32
  }
  func.func @transform_1(%arg0: i32, %arg1: i32) -> (i32, i32, i32) {
    %c0_i32 = arith.constant 0 : i32
    %c0_i32_0 = arith.constant 0 : i32
    %c0_i32_1 = arith.constant 0 : i32
    return %arg0, %c0_i32, %c0_i32_0 : i32, i32, i32
  }
  func.func @transform_2(%arg0: i32, %arg1: i32) -> (i32, i32, i32) {
    %c0_i32 = arith.constant 0 : i32
    %c0_i32_0 = arith.constant 0 : i32
    %c0_i32_1 = arith.constant 0 : i32
    return %arg0, %c0_i32, %c0_i32_0 : i32, i32, i32
  }
}

module attributes {stable_mosaic.version = 11 : i64} {
  func.func @_apply_kernel(%arg0: i32, %arg1: i32, %arg2: memref<1x8x64x128xf32, #tpu.memory_space<vmem>>, %arg3: memref<1x1x64x128xf32, #tpu.memory_space<vmem>>, %arg4: memref<1x1x64x128xf32, #tpu.memory_space<vmem>>, %arg5: memref<1x1x128xf32, #tpu.memory_space<vmem>>, %arg6: memref<1x1x128xf32, #tpu.memory_space<vmem>>, %arg7: memref<3x128x128xf32, #tpu.memory_space<vmem>>, %arg8: memref<1x128xf32, #tpu.memory_space<vmem>>, %arg9: memref<1x8x64x128xf32, #tpu.memory_space<vmem>>, %arg10: memref<1x8x64x128xf32, #tpu.memory_space<vmem>>) attributes {dimension_semantics = [#tpu.dimension_semantics<parallel>, #tpu.dimension_semantics<parallel>], iteration_bounds = array<i64: 2, 1>, scalar_prefetch = 0 : i64, scratch_operands = 0 : i64, tpu.core_type = #tpu.core_type<tc>, window_params = [{transform_indices = @transform_0, window_bounds = array<i64: 1, 8, 64, 128>}, {transform_indices = @transform_1, window_bounds = array<i64: 1, 1, 64, 128>}, {transform_indices = @transform_2, window_bounds = array<i64: 1, 1, 64, 128>}, {transform_indices = @transform_3, window_bounds = array<i64: 1, 1, 128>}, {transform_indices = @transform_4, window_bounds = array<i64: 1, 1, 128>}, {pipeline_mode = #tpu.pipeline_mode<synchronous>, transform_indices = @transform_5, window_bounds = array<i64: 3, 128, 128>}, {pipeline_mode = #tpu.pipeline_mode<synchronous>, transform_indices = @transform_6, window_bounds = array<i64: 1, 128>}, {transform_indices = @transform_7, window_bounds = array<i64: 1, 8, 64, 128>}, {transform_indices = @transform_8, window_bounds = array<i64: 1, 8, 64, 128>}]} {
    %c0 = arith.constant 0 : index
    %c0_0 = arith.constant 0 : index
    %c0_1 = arith.constant 0 : index
    %0 = vector.load %arg5[%c0, %c0_0, %c0_1] : memref<1x1x128xf32, #tpu.memory_space<vmem>>, vector<1x1x128xf32>
    %1 = vector.shape_cast %0 : vector<1x1x128xf32> to vector<1x128xf32>
    %c0_2 = arith.constant 0 : index
    %c0_3 = arith.constant 0 : index
    %c0_4 = arith.constant 0 : index
    %2 = vector.load %arg6[%c0_2, %c0_3, %c0_4] : memref<1x1x128xf32, #tpu.memory_space<vmem>>, vector<1x1x128xf32>
    %3 = vector.shape_cast %2 : vector<1x1x128xf32> to vector<1x128xf32>
    %c0_5 = arith.constant 0 : index
    %c0_6 = arith.constant 0 : index
    %c0_7 = arith.constant 0 : index
    %c0_8 = arith.constant 0 : index
    %4 = vector.load %arg2[%c0_5, %c0_6, %c0_7, %c0_8] : memref<1x8x64x128xf32, #tpu.memory_space<vmem>>, vector<1x8x64x128xf32>
    %5 = vector.shape_cast %4 : vector<1x8x64x128xf32> to vector<8x64x128xf32>
    %6 = vector.shape_cast %1 : vector<1x128xf32> to vector<1x1x128xf32>
    %7 = vector.broadcast %6 : vector<1x1x128xf32> to vector<8x64x128xf32>
    %8 = arith.mulf %5, %7 : vector<8x64x128xf32>
    %9 = vector.shape_cast %3 : vector<1x128xf32> to vector<1x1x128xf32>
    %10 = vector.broadcast %9 : vector<1x1x128xf32> to vector<8x64x128xf32>
    %11 = arith.addf %8, %10 : vector<8x64x128xf32>
    %12 = arith.negf %11 : vector<8x64x128xf32>
    %13 = math.exp %12 : vector<8x64x128xf32>
    %cst = arith.constant 1.000000e+00 : f32
    %14 = vector.broadcast %cst : f32 to vector<8x64x128xf32>
    %15 = arith.addf %14, %13 : vector<8x64x128xf32>
    %16 = arith.divf %14, %15 : vector<8x64x128xf32>
    %17 = arith.mulf %11, %16 : vector<8x64x128xf32>
    %18 = vector.shape_cast %17 : vector<8x64x128xf32> to vector<512x128xf32>
    %c0_i32 = arith.constant 0 : i32
    %19 = arith.cmpi sgt, %arg1, %c0_i32 : i32
    %cst_9 = arith.constant 1.000000e+00 : f32
    %cst_10 = arith.constant 0.000000e+00 : f32
    %20 = arith.select %19, %cst_9, %cst_10 : f32
    %c0_i32_11 = arith.constant 0 : i32
    %21 = arith.cmpi slt, %arg1, %c0_i32_11 : i32
    %cst_12 = arith.constant 1.000000e+00 : f32
    %cst_13 = arith.constant 0.000000e+00 : f32
    %22 = arith.select %21, %cst_12, %cst_13 : f32
    %c0_14 = arith.constant 0 : index
    %c0_15 = arith.constant 0 : index
    %c0_16 = arith.constant 0 : index
    %c0_17 = arith.constant 0 : index
    %23 = vector.load %arg3[%c0_14, %c0_15, %c0_16, %c0_17] : memref<1x1x64x128xf32, #tpu.memory_space<vmem>>, vector<1x1x64x128xf32>
    %24 = vector.shape_cast %23 : vector<1x1x64x128xf32> to vector<64x128xf32>
    %25 = vector.broadcast %1 : vector<1x128xf32> to vector<64x128xf32>
    %26 = arith.mulf %24, %25 : vector<64x128xf32>
    %27 = vector.broadcast %3 : vector<1x128xf32> to vector<64x128xf32>
    %28 = arith.addf %26, %27 : vector<64x128xf32>
    %29 = arith.negf %28 : vector<64x128xf32>
    %30 = math.exp %29 : vector<64x128xf32>
    %cst_18 = arith.constant 1.000000e+00 : f32
    %31 = vector.broadcast %cst_18 : f32 to vector<64x128xf32>
    %32 = arith.addf %31, %30 : vector<64x128xf32>
    %33 = arith.divf %31, %32 : vector<64x128xf32>
    %34 = arith.mulf %28, %33 : vector<64x128xf32>
    %35 = vector.broadcast %20 : f32 to vector<64x128xf32>
    %36 = arith.mulf %34, %35 : vector<64x128xf32>
    %c0_19 = arith.constant 0 : index
    %c0_20 = arith.constant 0 : index
    %c0_21 = arith.constant 0 : index
    %c0_22 = arith.constant 0 : index
    %37 = vector.load %arg4[%c0_19, %c0_20, %c0_21, %c0_22] : memref<1x1x64x128xf32, #tpu.memory_space<vmem>>, vector<1x1x64x128xf32>
    %38 = vector.shape_cast %37 : vector<1x1x64x128xf32> to vector<64x128xf32>
    %39 = vector.broadcast %1 : vector<1x128xf32> to vector<64x128xf32>
    %40 = arith.mulf %38, %39 : vector<64x128xf32>
    %41 = vector.broadcast %3 : vector<1x128xf32> to vector<64x128xf32>
    %42 = arith.addf %40, %41 : vector<64x128xf32>
    %43 = arith.negf %42 : vector<64x128xf32>
    %44 = math.exp %43 : vector<64x128xf32>
    %cst_23 = arith.constant 1.000000e+00 : f32
    %45 = vector.broadcast %cst_23 : f32 to vector<64x128xf32>
    %46 = arith.addf %45, %44 : vector<64x128xf32>
    %47 = arith.divf %45, %46 : vector<64x128xf32>
    %48 = arith.mulf %42, %47 : vector<64x128xf32>
    %49 = vector.broadcast %22 : f32 to vector<64x128xf32>
    %50 = arith.mulf %48, %49 : vector<64x128xf32>
    %c0_24 = arith.constant 0 : index
    %c0_25 = arith.constant 0 : index
    %c0_26 = arith.constant 0 : index
    %51 = vector.load %arg7[%c0_24, %c0_25, %c0_26] : memref<3x128x128xf32, #tpu.memory_space<vmem>>, vector<1x128x128xf32>
    %52 = vector.shape_cast %51 : vector<1x128x128xf32> to vector<128x128xf32>
    %c1 = arith.constant 1 : index
    %c0_27 = arith.constant 0 : index
    %c0_28 = arith.constant 0 : index
    %53 = vector.load %arg7[%c1, %c0_27, %c0_28] : memref<3x128x128xf32, #tpu.memory_space<vmem>>, vector<1x128x128xf32>
    %54 = vector.shape_cast %53 : vector<1x128x128xf32> to vector<128x128xf32>
    %c2 = arith.constant 2 : index
    %c0_29 = arith.constant 0 : index
    %c0_30 = arith.constant 0 : index
    %55 = vector.load %arg7[%c2, %c0_29, %c0_30] : memref<3x128x128xf32, #tpu.memory_space<vmem>>, vector<1x128x128xf32>
    %56 = vector.shape_cast %55 : vector<1x128x128xf32> to vector<128x128xf32>
    %c0_31 = arith.constant 0 : index
    %c0_32 = arith.constant 0 : index
    %57 = vector.load %arg8[%c0_31, %c0_32] : memref<1x128xf32, #tpu.memory_space<vmem>>, vector<1x128xf32>
    %cst_33 = arith.constant dense<0.000000e+00> : vector<512x128xf32>
    %58 = tpu.matmul %18, %54, %cst_33 {dimension_numbers = #tpu.dot_dimension_numbers<[1], [0], [0], [1], [0, 0, 1, 1], [], []>} : vector<512x128xf32>, vector<128x128xf32>, vector<512x128xf32> -> vector<512x128xf32>
    %59 = vector.extract_strided_slice %18 {offsets = [0, 0], sizes = [448, 128], strides = [1, 1]} : vector<512x128xf32> to vector<448x128xf32>
    %cst_34 = arith.constant dense<0.000000e+00> : vector<448x128xf32>
    %60 = tpu.matmul %59, %52, %cst_34 {dimension_numbers = #tpu.dot_dimension_numbers<[1], [0], [0], [1], [0, 0, 1, 1], [], []>} : vector<448x128xf32>, vector<128x128xf32>, vector<448x128xf32> -> vector<448x128xf32>
    %61 = vector.extract_strided_slice %18 {offsets = [64, 0], sizes = [448, 128], strides = [1, 1]} : vector<512x128xf32> to vector<448x128xf32>
    %cst_35 = arith.constant dense<0.000000e+00> : vector<448x128xf32>
    %62 = tpu.matmul %61, %56, %cst_35 {dimension_numbers = #tpu.dot_dimension_numbers<[1], [0], [0], [1], [0, 0, 1, 1], [], []>} : vector<448x128xf32>, vector<128x128xf32>, vector<448x128xf32> -> vector<448x128xf32>
    %cst_36 = arith.constant dense<0.000000e+00> : vector<64x128xf32>
    %63 = tpu.matmul %36, %52, %cst_36 {dimension_numbers = #tpu.dot_dimension_numbers<[1], [0], [0], [1], [0, 0, 1, 1], [], []>} : vector<64x128xf32>, vector<128x128xf32>, vector<64x128xf32> -> vector<64x128xf32>
    %cst_37 = arith.constant dense<0.000000e+00> : vector<64x128xf32>
    %64 = tpu.matmul %50, %56, %cst_37 {dimension_numbers = #tpu.dot_dimension_numbers<[1], [0], [0], [1], [0, 0, 1, 1], [], []>} : vector<64x128xf32>, vector<128x128xf32>, vector<64x128xf32> -> vector<64x128xf32>
    %65 = vector.extract_strided_slice %58 {offsets = [0, 0], sizes = [64, 128], strides = [1, 1]} : vector<512x128xf32> to vector<64x128xf32>
    %66 = vector.broadcast %57 : vector<1x128xf32> to vector<64x128xf32>
    %67 = arith.addf %65, %66 : vector<64x128xf32>
    %68 = arith.addf %67, %63 : vector<64x128xf32>
    %69 = vector.extract_strided_slice %62 {offsets = [0, 0], sizes = [64, 128], strides = [1, 1]} : vector<448x128xf32> to vector<64x128xf32>
    %70 = arith.addf %68, %69 : vector<64x128xf32>
    %c0_38 = arith.constant 0 : index
    %c0_39 = arith.constant 0 : index
    %c0_40 = arith.constant 0 : index
    %c0_41 = arith.constant 0 : index
    %71 = vector.load %arg9[%c0_38, %c0_39, %c0_40, %c0_41] : memref<1x8x64x128xf32, #tpu.memory_space<vmem>>, vector<1x1x64x128xf32>
    %72 = vector.shape_cast %71 : vector<1x1x64x128xf32> to vector<64x128xf32>
    %73 = arith.addf %70, %72 : vector<64x128xf32>
    %c0_42 = arith.constant 0 : index
    %c0_43 = arith.constant 0 : index
    %c0_44 = arith.constant 0 : index
    %c0_45 = arith.constant 0 : index
    %74 = vector.load %arg10[%c0_42, %c0_43, %c0_44, %c0_45] : memref<1x8x64x128xf32, #tpu.memory_space<vmem>>, vector<1x1x64x128xf32>
    %75 = vector.shape_cast %74 : vector<1x1x64x128xf32> to vector<64x128xf32>
    %76 = vector.shape_cast %73 : vector<64x128xf32> to vector<1x1x64x128xf32>
    tpu.vector_store %arg10[%c0_42, %c0_43, %c0_44, %c0_45], %76 {strides = array<i32>} : memref<1x8x64x128xf32, #tpu.memory_space<vmem>>, vector<1x1x64x128xf32>,
    %77 = vector.extract_strided_slice %58 {offsets = [64, 0], sizes = [64, 128], strides = [1, 1]} : vector<512x128xf32> to vector<64x128xf32>
    %78 = vector.broadcast %57 : vector<1x128xf32> to vector<64x128xf32>
    %79 = arith.addf %77, %78 : vector<64x128xf32>
    %80 = vector.extract_strided_slice %60 {offsets = [0, 0], sizes = [64, 128], strides = [1, 1]} : vector<448x128xf32> to vector<64x128xf32>
    %81 = arith.addf %79, %80 : vector<64x128xf32>
    %82 = vector.extract_strided_slice %62 {offsets = [64, 0], sizes = [64, 128], strides = [1, 1]} : vector<448x128xf32> to vector<64x128xf32>
    %83 = arith.addf %81, %82 : vector<64x128xf32>
    %c0_46 = arith.constant 0 : index
    %c1_47 = arith.constant 1 : index
    %c0_48 = arith.constant 0 : index
    %c0_49 = arith.constant 0 : index
    %84 = vector.load %arg9[%c0_46, %c1_47, %c0_48, %c0_49] : memref<1x8x64x128xf32, #tpu.memory_space<vmem>>, vector<1x1x64x128xf32>
    %85 = vector.shape_cast %84 : vector<1x1x64x128xf32> to vector<64x128xf32>
    %86 = arith.addf %83, %85 : vector<64x128xf32>
    %c0_50 = arith.constant 0 : index
    %c1_51 = arith.constant 1 : index
    %c0_52 = arith.constant 0 : index
    %c0_53 = arith.constant 0 : index
    %87 = vector.load %arg10[%c0_50, %c1_51, %c0_52, %c0_53] : memref<1x8x64x128xf32, #tpu.memory_space<vmem>>, vector<1x1x64x128xf32>
    %88 = vector.shape_cast %87 : vector<1x1x64x128xf32> to vector<64x128xf32>
    %89 = vector.shape_cast %86 : vector<64x128xf32> to vector<1x1x64x128xf32>
    tpu.vector_store %arg10[%c0_50, %c1_51, %c0_52, %c0_53], %89 {strides = array<i32>} : memref<1x8x64x128xf32, #tpu.memory_space<vmem>>, vector<1x1x64x128xf32>,
    %90 = vector.extract_strided_slice %58 {offsets = [128, 0], sizes = [64, 128], strides = [1, 1]} : vector<512x128xf32> to vector<64x128xf32>
    %91 = vector.broadcast %57 : vector<1x128xf32> to vector<64x128xf32>
    %92 = arith.addf %90, %91 : vector<64x128xf32>
    %93 = vector.extract_strided_slice %60 {offsets = [64, 0], sizes = [64, 128], strides = [1, 1]} : vector<448x128xf32> to vector<64x128xf32>
    %94 = arith.addf %92, %93 : vector<64x128xf32>
    %95 = vector.extract_strided_slice %62 {offsets = [128, 0], sizes = [64, 128], strides = [1, 1]} : vector<448x128xf32> to vector<64x128xf32>
    %96 = arith.addf %94, %95 : vector<64x128xf32>
    %c0_54 = arith.constant 0 : index
    %c2_55 = arith.constant 2 : index
    %c0_56 = arith.constant 0 : index
    %c0_57 = arith.constant 0 : index
    %97 = vector.load %arg9[%c0_54, %c2_55, %c0_56, %c0_57] : memref<1x8x64x128xf32, #tpu.memory_space<vmem>>, vector<1x1x64x128xf32>
    %98 = vector.shape_cast %97 : vector<1x1x64x128xf32> to vector<64x128xf32>
    %99 = arith.addf %96, %98 : vector<64x128xf32>
    %c0_58 = arith.constant 0 : index
    %c2_59 = arith.constant 2 : index
    %c0_60 = arith.constant 0 : index
    %c0_61 = arith.constant 0 : index
    %100 = vector.load %arg10[%c0_58, %c2_59, %c0_60, %c0_61] : memref<1x8x64x128xf32, #tpu.memory_space<vmem>>, vector<1x1x64x128xf32>
    %101 = vector.shape_cast %100 : vector<1x1x64x128xf32> to vector<64x128xf32>
    %102 = vector.shape_cast %99 : vector<64x128xf32> to vector<1x1x64x128xf32>
    tpu.vector_store %arg10[%c0_58, %c2_59, %c0_60, %c0_61], %102 {strides = array<i32>} : memref<1x8x64x128xf32, #tpu.memory_space<vmem>>, vector<1x1x64x128xf32>,
    %103 = vector.extract_strided_slice %58 {offsets = [192, 0], sizes = [64, 128], strides = [1, 1]} : vector<512x128xf32> to vector<64x128xf32>
    %104 = vector.broadcast %57 : vector<1x128xf32> to vector<64x128xf32>
    %105 = arith.addf %103, %104 : vector<64x128xf32>
    %106 = vector.extract_strided_slice %60 {offsets = [128, 0], sizes = [64, 128], strides = [1, 1]} : vector<448x128xf32> to vector<64x128xf32>
    %107 = arith.addf %105, %106 : vector<64x128xf32>
    %108 = vector.extract_strided_slice %62 {offsets = [192, 0], sizes = [64, 128], strides = [1, 1]} : vector<448x128xf32> to vector<64x128xf32>
    %109 = arith.addf %107, %108 : vector<64x128xf32>
    %c0_62 = arith.constant 0 : index
    %c3 = arith.constant 3 : index
    %c0_63 = arith.constant 0 : index
    %c0_64 = arith.constant 0 : index
    %110 = vector.load %arg9[%c0_62, %c3, %c0_63, %c0_64] : memref<1x8x64x128xf32, #tpu.memory_space<vmem>>, vector<1x1x64x128xf32>
    %111 = vector.shape_cast %110 : vector<1x1x64x128xf32> to vector<64x128xf32>
    %112 = arith.addf %109, %111 : vector<64x128xf32>
    %c0_65 = arith.constant 0 : index
    %c3_66 = arith.constant 3 : index
    %c0_67 = arith.constant 0 : index
    %c0_68 = arith.constant 0 : index
    %113 = vector.load %arg10[%c0_65, %c3_66, %c0_67, %c0_68] : memref<1x8x64x128xf32, #tpu.memory_space<vmem>>, vector<1x1x64x128xf32>
    %114 = vector.shape_cast %113 : vector<1x1x64x128xf32> to vector<64x128xf32>
    %115 = vector.shape_cast %112 : vector<64x128xf32> to vector<1x1x64x128xf32>
    tpu.vector_store %arg10[%c0_65, %c3_66, %c0_67, %c0_68], %115 {strides = array<i32>} : memref<1x8x64x128xf32, #tpu.memory_space<vmem>>, vector<1x1x64x128xf32>,
    %116 = vector.extract_strided_slice %58 {offsets = [256, 0], sizes = [64, 128], strides = [1, 1]} : vector<512x128xf32> to vector<64x128xf32>
    %117 = vector.broadcast %57 : vector<1x128xf32> to vector<64x128xf32>
    %118 = arith.addf %116, %117 : vector<64x128xf32>
    %119 = vector.extract_strided_slice %60 {offsets = [192, 0], sizes = [64, 128], strides = [1, 1]} : vector<448x128xf32> to vector<64x128xf32>
    %120 = arith.addf %118, %119 : vector<64x128xf32>
    %121 = vector.extract_strided_slice %62 {offsets = [256, 0], sizes = [64, 128], strides = [1, 1]} : vector<448x128xf32> to vector<64x128xf32>
    %122 = arith.addf %120, %121 : vector<64x128xf32>
    %c0_69 = arith.constant 0 : index
    %c4 = arith.constant 4 : index
    %c0_70 = arith.constant 0 : index
    %c0_71 = arith.constant 0 : index
    %123 = vector.load %arg9[%c0_69, %c4, %c0_70, %c0_71] : memref<1x8x64x128xf32, #tpu.memory_space<vmem>>, vector<1x1x64x128xf32>
    %124 = vector.shape_cast %123 : vector<1x1x64x128xf32> to vector<64x128xf32>
    %125 = arith.addf %122, %124 : vector<64x128xf32>
    %c0_72 = arith.constant 0 : index
    %c4_73 = arith.constant 4 : index
    %c0_74 = arith.constant 0 : index
    %c0_75 = arith.constant 0 : index
    %126 = vector.load %arg10[%c0_72, %c4_73, %c0_74, %c0_75] : memref<1x8x64x128xf32, #tpu.memory_space<vmem>>, vector<1x1x64x128xf32>
    %127 = vector.shape_cast %126 : vector<1x1x64x128xf32> to vector<64x128xf32>
    %128 = vector.shape_cast %125 : vector<64x128xf32> to vector<1x1x64x128xf32>
    tpu.vector_store %arg10[%c0_72, %c4_73, %c0_74, %c0_75], %128 {strides = array<i32>} : memref<1x8x64x128xf32, #tpu.memory_space<vmem>>, vector<1x1x64x128xf32>,
    %129 = vector.extract_strided_slice %58 {offsets = [320, 0], sizes = [64, 128], strides = [1, 1]} : vector<512x128xf32> to vector<64x128xf32>
    %130 = vector.broadcast %57 : vector<1x128xf32> to vector<64x128xf32>
    %131 = arith.addf %129, %130 : vector<64x128xf32>
    %132 = vector.extract_strided_slice %60 {offsets = [256, 0], sizes = [64, 128], strides = [1, 1]} : vector<448x128xf32> to vector<64x128xf32>
    %133 = arith.addf %131, %132 : vector<64x128xf32>
    %134 = vector.extract_strided_slice %62 {offsets = [320, 0], sizes = [64, 128], strides = [1, 1]} : vector<448x128xf32> to vector<64x128xf32>
    %135 = arith.addf %133, %134 : vector<64x128xf32>
    %c0_76 = arith.constant 0 : index
    %c5 = arith.constant 5 : index
    %c0_77 = arith.constant 0 : index
    %c0_78 = arith.constant 0 : index
    %136 = vector.load %arg9[%c0_76, %c5, %c0_77, %c0_78] : memref<1x8x64x128xf32, #tpu.memory_space<vmem>>, vector<1x1x64x128xf32>
    %137 = vector.shape_cast %136 : vector<1x1x64x128xf32> to vector<64x128xf32>
    %138 = arith.addf %135, %137 : vector<64x128xf32>
    %c0_79 = arith.constant 0 : index
    %c5_80 = arith.constant 5 : index
    %c0_81 = arith.constant 0 : index
    %c0_82 = arith.constant 0 : index
    %139 = vector.load %arg10[%c0_79, %c5_80, %c0_81, %c0_82] : memref<1x8x64x128xf32, #tpu.memory_space<vmem>>, vector<1x1x64x128xf32>
    %140 = vector.shape_cast %139 : vector<1x1x64x128xf32> to vector<64x128xf32>
    %141 = vector.shape_cast %138 : vector<64x128xf32> to vector<1x1x64x128xf32>
    tpu.vector_store %arg10[%c0_79, %c5_80, %c0_81, %c0_82], %141 {strides = array<i32>} : memref<1x8x64x128xf32, #tpu.memory_space<vmem>>, vector<1x1x64x128xf32>,
    %142 = vector.extract_strided_slice %58 {offsets = [384, 0], sizes = [64, 128], strides = [1, 1]} : vector<512x128xf32> to vector<64x128xf32>
    %143 = vector.broadcast %57 : vector<1x128xf32> to vector<64x128xf32>
    %144 = arith.addf %142, %143 : vector<64x128xf32>
    %145 = vector.extract_strided_slice %60 {offsets = [320, 0], sizes = [64, 128], strides = [1, 1]} : vector<448x128xf32> to vector<64x128xf32>
    %146 = arith.addf %144, %145 : vector<64x128xf32>
    %147 = vector.extract_strided_slice %62 {offsets = [384, 0], sizes = [64, 128], strides = [1, 1]} : vector<448x128xf32> to vector<64x128xf32>
    %148 = arith.addf %146, %147 : vector<64x128xf32>
    %c0_83 = arith.constant 0 : index
    %c6 = arith.constant 6 : index
    %c0_84 = arith.constant 0 : index
    %c0_85 = arith.constant 0 : index
    %149 = vector.load %arg9[%c0_83, %c6, %c0_84, %c0_85] : memref<1x8x64x128xf32, #tpu.memory_space<vmem>>, vector<1x1x64x128xf32>
    %150 = vector.shape_cast %149 : vector<1x1x64x128xf32> to vector<64x128xf32>
    %151 = arith.addf %148, %150 : vector<64x128xf32>
    %c0_86 = arith.constant 0 : index
    %c6_87 = arith.constant 6 : index
    %c0_88 = arith.constant 0 : index
    %c0_89 = arith.constant 0 : index
    %152 = vector.load %arg10[%c0_86, %c6_87, %c0_88, %c0_89] : memref<1x8x64x128xf32, #tpu.memory_space<vmem>>, vector<1x1x64x128xf32>
    %153 = vector.shape_cast %152 : vector<1x1x64x128xf32> to vector<64x128xf32>
    %154 = vector.shape_cast %151 : vector<64x128xf32> to vector<1x1x64x128xf32>
    tpu.vector_store %arg10[%c0_86, %c6_87, %c0_88, %c0_89], %154 {strides = array<i32>} : memref<1x8x64x128xf32, #tpu.memory_space<vmem>>, vector<1x1x64x128xf32>,
    %155 = vector.extract_strided_slice %58 {offsets = [448, 0], sizes = [64, 128], strides = [1, 1]} : vector<512x128xf32> to vector<64x128xf32>
    %156 = vector.broadcast %57 : vector<1x128xf32> to vector<64x128xf32>
    %157 = arith.addf %155, %156 : vector<64x128xf32>
    %158 = vector.extract_strided_slice %60 {offsets = [384, 0], sizes = [64, 128], strides = [1, 1]} : vector<448x128xf32> to vector<64x128xf32>
    %159 = arith.addf %157, %158 : vector<64x128xf32>
    %160 = arith.addf %159, %64 : vector<64x128xf32>
    %c0_90 = arith.constant 0 : index
    %c7 = arith.constant 7 : index
    %c0_91 = arith.constant 0 : index
    %c0_92 = arith.constant 0 : index
    %161 = vector.load %arg9[%c0_90, %c7, %c0_91, %c0_92] : memref<1x8x64x128xf32, #tpu.memory_space<vmem>>, vector<1x1x64x128xf32>
    %162 = vector.shape_cast %161 : vector<1x1x64x128xf32> to vector<64x128xf32>
    %163 = arith.addf %160, %162 : vector<64x128xf32>
    %c0_93 = arith.constant 0 : index
    %c7_94 = arith.constant 7 : index
    %c0_95 = arith.constant 0 : index
    %c0_96 = arith.constant 0 : index
    %164 = vector.load %arg10[%c0_93, %c7_94, %c0_95, %c0_96] : memref<1x8x64x128xf32, #tpu.memory_space<vmem>>, vector<1x1x64x128xf32>
    %165 = vector.shape_cast %164 : vector<1x1x64x128xf32> to vector<64x128xf32>
    %166 = vector.shape_cast %163 : vector<64x128xf32> to vector<1x1x64x128xf32>
    tpu.vector_store %arg10[%c0_93, %c7_94, %c0_95, %c0_96], %166 {strides = array<i32>} : memref<1x8x64x128xf32, #tpu.memory_space<vmem>>, vector<1x1x64x128xf32>,
    return
  }
  func.func @transform_0(%arg0: i32, %arg1: i32) -> (i32, i32, i32, i32) {
    %c0_i32 = arith.constant 0 : i32
    %c0_i32_0 = arith.constant 0 : i32
    %c0_i32_1 = arith.constant 0 : i32
    return %arg0, %arg1, %c0_i32, %c0_i32_0 : i32, i32, i32, i32
  }
  func.func @transform_1(%arg0: i32, %arg1: i32) -> (i32, i32, i32, i32) {
    %c8_i32 = arith.constant 8 : i32
    %0 = arith.muli %arg1, %c8_i32 : i32
    %c1_i32 = arith.constant 1 : i32
    %1 = arith.subi %0, %c1_i32 : i32
    %c0_i32 = arith.constant 0 : i32
    %2 = arith.maxsi %1, %c0_i32 : i32
    %c0_i32_0 = arith.constant 0 : i32
    %c0_i32_1 = arith.constant 0 : i32
    %c0_i32_2 = arith.constant 0 : i32
    return %arg0, %2, %c0_i32_0, %c0_i32_1 : i32, i32, i32, i32
  }
  func.func @transform_2(%arg0: i32, %arg1: i32) -> (i32, i32, i32, i32) {
    %c8_i32 = arith.constant 8 : i32
    %0 = arith.muli %arg1, %c8_i32 : i32
    %c8_i32_0 = arith.constant 8 : i32
    %1 = arith.addi %0, %c8_i32_0 : i32
    %c7_i32 = arith.constant 7 : i32
    %2 = arith.minsi %1, %c7_i32 : i32
    %c0_i32 = arith.constant 0 : i32
    %c0_i32_1 = arith.constant 0 : i32
    %c0_i32_2 = arith.constant 0 : i32
    return %arg0, %2, %c0_i32, %c0_i32_1 : i32, i32, i32, i32
  }
  func.func @transform_3(%arg0: i32, %arg1: i32) -> (i32, i32, i32) {
    %c0_i32 = arith.constant 0 : i32
    %c0_i32_0 = arith.constant 0 : i32
    %c0_i32_1 = arith.constant 0 : i32
    return %arg0, %c0_i32, %c0_i32_0 : i32, i32, i32
  }
  func.func @transform_4(%arg0: i32, %arg1: i32) -> (i32, i32, i32) {
    %c0_i32 = arith.constant 0 : i32
    %c0_i32_0 = arith.constant 0 : i32
    %c0_i32_1 = arith.constant 0 : i32
    return %arg0, %c0_i32, %c0_i32_0 : i32, i32, i32
  }
  func.func @transform_5(%arg0: i32, %arg1: i32) -> (i32, i32, i32) {
    %c0_i32 = arith.constant 0 : i32
    %c0_i32_0 = arith.constant 0 : i32
    %c0_i32_1 = arith.constant 0 : i32
    %c0_i32_2 = arith.constant 0 : i32
    return %c0_i32, %c0_i32_0, %c0_i32_1 : i32, i32, i32
  }
  func.func @transform_6(%arg0: i32, %arg1: i32) -> (i32, i32) {
    %c0_i32 = arith.constant 0 : i32
    %c0_i32_0 = arith.constant 0 : i32
    %c0_i32_1 = arith.constant 0 : i32
    return %c0_i32, %c0_i32_0 : i32, i32
  }
  func.func @transform_7(%arg0: i32, %arg1: i32) -> (i32, i32, i32, i32) {
    %c0_i32 = arith.constant 0 : i32
    %c0_i32_0 = arith.constant 0 : i32
    %c0_i32_1 = arith.constant 0 : i32
    return %arg0, %arg1, %c0_i32, %c0_i32_0 : i32, i32, i32, i32
  }
  func.func @transform_8(%arg0: i32, %arg1: i32) -> (i32, i32, i32, i32) {
    %c0_i32 = arith.constant 0 : i32
    %c0_i32_0 = arith.constant 0 : i32
    %c0_i32_1 = arith.constant 0 : i32
    return %arg0, %arg1, %c0_i32, %c0_i32_0 : i32, i32, i32, i32
  }
}

module attributes {stable_mosaic.version = 11 : i64} {
  func.func @_apply_kernel(%arg0: i32, %arg1: i32, %arg2: memref<1x8x64x128xf32, #tpu.memory_space<vmem>>, %arg3: memref<1x1x64x128xf32, #tpu.memory_space<vmem>>, %arg4: memref<1x1x64x128xf32, #tpu.memory_space<vmem>>, %arg5: memref<1x1x128xf32, #tpu.memory_space<vmem>>, %arg6: memref<1x1x128xf32, #tpu.memory_space<vmem>>, %arg7: memref<3x128x128xf32, #tpu.memory_space<vmem>>, %arg8: memref<1x128xf32, #tpu.memory_space<vmem>>, %arg9: memref<1x8x64x128xf32, #tpu.memory_space<vmem>>, %arg10: memref<1x1x128xf32, #tpu.memory_space<vmem>>, %arg11: memref<1x1x128xf32, #tpu.memory_space<vmem>>) attributes {dimension_semantics = [#tpu.dimension_semantics<parallel>, #tpu.dimension_semantics<arbitrary>], iteration_bounds = array<i64: 2, 1>, scalar_prefetch = 0 : i64, scratch_operands = 0 : i64, tpu.core_type = #tpu.core_type<tc>, window_params = [{transform_indices = @transform_0, window_bounds = array<i64: 1, 8, 64, 128>}, {transform_indices = @transform_1, window_bounds = array<i64: 1, 1, 64, 128>}, {transform_indices = @transform_2, window_bounds = array<i64: 1, 1, 64, 128>}, {transform_indices = @transform_3, window_bounds = array<i64: 1, 1, 128>}, {transform_indices = @transform_4, window_bounds = array<i64: 1, 1, 128>}, {pipeline_mode = #tpu.pipeline_mode<synchronous>, transform_indices = @transform_5, window_bounds = array<i64: 3, 128, 128>}, {pipeline_mode = #tpu.pipeline_mode<synchronous>, transform_indices = @transform_6, window_bounds = array<i64: 1, 128>}, {transform_indices = @transform_7, window_bounds = array<i64: 1, 8, 64, 128>}, {transform_indices = @transform_8, window_bounds = array<i64: 1, 1, 128>}, {transform_indices = @transform_9, window_bounds = array<i64: 1, 1, 128>}]} {
    %c0_i32 = arith.constant 0 : i32
    %0 = arith.cmpi eq, %arg1, %c0_i32 : i32
    %1 = arith.extui %0 : i1 to i32
    %c0_i32_0 = arith.constant 0 : i32
    %2 = arith.cmpi ne, %1, %c0_i32_0 : i32
    scf.if %2 {
      %cst_95 = arith.constant 0.000000e+00 : f32
      %212 = vector.broadcast %cst_95 : f32 to vector<1x1x128xf32>
      %c0_96 = arith.constant 0 : index
      %c0_97 = arith.constant 0 : index
      %c0_98 = arith.constant 0 : index
      %213 = vector.load %arg10[%c0_96, %c0_97, %c0_98] : memref<1x1x128xf32, #tpu.memory_space<vmem>>, vector<1x1x128xf32>
      tpu.vector_store %arg10[%c0_96, %c0_97, %c0_98], %212 {strides = array<i32>} : memref<1x1x128xf32, #tpu.memory_space<vmem>>, vector<1x1x128xf32>,
      %cst_99 = arith.constant 0.000000e+00 : f32
      %214 = vector.broadcast %cst_99 : f32 to vector<1x1x128xf32>
      %c0_100 = arith.constant 0 : index
      %c0_101 = arith.constant 0 : index
      %c0_102 = arith.constant 0 : index
      %215 = vector.load %arg11[%c0_100, %c0_101, %c0_102] : memref<1x1x128xf32, #tpu.memory_space<vmem>>, vector<1x1x128xf32>
      tpu.vector_store %arg11[%c0_100, %c0_101, %c0_102], %214 {strides = array<i32>} : memref<1x1x128xf32, #tpu.memory_space<vmem>>, vector<1x1x128xf32>,
    } else {
    }
    %c0 = arith.constant 0 : index
    %c0_1 = arith.constant 0 : index
    %c0_2 = arith.constant 0 : index
    %3 = vector.load %arg5[%c0, %c0_1, %c0_2] : memref<1x1x128xf32, #tpu.memory_space<vmem>>, vector<1x1x128xf32>
    %4 = vector.shape_cast %3 : vector<1x1x128xf32> to vector<1x128xf32>
    %c0_3 = arith.constant 0 : index
    %c0_4 = arith.constant 0 : index
    %c0_5 = arith.constant 0 : index
    %5 = vector.load %arg6[%c0_3, %c0_4, %c0_5] : memref<1x1x128xf32, #tpu.memory_space<vmem>>, vector<1x1x128xf32>
    %6 = vector.shape_cast %5 : vector<1x1x128xf32> to vector<1x128xf32>
    %c0_6 = arith.constant 0 : index
    %c0_7 = arith.constant 0 : index
    %c0_8 = arith.constant 0 : index
    %c0_9 = arith.constant 0 : index
    %7 = vector.load %arg2[%c0_6, %c0_7, %c0_8, %c0_9] : memref<1x8x64x128xf32, #tpu.memory_space<vmem>>, vector<1x8x64x128xf32>
    %8 = vector.shape_cast %7 : vector<1x8x64x128xf32> to vector<8x64x128xf32>
    %9 = vector.shape_cast %4 : vector<1x128xf32> to vector<1x1x128xf32>
    %10 = vector.broadcast %9 : vector<1x1x128xf32> to vector<8x64x128xf32>
    %11 = arith.mulf %8, %10 : vector<8x64x128xf32>
    %12 = vector.shape_cast %6 : vector<1x128xf32> to vector<1x1x128xf32>
    %13 = vector.broadcast %12 : vector<1x1x128xf32> to vector<8x64x128xf32>
    %14 = arith.addf %11, %13 : vector<8x64x128xf32>
    %15 = arith.negf %14 : vector<8x64x128xf32>
    %16 = math.exp %15 : vector<8x64x128xf32>
    %cst = arith.constant 1.000000e+00 : f32
    %17 = vector.broadcast %cst : f32 to vector<8x64x128xf32>
    %18 = arith.addf %17, %16 : vector<8x64x128xf32>
    %19 = arith.divf %17, %18 : vector<8x64x128xf32>
    %20 = arith.mulf %14, %19 : vector<8x64x128xf32>
    %21 = vector.shape_cast %20 : vector<8x64x128xf32> to vector<512x128xf32>
    %c0_i32_10 = arith.constant 0 : i32
    %22 = arith.cmpi sgt, %arg1, %c0_i32_10 : i32
    %cst_11 = arith.constant 1.000000e+00 : f32
    %cst_12 = arith.constant 0.000000e+00 : f32
    %23 = arith.select %22, %cst_11, %cst_12 : f32
    %c0_i32_13 = arith.constant 0 : i32
    %24 = arith.cmpi slt, %arg1, %c0_i32_13 : i32
    %cst_14 = arith.constant 1.000000e+00 : f32
    %cst_15 = arith.constant 0.000000e+00 : f32
    %25 = arith.select %24, %cst_14, %cst_15 : f32
    %c0_16 = arith.constant 0 : index
    %c0_17 = arith.constant 0 : index
    %c0_18 = arith.constant 0 : index
    %c0_19 = arith.constant 0 : index
    %26 = vector.load %arg3[%c0_16, %c0_17, %c0_18, %c0_19] : memref<1x1x64x128xf32, #tpu.memory_space<vmem>>, vector<1x1x64x128xf32>
    %27 = vector.shape_cast %26 : vector<1x1x64x128xf32> to vector<64x128xf32>
    %28 = vector.broadcast %4 : vector<1x128xf32> to vector<64x128xf32>
    %29 = arith.mulf %27, %28 : vector<64x128xf32>
    %30 = vector.broadcast %6 : vector<1x128xf32> to vector<64x128xf32>
    %31 = arith.addf %29, %30 : vector<64x128xf32>
    %32 = arith.negf %31 : vector<64x128xf32>
    %33 = math.exp %32 : vector<64x128xf32>
    %cst_20 = arith.constant 1.000000e+00 : f32
    %34 = vector.broadcast %cst_20 : f32 to vector<64x128xf32>
    %35 = arith.addf %34, %33 : vector<64x128xf32>
    %36 = arith.divf %34, %35 : vector<64x128xf32>
    %37 = arith.mulf %31, %36 : vector<64x128xf32>
    %38 = vector.broadcast %23 : f32 to vector<64x128xf32>
    %39 = arith.mulf %37, %38 : vector<64x128xf32>
    %c0_21 = arith.constant 0 : index
    %c0_22 = arith.constant 0 : index
    %c0_23 = arith.constant 0 : index
    %c0_24 = arith.constant 0 : index
    %40 = vector.load %arg4[%c0_21, %c0_22, %c0_23, %c0_24] : memref<1x1x64x128xf32, #tpu.memory_space<vmem>>, vector<1x1x64x128xf32>
    %41 = vector.shape_cast %40 : vector<1x1x64x128xf32> to vector<64x128xf32>
    %42 = vector.broadcast %4 : vector<1x128xf32> to vector<64x128xf32>
    %43 = arith.mulf %41, %42 : vector<64x128xf32>
    %44 = vector.broadcast %6 : vector<1x128xf32> to vector<64x128xf32>
    %45 = arith.addf %43, %44 : vector<64x128xf32>
    %46 = arith.negf %45 : vector<64x128xf32>
    %47 = math.exp %46 : vector<64x128xf32>
    %cst_25 = arith.constant 1.000000e+00 : f32
    %48 = vector.broadcast %cst_25 : f32 to vector<64x128xf32>
    %49 = arith.addf %48, %47 : vector<64x128xf32>
    %50 = arith.divf %48, %49 : vector<64x128xf32>
    %51 = arith.mulf %45, %50 : vector<64x128xf32>
    %52 = vector.broadcast %25 : f32 to vector<64x128xf32>
    %53 = arith.mulf %51, %52 : vector<64x128xf32>
    %c0_26 = arith.constant 0 : index
    %c0_27 = arith.constant 0 : index
    %c0_28 = arith.constant 0 : index
    %54 = vector.load %arg7[%c0_26, %c0_27, %c0_28] : memref<3x128x128xf32, #tpu.memory_space<vmem>>, vector<1x128x128xf32>
    %55 = vector.shape_cast %54 : vector<1x128x128xf32> to vector<128x128xf32>
    %c1 = arith.constant 1 : index
    %c0_29 = arith.constant 0 : index
    %c0_30 = arith.constant 0 : index
    %56 = vector.load %arg7[%c1, %c0_29, %c0_30] : memref<3x128x128xf32, #tpu.memory_space<vmem>>, vector<1x128x128xf32>
    %57 = vector.shape_cast %56 : vector<1x128x128xf32> to vector<128x128xf32>
    %c2 = arith.constant 2 : index
    %c0_31 = arith.constant 0 : index
    %c0_32 = arith.constant 0 : index
    %58 = vector.load %arg7[%c2, %c0_31, %c0_32] : memref<3x128x128xf32, #tpu.memory_space<vmem>>, vector<1x128x128xf32>
    %59 = vector.shape_cast %58 : vector<1x128x128xf32> to vector<128x128xf32>
    %c0_33 = arith.constant 0 : index
    %c0_34 = arith.constant 0 : index
    %60 = vector.load %arg8[%c0_33, %c0_34] : memref<1x128xf32, #tpu.memory_space<vmem>>, vector<1x128xf32>
    %cst_35 = arith.constant dense<0.000000e+00> : vector<512x128xf32>
    %61 = tpu.matmul %21, %57, %cst_35 {dimension_numbers = #tpu.dot_dimension_numbers<[1], [0], [0], [1], [0, 0, 1, 1], [], []>} : vector<512x128xf32>, vector<128x128xf32>, vector<512x128xf32> -> vector<512x128xf32>
    %62 = vector.extract_strided_slice %21 {offsets = [0, 0], sizes = [448, 128], strides = [1, 1]} : vector<512x128xf32> to vector<448x128xf32>
    %cst_36 = arith.constant dense<0.000000e+00> : vector<448x128xf32>
    %63 = tpu.matmul %62, %55, %cst_36 {dimension_numbers = #tpu.dot_dimension_numbers<[1], [0], [0], [1], [0, 0, 1, 1], [], []>} : vector<448x128xf32>, vector<128x128xf32>, vector<448x128xf32> -> vector<448x128xf32>
    %64 = vector.extract_strided_slice %21 {offsets = [64, 0], sizes = [448, 128], strides = [1, 1]} : vector<512x128xf32> to vector<448x128xf32>
    %cst_37 = arith.constant dense<0.000000e+00> : vector<448x128xf32>
    %65 = tpu.matmul %64, %59, %cst_37 {dimension_numbers = #tpu.dot_dimension_numbers<[1], [0], [0], [1], [0, 0, 1, 1], [], []>} : vector<448x128xf32>, vector<128x128xf32>, vector<448x128xf32> -> vector<448x128xf32>
    %cst_38 = arith.constant dense<0.000000e+00> : vector<64x128xf32>
    %66 = tpu.matmul %39, %55, %cst_38 {dimension_numbers = #tpu.dot_dimension_numbers<[1], [0], [0], [1], [0, 0, 1, 1], [], []>} : vector<64x128xf32>, vector<128x128xf32>, vector<64x128xf32> -> vector<64x128xf32>
    %cst_39 = arith.constant dense<0.000000e+00> : vector<64x128xf32>
    %67 = tpu.matmul %53, %59, %cst_39 {dimension_numbers = #tpu.dot_dimension_numbers<[1], [0], [0], [1], [0, 0, 1, 1], [], []>} : vector<64x128xf32>, vector<128x128xf32>, vector<64x128xf32> -> vector<64x128xf32>
    %68 = vector.extract_strided_slice %61 {offsets = [0, 0], sizes = [64, 128], strides = [1, 1]} : vector<512x128xf32> to vector<64x128xf32>
    %69 = vector.broadcast %60 : vector<1x128xf32> to vector<64x128xf32>
    %70 = arith.addf %68, %69 : vector<64x128xf32>
    %71 = arith.addf %70, %66 : vector<64x128xf32>
    %72 = vector.extract_strided_slice %65 {offsets = [0, 0], sizes = [64, 128], strides = [1, 1]} : vector<448x128xf32> to vector<64x128xf32>
    %73 = arith.addf %71, %72 : vector<64x128xf32>
    %c0_40 = arith.constant 0 : index
    %c0_41 = arith.constant 0 : index
    %c0_42 = arith.constant 0 : index
    %c0_43 = arith.constant 0 : index
    %74 = vector.load %arg9[%c0_40, %c0_41, %c0_42, %c0_43] : memref<1x8x64x128xf32, #tpu.memory_space<vmem>>, vector<1x1x64x128xf32>
    %75 = vector.shape_cast %74 : vector<1x1x64x128xf32> to vector<64x128xf32>
    %76 = vector.shape_cast %73 : vector<64x128xf32> to vector<1x1x64x128xf32>
    tpu.vector_store %arg9[%c0_40, %c0_41, %c0_42, %c0_43], %76 {strides = array<i32>} : memref<1x8x64x128xf32, #tpu.memory_space<vmem>>, vector<1x1x64x128xf32>,
    %cst_44 = arith.constant dense<0.000000e+00> : vector<128xf32>
    %77 = vector.multi_reduction <add>, %73, %cst_44 [0] : vector<64x128xf32> to vector<128xf32>
    %78 = vector.shape_cast %77 : vector<128xf32> to vector<1x128xf32>
    %79 = arith.mulf %73, %73 : vector<64x128xf32>
    %cst_45 = arith.constant dense<0.000000e+00> : vector<128xf32>
    %80 = vector.multi_reduction <add>, %79, %cst_45 [0] : vector<64x128xf32> to vector<128xf32>
    %81 = vector.shape_cast %80 : vector<128xf32> to vector<1x128xf32>
    %82 = vector.extract_strided_slice %61 {offsets = [64, 0], sizes = [64, 128], strides = [1, 1]} : vector<512x128xf32> to vector<64x128xf32>
    %83 = vector.broadcast %60 : vector<1x128xf32> to vector<64x128xf32>
    %84 = arith.addf %82, %83 : vector<64x128xf32>
    %85 = vector.extract_strided_slice %63 {offsets = [0, 0], sizes = [64, 128], strides = [1, 1]} : vector<448x128xf32> to vector<64x128xf32>
    %86 = arith.addf %84, %85 : vector<64x128xf32>
    %87 = vector.extract_strided_slice %65 {offsets = [64, 0], sizes = [64, 128], strides = [1, 1]} : vector<448x128xf32> to vector<64x128xf32>
    %88 = arith.addf %86, %87 : vector<64x128xf32>
    %c0_46 = arith.constant 0 : index
    %c1_47 = arith.constant 1 : index
    %c0_48 = arith.constant 0 : index
    %c0_49 = arith.constant 0 : index
    %89 = vector.load %arg9[%c0_46, %c1_47, %c0_48, %c0_49] : memref<1x8x64x128xf32, #tpu.memory_space<vmem>>, vector<1x1x64x128xf32>
    %90 = vector.shape_cast %89 : vector<1x1x64x128xf32> to vector<64x128xf32>
    %91 = vector.shape_cast %88 : vector<64x128xf32> to vector<1x1x64x128xf32>
    tpu.vector_store %arg9[%c0_46, %c1_47, %c0_48, %c0_49], %91 {strides = array<i32>} : memref<1x8x64x128xf32, #tpu.memory_space<vmem>>, vector<1x1x64x128xf32>,
    %cst_50 = arith.constant dense<0.000000e+00> : vector<128xf32>
    %92 = vector.multi_reduction <add>, %88, %cst_50 [0] : vector<64x128xf32> to vector<128xf32>
    %93 = vector.shape_cast %92 : vector<128xf32> to vector<1x128xf32>
    %94 = arith.mulf %88, %88 : vector<64x128xf32>
    %cst_51 = arith.constant dense<0.000000e+00> : vector<128xf32>
    %95 = vector.multi_reduction <add>, %94, %cst_51 [0] : vector<64x128xf32> to vector<128xf32>
    %96 = vector.shape_cast %95 : vector<128xf32> to vector<1x128xf32>
    %97 = arith.addf %78, %93 : vector<1x128xf32>
    %98 = arith.addf %81, %96 : vector<1x128xf32>
    %99 = vector.extract_strided_slice %61 {offsets = [128, 0], sizes = [64, 128], strides = [1, 1]} : vector<512x128xf32> to vector<64x128xf32>
    %100 = vector.broadcast %60 : vector<1x128xf32> to vector<64x128xf32>
    %101 = arith.addf %99, %100 : vector<64x128xf32>
    %102 = vector.extract_strided_slice %63 {offsets = [64, 0], sizes = [64, 128], strides = [1, 1]} : vector<448x128xf32> to vector<64x128xf32>
    %103 = arith.addf %101, %102 : vector<64x128xf32>
    %104 = vector.extract_strided_slice %65 {offsets = [128, 0], sizes = [64, 128], strides = [1, 1]} : vector<448x128xf32> to vector<64x128xf32>
    %105 = arith.addf %103, %104 : vector<64x128xf32>
    %c0_52 = arith.constant 0 : index
    %c2_53 = arith.constant 2 : index
    %c0_54 = arith.constant 0 : index
    %c0_55 = arith.constant 0 : index
    %106 = vector.load %arg9[%c0_52, %c2_53, %c0_54, %c0_55] : memref<1x8x64x128xf32, #tpu.memory_space<vmem>>, vector<1x1x64x128xf32>
    %107 = vector.shape_cast %106 : vector<1x1x64x128xf32> to vector<64x128xf32>
    %108 = vector.shape_cast %105 : vector<64x128xf32> to vector<1x1x64x128xf32>
    tpu.vector_store %arg9[%c0_52, %c2_53, %c0_54, %c0_55], %108 {strides = array<i32>} : memref<1x8x64x128xf32, #tpu.memory_space<vmem>>, vector<1x1x64x128xf32>,
    %cst_56 = arith.constant dense<0.000000e+00> : vector<128xf32>
    %109 = vector.multi_reduction <add>, %105, %cst_56 [0] : vector<64x128xf32> to vector<128xf32>
    %110 = vector.shape_cast %109 : vector<128xf32> to vector<1x128xf32>
    %111 = arith.mulf %105, %105 : vector<64x128xf32>
    %cst_57 = arith.constant dense<0.000000e+00> : vector<128xf32>
    %112 = vector.multi_reduction <add>, %111, %cst_57 [0] : vector<64x128xf32> to vector<128xf32>
    %113 = vector.shape_cast %112 : vector<128xf32> to vector<1x128xf32>
    %114 = arith.addf %97, %110 : vector<1x128xf32>
    %115 = arith.addf %98, %113 : vector<1x128xf32>
    %116 = vector.extract_strided_slice %61 {offsets = [192, 0], sizes = [64, 128], strides = [1, 1]} : vector<512x128xf32> to vector<64x128xf32>
    %117 = vector.broadcast %60 : vector<1x128xf32> to vector<64x128xf32>
    %118 = arith.addf %116, %117 : vector<64x128xf32>
    %119 = vector.extract_strided_slice %63 {offsets = [128, 0], sizes = [64, 128], strides = [1, 1]} : vector<448x128xf32> to vector<64x128xf32>
    %120 = arith.addf %118, %119 : vector<64x128xf32>
    %121 = vector.extract_strided_slice %65 {offsets = [192, 0], sizes = [64, 128], strides = [1, 1]} : vector<448x128xf32> to vector<64x128xf32>
    %122 = arith.addf %120, %121 : vector<64x128xf32>
    %c0_58 = arith.constant 0 : index
    %c3 = arith.constant 3 : index
    %c0_59 = arith.constant 0 : index
    %c0_60 = arith.constant 0 : index
    %123 = vector.load %arg9[%c0_58, %c3, %c0_59, %c0_60] : memref<1x8x64x128xf32, #tpu.memory_space<vmem>>, vector<1x1x64x128xf32>
    %124 = vector.shape_cast %123 : vector<1x1x64x128xf32> to vector<64x128xf32>
    %125 = vector.shape_cast %122 : vector<64x128xf32> to vector<1x1x64x128xf32>
    tpu.vector_store %arg9[%c0_58, %c3, %c0_59, %c0_60], %125 {strides = array<i32>} : memref<1x8x64x128xf32, #tpu.memory_space<vmem>>, vector<1x1x64x128xf32>,
    %cst_61 = arith.constant dense<0.000000e+00> : vector<128xf32>
    %126 = vector.multi_reduction <add>, %122, %cst_61 [0] : vector<64x128xf32> to vector<128xf32>
    %127 = vector.shape_cast %126 : vector<128xf32> to vector<1x128xf32>
    %128 = arith.mulf %122, %122 : vector<64x128xf32>
    %cst_62 = arith.constant dense<0.000000e+00> : vector<128xf32>
    %129 = vector.multi_reduction <add>, %128, %cst_62 [0] : vector<64x128xf32> to vector<128xf32>
    %130 = vector.shape_cast %129 : vector<128xf32> to vector<1x128xf32>
    %131 = arith.addf %114, %127 : vector<1x128xf32>
    %132 = arith.addf %115, %130 : vector<1x128xf32>
    %133 = vector.extract_strided_slice %61 {offsets = [256, 0], sizes = [64, 128], strides = [1, 1]} : vector<512x128xf32> to vector<64x128xf32>
    %134 = vector.broadcast %60 : vector<1x128xf32> to vector<64x128xf32>
    %135 = arith.addf %133, %134 : vector<64x128xf32>
    %136 = vector.extract_strided_slice %63 {offsets = [192, 0], sizes = [64, 128], strides = [1, 1]} : vector<448x128xf32> to vector<64x128xf32>
    %137 = arith.addf %135, %136 : vector<64x128xf32>
    %138 = vector.extract_strided_slice %65 {offsets = [256, 0], sizes = [64, 128], strides = [1, 1]} : vector<448x128xf32> to vector<64x128xf32>
    %139 = arith.addf %137, %138 : vector<64x128xf32>
    %c0_63 = arith.constant 0 : index
    %c4 = arith.constant 4 : index
    %c0_64 = arith.constant 0 : index
    %c0_65 = arith.constant 0 : index
    %140 = vector.load %arg9[%c0_63, %c4, %c0_64, %c0_65] : memref<1x8x64x128xf32, #tpu.memory_space<vmem>>, vector<1x1x64x128xf32>
    %141 = vector.shape_cast %140 : vector<1x1x64x128xf32> to vector<64x128xf32>
    %142 = vector.shape_cast %139 : vector<64x128xf32> to vector<1x1x64x128xf32>
    tpu.vector_store %arg9[%c0_63, %c4, %c0_64, %c0_65], %142 {strides = array<i32>} : memref<1x8x64x128xf32, #tpu.memory_space<vmem>>, vector<1x1x64x128xf32>,
    %cst_66 = arith.constant dense<0.000000e+00> : vector<128xf32>
    %143 = vector.multi_reduction <add>, %139, %cst_66 [0] : vector<64x128xf32> to vector<128xf32>
    %144 = vector.shape_cast %143 : vector<128xf32> to vector<1x128xf32>
    %145 = arith.mulf %139, %139 : vector<64x128xf32>
    %cst_67 = arith.constant dense<0.000000e+00> : vector<128xf32>
    %146 = vector.multi_reduction <add>, %145, %cst_67 [0] : vector<64x128xf32> to vector<128xf32>
    %147 = vector.shape_cast %146 : vector<128xf32> to vector<1x128xf32>
    %148 = arith.addf %131, %144 : vector<1x128xf32>
    %149 = arith.addf %132, %147 : vector<1x128xf32>
    %150 = vector.extract_strided_slice %61 {offsets = [320, 0], sizes = [64, 128], strides = [1, 1]} : vector<512x128xf32> to vector<64x128xf32>
    %151 = vector.broadcast %60 : vector<1x128xf32> to vector<64x128xf32>
    %152 = arith.addf %150, %151 : vector<64x128xf32>
    %153 = vector.extract_strided_slice %63 {offsets = [256, 0], sizes = [64, 128], strides = [1, 1]} : vector<448x128xf32> to vector<64x128xf32>
    %154 = arith.addf %152, %153 : vector<64x128xf32>
    %155 = vector.extract_strided_slice %65 {offsets = [320, 0], sizes = [64, 128], strides = [1, 1]} : vector<448x128xf32> to vector<64x128xf32>
    %156 = arith.addf %154, %155 : vector<64x128xf32>
    %c0_68 = arith.constant 0 : index
    %c5 = arith.constant 5 : index
    %c0_69 = arith.constant 0 : index
    %c0_70 = arith.constant 0 : index
    %157 = vector.load %arg9[%c0_68, %c5, %c0_69, %c0_70] : memref<1x8x64x128xf32, #tpu.memory_space<vmem>>, vector<1x1x64x128xf32>
    %158 = vector.shape_cast %157 : vector<1x1x64x128xf32> to vector<64x128xf32>
    %159 = vector.shape_cast %156 : vector<64x128xf32> to vector<1x1x64x128xf32>
    tpu.vector_store %arg9[%c0_68, %c5, %c0_69, %c0_70], %159 {strides = array<i32>} : memref<1x8x64x128xf32, #tpu.memory_space<vmem>>, vector<1x1x64x128xf32>,
    %cst_71 = arith.constant dense<0.000000e+00> : vector<128xf32>
    %160 = vector.multi_reduction <add>, %156, %cst_71 [0] : vector<64x128xf32> to vector<128xf32>
    %161 = vector.shape_cast %160 : vector<128xf32> to vector<1x128xf32>
    %162 = arith.mulf %156, %156 : vector<64x128xf32>
    %cst_72 = arith.constant dense<0.000000e+00> : vector<128xf32>
    %163 = vector.multi_reduction <add>, %162, %cst_72 [0] : vector<64x128xf32> to vector<128xf32>
    %164 = vector.shape_cast %163 : vector<128xf32> to vector<1x128xf32>
    %165 = arith.addf %148, %161 : vector<1x128xf32>
    %166 = arith.addf %149, %164 : vector<1x128xf32>
    %167 = vector.extract_strided_slice %61 {offsets = [384, 0], sizes = [64, 128], strides = [1, 1]} : vector<512x128xf32> to vector<64x128xf32>
    %168 = vector.broadcast %60 : vector<1x128xf32> to vector<64x128xf32>
    %169 = arith.addf %167, %168 : vector<64x128xf32>
    %170 = vector.extract_strided_slice %63 {offsets = [320, 0], sizes = [64, 128], strides = [1, 1]} : vector<448x128xf32> to vector<64x128xf32>
    %171 = arith.addf %169, %170 : vector<64x128xf32>
    %172 = vector.extract_strided_slice %65 {offsets = [384, 0], sizes = [64, 128], strides = [1, 1]} : vector<448x128xf32> to vector<64x128xf32>
    %173 = arith.addf %171, %172 : vector<64x128xf32>
    %c0_73 = arith.constant 0 : index
    %c6 = arith.constant 6 : index
    %c0_74 = arith.constant 0 : index
    %c0_75 = arith.constant 0 : index
    %174 = vector.load %arg9[%c0_73, %c6, %c0_74, %c0_75] : memref<1x8x64x128xf32, #tpu.memory_space<vmem>>, vector<1x1x64x128xf32>
    %175 = vector.shape_cast %174 : vector<1x1x64x128xf32> to vector<64x128xf32>
    %176 = vector.shape_cast %173 : vector<64x128xf32> to vector<1x1x64x128xf32>
    tpu.vector_store %arg9[%c0_73, %c6, %c0_74, %c0_75], %176 {strides = array<i32>} : memref<1x8x64x128xf32, #tpu.memory_space<vmem>>, vector<1x1x64x128xf32>,
    %cst_76 = arith.constant dense<0.000000e+00> : vector<128xf32>
    %177 = vector.multi_reduction <add>, %173, %cst_76 [0] : vector<64x128xf32> to vector<128xf32>
    %178 = vector.shape_cast %177 : vector<128xf32> to vector<1x128xf32>
    %179 = arith.mulf %173, %173 : vector<64x128xf32>
    %cst_77 = arith.constant dense<0.000000e+00> : vector<128xf32>
    %180 = vector.multi_reduction <add>, %179, %cst_77 [0] : vector<64x128xf32> to vector<128xf32>
    %181 = vector.shape_cast %180 : vector<128xf32> to vector<1x128xf32>
    %182 = arith.addf %165, %178 : vector<1x128xf32>
    %183 = arith.addf %166, %181 : vector<1x128xf32>
    %184 = vector.extract_strided_slice %61 {offsets = [448, 0], sizes = [64, 128], strides = [1, 1]} : vector<512x128xf32> to vector<64x128xf32>
    %185 = vector.broadcast %60 : vector<1x128xf32> to vector<64x128xf32>
    %186 = arith.addf %184, %185 : vector<64x128xf32>
    %187 = vector.extract_strided_slice %63 {offsets = [384, 0], sizes = [64, 128], strides = [1, 1]} : vector<448x128xf32> to vector<64x128xf32>
    %188 = arith.addf %186, %187 : vector<64x128xf32>
    %189 = arith.addf %188, %67 : vector<64x128xf32>
    %c0_78 = arith.constant 0 : index
    %c7 = arith.constant 7 : index
    %c0_79 = arith.constant 0 : index
    %c0_80 = arith.constant 0 : index
    %190 = vector.load %arg9[%c0_78, %c7, %c0_79, %c0_80] : memref<1x8x64x128xf32, #tpu.memory_space<vmem>>, vector<1x1x64x128xf32>
    %191 = vector.shape_cast %190 : vector<1x1x64x128xf32> to vector<64x128xf32>
    %192 = vector.shape_cast %189 : vector<64x128xf32> to vector<1x1x64x128xf32>
    tpu.vector_store %arg9[%c0_78, %c7, %c0_79, %c0_80], %192 {strides = array<i32>} : memref<1x8x64x128xf32, #tpu.memory_space<vmem>>, vector<1x1x64x128xf32>,
    %cst_81 = arith.constant dense<0.000000e+00> : vector<128xf32>
    %193 = vector.multi_reduction <add>, %189, %cst_81 [0] : vector<64x128xf32> to vector<128xf32>
    %194 = vector.shape_cast %193 : vector<128xf32> to vector<1x128xf32>
    %195 = arith.mulf %189, %189 : vector<64x128xf32>
    %cst_82 = arith.constant dense<0.000000e+00> : vector<128xf32>
    %196 = vector.multi_reduction <add>, %195, %cst_82 [0] : vector<64x128xf32> to vector<128xf32>
    %197 = vector.shape_cast %196 : vector<128xf32> to vector<1x128xf32>
    %198 = arith.addf %182, %194 : vector<1x128xf32>
    %199 = arith.addf %183, %197 : vector<1x128xf32>
    %c0_83 = arith.constant 0 : index
    %c0_84 = arith.constant 0 : index
    %c0_85 = arith.constant 0 : index
    %200 = vector.load %arg10[%c0_83, %c0_84, %c0_85] : memref<1x1x128xf32, #tpu.memory_space<vmem>>, vector<1x1x128xf32>
    %201 = vector.shape_cast %200 : vector<1x1x128xf32> to vector<1x128xf32>
    %202 = arith.addf %201, %198 : vector<1x128xf32>
    %c0_86 = arith.constant 0 : index
    %c0_87 = arith.constant 0 : index
    %c0_88 = arith.constant 0 : index
    %203 = vector.load %arg10[%c0_86, %c0_87, %c0_88] : memref<1x1x128xf32, #tpu.memory_space<vmem>>, vector<1x1x128xf32>
    %204 = vector.shape_cast %203 : vector<1x1x128xf32> to vector<1x128xf32>
    %205 = vector.shape_cast %202 : vector<1x128xf32> to vector<1x1x128xf32>
    tpu.vector_store %arg10[%c0_86, %c0_87, %c0_88], %205 {strides = array<i32>} : memref<1x1x128xf32, #tpu.memory_space<vmem>>, vector<1x1x128xf32>,
    %c0_89 = arith.constant 0 : index
    %c0_90 = arith.constant 0 : index
    %c0_91 = arith.constant 0 : index
    %206 = vector.load %arg11[%c0_89, %c0_90, %c0_91] : memref<1x1x128xf32, #tpu.memory_space<vmem>>, vector<1x1x128xf32>
    %207 = vector.shape_cast %206 : vector<1x1x128xf32> to vector<1x128xf32>
    %208 = arith.addf %207, %199 : vector<1x128xf32>
    %c0_92 = arith.constant 0 : index
    %c0_93 = arith.constant 0 : index
    %c0_94 = arith.constant 0 : index
    %209 = vector.load %arg11[%c0_92, %c0_93, %c0_94] : memref<1x1x128xf32, #tpu.memory_space<vmem>>, vector<1x1x128xf32>
    %210 = vector.shape_cast %209 : vector<1x1x128xf32> to vector<1x128xf32>
    %211 = vector.shape_cast %208 : vector<1x128xf32> to vector<1x1x128xf32>
    tpu.vector_store %arg11[%c0_92, %c0_93, %c0_94], %211 {strides = array<i32>} : memref<1x1x128xf32, #tpu.memory_space<vmem>>, vector<1x1x128xf32>,
    return
  }
  func.func @transform_0(%arg0: i32, %arg1: i32) -> (i32, i32, i32, i32) {
    %c0_i32 = arith.constant 0 : i32
    %c0_i32_0 = arith.constant 0 : i32
    %c0_i32_1 = arith.constant 0 : i32
    return %arg0, %arg1, %c0_i32, %c0_i32_0 : i32, i32, i32, i32
  }
  func.func @transform_1(%arg0: i32, %arg1: i32) -> (i32, i32, i32, i32) {
    %c8_i32 = arith.constant 8 : i32
    %0 = arith.muli %arg1, %c8_i32 : i32
    %c1_i32 = arith.constant 1 : i32
    %1 = arith.subi %0, %c1_i32 : i32
    %c0_i32 = arith.constant 0 : i32
    %2 = arith.maxsi %1, %c0_i32 : i32
    %c0_i32_0 = arith.constant 0 : i32
    %c0_i32_1 = arith.constant 0 : i32
    %c0_i32_2 = arith.constant 0 : i32
    return %arg0, %2, %c0_i32_0, %c0_i32_1 : i32, i32, i32, i32
  }
  func.func @transform_2(%arg0: i32, %arg1: i32) -> (i32, i32, i32, i32) {
    %c8_i32 = arith.constant 8 : i32
    %0 = arith.muli %arg1, %c8_i32 : i32
    %c8_i32_0 = arith.constant 8 : i32
    %1 = arith.addi %0, %c8_i32_0 : i32
    %c7_i32 = arith.constant 7 : i32
    %2 = arith.minsi %1, %c7_i32 : i32
    %c0_i32 = arith.constant 0 : i32
    %c0_i32_1 = arith.constant 0 : i32
    %c0_i32_2 = arith.constant 0 : i32
    return %arg0, %2, %c0_i32, %c0_i32_1 : i32, i32, i32, i32
  }
  func.func @transform_3(%arg0: i32, %arg1: i32) -> (i32, i32, i32) {
    %c0_i32 = arith.constant 0 : i32
    %c0_i32_0 = arith.constant 0 : i32
    %c0_i32_1 = arith.constant 0 : i32
    return %arg0, %c0_i32, %c0_i32_0 : i32, i32, i32
  }
  func.func @transform_4(%arg0: i32, %arg1: i32) -> (i32, i32, i32) {
    %c0_i32 = arith.constant 0 : i32
    %c0_i32_0 = arith.constant 0 : i32
    %c0_i32_1 = arith.constant 0 : i32
    return %arg0, %c0_i32, %c0_i32_0 : i32, i32, i32
  }
  func.func @transform_5(%arg0: i32, %arg1: i32) -> (i32, i32, i32) {
    %c0_i32 = arith.constant 0 : i32
    %c0_i32_0 = arith.constant 0 : i32
    %c0_i32_1 = arith.constant 0 : i32
    %c0_i32_2 = arith.constant 0 : i32
    return %c0_i32, %c0_i32_0, %c0_i32_1 : i32, i32, i32
  }
  func.func @transform_6(%arg0: i32, %arg1: i32) -> (i32, i32) {
    %c0_i32 = arith.constant 0 : i32
    %c0_i32_0 = arith.constant 0 : i32
    %c0_i32_1 = arith.constant 0 : i32
    return %c0_i32, %c0_i32_0 : i32, i32
  }
  func.func @transform_7(%arg0: i32, %arg1: i32) -> (i32, i32, i32, i32) {
    %c0_i32 = arith.constant 0 : i32
    %c0_i32_0 = arith.constant 0 : i32
    %c0_i32_1 = arith.constant 0 : i32
    return %arg0, %arg1, %c0_i32, %c0_i32_0 : i32, i32, i32, i32
  }
  func.func @transform_8(%arg0: i32, %arg1: i32) -> (i32, i32, i32) {
    %c0_i32 = arith.constant 0 : i32
    %c0_i32_0 = arith.constant 0 : i32
    %c0_i32_1 = arith.constant 0 : i32
    return %arg0, %c0_i32, %c0_i32_0 : i32, i32, i32
  }
  func.func @transform_9(%arg0: i32, %arg1: i32) -> (i32, i32, i32) {
    %c0_i32 = arith.constant 0 : i32
    %c0_i32_0 = arith.constant 0 : i32
    %c0_i32_1 = arith.constant 0 : i32
    return %arg0, %c0_i32, %c0_i32_0 : i32, i32, i32
  }
}

</mosaic_0001>

<bundles_post_ra>
// kernel: temporal_conv_block_forward.5
= control target key start
LH: loop header
LB: loop body
LE: loop exit
PB: predicated region body
PF: predicated region fallthrough
CT: control target
= control target key end

     0   :  { %8 = vsyncpa [#allocation3], 0  ;;  %s934_s0 = inlined_call_operand.hbm [shape: f32[2,8,64,128], index: 0, kind: input, shape index: {}]   ;;  %s935_s1 = inlined_call_operand.vmem [shape: f32[2,1,128], index: 1, kind: output, shape index: {0}]   ;;  %s936_s2 = inlined_call_operand.vmem [shape: f32[2,1,128], index: 2, kind: output, shape index: {1}]  }
   0x1   :  { %10 = vsyncpa [#allocation3 + $0x1], 0  ;;  %s731_s9 = smov 0   ;;  %s733_s10 = smov 0  }
   0x2   :  { %s735_s11 = smov 0   ;;  %s737_s12 = smov 0  }
   0x3   :  { %s739_s13 = smov 0   ;;  %s741_s14 = smov 0  }
   0x4 LB: > { %s560_s15 = sadd.s32 4294967295, %s710_s14   ;;  %s28_s16 = sadd.s32 1, %s706_s13  ;;  %s710_s14 = sphi %s741_s14, %s16_s14   ;;  %s706_s13 = sphi %s739_s13, %s944_s13   ;;  %s702_s12 = sphi %s737_s12, %s943_s12   ;;  %s698_s11 = sphi %s735_s11, %s942_s11   ;;  %s694_s10 = sphi %s733_s10, %s941_s10   ;;  %s690_s9 = sphi %s731_s9, %s940_s9  }
   0x5   : > { %p30_p0 = scmp.ge.s32.totalorder %s28_s16, 2  ;;  %s37_s17 = sadd.s32 1, %s698_s11 }
   0x6   : > { %p44_p1 = scmp.ne.s32.totalorder %s698_s11, %s694_s10  ;;  %p45_p2 = scmp.eq.s32.totalorder %s710_s14, 0 }
   0x7   : > { %s946_s16 = smov (%p30_p0, %s28_s16), 0  ;;  %p50_p4 = scmp.ne.s32.totalorder %s694_s10, %s690_s9 }
   0x8   : > { %p767_p3 = por %p45_p2, %p44_p1  ;;  %s32_s19 = ssub.s32 %s706_s13, %s946_s16 }
   0x9   : > { %p51_p5 = scmp.eq.s32.totalorder %s560_s15, 0  ;;  %p35_p6 = scmp.eq.s32.totalorder %s32_s19, 0 }
   0xa   : > { %p578_p8 = scmp.lt.s32.totalorder %s710_s14, 2  ;;  %s126_s22 = sand.u32 1, %s698_s11  }
   0xb   : > { %p774_p7 = por %p51_p5, %p50_p4  ;;  %s571_s23 = sshll.u32 %s706_s13, 13 }
   0xc   : > { %s780_s21 = scalar_select %p35_p6, %s698_s11, %s37_s17  }
   0xd   : > { %s564_s24 = sshll.u32 %s126_s22, 9  ;;  %s787_s27 = scalar_lea.hbm %s934_s0, %s571_s23 }
   0xe   : > { %s130_s28 = scalar_lea.vmem [#allocation2], %s564_s24  ;;  %p791_p9 = pnand %p578_p8, %p767_p3 }
   0xf   : > { %s140_s29 = sshll.u32 %s130_s28, 4  ;;  %s797_s3 = scalar_lea.sflag [#allocation3], %s126_s22  ;;  %s795_s29 = int_to_ptr.vmem [resolvable:$true] %s140_s29 }
  0x10   : > { %s630_s4 = scalar_lea.hbm %s787_s27, 8192  ;;  %p632_p11 = pneg %p791_p9 }
  0x11   : > { %p631_p10 = scmp.ne.s32.totalorder %s787_s27, %s630_s4  ;;  %s635_s7 = scalar_lea.hbm %s934_s0, 16384 }
  0x12   : > { %p636_p0 = scmp.lt.u32.totalorder %s787_s27, %s934_s0  ;;  %p637_p1 = scmp.lt.u32.totalorder %s635_s7, %s630_s4 }
  0x13   : > { %p633_p12 = pnand %p632_p11, %p631_p10  ;;  %p639_p3 = scmp.lt.u32.totalorder %s630_s4, %s787_s27 }
  0x14   : > { %p638_p2 = por %p637_p1, %p636_p0 }
  0x15   : > { %p634_p13 = pneg %p633_p12 }
  0x16   : > { %p640_p4 = por %p639_p3, %p638_p2 }
  0x18   : > { %p641_p5 = pnand %p640_p4, %p634_p13 }
  0x1a   : > { %644 = shalt.err (!%p641_p5)
}
  0x1b   : > { %s645_s15 = scalar_lea.vmem %s795_s29, 8192  ;;  %s712_s17 = smov [#allocation2]  }
  0x1c   : > { %p646_p6 = scmp.ne.s32.totalorder %s795_s29, %s645_s15  ;;  %s650_s18 = sshll.u32 %s712_s17, 4  ;;  %s651_s18 = int_to_ptr.vmem [resolvable:$false] %s650_s18 }
  0x1d   : > { %s652_s19 = scalar_lea.vmem %s651_s18, 16384  ;;  %p653_p12 = scmp.lt.s32.totalorder %s795_s29, %s651_s18 }
  0x1e   : > { %p648_p8 = pnand %p646_p6, %p632_p11  ;;  %p654_p0 = scmp.lt.s32.totalorder %s652_s19, %s645_s15 }
  0x20   : > { %p649_p10 = pneg %p648_p8  ;;  %p655_p1 = por %p654_p0, %p653_p12 }
  0x22   : > { %p656_p2 = pnand %p655_p1, %p649_p10 }
  0x24   : > { %659 = shalt.err (!%p656_p2)
}
  0x25   : > { %s713_s22 = smov 128   ;;  %s714_s23 = smov 8  }
  0x26   : > { %577 = dma.hbm_to_vmem [thread:$0]  (!%p791_p9), %s787_s27, 8192, %s795_s29, %s797_s3, %s713_s22, %s713_s22, %s714_s23  }
  0x27   : > { %p567_p11 = scmp.ge.s32.totalorder %s710_s14, 1  ;;  %p148_p13 = scmp.lt.s32.totalorder %s710_s14, 3 }
  0x29   : > { %p149_p3 = pnand %p567_p11, %p148_p13 }
  0x2a   : > { %s154_s24 = sand.u32 (!%p149_p3), 1, %s694_s10  }
  0x2b   : > { %152 = sbr.rel (%p149_p3) target bundleno = 195 (0xc3), region = 24  ;;  %s568_s25 = sshll.u32 (!%p149_p3), %s154_s24, 9 }
  0x2c   : > { %s155_s26 = scalar_lea.sflag (!%p149_p3), [#allocation3], %s154_s24  ;;  %s828_s28 = scalar_lea.vmem (!%p149_p3), [#allocation2], %s568_s25 }
  0x32   : > { %685 = dma.done.wait (%p774_p7), %s155_s26, 8192  }
  0x33   : > { %687 = vsyncadd (%p774_p7), %s155_s26, 4294959104  ;;  %p181_p9 = scmp.lt.s32.totalorder %s702_s12, 1  ;;  %v715_v0 = vmov 0.0   ;;  %v193_v1 = vld [vmem:[%s828_s28] sm:$0xff]  ;;  %v194_v2 = vld [vmem:[%s828_s28 + $0x8] sm:$0xff] }
  0x34   : > { %v195_v3 = vld [vmem:[%s828_s28 + $0x10] sm:$0xff]  ;;  %v196_v4 = vld [vmem:[%s828_s28 + $0x18] sm:$0xff]  ;;  %v258_v5 = vadd.f32 %v194_v2, %v193_v1  ;;  %v330_v6 = vmul.f32 %v193_v1, %v193_v1  ;;  %v331_v7 = vmul.f32 %v194_v2, %v194_v2  ;;  %v197_v9 = vld [vmem:[%s828_s28 + $0x20] sm:$0xff] }
  0x35   : > { %s948_s12 = smov (!%p181_p9, %s702_s12), 1  ;;  %v332_v8 = vmul.f32 %v195_v3, %v195_v3  ;;  %v333_v11 = vmul.f32 %v196_v4, %v196_v4  ;;  %v198_v13 = vld [vmem:[%s828_s28 + $0x28] sm:$0xff]  ;;  %v334_v15 = vmul.f32 %v197_v9, %v197_v9  ;;  %v199_v17 = vld [vmem:[%s828_s28 + $0x30] sm:$0xff]  ;;  %v200_v21 = vld [vmem:[%s828_s28 + $0x38] sm:$0xff] }
  0x36   : > { %s839_s30 = scalar_lea.vmem %s935_s1, %s948_s12  ;;  %v259_v10 = vadd.f32 %v258_v5, %v195_v3  ;;  %s850_s4 = scalar_lea.vmem %s936_s2, %s948_s12  ;;  %v394_v12 = vadd.f32 %v331_v7, %v330_v6  ;;  %v335_v19 = vmul.f32 %v198_v13, %v198_v13  ;;  %v336_v23 = vmul.f32 %v199_v17, %v199_v17  ;;  %v201_v25 = vld [vmem:[%s828_s28 + $0x40] sm:$0xff]  ;;  %v202_v29 = vld [vmem:[%s828_s28 + $0x48] sm:$0xff]  ;;  %v203_v33 = vld [vmem:[%s828_s28 + $0x50] sm:$0xff] }
  0x37   : > { %191 = vst [vmem:[%s839_s30] sm:$0x1] %v715_v0  ;;  %192 = vst [vmem:[%s850_s4] sm:$0x1] %v715_v0  ;;  %v337_v27 = vmul.f32 %v200_v21, %v200_v21  ;;  %v338_v31 = vmul.f32 %v201_v25, %v201_v25  ;;  %v339_v35 = vmul.f32 %v202_v29, %v202_v29  ;;  %v204_v37 = vld [vmem:[%s828_s28 + $0x58] sm:$0xff]  ;;  %v205_v41 = vld [vmem:[%s828_s28 + $0x60] sm:$0xff] }
  0x38   : > { %v260_v14 = vadd.f32 %v259_v10, %v196_v4  ;;  %v395_v16 = vadd.f32 %v394_v12, %v332_v8  ;;  %v340_v39 = vmul.f32 %v203_v33, %v203_v33  ;;  %v341_v43 = vmul.f32 %v204_v37, %v204_v37  ;;  %v206_v45 = vld [vmem:[%s828_s28 + $0x68] sm:$0xff]  ;;  %v207_v49 = vld [vmem:[%s828_s28 + $0x70] sm:$0xff]  ;;  %v208_v53 = vld [vmem:[%s828_s28 + $0x78] sm:$0xff] }
  0x39   : > { %v342_v47 = vmul.f32 %v205_v41, %v205_v41  ;;  %v343_v51 = vmul.f32 %v206_v45, %v206_v45  ;;  %v344_v55 = vmul.f32 %v207_v49, %v207_v49  ;;  %v209_v57 = vld [vmem:[%s828_s28 + $0x80] sm:$0xff]  ;;  %v345_v59 = vmul.f32 %v208_v53, %v208_v53  ;;  %v210_v61 = vld [vmem:[%s828_s28 + $0x88] sm:$0xff]  ;;  %v211_v1 = vld [vmem:[%s828_s28 + $0x90] sm:$0xff] }
  0x3a   : > { %v261_v18 = vadd.f32 %v260_v14, %v197_v9  ;;  %v396_v20 = vadd.f32 %v395_v16, %v333_v11  ;;  %v346_v63 = vmul.f32 %v209_v57, %v209_v57  ;;  %v347_v3 = vmul.f32 %v210_v61, %v210_v61  ;;  %v212_v5 = vld [vmem:[%s828_s28 + $0x98] sm:$0xff]  ;;  %v213_v9 = vld [vmem:[%s828_s28 + $0xa0] sm:$0xff] }
  0x3b   : > { %v348_v7 = vmul.f32 %v211_v1, %v211_v1  ;;  %v349_v11 = vmul.f32 %v212_v5, %v212_v5 }
  0x3c   : > { %v262_v22 = vadd.f32 %v261_v18, %v198_v13  ;;  %v397_v24 = vadd.f32 %v396_v20, %v334_v15  ;;  %v214_v13 = vld [vmem:[%s828_s28 + $0xa8] sm:$0xff]  ;;  %v350_v15 = vmul.f32 %v213_v9, %v213_v9 }
  0x3e   : > { %v263_v26 = vadd.f32 %v262_v22, %v199_v17  ;;  %v398_v28 = vadd.f32 %v397_v24, %v335_v19  ;;  %v215_v17 = vld [vmem:[%s828_s28 + $0xb0] sm:$0xff]  ;;  %v351_v19 = vmul.f32 %v214_v13, %v214_v13 }
  0x40   : > { %v264_v30 = vadd.f32 %v263_v26, %v200_v21  ;;  %v399_v32 = vadd.f32 %v398_v28, %v336_v23  ;;  %v216_v21 = vld [vmem:[%s828_s28 + $0xb8] sm:$0xff]  ;;  %v352_v23 = vmul.f32 %v215_v17, %v215_v17 }
  0x42   : > { %v265_v34 = vadd.f32 %v264_v30, %v201_v25  ;;  %v400_v36 = vadd.f32 %v399_v32, %v337_v27  ;;  %v217_v25 = vld [vmem:[%s828_s28 + $0xc0] sm:$0xff]  ;;  %v353_v27 = vmul.f32 %v216_v21, %v216_v21 }
  0x44   : > { %v266_v38 = vadd.f32 %v265_v34, %v202_v29  ;;  %v401_v40 = vadd.f32 %v400_v36, %v338_v31  ;;  %v218_v29 = vld [vmem:[%s828_s28 + $0xc8] sm:$0xff]  ;;  %v354_v31 = vmul.f32 %v217_v25, %v217_v25 }
  0x46   : > { %v267_v42 = vadd.f32 %v266_v38, %v203_v33  ;;  %v402_v44 = vadd.f32 %v401_v40, %v339_v35  ;;  %v219_v33 = vld [vmem:[%s828_s28 + $0xd0] sm:$0xff]  ;;  %v355_v35 = vmul.f32 %v218_v29, %v218_v29 }
  0x48   : > { %v268_v46 = vadd.f32 %v267_v42, %v204_v37  ;;  %v403_v48 = vadd.f32 %v402_v44, %v340_v39  ;;  %v220_v37 = vld [vmem:[%s828_s28 + $0xd8] sm:$0xff]  ;;  %v356_v39 = vmul.f32 %v219_v33, %v219_v33 }
  0x4a   : > { %v269_v50 = vadd.f32 %v268_v46, %v205_v41  ;;  %v404_v52 = vadd.f32 %v403_v48, %v341_v43  ;;  %v221_v41 = vld [vmem:[%s828_s28 + $0xe0] sm:$0xff]  ;;  %v357_v43 = vmul.f32 %v220_v37, %v220_v37 }
  0x4c   : > { %v270_v54 = vadd.f32 %v269_v50, %v206_v45  ;;  %v405_v56 = vadd.f32 %v404_v52, %v342_v47  ;;  %v222_v45 = vld [vmem:[%s828_s28 + $0xe8] sm:$0xff]  ;;  %v358_v47 = vmul.f32 %v221_v41, %v221_v41 }
  0x4e   : > { %v271_v58 = vadd.f32 %v270_v54, %v207_v49  ;;  %v406_v60 = vadd.f32 %v405_v56, %v343_v51  ;;  %v223_v49 = vld [vmem:[%s828_s28 + $0xf0] sm:$0xff]  ;;  %v359_v51 = vmul.f32 %v222_v45, %v222_v45 }
  0x50   : > { %v272_v62 = vadd.f32 %v271_v58, %v208_v53  ;;  %v407_v0 = vadd.f32 %v406_v60, %v344_v55  ;;  %v224_v53 = vld [vmem:[%s828_s28 + $0xf8] sm:$0xff]  ;;  %v360_v55 = vmul.f32 %v223_v49, %v223_v49 }
  0x52   : > { %v273_v2 = vadd.f32 %v272_v62, %v209_v57  ;;  %v408_v4 = vadd.f32 %v407_v0, %v345_v59  ;;  %v225_v57 = vld [vmem:[%s828_s28 + $0x100] sm:$0xff]  ;;  %v361_v59 = vmul.f32 %v224_v53, %v224_v53 }
  0x54   : > { %v274_v6 = vadd.f32 %v273_v2, %v210_v61  ;;  %v409_v8 = vadd.f32 %v408_v4, %v346_v63  ;;  %v226_v61 = vld [vmem:[%s828_s28 + $0x108] sm:$0xff]  ;;  %v362_v63 = vmul.f32 %v225_v57, %v225_v57 }
  0x56   : > { %v275_v10 = vadd.f32 %v274_v6, %v211_v1  ;;  %v410_v12 = vadd.f32 %v409_v8, %v347_v3  ;;  %v227_v1 = vld [vmem:[%s828_s28 + $0x110] sm:$0xff]  ;;  %v363_v3 = vmul.f32 %v226_v61, %v226_v61 }
  0x58   : > { %v276_v14 = vadd.f32 %v275_v10, %v212_v5  ;;  %v411_v16 = vadd.f32 %v410_v12, %v348_v7  ;;  %v228_v5 = vld [vmem:[%s828_s28 + $0x118] sm:$0xff]  ;;  %v364_v7 = vmul.f32 %v227_v1, %v227_v1 }
  0x5a   : > { %v277_v18 = vadd.f32 %v276_v14, %v213_v9  ;;  %v412_v20 = vadd.f32 %v411_v16, %v349_v11  ;;  %v229_v9 = vld [vmem:[%s828_s28 + $0x120] sm:$0xff]  ;;  %v365_v11 = vmul.f32 %v228_v5, %v228_v5 }
  0x5c   : > { %v278_v22 = vadd.f32 %v277_v18, %v214_v13  ;;  %v413_v24 = vadd.f32 %v412_v20, %v350_v15  ;;  %v230_v13 = vld [vmem:[%s828_s28 + $0x128] sm:$0xff]  ;;  %v366_v15 = vmul.f32 %v229_v9, %v229_v9 }
  0x5e   : > { %v279_v26 = vadd.f32 %v278_v22, %v215_v17  ;;  %v414_v28 = vadd.f32 %v413_v24, %v351_v19  ;;  %v231_v17 = vld [vmem:[%s828_s28 + $0x130] sm:$0xff]  ;;  %v367_v19 = vmul.f32 %v230_v13, %v230_v13 }
  0x60   : > { %v280_v30 = vadd.f32 %v279_v26, %v216_v21  ;;  %v415_v32 = vadd.f32 %v414_v28, %v352_v23  ;;  %v232_v21 = vld [vmem:[%s828_s28 + $0x138] sm:$0xff]  ;;  %v368_v23 = vmul.f32 %v231_v17, %v231_v17 }
  0x62   : > { %v281_v34 = vadd.f32 %v280_v30, %v217_v25  ;;  %v416_v36 = vadd.f32 %v415_v32, %v353_v27  ;;  %v233_v25 = vld [vmem:[%s828_s28 + $0x140] sm:$0xff]  ;;  %v369_v27 = vmul.f32 %v232_v21, %v232_v21 }
  0x64   : > { %v282_v38 = vadd.f32 %v281_v34, %v218_v29  ;;  %v417_v40 = vadd.f32 %v416_v36, %v354_v31  ;;  %v234_v29 = vld [vmem:[%s828_s28 + $0x148] sm:$0xff]  ;;  %v370_v31 = vmul.f32 %v233_v25, %v233_v25 }
  0x66   : > { %v283_v42 = vadd.f32 %v282_v38, %v219_v33  ;;  %v418_v44 = vadd.f32 %v417_v40, %v355_v35  ;;  %v235_v33 = vld [vmem:[%s828_s28 + $0x150] sm:$0xff]  ;;  %v371_v35 = vmul.f32 %v234_v29, %v234_v29 }
  0x68   : > { %v284_v46 = vadd.f32 %v283_v42, %v220_v37  ;;  %v419_v48 = vadd.f32 %v418_v44, %v356_v39  ;;  %v236_v37 = vld [vmem:[%s828_s28 + $0x158] sm:$0xff]  ;;  %v372_v39 = vmul.f32 %v235_v33, %v235_v33 }
  0x6a   : > { %v285_v50 = vadd.f32 %v284_v46, %v221_v41  ;;  %v420_v52 = vadd.f32 %v419_v48, %v357_v43  ;;  %v237_v41 = vld [vmem:[%s828_s28 + $0x160] sm:$0xff]  ;;  %v373_v43 = vmul.f32 %v236_v37, %v236_v37 }
  0x6c   : > { %v286_v54 = vadd.f32 %v285_v50, %v222_v45  ;;  %v421_v56 = vadd.f32 %v420_v52, %v358_v47  ;;  %v238_v45 = vld [vmem:[%s828_s28 + $0x168] sm:$0xff]  ;;  %v374_v47 = vmul.f32 %v237_v41, %v237_v41 }
  0x6e   : > { %v287_v58 = vadd.f32 %v286_v54, %v223_v49  ;;  %v422_v60 = vadd.f32 %v421_v56, %v359_v51  ;;  %v239_v49 = vld [vmem:[%s828_s28 + $0x170] sm:$0xff]  ;;  %v375_v51 = vmul.f32 %v238_v45, %v238_v45 }
  0x70   : > { %v288_v62 = vadd.f32 %v287_v58, %v224_v53  ;;  %v423_v0 = vadd.f32 %v422_v60, %v360_v55  ;;  %v240_v53 = vld [vmem:[%s828_s28 + $0x178] sm:$0xff]  ;;  %v376_v55 = vmul.f32 %v239_v49, %v239_v49 }
  0x72   : > { %v289_v2 = vadd.f32 %v288_v62, %v225_v57  ;;  %v424_v4 = vadd.f32 %v423_v0, %v361_v59  ;;  %v241_v57 = vld [vmem:[%s828_s28 + $0x180] sm:$0xff]  ;;  %v377_v59 = vmul.f32 %v240_v53, %v240_v53 }
  0x74   : > { %v290_v6 = vadd.f32 %v289_v2, %v226_v61  ;;  %v425_v8 = vadd.f32 %v424_v4, %v362_v63  ;;  %v242_v61 = vld [vmem:[%s828_s28 + $0x188] sm:$0xff]  ;;  %v378_v63 = vmul.f32 %v241_v57, %v241_v57 }
  0x76   : > { %v291_v10 = vadd.f32 %v290_v6, %v227_v1  ;;  %v426_v12 = vadd.f32 %v425_v8, %v363_v3  ;;  %v243_v1 = vld [vmem:[%s828_s28 + $0x190] sm:$0xff]  ;;  %v379_v3 = vmul.f32 %v242_v61, %v242_v61 }
  0x78   : > { %v292_v14 = vadd.f32 %v291_v10, %v228_v5  ;;  %v427_v16 = vadd.f32 %v426_v12, %v364_v7  ;;  %v244_v5 = vld [vmem:[%s828_s28 + $0x198] sm:$0xff]  ;;  %v380_v7 = vmul.f32 %v243_v1, %v243_v1 }
  0x7a   : > { %v293_v18 = vadd.f32 %v292_v14, %v229_v9  ;;  %v428_v20 = vadd.f32 %v427_v16, %v365_v11  ;;  %v245_v9 = vld [vmem:[%s828_s28 + $0x1a0] sm:$0xff]  ;;  %v381_v11 = vmul.f32 %v244_v5, %v244_v5 }
  0x7c   : > { %v294_v22 = vadd.f32 %v293_v18, %v230_v13  ;;  %v429_v24 = vadd.f32 %v428_v20, %v366_v15  ;;  %v246_v13 = vld [vmem:[%s828_s28 + $0x1a8] sm:$0xff]  ;;  %v382_v15 = vmul.f32 %v245_v9, %v245_v9 }
  0x7e   : > { %v295_v26 = vadd.f32 %v294_v22, %v231_v17  ;;  %v430_v28 = vadd.f32 %v429_v24, %v367_v19  ;;  %v247_v17 = vld [vmem:[%s828_s28 + $0x1b0] sm:$0xff]  ;;  %v383_v19 = vmul.f32 %v246_v13, %v246_v13 }
  0x80   : > { %v296_v30 = vadd.f32 %v295_v26, %v232_v21  ;;  %v431_v32 = vadd.f32 %v430_v28, %v368_v23  ;;  %v248_v21 = vld [vmem:[%s828_s28 + $0x1b8] sm:$0xff]  ;;  %v384_v23 = vmul.f32 %v247_v17, %v247_v17 }
  0x82   : > { %v297_v34 = vadd.f32 %v296_v30, %v233_v25  ;;  %v432_v36 = vadd.f32 %v431_v32, %v369_v27  ;;  %v249_v25 = vld [vmem:[%s828_s28 + $0x1c0] sm:$0xff]  ;;  %v385_v27 = vmul.f32 %v248_v21, %v248_v21 }
  0x84   : > { %v298_v38 = vadd.f32 %v297_v34, %v234_v29  ;;  %v433_v40 = vadd.f32 %v432_v36, %v370_v31  ;;  %v250_v29 = vld [vmem:[%s828_s28 + $0x1c8] sm:$0xff]  ;;  %v386_v31 = vmul.f32 %v249_v25, %v249_v25 }
  0x86   : > { %v299_v42 = vadd.f32 %v298_v38, %v235_v33  ;;  %v434_v44 = vadd.f32 %v433_v40, %v371_v35  ;;  %v251_v33 = vld [vmem:[%s828_s28 + $0x1d0] sm:$0xff]  ;;  %v387_v35 = vmul.f32 %v250_v29, %v250_v29 }
  0x88   : > { %v300_v46 = vadd.f32 %v299_v42, %v236_v37  ;;  %v435_v48 = vadd.f32 %v434_v44, %v372_v39  ;;  %v252_v37 = vld [vmem:[%s828_s28 + $0x1d8] sm:$0xff]  ;;  %v388_v39 = vmul.f32 %v251_v33, %v251_v33 }
  0x8a   : > { %v301_v50 = vadd.f32 %v300_v46, %v237_v41  ;;  %v436_v52 = vadd.f32 %v435_v48, %v373_v43  ;;  %v253_v41 = vld [vmem:[%s828_s28 + $0x1e0] sm:$0xff]  ;;  %v389_v43 = vmul.f32 %v252_v37, %v252_v37 }
  0x8c   : > { %v302_v54 = vadd.f32 %v301_v50, %v238_v45  ;;  %v437_v56 = vadd.f32 %v436_v52, %v374_v47  ;;  %v254_v45 = vld [vmem:[%s828_s28 + $0x1e8] sm:$0xff]  ;;  %v390_v47 = vmul.f32 %v253_v41, %v253_v41 }
  0x8e   : > { %v303_v58 = vadd.f32 %v302_v54, %v239_v49  ;;  %v438_v60 = vadd.f32 %v437_v56, %v375_v51  ;;  %v255_v49 = vld [vmem:[%s828_s28 + $0x1f0] sm:$0xff]  ;;  %v391_v51 = vmul.f32 %v254_v45, %v254_v45 }
  0x90   : > { %v304_v62 = vadd.f32 %v303_v58, %v240_v53  ;;  %v439_v0 = vadd.f32 %v438_v60, %v376_v55  ;;  %v256_v53 = vld [vmem:[%s828_s28 + $0x1f8] sm:$0xff]  ;;  %v392_v55 = vmul.f32 %v255_v49, %v255_v49 }
  0x91   : > { %v393_v58 = vmul.f32 %v256_v53, %v256_v53 }
  0x92   : > { %v305_v2 = vadd.f32 %v304_v62, %v241_v57  ;;  %v440_v4 = vadd.f32 %v439_v0, %v377_v59 }
  0x94   : > { %v306_v6 = vadd.f32 %v305_v2, %v242_v61  ;;  %v441_v8 = vadd.f32 %v440_v4, %v378_v63 }
  0x96   : > { %v307_v10 = vadd.f32 %v306_v6, %v243_v1  ;;  %v442_v12 = vadd.f32 %v441_v8, %v379_v3 }
  0x98   : > { %v308_v14 = vadd.f32 %v307_v10, %v244_v5  ;;  %v443_v16 = vadd.f32 %v442_v12, %v380_v7  ;;  %v257_v7 = vld [vmem:[%s839_s30] sm:$0x1] }
  0x99   : > { %v329_v12 = vld [vmem:[%s850_s4] sm:$0x1] }
  0x9a   : > { %v309_v18 = vadd.f32 %v308_v14, %v245_v9  ;;  %v444_v20 = vadd.f32 %v443_v16, %v381_v11 }
  0x9c   : > { %v310_v22 = vadd.f32 %v309_v18, %v246_v13  ;;  %v445_v24 = vadd.f32 %v444_v20, %v382_v15 }
  0x9e   : > { %v311_v26 = vadd.f32 %v310_v22, %v247_v17  ;;  %v446_v28 = vadd.f32 %v445_v24, %v383_v19 }
  0xa0   : > { %v312_v30 = vadd.f32 %v311_v26, %v248_v21  ;;  %v447_v32 = vadd.f32 %v446_v28, %v384_v23 }
  0xa2   : > { %v313_v34 = vadd.f32 %v312_v30, %v249_v25  ;;  %v448_v36 = vadd.f32 %v447_v32, %v385_v27 }
  0xa4   : > { %v314_v38 = vadd.f32 %v313_v34, %v250_v29  ;;  %v449_v40 = vadd.f32 %v448_v36, %v386_v31 }
  0xa6   : > { %v315_v42 = vadd.f32 %v314_v38, %v251_v33  ;;  %v450_v44 = vadd.f32 %v449_v40, %v387_v35 }
  0xa8   : > { %v316_v46 = vadd.f32 %v315_v42, %v252_v37  ;;  %v451_v48 = vadd.f32 %v450_v44, %v388_v39 }
  0xaa   : > { %v317_v50 = vadd.f32 %v316_v46, %v253_v41  ;;  %v452_v52 = vadd.f32 %v451_v48, %v389_v43 }
  0xac   : > { %v318_v54 = vadd.f32 %v317_v50, %v254_v45  ;;  %v453_v56 = vadd.f32 %v452_v52, %v390_v47 }
  0xae   : > { %v319_v57 = vadd.f32 %v318_v54, %v255_v49  ;;  %v454_v59 = vadd.f32 %v453_v56, %v391_v51 }
  0xb0   : > { %v320_v60 = vadd.f32 %v319_v57, %v256_v53  ;;  %v455_v61 = vadd.f32 %v454_v59, %v392_v55 }
  0xb2   : > { %v321_v62 = vrot.slane %v320_v60, 4  ;;  %v456_v63 = vadd.f32 %v455_v61, %v393_v58 }
  0xb4   : > { %v322_v0 = vadd.f32 %v321_v62, %v320_v60  ;;  %v457_v1 = vrot.slane %v456_v63, 4 }
  0xb6   : > { %v323_v2 = vrot.slane %v322_v0, 2  ;;  %v458_v3 = vadd.f32 %v457_v1, %v456_v63 }
  0xb8   : > { %v324_v4 = vadd.f32 %v323_v2, %v322_v0  ;;  %v459_v5 = vrot.slane %v458_v3, 2 }
  0xba   : > { %v325_v6 = vrot.slane %v324_v4, 1  ;;  %v460_v8 = vadd.f32 %v459_v5, %v458_v3 }
  0xbc   : > { %v326_v9 = vadd.f32 %v325_v6, %v324_v4  ;;  %v461_v10 = vrot.slane %v460_v8, 1 }
  0xbe   : > { %v327_v11 = vadd.f32 %v326_v9, %v257_v7  ;;  %v462_v13 = vadd.f32 %v461_v10, %v460_v8 }
  0xc0   : > { %328 = vst [vmem:[%s839_s30] sm:$0x1] %v327_v11  ;;  %v463_v14 = vadd.f32 %v462_v13, %v329_v12 }
  0xc2   : > { %464 = vst [vmem:[%s850_s4] sm:$0x1] %v463_v14 }
  0xc3 PF: > { %s16_s14 = sadd.s32 1, %s710_s14   ;;  %s940_s9 = smov %s694_s10 }
  0xc4   : > { %p13_p7 = scmp.ge.s32.totalorder %s16_s14, 4   ;;  %s941_s10 = smov %s698_s11 }
  0xc5   : > { %s942_s11 = smov %s780_s21  ;;  %s943_s12 = smov %s706_s13 }
  0xc6   : > { %s944_s13 = smov %s946_s16  ;;  %15 = sbr.rel (!%p13_p7) target bundleno = 4 (0x4), region = 80 }
  0xcd   :  { %494 = vsyncpa [#allocation3], 1 }
  0xce   :  { %496 = vsyncpa [#allocation3 + $0x1], 1 }

// kernel: temporal_conv_block_forward.9
= control target key start
LH: loop header
LB: loop body
LE: loop exit
PB: predicated region body
PF: predicated region fallthrough
CT: control target
= control target key end

     0   :  { %13 = vsyncpa [#allocation3], 0  ;;  %s6727_s0 = inlined_call_operand.vmem [shape: f32[2,8,64,128], index: 0, kind: input, shape index: {}, may-alias: {0,1,2}]   ;;  %s6728_s1 = inlined_call_operand.vmem [shape: f32[2,8,64,128], index: 1, kind: input, shape index: {}, may-alias: {0,1,2}]   ;;  %s6729_s2 = inlined_call_operand.vmem [shape: f32[2,8,64,128], index: 2, kind: input, shape index: {}, may-alias: {0,1,2}]   ;;  %s6730_s3 = inlined_call_operand.vmem [shape: f32[2,1,128], index: 3, kind: input, shape index: {}]   ;;  %s6731_s4 = inlined_call_operand.vmem [shape: f32[2,1,128], index: 4, kind: input, shape index: {}]   ;;  %s6732_s5 = inlined_call_operand.vmem [shape: f32[3,128,128], index: 5, kind: input, shape index: {}]   ;;  %s6733_s6 = inlined_call_operand.vmem [shape: f32[1,128], index: 6, kind: input, shape index: {}]   ;;  %s6734_s7 = inlined_call_operand.vmem [shape: f32[2,8,64,128], index: 7, kind: input, shape index: {}]   ;;  %s6735_s8 = inlined_call_operand.hbm [shape: f32[2,8,64,128], index: 8, kind: output, shape index: {}]  }
   0x1   :  { %15 = vsyncpa [#allocation3 + $0x1], 0  ;;  %s5134_s27 = smov 0   ;;  %s5136_s28 = smov 0  }
   0x2   :  { %s5138_s29 = smov 0   ;;  %s5140_s30 = smov 0  }
   0x3   :  { %s5142_s9 = smov 0   ;;  %s5144_s10 = smov 0  }
   0x4 LB: > { %6757 = sst [smem:[#allocation5_spill]] %s5080_s9  ;;  %s3285_s11 = sadd.s32 4294967295, %s5084_s10   ;;  %s5084_s10 = sphi %s5144_s10, %s21_s10   ;;  %s5080_s9 = sphi %s5142_s9, %s6784_s9   ;;  %s5076_s30 = sphi %s5140_s30, %s6783_s30   ;;  %s5072_s29 = sphi %s5138_s29, %s6787_s29   ;;  %s5068_s28 = sphi %s5136_s28, %s6786_s28   ;;  %s5064_s27 = sphi %s5134_s27, %s6785_s27  }
   0x5   : > { %s3286_s12 = sadd.s32 4294967294, %s5084_s10   ;;  %s33_s13 = sadd.s32 1, %s5080_s9 }
   0x6   : > { %s264_s14 = sadd.s32 1, %s5072_s29  ;;  %p35_p0 = scmp.ge.s32.totalorder %s33_s13, 2 }
   0x7   : > { %p274_p1 = scmp.ne.s32.totalorder %s5072_s29, %s5068_s28  ;;  %p275_p2 = scmp.eq.s32.totalorder %s3285_s11, 1 }
   0x8   : > { %p280_p3 = scmp.ne.s32.totalorder %s5068_s28, %s5064_s27  ;;  %s6789_s13 = smov (%p35_p0, %s33_s13), 0 }
   0x9   : > { %6758 = sst [smem:[#allocation6_spill]] %s6789_s13  ;;  %p5174_p4 = por %p275_p2, %p274_p1 }
   0xa   : > { %p281_p5 = scmp.eq.s32.totalorder %s3286_s12, 1  ;;  %s259_s16 = ssub.s32 %s5080_s9, %s6789_s13 }
   0xb   : > { %p3289_p6 = scmp.ge.s32.totalorder %s5084_s10, 1  ;;  %p262_p7 = scmp.eq.s32.totalorder %s259_s16, 0 }
   0xc   : > { %p5181_p8 = por %p281_p5, %p280_p3  ;;  %p385_p9 = scmp.lt.s32.totalorder %s5084_s10, 3 }
   0xd   : > { %s5187_s18 = scalar_select %p262_p7, %s5072_s29, %s264_s14  }
   0xe   : > { %p386_p10 = pnand %p3289_p6, %p385_p9 }
  0x10   : > { %389 = sbr.rel (%p386_p10) target bundleno = 497 (0x1f1), region = 52 }
  0x17   : > { %v3381_v0 = vld [vmem:[%s6732_s5 + $0x80] sm:$0xff]  ;;  %v3382_v1 = vld [vmem:[%s6732_s5 + $0x88] sm:$0xff]  ;;  %p467_p11 = scmp.lt.s32.totalorder %s5076_s30, 1  ;;  %v3383_v5 = vld [vmem:[%s6732_s5 + $0x90] sm:$0xff]  ;;  %s5086_s24 = smov [#allocation2]  }
  0x18   : > { %v1365_v2 = vld [vmem:[%s6732_s5] sm:$0xff]  ;;  %v4258_v3 = vpack.c.bf16 %v3382_v1, %v3381_v0  ;;  %v1366_v4 = vld [vmem:[%s6732_s5 + $0x8] sm:$0xff]  ;;  %v3384_v6 = vld [vmem:[%s6732_s5 + $0x98] sm:$0xff]  ;;  %s5010_s11 = sshll.u32 %s5086_s24, 4  ;;  %s5011_s11 = int_to_ptr.vmem [resolvable:$false] %s5010_s11 }
  0x19   : > { %v5208_v7 = vpack.c.bf16 %v1366_v4, %v1365_v2  ;;  %v4262_v8 = vpack.c.bf16 %v3384_v6, %v3383_v5  ;;  %v1367_v9 = vld [vmem:[%s6732_s5 + $0x10] sm:$0xff]  ;;  %v1368_v10 = vld [vmem:[%s6732_s5 + $0x18] sm:$0xff]  ;;  %v3385_v11 = vld [vmem:[%s6732_s5 + $0xa0] sm:$0xff]  ;;  %s468_s25 = scalar_select %p467_p11, %s5076_s30, 1 }
  0x1a   : > { %4259 = vmatprep.subr.bf16.mxu1 %v4258_v3  ;;  %v5220_v12 = vpack.c.bf16 %v1368_v10, %v1367_v9  ;;  %v3386_v13 = vld [vmem:[%s6732_s5 + $0xa8] sm:$0xff]  ;;  %v1369_v14 = vld [vmem:[%s6732_s5 + $0x20] sm:$0xff]  ;;  %v3387_v18 = vld [vmem:[%s6732_s5 + $0xb0] sm:$0xff] }
  0x1b   : > { %v1370_v15 = vld [vmem:[%s6732_s5 + $0x28] sm:$0xff]  ;;  %4261 = vmatpush3.bf16.msra.mxu1 %v4258_v3  ;;  %4291 = vmatprep.subr.bf16.mxu0 %v5208_v7  ;;  %v4266_v16 = vpack.c.bf16 %v3386_v13, %v3385_v11  ;;  %s5233_s20 = sshll.u32 %s468_s25, 9  ;;  %v3388_v19 = vld [vmem:[%s6732_s5 + $0xb8] sm:$0xff]  ;;  %v1371_v20 = vld [vmem:[%s6732_s5 + $0x30] sm:$0xff]  ;;  %s5253_s13 = scalar_lea.vmem %s6730_s3, %s468_s25 }
  0x1c   : > { %4293 = vmatpush3.bf16.msra.mxu0 %v5208_v7  ;;  %4263 = vmatprep.subr.bf16.mxu1 %v4262_v8  ;;  %v5236_v17 = vpack.c.bf16 %v1370_v15, %v1369_v14  ;;  %v1372_v21 = vld [vmem:[%s6732_s5 + $0x38] sm:$0xff]  ;;  %s5259_s23 = scalar_lea.vmem %s6727_s0, %s5233_s20  ;;  %s5264_s26 = scalar_lea.vmem %s6731_s4, %s468_s25  ;;  %v4270_v22 = vpack.c.bf16 %v3388_v19, %v3387_v18  ;;  %v3389_v23 = vld [vmem:[%s6732_s5 + $0xc0] sm:$0xff]  ;;  %v3390_v24 = vld [vmem:[%s6732_s5 + $0xc8] sm:$0xff] }
  0x1d   : > { %4295 = vmatprep.subr.bf16.mxu0 %v5220_v12  ;;  %v5274_v25 = vpack.c.bf16 %v1372_v21, %v1371_v20  ;;  %v1373_v26 = vld [vmem:[%s6732_s5 + $0x40] sm:$0xff]  ;;  %v1374_v27 = vld [vmem:[%s6732_s5 + $0x48] sm:$0xff]  ;;  %v3391_v32 = vld [vmem:[%s6732_s5 + $0xd0] sm:$0xff]  ;;  %v4274_v37 = vpack.c.bf16 %v3390_v24, %v3389_v23  ;;  %s6091_s9 = scalar_lea.vmem %s6728_s1, %s5233_s20  ;;  %s3534_s25 = sadd.s32 448, %s5233_s20 }
  0x1e   : > { %v5283_v28 = vld [vmem:[%s5253_s13] ss:$0 sm:$0xff]  ;;  %v532_v31 = vld [vmem:[%s5259_s23 + $0x8] sm:$0xff]  ;;  %v3392_v33 = vld [vmem:[%s6732_s5 + $0xd8] sm:$0xff]  ;;  %v5300_v38 = vpack.c.bf16 %v1374_v27, %v1373_v26  ;;  %s6169_s22 = scalar_lea.vmem %s6729_s2, %s3534_s25  ;;  %s6389_s12 = scalar_lea.vmem %s6734_s7, %s5233_s20 }
  0x1f   : > { %4265 = vmatpush3.bf16.msra.mxu1 %v4262_v8  ;;  %v5286_v29 = vld [vmem:[%s5264_s26] ss:$0 sm:$0xff]  ;;  %v602_v35 = vmul.f32 %v5283_v28, %v532_v31  ;;  %v533_v36 = vld [vmem:[%s5259_s23 + $0x10] sm:$0xff]  ;;  %v534_v40 = vld [vmem:[%s5259_s23 + $0x18] sm:$0xff]  ;;  %v4278_v48 = vpack.c.bf16 %v3392_v33, %v3391_v32 }
  0x20   : > { %4297 = vmatpush3.bf16.msra.mxu0 %v5220_v12  ;;  %4267 = vmatprep.subr.bf16.mxu1 %v4266_v16  ;;  %v531_v30 = vld [vmem:[%s5259_s23] sm:$0xff]  ;;  %v603_v39 = vmul.f32 %v5283_v28, %v533_v36  ;;  %v604_v44 = vmul.f32 %v5283_v28, %v534_v40  ;;  %v536_v46 = vld [vmem:[%s5259_s23 + $0x28] sm:$0xff]  ;;  %v537_v47 = vld [vmem:[%s5259_s23 + $0x30] sm:$0xff] }
  0x21   : > { %4299 = vmatprep.subr.bf16.mxu0 %v5236_v17  ;;  %v601_v34 = vmul.f32 %v5283_v28, %v531_v30  ;;  %v535_v41 = vld [vmem:[%s5259_s23 + $0x20] sm:$0xff]  ;;  %v5310_v43 = vadd.f32 %v5286_v29, %v602_v35  ;;  %v1375_v49 = vld [vmem:[%s6732_s5 + $0x50] sm:$0xff]  ;;  %v1376_v50 = vld [vmem:[%s6732_s5 + $0x58] sm:$0xff]  ;;  %v606_v52 = vmul.f32 %v5283_v28, %v536_v46  ;;  %v607_v53 = vmul.f32 %v5283_v28, %v537_v47 }
  0x22   : > { %v605_v45 = vmul.f32 %v5283_v28, %v535_v41  ;;  %v5323_v51 = vadd.f32 %v5286_v29, %v603_v39  ;;  %v538_v54 = vld [vmem:[%s5259_s23 + $0x38] sm:$0xff]  ;;  %v3393_v55 = vld [vmem:[%s6732_s5 + $0xe0] sm:$0xff]  ;;  %v3394_v56 = vld [vmem:[%s6732_s5 + $0xe8] sm:$0xff]  ;;  %v5337_v59 = vadd.f32 %v5286_v29, %v604_v44  ;;  %v5354_v3 = vpack.c.bf16 %v1376_v50, %v1375_v49 }
  0x23   : > { %4269 = vmatpush3.bf16.msra.mxu1 %v4266_v16  ;;  %v5307_v42 = vadd.f32 %v5286_v29, %v601_v34  ;;  %v3302_v58 = vmul.f32 -1.442695, %v5310_v43  ;;  %v5345_v62 = vadd.f32 %v5286_v29, %v606_v52  ;;  %v5348_v63 = vadd.f32 %v5286_v29, %v607_v53  ;;  %v539_v1 = vld [vmem:[%s5259_s23 + $0x40] sm:$0xff]  ;;  %v540_v2 = vld [vmem:[%s5259_s23 + $0x48] sm:$0xff]  ;;  %v541_v6 = vld [vmem:[%s5259_s23 + $0x50] sm:$0xff] }
  0x24   : > { %4301 = vmatpush3.bf16.msra.mxu0 %v5236_v17  ;;  %4271 = vmatprep.subr.bf16.mxu1 %v4270_v22  ;;  %v5340_v60 = vadd.f32 %v5286_v29, %v605_v45  ;;  %v3303_v61 = vmul.f32 -1.442695, %v5323_v51  ;;  %v608_v0 = vmul.f32 %v5283_v28, %v538_v54  ;;  %v3304_v4 = vmul.f32 -1.442695, %v5337_v59  ;;  %v542_v8 = vld [vmem:[%s5259_s23 + $0x58] sm:$0xff]  ;;  %v1377_v10 = vld [vmem:[%s6732_s5 + $0x60] sm:$0xff] }
  0x25   : > { %4303 = vmatprep.subr.bf16.mxu0 %v5274_v25  ;;  %v3301_v57 = vmul.f32 -1.442695, %v5307_v42  ;;  %v4282_v9 = vpack.c.bf16 %v3394_v56, %v3393_v55  ;;  %v1378_v11 = vld [vmem:[%s6732_s5 + $0x68] sm:$0xff]  ;;  %v3306_v13 = vmul.f32 -1.442695, %v5345_v62  ;;  %v609_v16 = vmul.f32 %v5283_v28, %v539_v1  ;;  %v543_v19 = vld [vmem:[%s5259_s23 + $0x60] sm:$0xff] }
  0x26   : > { %v3305_v5 = vmul.f32 -1.442695, %v5340_v60  ;;  %v5368_v14 = vadd.f32 %v5286_v29, %v608_v0  ;;  %v3307_v15 = vmul.f32 -1.442695, %v5348_v63  ;;  %v610_v18 = vmul.f32 %v5283_v28, %v540_v2  ;;  %v3395_v20 = vld [vmem:[%s6732_s5 + $0xf0] sm:$0xff]  ;;  %v3396_v21 = vld [vmem:[%s6732_s5 + $0xf8] sm:$0xff] }
  0x27   : > { %4273 = vmatpush3.bf16.msra.mxu1 %v4270_v22  ;;  %4683 = vpow2.f32 %v3301_v57  ;;  %v611_v23 = vmul.f32 %v5283_v28, %v541_v6  ;;  %v612_v24 = vmul.f32 %v5283_v28, %v542_v8  ;;  %v5385_v26 = vpack.c.bf16 %v1378_v11, %v1377_v10  ;;  %v1379_v31 = vld [vmem:[%s6732_s5 + $0x70] sm:$0xff]  ;;  %v1380_v32 = vld [vmem:[%s6732_s5 + $0x78] sm:$0xff]  ;;  %v544_v45 = vld [vmem:[%s5259_s23 + $0x68] sm:$0xff] }
  0x28   : > { %4305 = vmatpush3.bf16.msra.mxu0 %v5274_v25  ;;  %4275 = vmatprep.subr.bf16.mxu1 %v4274_v37  ;;  %4685 = vpow2.f32 %v3302_v58  ;;  %v3308_v22 = vmul.f32 -1.442695, %v5368_v14  ;;  %v5388_v27 = vadd.f32 %v5286_v29, %v609_v16  ;;  %v5391_v30 = vadd.f32 %v5286_v29, %v610_v18  ;;  %v545_v47 = vld [vmem:[%s5259_s23 + $0x70] sm:$0xff]  ;;  %v3398_v49 = vld [vmem:[%s6732_s5 + $0x108] sm:$0xff]  ;;  %v546_v52 = vld [vmem:[%s5259_s23 + $0x78] sm:$0xff] }
  0x29   : > { %4307 = vmatprep.subr.bf16.mxu0 %v5300_v38  ;;  %4687 = vpow2.f32 %v3303_v61  ;;  %v5400_v33 = vadd.f32 %v5286_v29, %v611_v23  ;;  %v5403_v34 = vadd.f32 %v5286_v29, %v612_v24  ;;  %v613_v35 = vmul.f32 %v5283_v28, %v543_v19  ;;  %v547_v55 = vld [vmem:[%s5259_s23 + $0x80] sm:$0xff]  ;;  %v548_v61 = vld [vmem:[%s5259_s23 + $0x88] sm:$0xff]  ;;  %v3399_v11 = vld [vmem:[%s6732_s5 + $0x110] sm:$0xff] }
  0x2a   : > { %4689 = vpow2.f32 %v3304_v4  ;;  %v4286_v36 = vpack.c.bf16 %v3396_v21, %v3395_v20  ;;  %v3310_v39 = vmul.f32 -1.442695, %v5391_v30  ;;  %v5416_v46 = vpack.c.bf16 %v1380_v32, %v1379_v31  ;;  %v549_v24 = vld [vmem:[%s5259_s23 + $0x90] sm:$0xff] }
  0x2b   : > { %4277 = vmatpush3.bf16.msra.mxu1 %v4274_v37  ;;  %4691 = vpow2.f32 %v3305_v5  ;;  %v3309_v37 = vmul.f32 -1.442695, %v5388_v27  ;;  %v3311_v40 = vmul.f32 -1.442695, %v5400_v33  ;;  %v3312_v41 = vmul.f32 -1.442695, %v5403_v34 }
  0x2c   : > { %4309 = vmatpush3.bf16.msra.mxu0 %v5300_v38  ;;  %4279 = vmatprep.subr.bf16.mxu1 %v4278_v48  ;;  %4693 = vpow2.f32 %v3306_v13  ;;  %v5412_v44 = vadd.f32 %v5286_v29, %v613_v35  ;;  %v614_v54 = vmul.f32 %v5283_v28, %v544_v45  ;;  %v615_v58 = vmul.f32 %v5283_v28, %v545_v47  ;;  %v3400_v13 = vld [vmem:[%s6732_s5 + $0x118] sm:$0xff]  ;;  %v551_v47 = vld [vmem:[%s5259_s23 + $0xa0] sm:$0xff] }
  0x2d   : > { %4311 = vmatprep.subr.bf16.mxu0 %v5354_v3  ;;  %4695 = vpow2.f32 %v3307_v15  ;;  %v616_v4 = vmul.f32 %v5283_v28, %v546_v52  ;;  %v617_v8 = vmul.f32 %v5283_v28, %v547_v55  ;;  %v618_v16 = vmul.f32 %v5283_v28, %v548_v61 }
  0x2e   : > { %4697 = vpow2.f32 %v3308_v22  ;;  %v3313_v50 = vmul.f32 -1.442695, %v5412_v44  ;;  %v5444_v15 = vadd.f32 %v5286_v29, %v614_v54  ;;  %v5450_v20 = vadd.f32 %v5286_v29, %v615_v58  ;;  %v553_v58 = vld [vmem:[%s5259_s23 + $0xb0] sm:$0xff] }
  0x2f   : > { %4281 = vmatpush3.bf16.msra.mxu1 %v4278_v48  ;;  %4699 = vpow2.f32 %v3309_v37  ;;  %v3397_v48 = vld [vmem:[%s6732_s5 + $0x100] sm:$0xff]  ;;  %v5454_v23 = vadd.f32 %v5286_v29, %v616_v4  ;;  %v5457_v32 = vpack.c.bf16 %v3400_v13, %v3399_v11  ;;  %v550_v37 = vld [vmem:[%s5259_s23 + $0x98] sm:$0xff]  ;;  %v5465_v45 = vadd.f32 %v5286_v29, %v618_v16 }
  0x30   : > { %4313 = vmatpush3.bf16.msra.mxu0 %v5354_v3  ;;  %4283 = vmatprep.subr.bf16.mxu1 %v4282_v9  ;;  %4701 = vpow2.f32 %v3310_v39  ;;  %v5433_v2 = vpack.c.bf16 %v3398_v49, %v3397_v48  ;;  %v619_v52 = vmul.f32 %v5283_v28, %v549_v24  ;;  %v621_v4 = vmul.f32 %v5283_v28, %v551_v47  ;;  %v555_v11 = vld [vmem:[%s5259_s23 + $0xc0] sm:$0xff] }
  0x31   : > { %4315 = vmatprep.subr.bf16.mxu0 %v5385_v26  ;;  %v4684_v53 = vpop.eup %4683  ;;  %4703 = vpow2.f32 %v3311_v40  ;;  %6762 = vst [vmem:[#allocation8_spill] sm:$0xff] %v5457_v32  ;;  %v625_v47 = vmul.f32 %v5283_v28, %v555_v11  ;;  %v3404_v11 = vld [vmem:[%s6732_s5 + $0x138] sm:$0xff] }
  0x32   : > { %v4686_v56 = vpop.eup %4685  ;;  %v927_v57 = vadd.f32 1.0, %v4684_v53  ;;  %4705 = vpow2.f32 %v3312_v41  ;;  %6761 = vst [vmem:[#allocation7_spill] sm:$0xff] %v5433_v2  ;;  %v3314_v41 = vmul.f32 -1.442695, %v5444_v15  ;;  %v552_v53 = vld [vmem:[%s5259_s23 + $0xa8] sm:$0xff] }
  0x33   : > { %4285 = vmatpush3.bf16.msra.mxu1 %v4282_v9  ;;  %v4688_v0 = vpop.eup %4687  ;;  %v928_v1 = vadd.f32 1.0, %v4686_v56  ;;  %4707 = vpow2.f32 %v3313_v50  ;;  %v3315_v50 = vmul.f32 -1.442695, %v5450_v20  ;;  %v3316_v56 = vmul.f32 -1.442695, %v5454_v23 }
  0x34   : > { %4317 = vmatpush3.bf16.msra.mxu0 %v5385_v26  ;;  %4287 = vmatprep.subr.bf16.mxu1 %v4286_v36  ;;  %v4690_v5 = vpop.eup %4689  ;;  %4709 = vrcp.f32 %v927_v57  ;;  %v929_v6 = vadd.f32 1.0, %v4688_v0  ;;  %v620_v57 = vmul.f32 %v5283_v28, %v550_v37 }
  0x35   : > { %4319 = vmatprep.subr.bf16.mxu0 %v5416_v46  ;;  %v4692_v9 = vpop.eup %4691  ;;  %4711 = vrcp.f32 %v928_v1  ;;  %v930_v10 = vadd.f32 1.0, %v4690_v5  ;;  %v554_v5 = vld [vmem:[%s5259_s23 + $0xb8] sm:$0xff] }
  0x36   : > { %v4694_v18 = vpop.eup %4693  ;;  %4713 = vrcp.f32 %v929_v6  ;;  %v931_v19 = vadd.f32 1.0, %v4692_v9  ;;  %v3318_v9 = vmul.f32 -1.442695, %v5465_v45 }
  0x37   : > { %4289 = vmatpush3.bf16.msra.mxu1 %v4286_v36  ;;  %v4696_v21 = vpop.eup %4695  ;;  %4715 = vrcp.f32 %v930_v10  ;;  %v932_v22 = vadd.f32 1.0, %v4694_v18  ;;  %v5460_v36 = vadd.f32 %v5286_v29, %v617_v8  ;;  %v622_v10 = vmul.f32 %v5283_v28, %v552_v53 }
  0x38   : > { %4321 = vmatpush3.bf16.msra.mxu0 %v5416_v46  ;;  %4418 = vmatprep.subr.bf16.mxu1 %v5208_v7  ;;  %v4698_v31 = vpop.eup %4697  ;;  %4717 = vrcp.f32 %v931_v19  ;;  %v933_v35 = vadd.f32 1.0, %v4696_v21  ;;  %v5481_v18 = vadd.f32 %v5286_v29, %v619_v52  ;;  %v623_v19 = vmul.f32 %v5283_v28, %v553_v58  ;;  %v556_v21 = vld [vmem:[%s5259_s23 + $0xc8] sm:$0xff] }
  0x39   : > { %4323 = vmatprep.subr.bf16.mxu0 %v5433_v2  ;;  %v4700_v39 = vpop.eup %4699  ;;  %4719 = vrcp.f32 %v932_v22  ;;  %v934_v40 = vadd.f32 1.0, %v4698_v31  ;;  %v3317_v1 = vmul.f32 -1.442695, %v5460_v36  ;;  %v5487_v31 = vadd.f32 %v5286_v29, %v620_v57 }
  0x3a   : > { %v4702_v48 = vpop.eup %4701  ;;  %4721 = vrcp.f32 %v933_v35  ;;  %v935_v49 = vadd.f32 1.0, %v4700_v39  ;;  %v624_v35 = vmul.f32 %v5283_v28, %v554_v5  ;;  %v626_v52 = vmul.f32 %v5283_v28, %v556_v21 }
  0x3b   : > { %v4704_v54 = vpop.eup %4703  ;;  %4723 = vrcp.f32 %v934_v40  ;;  %v936_v55 = vadd.f32 1.0, %v4702_v48  ;;  %v5492_v40 = vadd.f32 %v5286_v29, %v621_v4  ;;  %v3320_v58 = vmul.f32 -1.442695, %v5487_v31 }
  0x3c   : > { %v4706_v61 = vpop.eup %4705  ;;  %4725 = vrcp.f32 %v935_v49  ;;  %v937_v0 = vadd.f32 1.0, %v4704_v54  ;;  %v5497_v49 = vadd.f32 %v5286_v29, %v622_v10  ;;  %v3401_v54 = vld [vmem:[%s6732_s5 + $0x120] sm:$0xff]  ;;  %v5520_v4 = vadd.f32 %v5286_v29, %v625_v47  ;;  %v3403_v10 = vld [vmem:[%s6732_s5 + $0x130] sm:$0xff] }
  0x3d   : > { %v4708_v6 = vpop.eup %4707  ;;  %4727 = vrcp.f32 %v936_v55  ;;  %v938_v8 = vadd.f32 1.0, %v4706_v61  ;;  %v3402_v55 = vld [vmem:[%s6732_s5 + $0x128] sm:$0xff]  ;;  %v5515_v61 = vadd.f32 %v5286_v29, %v624_v35  ;;  %v3408_v35 = vld [vmem:[%s6732_s5 + $0x158] sm:$0xff]  ;;  %v5559_v47 = vpack.c.bf16 %v3404_v11, %v3403_v10 }
  0x3e   : > { %v4710_v13 = vpop.eup %4709  ;;  %4729 = vrcp.f32 %v937_v0  ;;  %v939_v16 = vadd.f32 1.0, %v4708_v6  ;;  %v5528_v6 = vadd.f32 %v5286_v29, %v626_v52  ;;  %v558_v52 = vld [vmem:[%s5259_s23 + $0xd8] sm:$0xff] }
  0x3f   : > { %v4712_v22 = vpop.eup %4711  ;;  %v1119_v24 = vmul.f32 %v4710_v13, %v5307_v42  ;;  %4731 = vrcp.f32 %v938_v8  ;;  %v557_v13 = vld [vmem:[%s5259_s23 + $0xd0] sm:$0xff]  ;;  %v3324_v21 = vmul.f32 -1.442695, %v5515_v61  ;;  %6764 = vst [vmem:[#allocation10_spill] sm:$0xff] %v5559_v47 }
  0x40   : > { %v4714_v37 = vpop.eup %4713  ;;  %v1120_v39 = vmul.f32 %v4712_v22, %v5310_v43  ;;  %4733 = vrcp.f32 %v939_v16 }
  0x41   : > { %v4716_v48 = vpop.eup %4715  ;;  %3842 = vmatprep.mubr.f32.mxu1 %v1119_v24  ;;  %3970 = vmatprep.mubr.f32.mxu0 %v1119_v24  ;;  %v1121_v42 = vmul.f32 %v4714_v37, %v5323_v51  ;;  %4735 = vpow2.f32 %v3314_v41  ;;  %v3319_v51 = vmul.f32 -1.442695, %v5481_v18  ;;  %v5509_v41 = vadd.f32 %v5286_v29, %v623_v19  ;;  %v3406_v24 = vld [vmem:[%s6732_s5 + $0x148] sm:$0xff] }
  0x42   : > { %v4718_v53 = vpop.eup %4717  ;;  %3843 = vmatmul.mubr.f32.vlgmr.msra.gmra.mrb[0].mxu1 %v1120_v39  ;;  %3971 = vmatmul.mubr.f32.vlgmr.msra.gmra.mrb[0].mxu0 %v1120_v39  ;;  %v1122_v43 = vmul.f32 %v4716_v48, %v5337_v59  ;;  %4737 = vpow2.f32 %v3315_v50  ;;  %v3321_v50 = vmul.f32 -1.442695, %v5492_v40  ;;  %v3325_v37 = vmul.f32 -1.442695, %v5520_v4 }
  0x43   : > { %v4720_v57 = vpop.eup %4719  ;;  %4426 = vmatpush3.bf16.msra.mxu1 %v5208_v7  ;;  %3845 = vmatprep.mubr.f32.mxu1 %v1121_v42  ;;  %v1123_v59 = vmul.f32 %v4718_v53, %v5340_v60  ;;  %4739 = vpow2.f32 %v3316_v56  ;;  %v5523_v60 = vpack.c.bf16 %v3402_v55, %v3401_v54  ;;  %v3322_v56 = vmul.f32 -1.442695, %v5497_v49  ;;  %v559_v53 = vld [vmem:[%s5259_s23 + $0xe0] sm:$0xff] }
  0x44   : > { %v4722_v0 = vpop.eup %4721  ;;  %3973 = vmatprep.mubr.f32.mxu0 %v1121_v42  ;;  %4325 = vmatpush3.bf16.msra.mxu0 %v5433_v2  ;;  %4741 = vpow2.f32 %v3317_v1  ;;  %v1124_v8 = vmul.f32 %v4720_v57, %v5345_v62  ;;  %v3405_v62 = vld [vmem:[%s6732_s5 + $0x140] sm:$0xff]  ;;  %v3326_v48 = vmul.f32 -1.442695, %v5528_v6  ;;  %v627_v42 = vmul.f32 %v5283_v28, %v557_v13 }
  0x45   : > { %v4724_v5 = vpop.eup %4723  ;;  %4327 = vmatprep.subr.bf16.mxu0 %v5457_v32  ;;  %6763 = vst [vmem:[#allocation9_spill] sm:$0xff] %v5523_v60  ;;  %4419 = vmatprep.subr.bf16.mxu1 %v5220_v12  ;;  %4743 = vpow2.f32 %v3318_v9  ;;  %v3323_v9 = vmul.f32 -1.442695, %v5509_v41  ;;  %v1125_v19 = vmul.f32 %v4722_v0, %v5348_v63  ;;  %v3407_v63 = vld [vmem:[%s6732_s5 + $0x150] sm:$0xff]  ;;  %v3409_v55 = vld [vmem:[%s6732_s5 + $0x160] sm:$0xff] }
  0x46   : > { %v4726_v1 = vpop.eup %4725  ;;  %3846 = vmatmul.mubr.f32.gmra.mrb[2].mxu1 %v1122_v43  ;;  %3974 = vmatmul.mubr.f32.gmra.mrb[2].mxu0 %v1122_v43  ;;  %4745 = vpow2.f32 %v3319_v51  ;;  %v1126_v54 = vmul.f32 %v4724_v5, %v5368_v14  ;;  %v3410_v51 = vld [vmem:[%s6732_s5 + $0x168] sm:$0xff]  ;;  %v5580_v0 = vpack.c.bf16 %v3408_v35, %v3407_v63  ;;  %v5598_v13 = vadd.f32 %v5286_v29, %v627_v42  ;;  %v561_v63 = vld [vmem:[%s5259_s23 + $0xf0] sm:$0xff] }
  0x47   : > { %v4728_v16 = vpop.eup %4727  ;;  %3848 = vmatprep.mubr.f32.mxu1 %v1123_v59  ;;  %3976 = vmatprep.mubr.f32.mxu0 %v1123_v59  ;;  %4747 = vpow2.f32 %v3320_v58  ;;  %v5576_v59 = vmul.f32 %v4726_v1, %v5388_v27  ;;  %v5578_v58 = vpack.c.bf16 %v3406_v24, %v3405_v62  ;;  %v560_v14 = vld [vmem:[%s5259_s23 + $0xe8] sm:$0xff]  ;;  %v3412_v27 = vld [vmem:[%s6732_s5 + $0x178] sm:$0xff]  ;;  %v628_v1 = vmul.f32 %v5283_v28, %v558_v52 }
  0x48   : > { %v4730_v22 = vpop.eup %4729  ;;  %4329 = vmatpush3.bf16.msra.mxu0 %v5457_v32  ;;  %4427 = vmatpush3.bf16.msra.mxu1 %v5220_v12  ;;  %4749 = vpow2.f32 %v3321_v50  ;;  %6766 = vst [vmem:[#allocation12_spill] sm:$0xff] %v5580_v0  ;;  %v5601_v62 = vmul.f32 %v4728_v16, %v5391_v30  ;;  %v630_v24 = vmul.f32 %v5283_v28, %v560_v14 }
  0x49   : > { %v5556_v39 = vpop.eup %4731  ;;  %4331 = vmatprep.subr.bf16.mxu0 %v5523_v60  ;;  %4420 = vmatprep.subr.bf16.mxu1 %v5236_v17  ;;  %4751 = vpow2.f32 %v3322_v56  ;;  %6765 = vst [vmem:[#allocation11_spill] sm:$0xff] %v5578_v58  ;;  %v3411_v56 = vld [vmem:[%s6732_s5 + $0x170] sm:$0xff]  ;;  %v5615_v52 = vadd.f32 %v5286_v29, %v628_v1 }
  0x4a   : > { %v5566_v43 = vpop.eup %4733  ;;  %3849 = vmatmul.mubr.f32.gmra.mrb[4].mxu1 %v1124_v8  ;;  %3977 = vmatmul.mubr.f32.gmra.mrb[4].mxu0 %v1124_v8  ;;  %4753 = vpow2.f32 %v3323_v9  ;;  %v629_v8 = vmul.f32 %v5283_v28, %v559_v53  ;;  %v5594_v9 = vpack.c.bf16 %v3410_v51, %v3409_v55  ;;  %v5610_v42 = vpack.c.bf16 %v3412_v27, %v3411_v56 }
  0x4b   : > { %v4736_v57 = vpop.eup %4735  ;;  %3851 = vmatprep.mubr.f32.mxu1 %v1125_v19  ;;  %3979 = vmatprep.mubr.f32.mxu0 %v1125_v19  ;;  %4755 = vpow2.f32 %v3324_v21  ;;  %v5623_v55 = vmul.f32 -1.442695, %v5598_v13  ;;  %v631_v51 = vmul.f32 %v5283_v28, %v561_v63  ;;  %v5635_v56 = vadd.f32 %v5286_v29, %v630_v24  ;;  %v565_v24 = vld [vmem:[%s5259_s23 + $0x110] sm:$0xff] }
  0x4c   : > { %v4738_v50 = vpop.eup %4737  ;;  %4333 = vmatpush3.bf16.msra.mxu0 %v5523_v60  ;;  %v940_v5 = vadd.f32 1.0, %v4736_v57  ;;  %4428 = vmatpush3.bf16.msra.mxu1 %v5236_v17  ;;  %4757 = vpow2.f32 %v3325_v37  ;;  %6767 = vst [vmem:[#allocation13_spill] sm:$0xff] %v5594_v9  ;;  %v5608_v37 = vmul.f32 %v4730_v22, %v5400_v33  ;;  %6768 = vst [vmem:[#allocation14_spill] sm:$0xff] %v5610_v42  ;;  %v562_v33 = vld [vmem:[%s5259_s23 + $0xf8] sm:$0xff]  ;;  %v563_v57 = vld [vmem:[%s5259_s23 + $0x100] sm:$0xff] }
  0x4d   : > { %v4740_v10 = vpop.eup %4739  ;;  %4335 = vmatprep.subr.bf16.mxu0 %v5559_v47  ;;  %v941_v11 = vadd.f32 1.0, %v4738_v50  ;;  %4421 = vmatprep.subr.bf16.mxu1 %v5274_v25  ;;  %4759 = vpow2.f32 %v3326_v48  ;;  %v5618_v53 = vadd.f32 %v5286_v29, %v629_v8  ;;  %v5632_v50 = vmul.f32 %v5556_v39, %v5403_v34  ;;  %v564_v39 = vld [vmem:[%s5259_s23 + $0x108] sm:$0xff] }
  0x4e   : > { %v4742_v19 = vpop.eup %4741  ;;  %3852 = vmatmul.mubr.f32.gmra.mrb[6].mxu1 %v1126_v54  ;;  %3980 = vmatmul.mubr.f32.gmra.mrb[6].mxu0 %v1126_v54  ;;  %4761 = vrcp.f32 %v940_v5  ;;  %v942_v21 = vadd.f32 1.0, %v4740_v10  ;;  %v5641_v1 = vmul.f32 %v5566_v43, %v5412_v44  ;;  %v632_v34 = vmul.f32 %v5283_v28, %v562_v33 }
  0x4f   : > { %v4744_v35 = vpop.eup %4743  ;;  %3854 = vmatprep.mubr.f32.mxu1 %v5576_v59  ;;  %3982 = vmatprep.mubr.f32.mxu0 %v5576_v59  ;;  %4763 = vrcp.f32 %v941_v11  ;;  %v943_v48 = vadd.f32 1.0, %v4742_v19  ;;  %v3328_v19 = vmul.f32 -1.442695, %v5615_v52  ;;  %v3329_v63 = vmul.f32 -1.442695, %v5618_v53 }
  0x50   : > { %v4746_v30 = vpop.eup %4745  ;;  %4337 = vmatpush3.bf16.msra.mxu0 %v5559_v47  ;;  %4765 = vrcp.f32 %v942_v21  ;;  %v944_v16 = vadd.f32 1.0, %v4744_v35  ;;  %4429 = vmatpush3.bf16.msra.mxu1 %v5274_v25  ;;  %v633_v21 = vmul.f32 %v5283_v28, %v563_v57  ;;  %v5653_v35 = vadd.f32 %v5286_v29, %v631_v51  ;;  %v573_v47 = vld [vmem:[%s5259_s23 + $0x150] sm:$0xff] }
  0x51   : > { %v4748_v22 = vpop.eup %4747  ;;  %4339 = vmatprep.subr.bf16.mxu0 %v5578_v58  ;;  %4767 = vrcp.f32 %v943_v48  ;;  %v945_v54 = vadd.f32 1.0, %v4746_v30  ;;  %4422 = vmatprep.subr.bf16.mxu1 %v5300_v38  ;;  %v566_v48 = vld [vmem:[%s5259_s23 + $0x118] sm:$0xff]  ;;  %v3330_v33 = vmul.f32 -1.442695, %v5635_v56 }
  0x52   : > { %v4750_v14 = vpop.eup %4749  ;;  %3855 = vmatmul.mubr.f32.gmra.mrb[8].mxu1 %v5601_v62  ;;  %3983 = vmatmul.mubr.f32.gmra.mrb[8].mxu0 %v5601_v62  ;;  %4769 = vrcp.f32 %v944_v16  ;;  %v946_v5 = vadd.f32 1.0, %v4748_v22  ;;  %v634_v22 = vmul.f32 %v5283_v28, %v564_v39 }
  0x53   : > { %v4752_v27 = vpop.eup %4751  ;;  %3857 = vmatprep.mubr.f32.mxu1 %v5608_v37  ;;  %3985 = vmatprep.mubr.f32.mxu0 %v5608_v37  ;;  %4771 = vrcp.f32 %v945_v54  ;;  %v947_v8 = vadd.f32 1.0, %v4750_v14  ;;  %v567_v54 = vld [vmem:[%s5259_s23 + $0x120] sm:$0xff]  ;;  %v5665_v14 = vadd.f32 %v5286_v29, %v632_v34 }
  0x54   : > { %v4754_v10 = vpop.eup %4753  ;;  %4341 = vmatpush3.bf16.msra.mxu0 %v5578_v58  ;;  %4773 = vrcp.f32 %v946_v5  ;;  %v948_v11 = vadd.f32 1.0, %v4752_v27  ;;  %4430 = vmatpush3.bf16.msra.mxu1 %v5300_v38  ;;  %v635_v5 = vmul.f32 %v5283_v28, %v565_v24  ;;  %v568_v27 = vld [vmem:[%s5259_s23 + $0x128] sm:$0xff]  ;;  %v3331_v24 = vmul.f32 -1.442695, %v5653_v35 }
  0x55   : > { %v4756_v44 = vpop.eup %4755  ;;  %4343 = vmatprep.subr.bf16.mxu0 %v5580_v0  ;;  %4775 = vrcp.f32 %v947_v8  ;;  %v949_v43 = vadd.f32 1.0, %v4754_v10  ;;  %4423 = vmatprep.subr.bf16.mxu1 %v5354_v3  ;;  %v5671_v10 = vadd.f32 %v5286_v29, %v633_v21 }
  0x56   : > { %v4758_v30 = vpop.eup %4757  ;;  %3858 = vmatmul.mubr.f32.gmra.mrb[10].mxu1 %v5632_v50  ;;  %3986 = vmatmul.mubr.f32.gmra.mrb[10].mxu0 %v5632_v50  ;;  %4777 = vrcp.f32 %v948_v11  ;;  %v950_v16 = vadd.f32 1.0, %v4756_v44  ;;  %v636_v11 = vmul.f32 %v5283_v28, %v566_v48  ;;  %v569_v44 = vld [vmem:[%s5259_s23 + $0x130] sm:$0xff]  ;;  %v5687_v48 = vadd.f32 %v5286_v29, %v634_v22 }
  0x57   : > { %v4760_v57 = vpop.eup %4759  ;;  %3860 = vmatprep.mubr.f32.mxu1 %v5641_v1  ;;  %3988 = vmatprep.mubr.f32.mxu0 %v5641_v1  ;;  %4779 = vrcp.f32 %v949_v43  ;;  %v951_v51 = vadd.f32 1.0, %v4758_v30  ;;  %v637_v30 = vmul.f32 %v5283_v28, %v567_v54  ;;  %v5697_v54 = vadd.f32 %v5286_v29, %v635_v5 }
  0x58   : > { %v4762_v8 = vpop.eup %4761  ;;  %4345 = vmatpush3.bf16.msra.mxu0 %v5580_v0  ;;  %4781 = vrcp.f32 %v950_v16  ;;  %v952_v39 = vadd.f32 1.0, %v4760_v57  ;;  %4431 = vmatpush3.bf16.msra.mxu1 %v5354_v3  ;;  %v3333_v5 = vmul.f32 -1.442695, %v5671_v10 }
  0x59   : > { %v4764_v43 = vpop.eup %4763  ;;  %v5677_v34 = vmul.f32 %v4762_v8, %v5444_v15  ;;  %4347 = vmatprep.subr.bf16.mxu0 %v5594_v9  ;;  %4783 = vrcp.f32 %v951_v51  ;;  %4424 = vmatprep.subr.bf16.mxu1 %v5385_v26  ;;  %v638_v15 = vmul.f32 %v5283_v28, %v568_v27  ;;  %v3332_v27 = vmul.f32 -1.442695, %v5665_v14 }
  0x5a   : > { %v4766_v21 = vpop.eup %4765  ;;  %v5684_v16 = vmul.f32 %v4764_v43, %v5450_v20  ;;  %4785 = vrcp.f32 %v952_v39  ;;  %v639_v20 = vmul.f32 %v5283_v28, %v569_v44  ;;  %v5712_v39 = vadd.f32 %v5286_v29, %v637_v30 }
  0x5b   : > { %v4768_v57 = vpop.eup %4767  ;;  %3861 = vmatmul.mubr.f32.gmra.mrb[12].mxu1 %v5677_v34  ;;  %3989 = vmatmul.mubr.f32.gmra.mrb[12].mxu0 %v5677_v34  ;;  %v5693_v51 = vmul.f32 %v4766_v21, %v5454_v23  ;;  %4787 = vpow2.f32 %v5623_v55  ;;  %v5707_v23 = vadd.f32 %v5286_v29, %v636_v11  ;;  %v3335_v43 = vmul.f32 -1.442695, %v5697_v54 }
  0x5c   : > { %v4770_v8 = vpop.eup %4769  ;;  %3863 = vmatprep.mubr.f32.mxu1 %v5684_v16  ;;  %3991 = vmatprep.mubr.f32.mxu0 %v5684_v16  ;;  %v5703_v22 = vmul.f32 %v4768_v57, %v5460_v36  ;;  %4789 = vpow2.f32 %v3328_v19  ;;  %v3334_v36 = vmul.f32 -1.442695, %v5687_v48  ;;  %v5718_v19 = vadd.f32 %v5286_v29, %v638_v15 }
  0x5d   : > { %v4772_v55 = vpop.eup %4771  ;;  %4349 = vmatpush3.bf16.msra.mxu0 %v5594_v9  ;;  %4791 = vpow2.f32 %v3329_v63  ;;  %4432 = vmatpush3.bf16.msra.mxu1 %v5385_v26  ;;  %v5724_v11 = vmul.f32 %v4770_v8, %v5465_v45  ;;  %v3336_v15 = vmul.f32 -1.442695, %v5707_v23  ;;  %v570_v45 = vld [vmem:[%s5259_s23 + $0x138] sm:$0xff]  ;;  %v571_v8 = vld [vmem:[%s5259_s23 + $0x140] sm:$0xff]  ;;  %v572_v9 = vld [vmem:[%s5259_s23 + $0x148] sm:$0xff] }
  0x5e   : > { %v4774_v44 = vpop.eup %4773  ;;  %4351 = vmatprep.subr.bf16.mxu0 %v5610_v42  ;;  %4793 = vpow2.f32 %v3330_v33  ;;  %4425 = vmatprep.subr.bf16.mxu1 %v5416_v46  ;;  %v5728_v33 = vadd.f32 %v5286_v29, %v639_v20  ;;  %v5733_v21 = vmul.f32 %v4772_v55, %v5481_v18  ;;  %v3338_v18 = vmul.f32 -1.442695, %v5718_v19 }
  0x5f   : > { %v4776_v63 = vpop.eup %4775  ;;  %3864 = vmatmul.mubr.f32.gmra.mrb[14].mxu1 %v5693_v51  ;;  %3992 = vmatmul.mubr.f32.gmra.mrb[14].mxu0 %v5693_v51  ;;  %4795 = vpow2.f32 %v3331_v24  ;;  %v3337_v24 = vmul.f32 -1.442695, %v5712_v39  ;;  %v5746_v55 = vmul.f32 %v4774_v44, %v5487_v31  ;;  %v641_v44 = vmul.f32 %v5283_v28, %v571_v8 }
  0x60   : > { %v4778_v30 = vpop.eup %4777  ;;  %3866 = vmatprep.mubr.f32.mxu1 %v5703_v22  ;;  %3994 = vmatprep.mubr.f32.mxu0 %v5703_v22  ;;  %4797 = vpow2.f32 %v3332_v27 }
  0x61   : > { %v4780_v57 = vpop.eup %4779  ;;  %4353 = vmatpush3.bf16.msra.mxu0 %v5610_v42  ;;  %4799 = vpow2.f32 %v3333_v5  ;;  %4433 = vmatpush3.bf16.msra.mxu1 %v5416_v46  ;;  %v3339_v5 = vmul.f32 -1.442695, %v5728_v33  ;;  %v640_v42 = vmul.f32 %v5283_v28, %v570_v45  ;;  %v642_v45 = vmul.f32 %v5283_v28, %v572_v9 }
  0x62   : > { %v4782_v20 = vpop.eup %4781  ;;  %4355 = vmatprep.subr.bf16.mxu0 %v5208_v7  ;;  %4801 = vpow2.f32 %v3334_v36  ;;  %v5756_v36 = vmul.f32 %v4776_v63, %v5492_v40  ;;  %v5764_v40 = vmul.f32 %v4778_v30, %v5497_v49  ;;  %v5773_v9 = vmul.f32 %v4780_v57, %v5509_v41 }
  0x63   : > { %v4784_v27 = vpop.eup %4783  ;;  %3867 = vmatmul.mubr.f32.gmra.mrb[16].mxu1 %v5724_v11  ;;  %3995 = vmatmul.mubr.f32.gmra.mrb[16].mxu0 %v5724_v11  ;;  %4803 = vpow2.f32 %v3335_v43  ;;  %v5776_v30 = vadd.f32 %v5286_v29, %v641_v44  ;;  %v5781_v2 = vadd.f32 %v5286_v29, %v642_v45 }
  0x64   : > { %v5751_v0 = vpop.eup %4785  ;;  %3869 = vmatprep.mubr.f32.mxu1 %v5733_v21  ;;  %3997 = vmatprep.mubr.f32.mxu0 %v5733_v21  ;;  %4805 = vpow2.f32 %v3336_v15  ;;  %v5767_v15 = vadd.f32 %v5286_v29, %v640_v42  ;;  %v643_v42 = vmul.f32 %v5283_v28, %v573_v47  ;;  %v5795_v57 = vmul.f32 %v4784_v27, %v5520_v4  ;;  %v577_v4 = vld [vmem:[%s5259_s23 + $0x170] sm:$0xff] }
  0x65   : > { %v4788_v31 = vpop.eup %4787  ;;  %4807 = vpow2.f32 %v3337_v24  ;;  %v574_v24 = vld [vmem:[%s5259_s23 + $0x158] sm:$0xff]  ;;  %v5810_v27 = vmul.f32 -1.442695, %v5781_v2 }
  0x66   : > { %v4790_v43 = vpop.eup %4789  ;;  %v953_v58 = vadd.f32 1.0, %v4788_v31  ;;  %4809 = vpow2.f32 %v3338_v18  ;;  %v644_v41 = vmul.f32 %v5283_v28, %v574_v24  ;;  %v5802_v24 = vld [vmem:[%s5264_s26] ss:$0 sm:$0xff] }
  0x67   : > { %v4792_v60 = vpop.eup %4791  ;;  %3870 = vmatmul.mubr.f32.gmra.mrb[18].mxu1 %v5746_v55  ;;  %3998 = vmatmul.mubr.f32.gmra.mrb[18].mxu0 %v5746_v55  ;;  %v954_v63 = vadd.f32 1.0, %v4790_v43  ;;  %4811 = vpow2.f32 %v3339_v5  ;;  %v575_v5 = vld [vmem:[%s5259_s23 + $0x160] sm:$0xff] }
  0x68   : > { %v4794_v8 = vpop.eup %4793  ;;  %3872 = vmatprep.mubr.f32.mxu1 %v5756_v36  ;;  %4086 = vmatprep.mubr.f32.mxu0 %v5576_v59  ;;  %4813 = vrcp.f32 %v953_v58  ;;  %v955_v18 = vadd.f32 1.0, %v4792_v60  ;;  %v5787_v60 = vmul.f32 %v4782_v20, %v5515_v61  ;;  %v5790_v58 = vmul.f32 -1.442695, %v5767_v15  ;;  %v576_v20 = vld [vmem:[%s5259_s23 + $0x168] sm:$0xff] }
  0x69   : > { %v4796_v31 = vpop.eup %4795  ;;  %4815 = vrcp.f32 %v954_v63  ;;  %v956_v49 = vadd.f32 1.0, %v4794_v8  ;;  %v645_v61 = vmul.f32 %v5283_v28, %v575_v5  ;;  %v3341_v63 = vmul.f32 -1.442695, %v5776_v30  ;;  %v578_v8 = vld [vmem:[%s5259_s23 + $0x178] sm:$0xff] }
  0x6a   : > { %v4798_v43 = vpop.eup %4797  ;;  %4817 = vrcp.f32 %v955_v18  ;;  %v957_v32 = vadd.f32 1.0, %v4796_v31  ;;  %v5820_v31 = vmul.f32 %v5751_v0, %v5528_v6  ;;  %v580_v0 = vld [vmem:[%s5259_s23 + $0x188] sm:$0xff] }
  0x6b   : > { %v4800_v59 = vpop.eup %4799  ;;  %3873 = vmatmul.mubr.f32.gmra.mrb[20].mxu1 %v5764_v40  ;;  %4087 = vmatmul.mubr.f32.vlgmr.msra.gmra.mrb[20].mxu0 %v5601_v62  ;;  %4819 = vrcp.f32 %v956_v49  ;;  %v958_v47 = vadd.f32 1.0, %v4798_v43  ;;  %v579_v43 = vld [vmem:[%s5259_s23 + $0x180] sm:$0xff] }
  0x6c   : > { %v4802_v29 = vpop.eup %4801  ;;  %3875 = vmatprep.mubr.f32.mxu1 %v5773_v9  ;;  %4089 = vmatprep.mubr.f32.mxu0 %v5608_v37  ;;  %4821 = vrcp.f32 %v957_v32  ;;  %v959_v62 = vadd.f32 1.0, %v4800_v59  ;;  %v5805_v37 = vadd.f32 %v5802_v24, %v643_v42  ;;  %v5823_v42 = vld [vmem:[%s5253_s13] ss:$0 sm:$0xff] }
  0x6d   : > { %v4804_v44 = vpop.eup %4803  ;;  %4357 = vmatpush3.bf16.msra.mxu0 %v5208_v7  ;;  %4823 = vrcp.f32 %v958_v47  ;;  %v960_v45 = vadd.f32 1.0, %v4802_v29  ;;  %v5813_v7 = vadd.f32 %v5802_v24, %v644_v41  ;;  %v646_v5 = vmul.f32 %v5823_v42, %v576_v20 }
  0x6e   : > { %v4806_v32 = vpop.eup %4805  ;;  %4359 = vmatprep.subr.bf16.mxu0 %v5220_v12  ;;  %4825 = vrcp.f32 %v959_v62  ;;  %v961_v28 = vadd.f32 1.0, %v4804_v44  ;;  %v647_v6 = vmul.f32 %v5823_v42, %v577_v4  ;;  %v3343_v62 = vmul.f32 -1.442695, %v5805_v37  ;;  %v581_v44 = vld [vmem:[%s5259_s23 + $0x190] sm:$0xff] }
  0x6f   : > { %v4808_v18 = vpop.eup %4807  ;;  %3876 = vmatmul.mubr.f32.gmra.mrb[22].mxu1 %v5787_v60  ;;  %4090 = vmatmul.mubr.f32.gmra.mrb[22].mxu0 %v5632_v50  ;;  %4827 = vrcp.f32 %v960_v45  ;;  %v962_v49 = vadd.f32 1.0, %v4806_v32  ;;  %v5830_v50 = vadd.f32 %v5802_v24, %v645_v61  ;;  %v648_v20 = vmul.f32 %v5823_v42, %v578_v8  ;;  %v582_v32 = vld [vmem:[%s5259_s23 + $0x198] sm:$0xff] }
  0x70   : > { %v4810_v41 = vpop.eup %4809  ;;  %3878 = vmatprep.mubr.f32.mxu1 %v5795_v57  ;;  %4092 = vmatprep.mubr.f32.mxu0 %v5641_v1  ;;  %4829 = vrcp.f32 %v961_v28  ;;  %v963_v59 = vadd.f32 1.0, %v4808_v18  ;;  %v3344_v45 = vmul.f32 -1.442695, %v5813_v7  ;;  %v649_v4 = vmul.f32 %v5823_v42, %v579_v43 }
  0x71   : > { %v4812_v47 = vpop.eup %4811  ;;  %4361 = vmatpush3.bf16.msra.mxu0 %v5220_v12  ;;  %4831 = vrcp.f32 %v962_v49  ;;  %v964_v29 = vadd.f32 1.0, %v4810_v41  ;;  %v5848_v8 = vadd.f32 %v5802_v24, %v646_v5  ;;  %v650_v18 = vmul.f32 %v5823_v42, %v580_v0 }
  0x72   : > { %v4814_v1 = vpop.eup %4813  ;;  %4363 = vmatprep.subr.bf16.mxu0 %v5236_v17  ;;  %4833 = vrcp.f32 %v963_v59  ;;  %v965_v61 = vadd.f32 1.0, %v4812_v47  ;;  %v5856_v41 = vadd.f32 %v5802_v24, %v647_v6  ;;  %v3345_v6 = vmul.f32 -1.442695, %v5830_v50 }
  0x73   : > { %v4816_v28 = vpop.eup %4815  ;;  %3879 = vmatmul.mubr.f32.gmra.mrb[24].mxu1 %v5820_v31  ;;  %4093 = vmatmul.mubr.f32.gmra.mrb[24].mxu0 %v5677_v34  ;;  %v5845_v12 = vmul.f32 %v4814_v1, %v5598_v13  ;;  %4835 = vrcp.f32 %v964_v29  ;;  %v651_v34 = vmul.f32 %v5823_v42, %v581_v44  ;;  %v5872_v0 = vadd.f32 %v5802_v24, %v649_v4 }
  0x74   : > { %v4818_v49 = vpop.eup %4817  ;;  %4095 = vmatprep.mubr.f32.mxu0 %v5684_v16  ;;  %v5853_v43 = vmul.f32 %v4816_v28, %v5615_v52  ;;  %4837 = vrcp.f32 %v965_v61  ;;  %v5866_v16 = vadd.f32 %v5802_v24, %v648_v20  ;;  %v652_v52 = vmul.f32 %v5823_v42, %v582_v32 }
  0x75   : > { %v4820_v13 = vpop.eup %4819  ;;  %3881 = vmatprep.mubr.f32.mxu1 %v5845_v12  ;;  %v5861_v5 = vmul.f32 %v4818_v49, %v5618_v53  ;;  %4365 = vmatpush3.bf16.msra.mxu0 %v5236_v17  ;;  %4839 = vpow2.f32 %v5790_v58  ;;  %v3346_v58 = vmul.f32 -1.442695, %v5848_v8 }
  0x76   : > { %v4822_v59 = vpop.eup %4821  ;;  %4841 = vpow2.f32 %v3341_v63  ;;  %4367 = vmatprep.subr.bf16.mxu0 %v5274_v25  ;;  %v5877_v17 = vmul.f32 %v4820_v13, %v5635_v56  ;;  %v5882_v63 = vadd.f32 %v5802_v24, %v650_v18  ;;  %v3347_v56 = vmul.f32 -1.442695, %v5856_v41 }
  0x77   : > { %v4824_v53 = vpop.eup %4823  ;;  %3882 = vmatmul.mubr.f32.gmra.mrb[26].mxu1 %v5853_v43  ;;  %4096 = vmatmul.mubr.f32.gmra.mrb[26].mxu0 %v5693_v51  ;;  %4843 = vpow2.f32 %v5810_v27  ;;  %v5887_v29 = vmul.f32 %v4822_v59, %v5653_v35  ;;  %v5891_v51 = vadd.f32 %v5802_v24, %v651_v34  ;;  %v3348_v20 = vmul.f32 -1.442695, %v5866_v16  ;;  %v586_v34 = vld [vmem:[%s5259_s23 + $0x1b8] sm:$0xff] }
  0x78   : > { %v4826_v47 = vpop.eup %4825  ;;  %3884 = vmatprep.mubr.f32.mxu1 %v5861_v5  ;;  %4098 = vmatprep.mubr.f32.mxu0 %v5703_v22  ;;  %4845 = vpow2.f32 %v3343_v62  ;;  %v5896_v44 = vadd.f32 %v5802_v24, %v652_v52  ;;  %v3349_v35 = vmul.f32 -1.442695, %v5872_v0  ;;  %v583_v22 = vld [vmem:[%s5259_s23 + $0x1a0] sm:$0xff]  ;;  %v5904_v61 = vmul.f32 %v4824_v53, %v5665_v14 }
  0x79   : > { %v4828_v27 = vpop.eup %4827  ;;  %4847 = vpow2.f32 %v3344_v45  ;;  %4369 = vmatpush3.bf16.msra.mxu0 %v5274_v25  ;;  %v3350_v25 = vmul.f32 -1.442695, %v5882_v63  ;;  %v5910_v4 = vmul.f32 %v4826_v47, %v5671_v10  ;;  %v3351_v32 = vmul.f32 -1.442695, %v5891_v51  ;;  %v584_v10 = vld [vmem:[%s5259_s23 + $0x1a8] sm:$0xff] }
  0x7a   : > { %v4830_v1 = vpop.eup %4829  ;;  %4849 = vpow2.f32 %v3345_v6  ;;  %4371 = vmatprep.subr.bf16.mxu0 %v5300_v38  ;;  %v3352_v14 = vmul.f32 -1.442695, %v5896_v44  ;;  %v653_v28 = vmul.f32 %v5823_v42, %v583_v22  ;;  %v5925_v49 = vmul.f32 %v4828_v27, %v5687_v48  ;;  %v587_v6 = vld [vmem:[%s5259_s23 + $0x1c0] sm:$0xff] }
  0x7b   : > { %v4832_v62 = vpop.eup %4831  ;;  %3885 = vmatmul.mubr.f32.gmra.mrb[28].mxu1 %v5877_v17  ;;  %4099 = vmatmul.mubr.f32.gmra.mrb[0].mxu0 %v5724_v11  ;;  %4851 = vpow2.f32 %v3346_v58  ;;  %v5932_v52 = vmul.f32 %v4830_v1, %v5697_v54  ;;  %v656_v54 = vmul.f32 %v5823_v42, %v586_v34  ;;  %v589_v34 = vld [vmem:[%s5259_s23 + $0x1d0] sm:$0xff] }
  0x7c   : > { %v4834_v45 = vpop.eup %4833  ;;  %3887 = vmatprep.mubr.f32.mxu1 %v5887_v29  ;;  %4101 = vmatprep.mubr.f32.mxu0 %v5733_v21  ;;  %4853 = vpow2.f32 %v3347_v56  ;;  %v5936_v48 = vadd.f32 %v5802_v24, %v653_v28  ;;  %v5946_v1 = vmul.f32 %v4832_v62, %v5707_v23 }
  0x7d   : > { %v5913_v11 = vpop.eup %4835  ;;  %4855 = vpow2.f32 %v3348_v20  ;;  %4373 = vmatpush3.bf16.msra.mxu0 %v5300_v38  ;;  %v585_v38 = vld [vmem:[%s5259_s23 + $0x1b0] sm:$0xff] }
  0x7e   : > { %v5918_v18 = vpop.eup %4837  ;;  %4857 = vpow2.f32 %v3349_v35  ;;  %4375 = vmatprep.subr.bf16.mxu0 %v5354_v3  ;;  %v655_v27 = vmul.f32 %v5823_v42, %v585_v38  ;;  %v657_v35 = vmul.f32 %v5823_v42, %v587_v6  ;;  %v5955_v23 = vmul.f32 -1.442695, %v5936_v48 }
  0x7f   : > { %v4840_v21 = vpop.eup %4839  ;;  %3888 = vmatmul.mubr.f32.gmra.mrb[30].mxu1 %v5904_v61  ;;  %4102 = vmatmul.mubr.f32.gmra.mrb[2].mxu0 %v5746_v55  ;;  %4859 = vpow2.f32 %v3350_v25  ;;  %v654_v55 = vmul.f32 %v5823_v42, %v584_v10  ;;  %v5952_v25 = vmul.f32 %v4834_v45, %v5712_v39  ;;  %v588_v10 = vld [vmem:[%s5259_s23 + $0x1c8] sm:$0xff]  ;;  %v5966_v45 = vadd.f32 %v5802_v24, %v656_v54 }
  0x80   : > { %v4842_v13 = vpop.eup %4841  ;;  %3890 = vmatprep.mubr.f32.mxu1 %v5910_v4  ;;  %4104 = vmatprep.mubr.f32.mxu0 %v5756_v36  ;;  %v966_v59 = vadd.f32 1.0, %v4840_v21  ;;  %4861 = vpow2.f32 %v3351_v32  ;;  %v5963_v39 = vadd.f32 %v5802_v24, %v655_v27  ;;  %v5977_v6 = vadd.f32 %v5802_v24, %v657_v35 }
  0x81   : > { %v4844_v53 = vpop.eup %4843  ;;  %v967_v58 = vadd.f32 1.0, %v4842_v13  ;;  %4863 = vpow2.f32 %v3352_v14  ;;  %4377 = vmatpush3.bf16.msra.mxu0 %v5354_v3  ;;  %v5958_v62 = vadd.f32 %v5802_v24, %v654_v55  ;;  %v5984_v55 = vmul.f32 %v5918_v18, %v5728_v33 }
  0x82   : > { %v4846_v47 = vpop.eup %4845  ;;  %4865 = vrcp.f32 %v966_v59  ;;  %v968_v56 = vadd.f32 1.0, %v4844_v53  ;;  %4379 = vmatprep.subr.bf16.mxu0 %v5385_v26  ;;  %v590_v53 = vld [vmem:[%s5259_s23 + $0x1d8] sm:$0xff]  ;;  %v3355_v18 = vmul.f32 -1.442695, %v5963_v39 }
  0x83   : > { %v4848_v20 = vpop.eup %4847  ;;  %3891 = vmatmul.mubr.f32.gmra.mrb[32].mxu1 %v5925_v49  ;;  %4105 = vmatmul.mubr.f32.gmra.mrb[4].mxu0 %v5764_v40  ;;  %4867 = vrcp.f32 %v967_v58  ;;  %v969_v3 = vadd.f32 1.0, %v4846_v47  ;;  %v3354_v54 = vmul.f32 -1.442695, %v5958_v62  ;;  %v660_v35 = vmul.f32 %v5823_v42, %v590_v53  ;;  %v594_v53 = vld [vmem:[%s5259_s23 + $0x1f8] sm:$0xff] }
  0x84   : > { %v4850_v22 = vpop.eup %4849  ;;  %3893 = vmatprep.mubr.f32.mxu1 %v5932_v52  ;;  %4107 = vmatprep.mubr.f32.mxu0 %v5773_v9  ;;  %4869 = vrcp.f32 %v968_v56  ;;  %v970_v32 = vadd.f32 1.0, %v4848_v20  ;;  %v659_v20 = vmul.f32 %v5823_v42, %v589_v34 }
  0x85   : > { %v4852_v14 = vpop.eup %4851  ;;  %4871 = vrcp.f32 %v969_v3  ;;  %v971_v28 = vadd.f32 1.0, %v4850_v22  ;;  %4381 = vmatpush3.bf16.msra.mxu0 %v5385_v26  ;;  %v5974_v26 = vmul.f32 %v5913_v11, %v5718_v19  ;;  %v658_v19 = vmul.f32 %v5823_v42, %v588_v10  ;;  %v591_v11 = vld [vmem:[%s5259_s23 + $0x1e0] sm:$0xff]  ;;  %v592_v22 = vld [vmem:[%s5259_s23 + $0x1e8] sm:$0xff] }
  0x86   : > { %v4854_v21 = vpop.eup %4853  ;;  %4873 = vrcp.f32 %v970_v32  ;;  %v972_v38 = vadd.f32 1.0, %v4852_v14  ;;  %4383 = vmatprep.subr.bf16.mxu0 %v5416_v46  ;;  %v6769_v32 = vld [vmem:[#allocation7_spill] sm:$0xff]  ;;  %v661_v10 = vmul.f32 %v5823_v42, %v591_v11  ;;  %v6011_v11 = vadd.f32 %v5802_v24, %v659_v20 }
  0x87   : > { %v4856_v13 = vpop.eup %4855  ;;  %3894 = vmatmul.mubr.f32.gmra.mrb[34].mxu1 %v5946_v1  ;;  %4108 = vmatmul.mubr.f32.gmra.mrb[6].mxu0 %v5787_v60  ;;  %4875 = vrcp.f32 %v971_v28  ;;  %v973_v59 = vadd.f32 1.0, %v4854_v21  ;;  %v593_v21 = vld [vmem:[%s5259_s23 + $0x1f0] sm:$0xff]  ;;  %s3536_s23 = sshll.u32 %s5076_s30, 13 }
  0x88   : > { %v4858_v58 = vpop.eup %4857  ;;  %3896 = vmatprep.mubr.f32.mxu1 %v5952_v25  ;;  %4110 = vmatprep.mubr.f32.mxu0 %v5795_v57  ;;  %4877 = vrcp.f32 %v972_v38  ;;  %v974_v47 = vadd.f32 1.0, %v4856_v13  ;;  %v3357_v13 = vmul.f32 -1.442695, %v5977_v6  ;;  %v6028_v20 = vadd.f32 %v5802_v24, %v661_v10  ;;  %s6673_s21 = scalar_lea.hbm %s6735_s8, %s3536_s23 }
  0x89   : > { %v4860_v56 = vpop.eup %4859  ;;  %4879 = vrcp.f32 %v973_v59  ;;  %v975_v27 = vadd.f32 1.0, %v4858_v58  ;;  %4385 = vmatpush3.bf16.msra.mxu0 %v5416_v46  ;;  %v3356_v46 = vmul.f32 -1.442695, %v5966_v45  ;;  %v6004_v59 = vadd.f32 %v5802_v24, %v658_v19 }
  0x8a   : > { %v4862_v3 = vpop.eup %4861  ;;  %4881 = vrcp.f32 %v974_v47  ;;  %v976_v33 = vadd.f32 1.0, %v4860_v56  ;;  %4387 = vmatprep.subr.bf16.mxu0 %v6769_v32  ;;  %v662_v56 = vmul.f32 %v5823_v42, %v592_v22  ;;  %v663_v19 = vmul.f32 %v5823_v42, %v593_v21 }
  0x8b   : > { %v4864_v14 = vpop.eup %4863  ;;  %3897 = vmatmul.mubr.f32.gmra.mrb[36].mxu1 %v5974_v26  ;;  %4111 = vmatmul.mubr.f32.gmra.mrb[8].mxu0 %v5820_v31  ;;  %4883 = vrcp.f32 %v975_v27  ;;  %v977_v28 = vadd.f32 1.0, %v4862_v3 }
  0x8c   : > { %v4866_v38 = vpop.eup %4865  ;;  %3899 = vmatprep.mubr.f32.mxu1 %v5984_v55  ;;  %4113 = vmatprep.mubr.f32.mxu0 %v5845_v12  ;;  %4885 = vrcp.f32 %v976_v33  ;;  %v978_v34 = vadd.f32 1.0, %v4864_v14  ;;  %v6018_v33 = vadd.f32 %v5802_v24, %v660_v35  ;;  %v6039_v10 = vadd.f32 %v5802_v24, %v662_v56 }
  0x8d   : > { %v4868_v58 = vpop.eup %4867  ;;  %v6008_v47 = vmul.f32 %v4866_v38, %v5767_v15  ;;  %4887 = vrcp.f32 %v977_v28  ;;  %v3358_v28 = vmul.f32 -1.442695, %v6004_v59 }
  0x8e   : > { %v4870_v27 = vpop.eup %4869  ;;  %v6015_v3 = vmul.f32 %v4868_v58, %v5776_v30  ;;  %4889 = vrcp.f32 %v978_v34  ;;  %v664_v30 = vmul.f32 %v5823_v42, %v594_v53  ;;  %v3360_v38 = vmul.f32 -1.442695, %v6018_v33 }
  0x8f   : > { %v4872_v14 = vpop.eup %4871  ;;  %3900 = vmatmul.mubr.f32.gmra.mrb[38].mxu1 %v6008_v47  ;;  %4114 = vmatmul.mubr.f32.gmra.mrb[10].mxu0 %v5853_v43  ;;  %v6024_v15 = vmul.f32 %v4870_v27, %v5781_v2  ;;  %4891 = vpow2.f32 %v5955_v23  ;;  %v3359_v23 = vmul.f32 -1.442695, %v6011_v11  ;;  %v6043_v34 = vadd.f32 %v5802_v24, %v663_v19 }
  0x90   : > { %v4874_v22 = vpop.eup %4873  ;;  %3902 = vmatprep.mubr.f32.mxu1 %v6015_v3  ;;  %4116 = vmatprep.mubr.f32.mxu0 %v5861_v5  ;;  %v6034_v35 = vmul.f32 %v4872_v14, %v5805_v37  ;;  %4893 = vpow2.f32 %v3354_v54  ;;  %v3361_v54 = vmul.f32 -1.442695, %v6028_v20 }
  0x91   : > { %v4876_v2 = vpop.eup %4875  ;;  %4895 = vpow2.f32 %v3355_v18  ;;  %v6048_v37 = vmul.f32 %v4874_v22, %v5813_v7  ;;  %v6052_v18 = vadd.f32 %v5802_v24, %v664_v30  ;;  %v3362_v7 = vmul.f32 -1.442695, %v6039_v10 }
  0x92   : > { %v4878_v21 = vpop.eup %4877  ;;  %4897 = vpow2.f32 %v3356_v46  ;;  %v6057_v58 = vmul.f32 %v4876_v2, %v5830_v50 }
  0x93   : > { %v4880_v53 = vpop.eup %4879  ;;  %3903 = vmatmul.mubr.f32.gmra.mrb[40].mxu1 %v6024_v15  ;;  %4117 = vmatmul.mubr.f32.gmra.mrb[12].mxu0 %v5877_v17  ;;  %4899 = vpow2.f32 %v3357_v13  ;;  %v3363_v13 = vmul.f32 -1.442695, %v6043_v34  ;;  %v6064_v14 = vmul.f32 %v4878_v21, %v5848_v8  ;;  %v3364_v50 = vmul.f32 -1.442695, %v6052_v18 }
  0x94   : > { %v4882_v46 = vpop.eup %4881  ;;  %3905 = vmatprep.mubr.f32.mxu1 %v6034_v35  ;;  %4119 = vmatprep.mubr.f32.mxu0 %v5887_v29  ;;  %6770 = vst [vmem:[#allocation7_spill] sm:$0xff] %v6057_v58  ;;  %4901 = vpow2.f32 %v3358_v28  ;;  %v6070_v22 = vmul.f32 %v4880_v53, %v5856_v41 }
  0x95   : > { %v4884_v56 = vpop.eup %4883  ;;  %4903 = vpow2.f32 %v3359_v23  ;;  %6771 = vst [vmem:[#allocation15_spill] sm:$0xff] %v6064_v14  ;;  %v6075_v8 = vmul.f32 %v4882_v46, %v5866_v16 }
  0x96   : > { %v4886_v27 = vpop.eup %4885  ;;  %4905 = vpow2.f32 %v3360_v38  ;;  %6772 = vst [vmem:[#allocation16_spill] sm:$0xff] %v6070_v22  ;;  %v6080_v41 = vmul.f32 %v4884_v56, %v5872_v0 }
  0x97   : > { %v4888_v19 = vpop.eup %4887  ;;  %3906 = vmatmul.mubr.f32.gmra.mrb[42].mxu1 %v6048_v37  ;;  %4120 = vmatmul.mubr.f32.gmra.mrb[14].mxu0 %v5904_v61  ;;  %4907 = vpow2.f32 %v3361_v54 }
  0x98   : > { %v4890_v30 = vpop.eup %4889  ;;  %3908 = vmatprep.mubr.f32.mxu1 %v6057_v58  ;;  %4122 = vmatprep.mubr.f32.mxu0 %v5910_v4  ;;  %4909 = vpow2.f32 %v3362_v7  ;;  %v6096_v56 = vmul.f32 %v4888_v19, %v5891_v51 }
  0x99   : > { %v4892_v28 = vpop.eup %4891  ;;  %4911 = vpow2.f32 %v3363_v13 }
  0x9a   : > { %v4894_v2 = vpop.eup %4893  ;;  %v979_v23 = vadd.f32 1.0, %v4892_v28  ;;  %4913 = vpow2.f32 %v3364_v50  ;;  %v6085_v50 = vmul.f32 %v4886_v27, %v5882_v63 }
  0x9b   : > { %v4896_v38 = vpop.eup %4895  ;;  %3909 = vmatmul.mubr.f32.gmra.mrb[44].mxu1 %v6064_v14  ;;  %4123 = vmatmul.mubr.f32.gmra.mrb[16].mxu0 %v5925_v49  ;;  %v980_v21 = vadd.f32 1.0, %v4894_v2 }
  0x9c   : > { %v4898_v54 = vpop.eup %4897  ;;  %3911 = vmatprep.mubr.f32.mxu1 %v6070_v22  ;;  %4125 = vmatprep.mubr.f32.mxu0 %v5932_v52  ;;  %4915 = vrcp.f32 %v979_v23  ;;  %v981_v53 = vadd.f32 1.0, %v4896_v38  ;;  %v1187_v38 = vld [vmem:[%s6091_s9] sm:$0xff] }
  0x9d   : > { %v4900_v7 = vpop.eup %4899  ;;  %4917 = vrcp.f32 %v980_v21  ;;  %v982_v13 = vadd.f32 1.0, %v4898_v54  ;;  %v6102_v54 = vmul.f32 %v4890_v30, %v5896_v44  ;;  %v1195_v19 = vmul.f32 %v5823_v42, %v1187_v38 }
  0x9e   : > { %v4902_v28 = vpop.eup %4901  ;;  %4919 = vrcp.f32 %v981_v53  ;;  %v983_v16 = vadd.f32 1.0, %v4900_v7 }
  0x9f   : > { %v4904_v46 = vpop.eup %4903  ;;  %3912 = vmatmul.mubr.f32.gmra.mrb[46].mxu1 %v6075_v8  ;;  %4126 = vmatmul.mubr.f32.gmra.mrb[18].mxu0 %v5946_v1  ;;  %4921 = vrcp.f32 %v982_v13  ;;  %v984_v2 = vadd.f32 1.0, %v4902_v28  ;;  %v6123_v38 = vadd.f32 %v5802_v24, %v1195_v19  ;;  %v1191_v19 = vld [vmem:[%s6091_s9 + $0x20] sm:$0xff] }
  0xa0   : > { %v4906_v0 = vpop.eup %4905  ;;  %3914 = vmatprep.mubr.f32.mxu1 %v6080_v41  ;;  %4128 = vmatprep.mubr.f32.mxu0 %v5952_v25  ;;  %4923 = vrcp.f32 %v983_v16  ;;  %v985_v23 = vadd.f32 1.0, %v4904_v46  ;;  %v1188_v16 = vld [vmem:[%s6091_s9 + $0x8] sm:$0xff] }
  0xa1   : > { %v4908_v63 = vpop.eup %4907  ;;  %4925 = vrcp.f32 %v984_v2  ;;  %v986_v27 = vadd.f32 1.0, %v4906_v0 }
  0xa2   : > { %v4910_v21 = vpop.eup %4909  ;;  %4927 = vrcp.f32 %v985_v23  ;;  %v987_v53 = vadd.f32 1.0, %v4908_v63  ;;  %v1189_v23 = vld [vmem:[%s6091_s9 + $0x10] sm:$0xff] }
  0xa3   : > { %3915 = vmatmul.mubr.f32.gmra.mrb[48].mxu1 %v6085_v50  ;;  %4129 = vmatmul.mubr.f32.gmra.mrb[28].mxu0 %v5974_v26  ;;  %v4912_v7 = vpop.eup %4911  ;;  %4929 = vrcp.f32 %v986_v27  ;;  %v988_v28 = vadd.f32 1.0, %v4910_v21 }
  0xa4   : > { %3917 = vmatprep.mubr.f32.mxu1 %v6096_v56  ;;  %4131 = vmatprep.mubr.f32.mxu0 %v5984_v55  ;;  %v4914_v51 = vpop.eup %4913  ;;  %4931 = vrcp.f32 %v987_v53  ;;  %v989_v30 = vadd.f32 1.0, %v4912_v7  ;;  %v1190_v7 = vld [vmem:[%s6091_s9 + $0x18] sm:$0xff] }
  0xa5   : > { %4933 = vrcp.f32 %v988_v28  ;;  %v990_v53 = vadd.f32 1.0, %v4914_v51 }
  0xa6   : > { %v4916_v13 = vpop.eup %4915  ;;  %4935 = vrcp.f32 %v989_v30  ;;  %v1199_v30 = vmul.f32 %v5823_v42, %v1191_v19 }
  0xa7   : > { %v4918_v46 = vpop.eup %4917  ;;  %3918 = vmatmul.mubr.f32.gmra.mrb[50].mxu1 %v6102_v54  ;;  %4132 = vmatmul.mubr.f32.gmra.mrb[30].mxu0 %v6008_v47  ;;  %v6111_v44 = vmul.f32 %v4916_v13, %v5936_v48  ;;  %v1196_v48 = vmul.f32 %v5823_v42, %v1188_v16  ;;  %v3365_v16 = vmul.f32 -1.442695, %v6123_v38  ;;  %4937 = vrcp.f32 %v990_v53 }
  0xa8   : > { %v4920_v2 = vpop.eup %4919  ;;  %4134 = vmatprep.mubr.f32.mxu0 %v6015_v3  ;;  %v6115_v0 = vmul.f32 %v4918_v46, %v5958_v62 }
  0xa9   : > { %v4922_v63 = vpop.eup %4921  ;;  %3920 = vmatprep.mubr.f32.mxu1 %v6111_v44  ;;  %v6120_v27 = vmul.f32 %v4920_v2, %v5963_v39  ;;  %v1197_v39 = vmul.f32 %v5823_v42, %v1189_v23  ;;  %v6141_v46 = vadd.f32 %v5802_v24, %v1196_v48  ;;  %v1192_v2 = vld [vmem:[%s6091_s9 + $0x28] sm:$0xff]  ;;  %4939 = vpow2.f32 %v3365_v16 }
  0xaa   : > { %v4924_v21 = vpop.eup %4923  ;;  %v6130_v62 = vmul.f32 %v4922_v63, %v5966_v45  ;;  %v1198_v45 = vmul.f32 %v5823_v42, %v1190_v7 }
  0xab   : > { %3921 = vmatmul.mubr.f32.gmra.mrb[52].mxu1 %v6115_v0  ;;  %4135 = vmatmul.mubr.f32.gmra.mrb[32].mxu0 %v6024_v15  ;;  %v4926_v13 = vpop.eup %4925  ;;  %v6137_v51 = vmul.f32 %v4924_v21, %v5977_v6  ;;  %v6153_v23 = vadd.f32 %v5802_v24, %v1197_v39  ;;  %v1193_v21 = vld [vmem:[%s6091_s9 + $0x30] sm:$0xff]  ;;  %v3366_v7 = vmul.f32 -1.442695, %v6141_v46  ;;  %v6172_v39 = vadd.f32 %v5802_v24, %v1199_v30 }
  0xac   : > { %3923 = vmatprep.mubr.f32.mxu1 %v6120_v27  ;;  %4137 = vmatprep.mubr.f32.mxu0 %v6034_v35  ;;  %v4928_v28 = vpop.eup %4927  ;;  %v6150_v6 = vmul.f32 %v4926_v13, %v6004_v59  ;;  %v6163_v19 = vadd.f32 %v5802_v24, %v1198_v45  ;;  %v1200_v59 = vmul.f32 %v5823_v42, %v1192_v2  ;;  %v1276_v2 = vld [vmem:[%s6169_s22] sm:$0xff] }
  0xad   : > { %v4930_v63 = vpop.eup %4929  ;;  %v6158_v48 = vmul.f32 %v4928_v28, %v6011_v11  ;;  %v1194_v11 = vld [vmem:[%s6091_s9 + $0x38] sm:$0xff]  ;;  %v3367_v28 = vmul.f32 -1.442695, %v6153_v23  ;;  %v1201_v16 = vmul.f32 %v5823_v42, %v1193_v21  ;;  %4941 = vpow2.f32 %v3366_v7 }
  0xae   : > { %v4932_v53 = vpop.eup %4931  ;;  %v6178_v13 = vmul.f32 %v4930_v63, %v6018_v33  ;;  %v6190_v33 = vadd.f32 %v5802_v24, %v1200_v59  ;;  %v1202_v63 = vmul.f32 %v5823_v42, %v1194_v11  ;;  %v3369_v21 = vmul.f32 -1.442695, %v6172_v39 }
  0xaf   : > { %3924 = vmatmul.mubr.f32.gmra.mrb[54].mxu1 %v6130_v62  ;;  %4138 = vmatmul.mubr.f32.gmra.mrb[34].mxu0 %v6048_v37  ;;  %v4934_v45 = vpop.eup %4933  ;;  %v6185_v30 = vmul.f32 %v4932_v53, %v6028_v20  ;;  %4943 = vpow2.f32 %v3367_v28  ;;  %v6200_v20 = vadd.f32 %v5802_v24, %v1201_v16  ;;  %v1284_v53 = vmul.f32 %v5823_v42, %v1276_v2 }
  0xb0   : > { %3926 = vmatprep.mubr.f32.mxu1 %v6137_v51  ;;  %4140 = vmatprep.mubr.f32.mxu0 %v6057_v58  ;;  %v4936_v58 = vpop.eup %4935  ;;  %v3370_v11 = vmul.f32 -1.442695, %v6190_v33 }
  0xb1   : > { %v4938_v7 = vpop.eup %4937  ;;  %v6206_v59 = vmul.f32 %v4936_v58, %v6043_v34  ;;  %v6219_v34 = vadd.f32 %v5802_v24, %v1284_v53 }
  0xb2   : > { %v6215_v16 = vmul.f32 %v4938_v7, %v6052_v18 }
  0xb3   : > { %3927 = vmatmul.mubr.f32.gmra.mrb[56].mxu1 %v6150_v6  ;;  %4141 = vmatmul.mubr.f32.gmra.mrb[36].mxu0 %v6064_v14  ;;  %v3368_v14 = vmul.f32 -1.442695, %v6163_v19  ;;  %v4940_v28 = vpop.eup %4939  ;;  %v3373_v18 = vmul.f32 -1.442695, %v6219_v34 }
  0xb4   : > { %3929 = vmatprep.mubr.f32.mxu1 %v6158_v48  ;;  %4143 = vmatprep.mubr.f32.mxu0 %v6070_v22  ;;  %v6197_v22 = vmul.f32 %v4934_v45, %v6039_v10  ;;  %v6210_v10 = vadd.f32 %v5802_v24, %v1202_v63  ;;  %v3371_v45 = vmul.f32 -1.442695, %v6200_v20 }
  0xb5   : > { %4945 = vpow2.f32 %v3368_v14  ;;  %v1235_v14 = vadd.f32 1.0, %v4940_v28  ;;  %v1277_v28 = vld [vmem:[%s6169_s22 + $0x8] sm:$0xff] }
  0xb6   : > { %4947 = vpow2.f32 %v3369_v21  ;;  %v3372_v58 = vmul.f32 -1.442695, %v6210_v10 }
  0xb7   : > { %3930 = vmatmul.mubr.f32.gmra.mrb[58].mxu1 %v6178_v13  ;;  %4144 = vmatmul.mubr.f32.gmra.mrb[38].mxu0 %v6075_v8  ;;  %4949 = vpow2.f32 %v3370_v11  ;;  %v4942_v2 = vpop.eup %4941 }
  0xb8   : > { %3932 = vmatprep.mubr.f32.mxu1 %v6185_v30  ;;  %4146 = vmatprep.mubr.f32.mxu0 %v6080_v41  ;;  %4951 = vpow2.f32 %v3371_v45  ;;  %v1236_v21 = vadd.f32 1.0, %v4942_v2 }
  0xb9   : > { %v4944_v63 = vpop.eup %4943  ;;  %4953 = vpow2.f32 %v3372_v58 }
  0xba   : > { %4955 = vrcp.f32 %v1235_v14  ;;  %v1237_v7 = vadd.f32 1.0, %v4944_v63  ;;  %v1285_v14 = vmul.f32 %v5823_v42, %v1277_v28  ;;  %v1279_v63 = vld [vmem:[%s6169_s22 + $0x18] sm:$0xff] }
  0xbb   : > { %3933 = vmatmul.mubr.f32.gmra.mrb[60].mxu1 %v6197_v22  ;;  %4147 = vmatmul.mubr.f32.gmra.mrb[40].mxu0 %v6085_v50  ;;  %4957 = vpow2.f32 %v3373_v18 }
  0xbc   : > { %3935 = vmatprep.mubr.f32.mxu1 %v6206_v59  ;;  %4149 = vmatprep.mubr.f32.mxu0 %v6096_v56  ;;  %4959 = vrcp.f32 %v1236_v21  ;;  %v1280_v21 = vld [vmem:[%s6169_s22 + $0x20] sm:$0xff] }
  0xbd   : > { %4961 = vrcp.f32 %v1237_v7  ;;  %v6248_v7 = vadd.f32 %v5802_v24, %v1285_v14  ;;  %v1288_v28 = vmul.f32 %v5823_v42, %v1280_v21 }
  0xbf   : > { %3936 = vmatmul.mubr.f32.gmra.mrb[62].mxu1 %v6215_v16  ;;  %4150 = vmatmul.mubr.f32.gmra.mrb[42].mxu0 %v6102_v54  ;;  %v4946_v53 = vpop.eup %4945 }
  0xc0   : > { %4000 = vmatprep.mubr.f32.mxu1 %v5756_v36  ;;  %4152 = vmatprep.mubr.f32.mxu0 %v6111_v44  ;;  %v4948_v36 = vpop.eup %4947  ;;  %v1238_v11 = vadd.f32 1.0, %v4946_v53 }
  0xc1   : > { %v4950_v45 = vpop.eup %4949 }
  0xc2   : > { %v4952_v58 = vpop.eup %4951  ;;  %4963 = vrcp.f32 %v1238_v11  ;;  %v1240_v2 = vadd.f32 1.0, %v4950_v45  ;;  %v1281_v11 = vld [vmem:[%s6169_s22 + $0x28] sm:$0xff] }
  0xc3   : > { %4001 = vmatmul.mubr.f32.vlgmr.msra.gmra.mrb[28].mxu1 %v5764_v40  ;;  %4153 = vmatmul.mubr.f32.gmra.mrb[44].mxu0 %v6115_v0  ;;  %v1278_v40 = vld [vmem:[%s6169_s22 + $0x10] sm:$0xff] }
  0xc4   : > { %4003 = vmatprep.mubr.f32.mxu1 %v5773_v9  ;;  %4155 = vmatprep.mubr.f32.mxu0 %v6120_v27  ;;  %v1239_v9 = vadd.f32 1.0, %v4948_v36  ;;  %v1286_v18 = vmul.f32 %v5823_v42, %v1278_v40  ;;  %v1287_v36 = vmul.f32 %v5823_v42, %v1279_v63 }
  0xc6   : > { %4965 = vrcp.f32 %v1239_v9  ;;  %v1289_v9 = vmul.f32 %v5823_v42, %v1281_v11  ;;  %v6265_v14 = vadd.f32 %v5802_v24, %v1287_v36  ;;  %v5005_v11 = vld [vmem:[%s5264_s26] ss:$0 sm:$0xff]  ;;  %s463_s26 = sand.u32 1, %s5068_s28  }
  0xc7   : > { %4004 = vmatmul.mubr.f32.gmra.mrb[30].mxu1 %v5787_v60  ;;  %4156 = vmatmul.mubr.f32.gmra.mrb[46].mxu0 %v6130_v62  ;;  %v4954_v60 = vpop.eup %4953  ;;  %4967 = vrcp.f32 %v1240_v2  ;;  %v6269_v2 = vadd.f32 %v5802_v24, %v1288_v28  ;;  %s3290_s13 = sshll.u32 %s463_s26, 9  ;;  %s6681_s30 = scalar_lea.sflag [#allocation3], %s463_s26 }
  0xc8   : > { %4006 = vmatprep.mubr.f32.mxu1 %v5795_v57  ;;  %4158 = vmatprep.mubr.f32.mxu0 %v6137_v51  ;;  %v4956_v57 = vpop.eup %4955  ;;  %v1241_v51 = vadd.f32 1.0, %v4952_v58  ;;  %v3374_v58 = vmul.f32 -1.442695, %v6248_v7  ;;  %s6405_s20 = scalar_lea.vmem [#allocation2], %s3290_s13 }
  0xc9   : > { %v4958_v53 = vpop.eup %4957  ;;  %v1259_v45 = vmul.f32 %v4956_v57, %v6123_v38  ;;  %v3376_v57 = vmul.f32 -1.442695, %v6265_v14  ;;  %s3122_s9 = sshll.u32 %s6405_s20, 4  ;;  %s6675_s9 = int_to_ptr.vmem [resolvable:$true] %s3122_s9 }
  0xca   : > { %4969 = vrcp.f32 %v1241_v51  ;;  %v1324_v40 = vadd.f32 1.0, %v4958_v53  ;;  %p5013_p1 = scmp.lt.s32.totalorder %s6675_s9, %s5011_s11 }
  0xcb   : > { %4007 = vmatmul.mubr.f32.gmra.mrb[32].mxu1 %v5820_v31  ;;  %4159 = vmatmul.mubr.f32.gmra.mrb[48].mxu0 %v6150_v6  ;;  %v1242_v31 = vadd.f32 1.0, %v4954_v60  ;;  %v6253_v6 = vadd.f32 %v5802_v24, %v1286_v18  ;;  %v1268_v63 = vmul.f32 0.0, %v1259_v45  ;;  %v6279_v60 = vadd.f32 %v5802_v24, %v1289_v9 }
  0xcc   : > { %4009 = vmatprep.mubr.f32.mxu1 %v5845_v12  ;;  %4161 = vmatprep.mubr.f32.mxu0 %v6158_v48  ;;  %v1282_v12 = vld [vmem:[%s6169_s22 + $0x30] sm:$0xff]  ;;  %v4960_v48 = vpop.eup %4959 }
  0xcd   : > { %4971 = vrcp.f32 %v1242_v31  ;;  %v1260_v38 = vmul.f32 %v4960_v48, %v6141_v46  ;;  %v3377_v46 = vmul.f32 -1.442695, %v6269_v2 }
  0xce   : > { %4973 = vrcp.f32 %v1324_v40 }
  0xcf   : > { %4010 = vmatmul.mubr.f32.gmra.mrb[34].mxu1 %v5853_v43  ;;  %4162 = vmatmul.mubr.f32.gmra.mrb[50].mxu0 %v6178_v13  ;;  %v4962_v43 = vpop.eup %4961  ;;  %v3375_v13 = vmul.f32 -1.442695, %v6253_v6  ;;  %4975 = vpow2.f32 %v3374_v58 }
  0xd0   : > { %4012 = vmatprep.mubr.f32.mxu1 %v5861_v5  ;;  %4164 = vmatprep.mubr.f32.mxu0 %v6185_v30  ;;  %v1290_v5 = vmul.f32 %v5823_v42, %v1282_v12  ;;  %v1283_v30 = vld [vmem:[%s6169_s22 + $0x38] sm:$0xff]  ;;  %v4964_v18 = vpop.eup %4963  ;;  %v1261_v21 = vmul.f32 %v4962_v43, %v6153_v23  ;;  %s5006_s22 = scalar_lea.vmem %s6675_s9, 8192 }
  0xd1   : > { %4977 = vpow2.f32 %v3375_v13  ;;  %v1262_v23 = vmul.f32 %v4964_v18, %v6163_v19  ;;  %v6776_v18 = vld [vmem:[#allocation11_spill] sm:$0xff]  ;;  %p5007_p12 = scmp.ne.s32.totalorder %s6675_s9, %s5006_s22 }
  0xd2   : > { %v1270_v53 = vmul.f32 0.0, %v1261_v21  ;;  %4979 = vpow2.f32 %v3376_v57 }
  0xd3   : > { %4013 = vmatmul.mubr.f32.gmra.mrb[36].mxu1 %v5877_v17  ;;  %4165 = vmatmul.mubr.f32.gmra.mrb[52].mxu0 %v6197_v22  ;;  %v1291_v17 = vmul.f32 %v5823_v42, %v1283_v30  ;;  %v4966_v22 = vpop.eup %4965  ;;  %v3378_v42 = vmul.f32 -1.442695, %v6279_v60  ;;  %4981 = vpow2.f32 %v3377_v46  ;;  %v1271_v19 = vmul.f32 0.0, %v1262_v23  ;;  %v6780_v46 = vld [vmem:[#allocation15_spill] sm:$0xff]  ;;  %v6781_v23 = vld [vmem:[#allocation16_spill] sm:$0xff]  ;;  %p5008_p13 = pnand %p5007_p12, %p5174_p4 }
  0xd4   : > { %4015 = vmatprep.mubr.f32.mxu1 %v5887_v29  ;;  %4167 = vmatprep.mubr.f32.mxu0 %v6206_v59  ;;  %v6286_v29 = vadd.f32 %v5802_v24, %v1290_v5  ;;  %v1269_v59 = vmul.f32 0.0, %v1260_v38  ;;  %v4968_v51 = vpop.eup %4967  ;;  %v1263_v36 = vmul.f32 %v4966_v22, %v6172_v39  ;;  %v6773_v39 = vld [vmem:[#allocation8_spill] sm:$0xff] }
  0xd5   : > { %v6295_v24 = vadd.f32 %v5005_v11, %v1291_v17  ;;  %v4970_v31 = vpop.eup %4969  ;;  %4983 = vpow2.f32 %v3378_v42  ;;  %v6778_v17 = vld [vmem:[#allocation7_spill] sm:$0xff]  ;;  %v6782_v42 = vld [vmem:[#allocation14_spill] sm:$0xff]  ;;  %p5009_p0 = pneg %p5008_p13 }
  0xd6   : > { %v1272_v28 = vmul.f32 0.0, %v1263_v36  ;;  %v1265_v12 = vmul.f32 %v4970_v31, %v6200_v20 }
  0xd7   : > { %4016 = vmatmul.mubr.f32.gmra.mrb[38].mxu1 %v5904_v61  ;;  %4168 = vmatmul.mubr.f32.gmra.mrb[54].mxu0 %v6215_v16  ;;  %v3379_v61 = vmul.f32 -1.442695, %v6286_v29  ;;  %v4972_v16 = vpop.eup %4971  ;;  %v3380_v48 = vmul.f32 -1.442695, %v6295_v24 }
  0xd8   : > { %4018 = vmatprep.mubr.f32.mxu1 %v5910_v4  ;;  %4202 = vmatprep.mubr.f32.mxu0 %v1268_v63  ;;  %v1264_v4 = vmul.f32 %v4968_v51, %v6190_v33  ;;  %v4974_v45 = vpop.eup %4973  ;;  %v1274_v20 = vmul.f32 0.0, %v1265_v12 }
  0xd9   : > { %4985 = vpow2.f32 %v3379_v61  ;;  %v1348_v9 = vmul.f32 %v4974_v45, %v6219_v34 }
  0xda   : > { %v1273_v33 = vmul.f32 0.0, %v1264_v4  ;;  %4987 = vpow2.f32 %v3380_v48 }
  0xdb   : > { %4019 = vmatmul.mubr.f32.gmra.mrb[40].mxu1 %v5925_v49  ;;  %4203 = vmatmul.mubr.f32.vlgmr.msra.gmra.mrb[20].mxu0 %v1269_v59  ;;  %v4976_v49 = vpop.eup %4975  ;;  %v1357_v5 = vmul.f32 0.0, %v1348_v9 }
  0xdc   : > { %4389 = vmatpush3.bf16.msra.mxu0 %v6769_v32  ;;  %4021 = vmatprep.mubr.f32.mxu1 %v5932_v52  ;;  %v1266_v32 = vmul.f32 %v4972_v16, %v6210_v10  ;;  %v4978_v40 = vpop.eup %4977  ;;  %v6774_v52 = vld [vmem:[#allocation9_spill] sm:$0xff]  ;;  %v1325_v58 = vadd.f32 1.0, %v4976_v49 }
  0xdd   : > { %4205 = vmatprep.mubr.f32.mxu0 %v1270_v53  ;;  %4391 = vmatprep.subr.bf16.mxu0 %v6773_v39  ;;  %v4980_v43 = vpop.eup %4979  ;;  %v1326_v13 = vadd.f32 1.0, %v4978_v40 }
  0xde   : > { %v4982_v10 = vpop.eup %4981  ;;  %4989 = vrcp.f32 %v1325_v58  ;;  %v1327_v30 = vadd.f32 1.0, %v4980_v43 }
  0xdf   : > { %4022 = vmatmul.mubr.f32.gmra.mrb[42].mxu1 %v5946_v1  ;;  %4206 = vmatmul.mubr.f32.gmra.mrb[22].mxu0 %v1271_v19  ;;  %v1275_v1 = vmul.f32 0.0, %v1266_v32  ;;  %v4984_v34 = vpop.eup %4983  ;;  %4991 = vrcp.f32 %v1326_v13 }
  0xe0   : > { %4393 = vmatpush3.bf16.msra.mxu0 %v6773_v39  ;;  %4024 = vmatprep.mubr.f32.mxu1 %v5952_v25  ;;  %v6775_v25 = vld [vmem:[#allocation10_spill] sm:$0xff]  ;;  %4993 = vrcp.f32 %v1327_v30  ;;  %v6394_v30 = vld [vmem:[%s6733_s6] ss:$0 sm:$0xff] }
  0xe1   : > { %4208 = vmatprep.mubr.f32.mxu0 %v1272_v28  ;;  %4395 = vmatprep.subr.bf16.mxu0 %v6774_v52 }
  0xe3   : > { %4025 = vmatmul.mubr.f32.gmra.mrb[44].mxu1 %v5974_v26  ;;  %4209 = vmatmul.mubr.f32.gmra.mrb[24].mxu0 %v1273_v33  ;;  %v1328_v26 = vadd.f32 1.0, %v4982_v10  ;;  %v4986_v38 = vpop.eup %4985 }
  0xe4   : > { %4397 = vmatpush3.bf16.msra.mxu0 %v6774_v52  ;;  %4027 = vmatprep.mubr.f32.mxu1 %v5984_v55  ;;  %v1329_v55 = vadd.f32 1.0, %v4984_v34  ;;  %v4988_v63 = vpop.eup %4987  ;;  %v1330_v21 = vadd.f32 1.0, %v4986_v38 }
  0xe5   : > { %4211 = vmatprep.mubr.f32.mxu0 %v1274_v20  ;;  %4399 = vmatprep.subr.bf16.mxu0 %v6775_v25  ;;  %4995 = vrcp.f32 %v1328_v26  ;;  %v1331_v57 = vadd.f32 1.0, %v4988_v63 }
  0xe6   : > { %4997 = vrcp.f32 %v1329_v55 }
  0xe7   : > { %4028 = vmatmul.mubr.f32.gmra.mrb[46].mxu1 %v6008_v47  ;;  %4212 = vmatmul.mubr.f32.gmra.mrb[26].mxu0 %v1275_v1  ;;  %v6777_v47 = vld [vmem:[#allocation12_spill] sm:$0xff]  ;;  %4999 = vrcp.f32 %v1330_v21  ;;  %v3414_v21 = vld [vmem:[%s6389_s12 + $0x40] sm:$0xff] }
  0xe8   : > { %4401 = vmatpush3.bf16.msra.mxu0 %v6775_v25  ;;  %4030 = vmatprep.mubr.f32.mxu1 %v6015_v3  ;;  %v4990_v3 = vpop.eup %4989  ;;  %5001 = vrcp.f32 %v1331_v57 }
  0xe9   : > { %4403 = vmatprep.subr.bf16.mxu0 %v6776_v18  ;;  %4246 = vmatprep.mubr.f32.mxu0 %v1357_v5  ;;  %v4992_v22 = vpop.eup %4991 }
  0xea   : > { %v4994_v59 = vpop.eup %4993 }
  0xeb   : > { %4031 = vmatmul.mubr.f32.gmra.mrb[48].mxu1 %v6024_v15  ;;  %v6779_v15 = vld [vmem:[#allocation13_spill] sm:$0xff]  ;;  %v1351_v36 = vmul.f32 %v4994_v59, %v6265_v14 }
  0xec   : > { %4405 = vmatpush3.bf16.msra.mxu0 %v6776_v18  ;;  %4033 = vmatprep.mubr.f32.mxu1 %v6034_v35  ;;  %v1349_v35 = vmul.f32 %v4990_v3, %v6248_v7  ;;  %v3415_v18 = vld [vmem:[%s6389_s12 + $0x48] sm:$0xff] }
  0xed   : > { %4407 = vmatprep.subr.bf16.mxu0 %v6777_v47 }
  0xee   : > { %v1358_v53 = vmul.f32 0.0, %v1349_v35 }
  0xef   : > { %4034 = vmatmul.mubr.f32.gmra.mrb[50].mxu1 %v6048_v37  ;;  %v1350_v37 = vmul.f32 %v4992_v22, %v6253_v6  ;;  %v4996_v51 = vpop.eup %4995  ;;  %v1360_v6 = vmul.f32 0.0, %v1351_v36 }
  0xf0   : > { %4409 = vmatpush3.bf16.msra.mxu0 %v6777_v47  ;;  %4036 = vmatprep.mubr.f32.mxu1 %v6778_v17  ;;  %v4998_v11 = vpop.eup %4997  ;;  %v1352_v31 = vmul.f32 %v4996_v51, %v6269_v2 }
  0xf1   : > { %4411 = vmatprep.subr.bf16.mxu0 %v6779_v15  ;;  %v1359_v7 = vmul.f32 0.0, %v1350_v37  ;;  %v5000_v61 = vpop.eup %4999  ;;  %v1353_v19 = vmul.f32 %v4998_v11, %v6279_v60 }
  0xf2   : > { %v5002_v4 = vpop.eup %5001  ;;  %v1354_v14 = vmul.f32 %v5000_v61, %v6286_v29 }
  0xf3   : > { %4037 = vmatmul.mubr.f32.gmra.mrb[52].mxu1 %v6780_v46  ;;  %v1355_v2 = vmul.f32 %v5002_v4, %v6295_v24  ;;  %v3417_v46 = vld [vmem:[%s6389_s12 + $0x58] sm:$0xff] }
  0xf4   : > { %4413 = vmatpush3.bf16.msra.mxu0 %v6779_v15  ;;  %4039 = vmatprep.mubr.f32.mxu1 %v6781_v23  ;;  %v3416_v23 = vld [vmem:[%s6389_s12 + $0x50] sm:$0xff] }
  0xf5   : > { %4415 = vmatprep.subr.bf16.mxu0 %v6782_v42  ;;  %v1364_v60 = vmul.f32 0.0, %v1355_v2 }
  0xf7   : > { %4040 = vmatmul.mubr.f32.gmra.mrb[54].mxu1 %v6075_v8  ;;  %v1361_v8 = vmul.f32 0.0, %v1352_v31 }
  0xf8   : > { %4417 = vmatpush3.bf16.msra.mxu0 %v6782_v42  ;;  %4042 = vmatprep.mubr.f32.mxu1 %v6080_v41  ;;  %v1362_v41 = vmul.f32 0.0, %v1353_v19 }
  0xfb   : > { %4043 = vmatmul.mubr.f32.gmra.mrb[56].mxu1 %v6085_v50  ;;  %4247 = vmatmul.mubr.f32.vlgmr.msra.gmra.mrb[56].mxu0 %v1358_v53  ;;  %v1363_v50 = vmul.f32 0.0, %v1354_v14 }
  0xfc   : > { %4045 = vmatprep.mubr.f32.mxu1 %v6096_v56  ;;  %4249 = vmatprep.mubr.f32.mxu0 %v1359_v7  ;;  %v3419_v7 = vld [vmem:[%s6389_s12 + $0x68] sm:$0xff] }
  0xff   : > { %4046 = vmatmul.mubr.f32.gmra.mrb[58].mxu1 %v6102_v54  ;;  %4250 = vmatmul.mubr.f32.gmra.mrb[58].mxu0 %v1360_v6  ;;  %v3418_v6 = vld [vmem:[%s6389_s12 + $0x60] sm:$0xff] }
 0x100   : > { %4048 = vmatprep.mubr.f32.mxu1 %v6111_v44  ;;  %4252 = vmatprep.mubr.f32.mxu0 %v1361_v8 }
 0x103   : > { %4049 = vmatmul.mubr.f32.gmra.mrb[60].mxu1 %v6115_v0  ;;  %4253 = vmatmul.mubr.f32.gmra.mrb[60].mxu0 %v1362_v41 }
 0x104   : > { %4051 = vmatprep.mubr.f32.mxu1 %v6120_v27  ;;  %4255 = vmatprep.mubr.f32.mxu0 %v1363_v50  ;;  %v3421_v50 = vld [vmem:[%s6389_s12 + $0x78] sm:$0xff] }
 0x107   : > { %4052 = vmatmul.mubr.f32.gmra.mrb[62].mxu1 %v6130_v62  ;;  %4256 = vmatmul.mubr.f32.gmra.mrb[62].mxu0 %v1364_v60 }
 0x115   : > { %v6348_v56 = vpop.f32.mrb[0].mxu1 }
 0x116   : > { %v6350_v54 = vpop.f32.mrb[1].mxu1 }
 0x119   : > { %v6352_v29 = vpop.f32.mrb[2].mxu1 }
 0x11a   : > { %v6354_v24 = vpop.f32.mrb[3].mxu1 }
 0x11d   : > { %v6356_v44 = vpop.f32.mrb[4].mxu1 }
 0x11e   : > { %v6358_v16 = vpop.f32.mrb[5].mxu1 }
 0x121   : > { %v6360_v0 = vpop.f32.mrb[6].mxu1 }
 0x122   : > { %v6362_v39 = vpop.f32.mrb[7].mxu1 }
 0x125   : > { %v3856_v27 = vpop.f32.mrb[8].mxu1 }
 0x126   : > { %v1522_v28 = vpop.f32.mrb[9].mxu1  ;;  %v2756_v34 = vadd.f32 %v3856_v27, %v6394_v30 }
 0x127   : > { %v2755_v26 = vadd.f32 %v6394_v30, %v1522_v28  ;;  %v3420_v28 = vld [vmem:[%s6389_s12 + $0x70] sm:$0xff] }
 0x129   : > { %v3859_v62 = vpop.f32.mrb[10].mxu1 }
 0x12a   : > { %v1532_v12 = vpop.f32.mrb[11].mxu1  ;;  %v2758_v57 = vadd.f32 %v3859_v62, %v6394_v30 }
 0x12b   : > { %v2757_v17 = vadd.f32 %v6394_v30, %v1532_v12 }
 0x12e   : > { %v3862_v48 = vpop.f32.mrb[12].mxu1 }
 0x12f   : > { %v1542_v45 = vpop.f32.mrb[13].mxu1  ;;  %v2760_v51 = vadd.f32 %v3862_v48, %v6394_v30 }
 0x130   : > { %v2759_v53 = vadd.f32 %v6394_v30, %v1542_v45 }
 0x132   : > { %v3865_v49 = vpop.f32.mrb[14].mxu1 }
 0x133   : > { %v1552_v33 = vpop.f32.mrb[15].mxu1  ;;  %v2762_v4 = vadd.f32 %v3865_v49, %v6394_v30 }
 0x134   : > { %v2761_v14 = vadd.f32 %v6394_v30, %v1552_v33 }
 0x136   : > { %v3868_v32 = vpop.f32.mrb[16].mxu1 }
 0x137   : > { %v1562_v40 = vpop.f32.mrb[17].mxu1  ;;  %v2806_v12 = vadd.f32 %v3868_v32, %v6394_v30 }
 0x138   : > { %v2805_v45 = vadd.f32 %v6394_v30, %v1562_v40 }
 0x13a   : > { %v6364_v52 = vpop.f32.mrb[18].mxu1 }
 0x13b   : > { %v6366_v20 = vpop.f32.mrb[19].mxu1 }
 0x13c   : > { %v2807_v40 = vadd.f32 %v6394_v30, %v6366_v20 }
 0x13e   : > { %v6368_v9 = vpop.f32.mrb[20].mxu1 }
 0x13f   : > { %v6370_v58 = vpop.f32.mrb[21].mxu1 }
 0x140   : > { %v2809_v20 = vadd.f32 %v6394_v30, %v6370_v58 }
 0x142   : > { %v6372_v43 = vpop.f32.mrb[22].mxu1 }
 0x143   : > { %v6374_v1 = vpop.f32.mrb[23].mxu1 }
 0x144   : > { %v2811_v58 = vadd.f32 %v6394_v30, %v6374_v1 }
 0x146   : > { %v6376_v13 = vpop.f32.mrb[24].mxu1 }
 0x147   : > { %v6378_v10 = vpop.f32.mrb[25].mxu1 }
 0x148   : > { %v2855_v1 = vadd.f32 %v6394_v30, %v6378_v10 }
 0x14a   : > { %v6380_v25 = vpop.f32.mrb[26].mxu1 }
 0x14b   : > { %v6383_v5 = vpop.f32.mrb[27].mxu1 }
 0x14c   : > { %v2857_v10 = vadd.f32 %v6394_v30, %v6383_v5 }
 0x14e   : > { %v4100_v38 = vpop.f32.mrb[0].mxu0 }
 0x14f   : > { %v4451_v55 = vadd.f32 %v4100_v38, %v2756_v34  ;;  %v2252_v63 = vpop.f32.mrb[1].mxu0  ;;  %v3431_v34 = vld [vmem:[%s6389_s12 + $0x88] sm:$0xff] }
 0x150   : > { %v4453_v47 = vadd.f32 %v2755_v26, %v2252_v63  ;;  %v2808_v63 = vadd.f32 %v6364_v52, %v6394_v30  ;;  %v2810_v52 = vadd.f32 %v6368_v9, %v6394_v30  ;;  %v2812_v9 = vadd.f32 %v6372_v43, %v6394_v30 }
 0x151   : > { %v2789_v3 = vadd.f32 %v4451_v55, %v3415_v18  ;;  %v3430_v18 = vld [vmem:[%s6389_s12 + $0x80] sm:$0xff]  ;;  %v2856_v43 = vadd.f32 %v6376_v13, %v6394_v30  ;;  %v2858_v13 = vadd.f32 %v6380_v25, %v6394_v30 }
 0x152   : > { %v2788_v22 = vadd.f32 %v4453_v47, %v3414_v21  ;;  %v4103_v15 = vpop.f32.mrb[2].mxu0 }
 0x153   : > { %3423 = vst [vmem:[%s6405_s20 + $0x48] sm:$0xff] %v2789_v3  ;;  %v4455_v35 = vadd.f32 %v4103_v15, %v2758_v57  ;;  %v2262_v59 = vpop.f32.mrb[3].mxu0  ;;  %v3433_v57 = vld [vmem:[%s6389_s12 + $0x98] sm:$0xff] }
 0x154   : > { %3422 = vst [vmem:[%s6405_s20 + $0x40] sm:$0xff] %v2788_v22  ;;  %v4457_v37 = vadd.f32 %v2757_v17, %v2262_v59  ;;  %v3432_v22 = vld [vmem:[%s6389_s12 + $0x90] sm:$0xff] }
 0x155   : > { %v2791_v42 = vadd.f32 %v4455_v35, %v3417_v46 }
 0x156   : > { %v2790_v36 = vadd.f32 %v4457_v37, %v3416_v23  ;;  %v4106_v11 = vpop.f32.mrb[4].mxu0  ;;  %v3435_v23 = vld [vmem:[%s6389_s12 + $0xa8] sm:$0xff] }
 0x157   : > { %3425 = vst [vmem:[%s6405_s20 + $0x58] sm:$0xff] %v2791_v42  ;;  %v4459_v31 = vadd.f32 %v4106_v11, %v2760_v51  ;;  %v2272_v61 = vpop.f32.mrb[5].mxu0  ;;  %v3434_v42 = vld [vmem:[%s6389_s12 + $0xa0] sm:$0xff] }
 0x158   : > { %3424 = vst [vmem:[%s6405_s20 + $0x50] sm:$0xff] %v2790_v36  ;;  %v4461_v19 = vadd.f32 %v2759_v53, %v2272_v61 }
 0x159   : > { %v2793_v8 = vadd.f32 %v4459_v31, %v3419_v7  ;;  %v3437_v31 = vld [vmem:[%s6389_s12 + $0xb8] sm:$0xff] }
 0x15a   : > { %v2792_v41 = vadd.f32 %v4461_v19, %v3418_v6  ;;  %v4109_v2 = vpop.f32.mrb[6].mxu0  ;;  %v3436_v19 = vld [vmem:[%s6389_s12 + $0xb0] sm:$0xff] }
 0x15b   : > { %3427 = vst [vmem:[%s6405_s20 + $0x68] sm:$0xff] %v2793_v8  ;;  %v4463_v60 = vadd.f32 %v4109_v2, %v2762_v4  ;;  %v2282_v27 = vpop.f32.mrb[7].mxu0  ;;  %v3447_v2 = vld [vmem:[%s6389_s12 + $0xc8] sm:$0xff] }
 0x15c   : > { %3426 = vst [vmem:[%s6405_s20 + $0x60] sm:$0xff] %v2792_v41  ;;  %v4465_v62 = vadd.f32 %v2761_v14, %v2282_v27  ;;  %v3446_v27 = vld [vmem:[%s6389_s12 + $0xc0] sm:$0xff] }
 0x15d   : > { %v2795_v48 = vadd.f32 %v4463_v60, %v3421_v50 }
 0x15e   : > { %v2794_v49 = vadd.f32 %v4465_v62, %v3420_v28  ;;  %v4112_v33 = vpop.f32.mrb[8].mxu0 }
 0x15f   : > { %3429 = vst [vmem:[%s6405_s20 + $0x78] sm:$0xff] %v2795_v48  ;;  %v4467_v26 = vadd.f32 %v4112_v33, %v2806_v12  ;;  %v2292_v38 = vpop.f32.mrb[9].mxu0 }
 0x160   : > { %3428 = vst [vmem:[%s6405_s20 + $0x70] sm:$0xff] %v2794_v49  ;;  %v4469_v55 = vadd.f32 %v2805_v45, %v2292_v38  ;;  %v3449_v45 = vld [vmem:[%s6389_s12 + $0xd8] sm:$0xff] }
 0x161   : > { %v2839_v32 = vadd.f32 %v4467_v26, %v3431_v34  ;;  %v3448_v34 = vld [vmem:[%s6389_s12 + $0xd0] sm:$0xff] }
 0x162   : > { %v2838_v21 = vadd.f32 %v4469_v55, %v3430_v18  ;;  %v4115_v47 = vpop.f32.mrb[10].mxu0 }
 0x163   : > { %3439 = vst [vmem:[%s6405_s20 + $0x88] sm:$0xff] %v2839_v32  ;;  %v4471_v3 = vadd.f32 %v4115_v47, %v2808_v63  ;;  %v2302_v17 = vpop.f32.mrb[11].mxu0 }
 0x164   : > { %3438 = vst [vmem:[%s6405_s20 + $0x80] sm:$0xff] %v2838_v21  ;;  %v4473_v15 = vadd.f32 %v2807_v40, %v2302_v17 }
 0x165   : > { %v2841_v46 = vadd.f32 %v4471_v3, %v3433_v57 }
 0x166   : > { %v2840_v35 = vadd.f32 %v4473_v15, %v3432_v22  ;;  %v4118_v59 = vpop.f32.mrb[12].mxu0 }
 0x167   : > { %3441 = vst [vmem:[%s6405_s20 + $0x98] sm:$0xff] %v2841_v46  ;;  %v4475_v37 = vadd.f32 %v4118_v59, %v2810_v52  ;;  %v2312_v51 = vpop.f32.mrb[13].mxu0 }
 0x168   : > { %3440 = vst [vmem:[%s6405_s20 + $0x90] sm:$0xff] %v2840_v35  ;;  %v4477_v53 = vadd.f32 %v2809_v20, %v2312_v51 }
 0x169   : > { %v2843_v36 = vadd.f32 %v4475_v37, %v3435_v23 }
 0x16a   : > { %v2842_v11 = vadd.f32 %v4477_v53, %v3434_v42  ;;  %v4121_v7 = vpop.f32.mrb[14].mxu0  ;;  %v3451_v42 = vld [vmem:[%s6389_s12 + $0xe8] sm:$0xff] }
 0x16b   : > { %3443 = vst [vmem:[%s6405_s20 + $0xa8] sm:$0xff] %v2843_v36  ;;  %v4479_v61 = vadd.f32 %v4121_v7, %v2812_v9  ;;  %v2322_v6 = vpop.f32.mrb[15].mxu0  ;;  %v3450_v36 = vld [vmem:[%s6389_s12 + $0xe0] sm:$0xff] }
 0x16c   : > { %3442 = vst [vmem:[%s6405_s20 + $0xa0] sm:$0xff] %v2842_v11  ;;  %v4481_v4 = vadd.f32 %v2811_v58, %v2322_v6 }
 0x16d   : > { %v2845_v8 = vadd.f32 %v4479_v61, %v3437_v31 }
 0x16e   : > { %v2844_v14 = vadd.f32 %v4481_v4, %v3436_v19  ;;  %v4124_v41 = vpop.f32.mrb[16].mxu0 }
 0x16f   : > { %3445 = vst [vmem:[%s6405_s20 + $0xb8] sm:$0xff] %v2845_v8  ;;  %v4483_v50 = vadd.f32 %v4124_v41, %v2856_v43  ;;  %v2332_v60 = vpop.f32.mrb[17].mxu0  ;;  %v3453_v43 = vld [vmem:[%s6389_s12 + $0xf8] sm:$0xff] }
 0x170   : > { %3444 = vst [vmem:[%s6405_s20 + $0xb0] sm:$0xff] %v2844_v14  ;;  %v4485_v28 = vadd.f32 %v2855_v1, %v2332_v60  ;;  %v3452_v14 = vld [vmem:[%s6389_s12 + $0xf0] sm:$0xff] }
 0x171   : > { %v2889_v62 = vadd.f32 %v4483_v50, %v3447_v2 }
 0x172   : > { %v2888_v12 = vadd.f32 %v4485_v28, %v3446_v27  ;;  %v4127_v48 = vpop.f32.mrb[18].mxu0 }
 0x173   : > { %3455 = vst [vmem:[%s6405_s20 + $0xc8] sm:$0xff] %v2889_v62  ;;  %v4487_v49 = vadd.f32 %v4127_v48, %v2858_v13  ;;  %v2342_v33 = vpop.f32.mrb[19].mxu0 }
 0x174   : > { %3454 = vst [vmem:[%s6405_s20 + $0xc0] sm:$0xff] %v2888_v12  ;;  %v4489_v26 = vadd.f32 %v2857_v10, %v2342_v33  ;;  %v3463_v10 = vld [vmem:[%s6389_s12 + $0x108] sm:$0xff] }
 0x175   : > { %v2891_v38 = vadd.f32 %v4487_v49, %v3449_v45  ;;  %v3462_v45 = vld [vmem:[%s6389_s12 + $0x100] sm:$0xff] }
 0x176   : > { %v2890_v18 = vadd.f32 %v4489_v26, %v3448_v34  ;;  %v4130_v55 = vpop.f32.mrb[28].mxu0 }
 0x177   : > { %3457 = vst [vmem:[%s6405_s20 + $0xd8] sm:$0xff] %v2891_v38  ;;  %v2352_v63 = vpop.f32.mrb[29].mxu0 }
 0x178   : > { %3456 = vst [vmem:[%s6405_s20 + $0xd0] sm:$0xff] %v2890_v18 }
 0x17a   : > { %v4133_v25 = vpop.f32.mrb[30].mxu0 }
 0x17b   : > { %v2362_v32 = vpop.f32.mrb[31].mxu0 }
 0x17e   : > { %v4136_v40 = vpop.f32.mrb[32].mxu0 }
 0x17f   : > { %v2372_v21 = vpop.f32.mrb[33].mxu0 }
 0x182   : > { %v4139_v5 = vpop.f32.mrb[34].mxu0 }
 0x183   : > { %v2382_v47 = vpop.f32.mrb[35].mxu0 }
 0x186   : > { %v6470_v57 = vpop.f32.mrb[36].mxu0 }
 0x187   : > { %v6472_v3 = vpop.f32.mrb[37].mxu0 }
 0x18a   : > { %v6474_v17 = vpop.f32.mrb[38].mxu0 }
 0x18b   : > { %v6476_v22 = vpop.f32.mrb[39].mxu0 }
 0x18e   : > { %v6478_v15 = vpop.f32.mrb[40].mxu0 }
 0x18f   : > { %v6480_v52 = vpop.f32.mrb[41].mxu0 }
 0x192   : > { %v6482_v46 = vpop.f32.mrb[42].mxu0 }
 0x193   : > { %v6484_v20 = vpop.f32.mrb[43].mxu0 }
 0x196   : > { %v4002_v35 = vpop.f32.mrb[28].mxu1  ;;  %v6486_v59 = vpop.f32.mrb[44].mxu0 }
 0x197   : > { %v4490_v23 = vadd.f32 %v4002_v35, %v6394_v30  ;;  %v1967_v37 = vpop.f32.mrb[29].mxu1  ;;  %v6489_v51 = vpop.f32.mrb[45].mxu0 }
 0x198   : > { %v4492_v53 = vadd.f32 %v6394_v30, %v1967_v37 }
 0x199   : > { %v4491_v9 = vadd.f32 %v4490_v23, %v4130_v55 }
 0x19a   : > { %v4493_v58 = vadd.f32 %v4492_v53, %v2352_v63  ;;  %v4005_v11 = vpop.f32.mrb[30].mxu1  ;;  %v6494_v7 = vpop.f32.mrb[46].mxu0 }
 0x19b   : > { %v2893_v31 = vadd.f32 %v4491_v9, %v3451_v42  ;;  %v4494_v61 = vadd.f32 %v4005_v11, %v6394_v30  ;;  %v1977_v6 = vpop.f32.mrb[31].mxu1  ;;  %v6497_v19 = vpop.f32.mrb[47].mxu0  ;;  %v3467_v11 = vld [vmem:[%s6389_s12 + $0x128] sm:$0xff] }
 0x19c   : > { %v2892_v4 = vadd.f32 %v4493_v58, %v3450_v36  ;;  %v4496_v8 = vadd.f32 %v6394_v30, %v1977_v6 }
 0x19d   : > { %3459 = vst [vmem:[%s6405_s20 + $0xe8] sm:$0xff] %v2893_v31  ;;  %v4495_v1 = vadd.f32 %v4494_v61, %v4133_v25  ;;  %v3465_v25 = vld [vmem:[%s6389_s12 + $0x118] sm:$0xff] }
 0x19e   : > { %3458 = vst [vmem:[%s6405_s20 + $0xe0] sm:$0xff] %v2892_v4  ;;  %v4497_v41 = vadd.f32 %v4496_v8, %v2362_v32  ;;  %v4008_v2 = vpop.f32.mrb[32].mxu1  ;;  %v6504_v50 = vpop.f32.mrb[48].mxu0 }
 0x19f   : > { %v2895_v60 = vadd.f32 %v4495_v1, %v3453_v43  ;;  %v4498_v27 = vadd.f32 %v4008_v2, %v6394_v30  ;;  %v1987_v28 = vpop.f32.mrb[33].mxu1  ;;  %v6507_v13 = vpop.f32.mrb[49].mxu0  ;;  %v3469_v2 = vld [vmem:[%s6389_s12 + $0x138] sm:$0xff] }
 0x1a0   : > { %v2894_v62 = vadd.f32 %v4497_v41, %v3452_v14  ;;  %v4500_v12 = vadd.f32 %v6394_v30, %v1987_v28  ;;  %v2707_v28 = vadd.f32 %v6394_v30, %v6350_v54 }
 0x1a1   : > { %3461 = vst [vmem:[%s6405_s20 + $0xf8] sm:$0xff] %v2895_v60  ;;  %v4499_v48 = vadd.f32 %v4498_v27, %v4136_v40  ;;  %v2708_v60 = vadd.f32 %v6348_v56, %v6394_v30  ;;  %v3468_v27 = vld [vmem:[%s6389_s12 + $0x130] sm:$0xff] }
 0x1a2   : > { %3460 = vst [vmem:[%s6405_s20 + $0xf0] sm:$0xff] %v2894_v62  ;;  %v4501_v49 = vadd.f32 %v4500_v12, %v2372_v21  ;;  %v4011_v33 = vpop.f32.mrb[34].mxu1  ;;  %v6514_v34 = vpop.f32.mrb[50].mxu0  ;;  %v3464_v21 = vld [vmem:[%s6389_s12 + $0x110] sm:$0xff] }
 0x1a3   : > { %v2939_v26 = vadd.f32 %v4499_v48, %v3463_v10  ;;  %v4502_v38 = vadd.f32 %v4011_v33, %v6394_v30  ;;  %v1997_v18 = vpop.f32.mrb[35].mxu1  ;;  %v6517_v55 = vpop.f32.mrb[51].mxu0  ;;  %v2732_v48 = vld [vmem:[%s6389_s12 + $0x8] sm:$0xff] }
 0x1a4   : > { %v2938_v63 = vadd.f32 %v4501_v49, %v3462_v45  ;;  %v4504_v32 = vadd.f32 %v6394_v30, %v1997_v18  ;;  %v3479_v18 = vld [vmem:[%s6389_s12 + $0x148] sm:$0xff] }
 0x1a5   : > { %3471 = vst [vmem:[%s6405_s20 + $0x108] sm:$0xff] %v2939_v26  ;;  %v4503_v40 = vadd.f32 %v4502_v38, %v4139_v5 }
 0x1a6   : > { %3470 = vst [vmem:[%s6405_s20 + $0x100] sm:$0xff] %v2938_v63  ;;  %v4505_v35 = vadd.f32 %v4504_v32, %v2382_v47  ;;  %v4014_v23 = vpop.f32.mrb[36].mxu1  ;;  %v6524_v37 = vpop.f32.mrb[52].mxu0  ;;  %v3466_v47 = vld [vmem:[%s6389_s12 + $0x120] sm:$0xff] }
 0x1a7   : > { %v2941_v42 = vadd.f32 %v4503_v40, %v3465_v25  ;;  %v4506_v53 = vadd.f32 %v4014_v23, %v6394_v30  ;;  %v2007_v9 = vpop.f32.mrb[37].mxu1  ;;  %v6527_v36 = vpop.f32.mrb[53].mxu0  ;;  %v3478_v40 = vld [vmem:[%s6389_s12 + $0x140] sm:$0xff] }
 0x1a8   : > { %v2940_v58 = vadd.f32 %v4505_v35, %v3464_v21  ;;  %v4508_v31 = vadd.f32 %v6394_v30, %v2007_v9  ;;  %v2709_v21 = vadd.f32 %v6394_v30, %v6354_v24  ;;  %v2734_v9 = vld [vmem:[%s6389_s12 + $0x18] sm:$0xff] }
 0x1a9   : > { %3473 = vst [vmem:[%s6405_s20 + $0x118] sm:$0xff] %v2941_v42  ;;  %v4507_v5 = vadd.f32 %v4506_v53, %v6470_v57 }
 0x1aa   : > { %3472 = vst [vmem:[%s6405_s20 + $0x110] sm:$0xff] %v2940_v58  ;;  %v4509_v61 = vadd.f32 %v4508_v31, %v6472_v3  ;;  %v4017_v6 = vpop.f32.mrb[38].mxu1  ;;  %v6536_v4 = vpop.f32.mrb[54].mxu0 }
 0x1ab   : > { %v2943_v43 = vadd.f32 %v4507_v5, %v3467_v11  ;;  %v4510_v8 = vadd.f32 %v4017_v6, %v6394_v30  ;;  %v2017_v1 = vpop.f32.mrb[39].mxu1  ;;  %v6539_v14 = vpop.f32.mrb[55].mxu0  ;;  %v2733_v5 = vld [vmem:[%s6389_s12 + $0x10] sm:$0xff]  ;;  %v2712_v6 = vadd.f32 %v6356_v44, %v6394_v30 }
 0x1ac   : > { %v2942_v41 = vadd.f32 %v4509_v61, %v3466_v47  ;;  %v4512_v57 = vadd.f32 %v6394_v30, %v2017_v1  ;;  %v3481_v47 = vld [vmem:[%s6389_s12 + $0x158] sm:$0xff]  ;;  %v3480_v1 = vld [vmem:[%s6389_s12 + $0x150] sm:$0xff] }
 0x1ad   : > { %3475 = vst [vmem:[%s6405_s20 + $0x128] sm:$0xff] %v2943_v43  ;;  %v4511_v3 = vadd.f32 %v4510_v8, %v6474_v17  ;;  %v2731_v17 = vld [vmem:[%s6389_s12] sm:$0xff] }
 0x1ae   : > { %3474 = vst [vmem:[%s6405_s20 + $0x120] sm:$0xff] %v2942_v41  ;;  %v4513_v62 = vadd.f32 %v4512_v57, %v6476_v22  ;;  %v4020_v10 = vpop.f32.mrb[40].mxu1  ;;  %v4204_v12 = vpop.f32.mrb[20].mxu0  ;;  %v2710_v22 = vadd.f32 %v6352_v29, %v6394_v30  ;;  %v2711_v41 = vadd.f32 %v6394_v30, %v6358_v16 }
 0x1af   : > { %v2945_v45 = vadd.f32 %v4511_v3, %v3469_v2  ;;  %v4514_v56 = vadd.f32 %v4020_v10, %v6394_v30  ;;  %v2716_v49 = vadd.f32 %v4204_v12, %v2708_v60  ;;  %v2027_v33 = vpop.f32.mrb[41].mxu1  ;;  %v2557_v26 = vpop.f32.mrb[21].mxu0  ;;  %v2735_v12 = vld [vmem:[%s6389_s12 + $0x20] sm:$0xff] }
 0x1b0   : > { %v2944_v38 = vadd.f32 %v4513_v62, %v3468_v27  ;;  %v4516_v54 = vadd.f32 %v6394_v30, %v2027_v33  ;;  %v2715_v63 = vadd.f32 %v2707_v28, %v2557_v26  ;;  %v2736_v27 = vld [vmem:[%s6389_s12 + $0x28] sm:$0xff]  ;;  %v3482_v26 = vld [vmem:[%s6389_s12 + $0x160] sm:$0xff] }
 0x1b1   : > { %3477 = vst [vmem:[%s6405_s20 + $0x138] sm:$0xff] %v2945_v45  ;;  %v4515_v25 = vadd.f32 %v4514_v56, %v6478_v15  ;;  %v2740_v32 = vadd.f32 %v2732_v48, %v2716_v49  ;;  %v3483_v48 = vld [vmem:[%s6389_s12 + $0x168] sm:$0xff]  ;;  %v2714_v56 = vadd.f32 %v6360_v0, %v6394_v30 }
 0x1b2   : > { %3476 = vst [vmem:[%s6405_s20 + $0x130] sm:$0xff] %v2944_v38  ;;  %v4517_v35 = vadd.f32 %v4516_v54, %v6480_v52  ;;  %v2739_v23 = vadd.f32 %v2731_v17, %v2715_v63  ;;  %v4023_v42 = vpop.f32.mrb[42].mxu1  ;;  %v4207_v53 = vpop.f32.mrb[22].mxu0  ;;  %v2713_v17 = vadd.f32 %v6394_v30, %v6362_v39  ;;  %v2737_v39 = vld [vmem:[%s6389_s12 + $0x30] sm:$0xff] }
 0x1b3   : > { %v2989_v29 = vadd.f32 %v4515_v25, %v3479_v18  ;;  %2748 = vst [vmem:[%s6405_s20 + $0x8] sm:$0xff] %v2740_v32  ;;  %v4518_v15 = vadd.f32 %v4023_v42, %v6394_v30  ;;  %v2718_v58 = vadd.f32 %v4207_v53, %v2710_v22  ;;  %v2037_v11 = vpop.f32.mrb[43].mxu1  ;;  %v2567_v31 = vpop.f32.mrb[23].mxu0  ;;  %v2738_v22 = vld [vmem:[%s6389_s12 + $0x38] sm:$0xff] }
 0x1b4   : > { %v2988_v24 = vadd.f32 %v4517_v35, %v3478_v40  ;;  %2747 = vst [vmem:[%s6405_s20] sm:$0xff] %v2739_v23  ;;  %v4520_v52 = vadd.f32 %v6394_v30, %v2037_v11  ;;  %v2717_v61 = vadd.f32 %v2709_v21, %v2567_v31  ;;  %v3485_v35 = vld [vmem:[%s6389_s12 + $0x178] sm:$0xff] }
 0x1b5   : > { %3487 = vst [vmem:[%s6405_s20 + $0x148] sm:$0xff] %v2989_v29  ;;  %v4519_v43 = vadd.f32 %v4518_v15, %v6482_v46  ;;  %v2742_v8 = vadd.f32 %v2734_v9, %v2718_v58  ;;  %v3484_v9 = vld [vmem:[%s6389_s12 + $0x170] sm:$0xff] }
 0x1b6   : > { %3486 = vst [vmem:[%s6405_s20 + $0x140] sm:$0xff] %v2988_v24  ;;  %v4521_v2 = vadd.f32 %v4520_v52, %v6484_v20  ;;  %v2741_v57 = vadd.f32 %v2733_v5, %v2717_v61  ;;  %v4026_v60 = vpop.f32.mrb[44].mxu1  ;;  %v4210_v3 = vpop.f32.mrb[24].mxu0 }
 0x1b7   : > { %v2991_v44 = vadd.f32 %v4519_v43, %v3481_v47  ;;  %2750 = vst [vmem:[%s6405_s20 + $0x18] sm:$0xff] %v2742_v8  ;;  %v4522_v46 = vadd.f32 %v4026_v60, %v6394_v30  ;;  %v2720_v28 = vadd.f32 %v4210_v3, %v2712_v6  ;;  %v2047_v62 = vpop.f32.mrb[45].mxu1  ;;  %v2577_v10 = vpop.f32.mrb[25].mxu0  ;;  %v3495_v47 = vld [vmem:[%s6389_s12 + $0x188] sm:$0xff]  ;;  %v3496_v60 = vld [vmem:[%s6389_s12 + $0x190] sm:$0xff] }
 0x1b8   : > { %v2990_v16 = vadd.f32 %v4521_v2, %v3480_v1  ;;  %2749 = vst [vmem:[%s6405_s20 + $0x10] sm:$0xff] %v2741_v57  ;;  %v4524_v20 = vadd.f32 %v6394_v30, %v2047_v62  ;;  %v2719_v45 = vadd.f32 %v2711_v41, %v2577_v10  ;;  %v3497_v2 = vld [vmem:[%s6389_s12 + $0x198] sm:$0xff]  ;;  %v3499_v62 = vld [vmem:[%s6389_s12 + $0x1a8] sm:$0xff] }
 0x1b9   : > { %3489 = vst [vmem:[%s6405_s20 + $0x158] sm:$0xff] %v2991_v44  ;;  %v4523_v49 = vadd.f32 %v4522_v46, %v6486_v59  ;;  %v2744_v33 = vadd.f32 %v2736_v27, %v2720_v28 }
 0x1ba   : > { %3488 = vst [vmem:[%s6405_s20 + $0x150] sm:$0xff] %v2990_v16  ;;  %v4525_v38 = vadd.f32 %v4524_v20, %v6489_v51  ;;  %v2743_v18 = vadd.f32 %v2735_v12, %v2719_v45  ;;  %v4029_v54 = vpop.f32.mrb[46].mxu1  ;;  %v4213_v63 = vpop.f32.mrb[26].mxu0  ;;  %v3498_v12 = vld [vmem:[%s6389_s12 + $0x1a0] sm:$0xff] }
 0x1bb   : > { %v2993_v0 = vadd.f32 %v4523_v49, %v3483_v48  ;;  %2752 = vst [vmem:[%s6405_s20 + $0x28] sm:$0xff] %v2744_v33  ;;  %v4526_v59 = vadd.f32 %v4029_v54, %v6394_v30  ;;  %v2722_v25 = vadd.f32 %v4213_v63, %v2714_v56  ;;  %v2057_v32 = vpop.f32.mrb[47].mxu1  ;;  %v2587_v40 = vpop.f32.mrb[27].mxu0  ;;  %v3501_v49 = vld [vmem:[%s6389_s12 + $0x1b8] sm:$0xff] }
 0x1bc   : > { %v2992_v21 = vadd.f32 %v4525_v38, %v3482_v26  ;;  %2751 = vst [vmem:[%s6405_s20 + $0x20] sm:$0xff] %v2743_v18  ;;  %v4528_v51 = vadd.f32 %v6394_v30, %v2057_v32  ;;  %v2721_v23 = vadd.f32 %v2713_v17, %v2587_v40  ;;  %v3510_v32 = vld [vmem:[%s6389_s12 + $0x1c0] sm:$0xff] }
 0x1bd   : > { %3491 = vst [vmem:[%s6405_s20 + $0x168] sm:$0xff] %v2993_v0  ;;  %v4527_v42 = vadd.f32 %v4526_v59, %v6494_v7  ;;  %v2746_v53 = vadd.f32 %v2738_v22, %v2722_v25  ;;  %v3511_v25 = vld [vmem:[%s6389_s12 + $0x1c8] sm:$0xff] }
 0x1be   : > { %3490 = vst [vmem:[%s6405_s20 + $0x160] sm:$0xff] %v2992_v21  ;;  %v4529_v29 = vadd.f32 %v4528_v51, %v6497_v19  ;;  %v2745_v15 = vadd.f32 %v2737_v39, %v2721_v23  ;;  %v4032_v58 = vpop.f32.mrb[48].mxu1  ;;  %v3494_v19 = vld [vmem:[%s6389_s12 + $0x180] sm:$0xff] }
 0x1bf   : > { %v2995_v11 = vadd.f32 %v4527_v42, %v3485_v35  ;;  %2754 = vst [vmem:[%s6405_s20 + $0x38] sm:$0xff] %v2746_v53  ;;  %v4530_v31 = vadd.f32 %v4032_v58, %v6394_v30  ;;  %v2067_v5 = vpop.f32.mrb[49].mxu1 }
 0x1c0   : > { %v2994_v24 = vadd.f32 %v4529_v29, %v3484_v9  ;;  %2753 = vst [vmem:[%s6405_s20 + $0x30] sm:$0xff] %v2745_v15  ;;  %v4532_v7 = vadd.f32 %v6394_v30, %v2067_v5  ;;  %v3513_v9 = vld [vmem:[%s6389_s12 + $0x1d8] sm:$0xff]  ;;  %v3512_v15 = vld [vmem:[%s6389_s12 + $0x1d0] sm:$0xff] }
 0x1c1   : > { %3493 = vst [vmem:[%s6405_s20 + $0x178] sm:$0xff] %v2995_v11  ;;  %v4531_v52 = vadd.f32 %v4530_v31, %v6504_v50 }
 0x1c2   : > { %3492 = vst [vmem:[%s6405_s20 + $0x170] sm:$0xff] %v2994_v24  ;;  %v4533_v61 = vadd.f32 %v4532_v7, %v6507_v13  ;;  %v4035_v6 = vpop.f32.mrb[50].mxu1 }
 0x1c3   : > { %v3039_v43 = vadd.f32 %v4531_v52, %v3495_v47  ;;  %v4534_v8 = vadd.f32 %v4035_v6, %v6394_v30  ;;  %v2077_v1 = vpop.f32.mrb[51].mxu1 }
 0x1c4   : > { %v3038_v41 = vadd.f32 %v4533_v61, %v3494_v19  ;;  %v4536_v57 = vadd.f32 %v6394_v30, %v2077_v1  ;;  %v3515_v61 = vld [vmem:[%s6389_s12 + $0x1e8] sm:$0xff] }
 0x1c5   : > { %3503 = vst [vmem:[%s6405_s20 + $0x188] sm:$0xff] %v3039_v43  ;;  %v4535_v50 = vadd.f32 %v4534_v8, %v6514_v34  ;;  %v3514_v43 = vld [vmem:[%s6389_s12 + $0x1e0] sm:$0xff] }
 0x1c6   : > { %3502 = vst [vmem:[%s6405_s20 + $0x180] sm:$0xff] %v3038_v41  ;;  %v4537_v13 = vadd.f32 %v4536_v57, %v6517_v55  ;;  %v4038_v3 = vpop.f32.mrb[52].mxu1 }
 0x1c7   : > { %v3041_v27 = vadd.f32 %v4535_v50, %v3497_v2  ;;  %v4538_v44 = vadd.f32 %v4038_v3, %v6394_v30  ;;  %v2087_v46 = vpop.f32.mrb[53].mxu1 }
 0x1c8   : > { %v3040_v28 = vadd.f32 %v4537_v13, %v3496_v60  ;;  %v4540_v10 = vadd.f32 %v6394_v30, %v2087_v46  ;;  %v3516_v46 = vld [vmem:[%s6389_s12 + $0x1f0] sm:$0xff] }
 0x1c9   : > { %3505 = vst [vmem:[%s6405_s20 + $0x198] sm:$0xff] %v3041_v27  ;;  %v4539_v34 = vadd.f32 %v4538_v44, %v6524_v37  ;;  %v3500_v37 = vld [vmem:[%s6389_s12 + $0x1b0] sm:$0xff]  ;;  %v3517_v27 = vld [vmem:[%s6389_s12 + $0x1f8] sm:$0xff]  ;;  %s5012_s12 = scalar_lea.vmem %s5011_s11, 16384 }
 0x1ca   : > { %3504 = vst [vmem:[%s6405_s20 + $0x190] sm:$0xff] %v3040_v28  ;;  %v4541_v55 = vadd.f32 %v4540_v10, %v6527_v36  ;;  %v4041_v16 = vpop.f32.mrb[54].mxu1  ;;  %p5014_p2 = scmp.lt.s32.totalorder %s5012_s12, %s5006_s22 }
 0x1cb   : > { %v3043_v48 = vadd.f32 %v4539_v34, %v3499_v62  ;;  %v4542_v20 = vadd.f32 %v4041_v16, %v6394_v30  ;;  %v2097_v45 = vpop.f32.mrb[55].mxu1 }
 0x1cc   : > { %v3042_v56 = vadd.f32 %v4541_v55, %v3498_v12  ;;  %v4544_v33 = vadd.f32 %v6394_v30, %v2097_v45  ;;  %p5015_p3 = por %p5014_p2, %p5013_p1 }
 0x1cd   : > { %3507 = vst [vmem:[%s6405_s20 + $0x1a8] sm:$0xff] %v3043_v48  ;;  %v4543_v26 = vadd.f32 %v4542_v20, %v6536_v4 }
 0x1ce   : > { %3506 = vst [vmem:[%s6405_s20 + $0x1a0] sm:$0xff] %v3042_v56  ;;  %v4545_v36 = vadd.f32 %v4544_v33, %v6539_v14  ;;  %v4044_v17 = vpop.f32.mrb[56].mxu1  ;;  %v4248_v38 = vpop.f32.mrb[56].mxu0  ;;  %p5016_p5 = pnand %p5015_p3, %p5009_p0 }
 0x1cf   : > { %v3045_v18 = vadd.f32 %v4543_v26, %v3501_v49  ;;  %v4546_v54 = vadd.f32 %v4044_v17, %v6394_v30  ;;  %v2107_v63 = vpop.f32.mrb[57].mxu1  ;;  %v2662_v22 = vpop.f32.mrb[57].mxu0 }
 0x1d0   : > { %v3044_v0 = vadd.f32 %v4545_v36, %v3500_v37  ;;  %v4548_v59 = vadd.f32 %v6394_v30, %v2107_v63 }
 0x1d1   : > { %3509 = vst [vmem:[%s6405_s20 + $0x1b8] sm:$0xff] %v3045_v18  ;;  %v4547_v4 = vadd.f32 %v4546_v54, %v4248_v38 }
 0x1d2   : > { %3508 = vst [vmem:[%s6405_s20 + $0x1b0] sm:$0xff] %v3044_v0  ;;  %v4549_v14 = vadd.f32 %v4548_v59, %v2662_v22  ;;  %v4047_v40 = vpop.f32.mrb[58].mxu1  ;;  %v4251_v39 = vpop.f32.mrb[58].mxu0 }
 0x1d3   : > { %v3089_v21 = vadd.f32 %v4547_v4, %v3511_v25  ;;  %v4550_v35 = vadd.f32 %v4047_v40, %v6394_v30  ;;  %v2117_v51 = vpop.f32.mrb[59].mxu1  ;;  %v2672_v23 = vpop.f32.mrb[59].mxu0 }
 0x1d4   : > { %v3088_v42 = vadd.f32 %v4549_v14, %v3510_v32  ;;  %v4552_v53 = vadd.f32 %v6394_v30, %v2117_v51 }
 0x1d5   : > { %3519 = vst [vmem:[%s6405_s20 + $0x1c8] sm:$0xff] %v3089_v21  ;;  %v4551_v29 = vadd.f32 %v4550_v35, %v4251_v39 }
 0x1d6   : > { %3518 = vst [vmem:[%s6405_s20 + $0x1c0] sm:$0xff] %v3088_v42  ;;  %v4553_v58 = vadd.f32 %v4552_v53, %v2672_v23  ;;  %v4050_v11 = vpop.f32.mrb[60].mxu1  ;;  %v4254_v31 = vpop.f32.mrb[60].mxu0 }
 0x1d7   : > { %v3091_v5 = vadd.f32 %v4551_v29, %v3513_v9  ;;  %v4554_v24 = vadd.f32 %v4050_v11, %v6394_v30  ;;  %v2127_v47 = vpop.f32.mrb[61].mxu1  ;;  %v2682_v7 = vpop.f32.mrb[61].mxu0 }
 0x1d8   : > { %v3090_v52 = vadd.f32 %v4553_v58, %v3512_v15  ;;  %v4556_v19 = vadd.f32 %v6394_v30, %v2127_v47 }
 0x1d9   : > { %3521 = vst [vmem:[%s6405_s20 + $0x1d8] sm:$0xff] %v3091_v5  ;;  %v4555_v6 = vadd.f32 %v4554_v24, %v4254_v31 }
 0x1da   : > { %3520 = vst [vmem:[%s6405_s20 + $0x1d0] sm:$0xff] %v3090_v52  ;;  %v4557_v8 = vadd.f32 %v4556_v19, %v2682_v7  ;;  %v4053_v1 = vpop.f32.mrb[62].mxu1  ;;  %v4257_v41 = vpop.f32.mrb[62].mxu0 }
 0x1db   : > { %v3093_v2 = vadd.f32 %v4555_v6, %v3515_v61  ;;  %v4558_v57 = vadd.f32 %v4053_v1, %v6394_v30  ;;  %v2137_v50 = vpop.f32.mrb[63].mxu1  ;;  %v2692_v60 = vpop.f32.mrb[63].mxu0 }
 0x1dc   : > { %v3092_v13 = vadd.f32 %v4557_v8, %v3514_v43  ;;  %v4560_v3 = vadd.f32 %v6394_v30, %v2137_v50 }
 0x1dd   : > { %3523 = vst [vmem:[%s6405_s20 + $0x1e8] sm:$0xff] %v3093_v2  ;;  %v4559_v44 = vadd.f32 %v4558_v57, %v4257_v41 }
 0x1de   : > { %3522 = vst [vmem:[%s6405_s20 + $0x1e0] sm:$0xff] %v3092_v13  ;;  %v4561_v28 = vadd.f32 %v4560_v3, %v2692_v60 }
 0x1df   : > { %v3095_v62 = vadd.f32 %v4559_v44, %v3517_v27 }
 0x1e0   : > { %v3094_v30 = vadd.f32 %v4561_v28, %v3516_v46 }
 0x1e1   : > { %3525 = vst [vmem:[%s6405_s20 + $0x1f8] sm:$0xff] %v3095_v62 }
 0x1e2   : > { %3524 = vst [vmem:[%s6405_s20 + $0x1f0] sm:$0xff] %v3094_v30 }
 0x1e3   : > { %5019 = shalt.err (!%p5016_p5)
}
 0x1e4   : > { %s5020_s26 = scalar_lea.hbm %s6673_s21, 8192  ;;  %s5024_s13 = scalar_lea.hbm %s6735_s8, 16384 }
 0x1e5   : > { %p5021_p6 = scmp.ne.s32.totalorder %s6673_s21, %s5020_s26  ;;  %p5025_p10 = scmp.lt.u32.totalorder %s6673_s21, %s6735_s8 }
 0x1e6   : > { %p5026_p11 = scmp.lt.u32.totalorder %s5024_s13, %s5020_s26  ;;  %p5028_p13 = scmp.lt.u32.totalorder %s5020_s26, %s6673_s21 }
 0x1e7   : > { %p5022_p7 = pnand %p5021_p6, %p5174_p4 }
 0x1e8   : > { %p5027_p12 = por %p5026_p11, %p5025_p10 }
 0x1e9   : > { %p5023_p9 = pneg %p5022_p7 }
 0x1ea   : > { %p5029_p0 = por %p5028_p13, %p5027_p12 }
 0x1ec   : > { %p5030_p1 = pnand %p5029_p0, %p5023_p9 }
 0x1ee   : > { %5033 = shalt.err (!%p5030_p1)
}
 0x1ef   : > { %s5087_s25 = smov 128   ;;  %s5088_s19 = smov 8  }
 0x1f0   : > { %4626 = dma.vmem_to_hbm [thread:$0]  (%p5174_p4), %s6675_s9, 8192, %s6673_s21, %s6681_s30, %s5087_s25, %s5087_s25, %s5088_s19  }
 0x1f1 PF: > { %p4632_p2 = scmp.ge.s32.totalorder %s5084_s10, 2  ;;  %s3137_s22 = sand.u32 1, %s5064_s27  }
 0x1f2   : > { %s3138_s24 = scalar_lea.sflag [#allocation3], %s3137_s22 }
 0x1f3   : > { %p4629_p3 = pnand %p4632_p2, %p5181_p8 }
 0x1f5   : > { %5059 = dma.done.wait (!%p4629_p3), %s3138_s24, 8192  }
 0x1f6   : > { %5061 = vsyncadd (!%p4629_p3), %s3138_s24, 4294959104  ;;  %s21_s10 = sadd.s32 1, %s5084_s10   ;;  %s6783_s30 = sld [smem:[#allocation5_spill]] }
 0x1f7   : > { %p18_p5 = scmp.ge.s32.totalorder %s21_s10, 4   ;;  %s6784_s9 = sld [smem:[#allocation6_spill]] }
 0x1f8   : > { %s6785_s27 = smov %s5068_s28  ;;  %s6786_s28 = smov %s5072_s29 }
 0x1f9   : > { %s6787_s29 = smov %s5187_s18  ;;  %20 = sbr.rel (!%p18_p5) target bundleno = 4 (0x4), region = 118 }
 0x200   :  { %3143 = vsyncpa [#allocation3], 1 }
 0x201   :  { %3145 = vsyncpa [#allocation3 + $0x1], 1 }

// kernel: temporal_conv_block_forward.6
= control target key start
LH: loop header
LB: loop body
LE: loop exit
PB: predicated region body
PF: predicated region fallthrough
CT: control target
= control target key end

     0   :  { %s5195_s30 = smov 0   ;;  %s5197_s10 = smov 0   ;;  %s6739_s0 = inlined_call_operand.vmem [shape: f32[2,8,64,128], index: 0, kind: input, shape index: {}, may-alias: {0,1,2}]   ;;  %s6740_s1 = inlined_call_operand.vmem [shape: f32[2,8,64,128], index: 1, kind: input, shape index: {}, may-alias: {0,1,2}]   ;;  %s6741_s2 = inlined_call_operand.vmem [shape: f32[2,8,64,128], index: 2, kind: input, shape index: {}, may-alias: {0,1,2}]   ;;  %s6742_s3 = inlined_call_operand.vmem [shape: f32[2,1,128], index: 3, kind: input, shape index: {}]   ;;  %s6743_s4 = inlined_call_operand.vmem [shape: f32[2,1,128], index: 4, kind: input, shape index: {}]   ;;  %s6744_s5 = inlined_call_operand.vmem [shape: f32[3,128,128], index: 5, kind: input, shape index: {}]   ;;  %s6745_s6 = inlined_call_operand.vmem [shape: f32[1,128], index: 6, kind: input, shape index: {}]   ;;  %s6746_s7 = inlined_call_operand.vmem [shape: f32[2,8,64,128], index: 7, kind: output, shape index: {0}]   ;;  %s6747_s8 = inlined_call_operand.vmem [shape: f32[2,1,128], index: 8, kind: output, shape index: {1}]   ;;  %s6748_s9 = inlined_call_operand.vmem [shape: f32[2,1,128], index: 9, kind: output, shape index: {2}]  }
   0x1   :  { %s5199_s11 = smov 0  }
   0x2 LB: > { %s32_s12 = sadd.s32 1, %s5138_s10  ;;  %p3495_p0 = scmp.ge.s32.totalorder %s5142_s11, 1  ;;  %s5142_s11 = sphi %s5199_s11, %s20_s11   ;;  %s5138_s10 = sphi %s5197_s10, %s6791_s10   ;;  %s5134_s30 = sphi %s5195_s30, %s6790_s30  }
   0x3   : > { %p34_p1 = scmp.ge.s32.totalorder %s32_s12, 2  ;;  %p394_p2 = scmp.lt.s32.totalorder %s5142_s11, 3 }
   0x5   : > { %s6793_s12 = smov (%p34_p1, %s32_s12), 0  ;;  %p395_p3 = pnand %p3495_p0, %p394_p2 }
   0x7   : > { %398 = sbr.rel (%p395_p3) target bundleno = 498 (0x1f2), region = 48 }
   0xe   : > { %v3586_v0 = vld [vmem:[%s6744_s5 + $0x80] sm:$0xff]  ;;  %v3587_v1 = vld [vmem:[%s6744_s5 + $0x88] sm:$0xff]  ;;  %p479_p4 = scmp.lt.s32.totalorder %s5134_s30, 1  ;;  %v3588_v5 = vld [vmem:[%s6744_s5 + $0x90] sm:$0xff] }
   0xf   : > { %v1388_v2 = vld [vmem:[%s6744_s5] sm:$0xff]  ;;  %v4403_v3 = vpack.c.bf16 %v3587_v1, %v3586_v0  ;;  %v1389_v4 = vld [vmem:[%s6744_s5 + $0x8] sm:$0xff]  ;;  %v3589_v6 = vld [vmem:[%s6744_s5 + $0x98] sm:$0xff] }
  0x10   : > { %v5231_v7 = vpack.c.bf16 %v1389_v4, %v1388_v2  ;;  %v4407_v8 = vpack.c.bf16 %v3589_v6, %v3588_v5  ;;  %v1390_v9 = vld [vmem:[%s6744_s5 + $0x10] sm:$0xff]  ;;  %v1391_v10 = vld [vmem:[%s6744_s5 + $0x18] sm:$0xff]  ;;  %v3590_v11 = vld [vmem:[%s6744_s5 + $0xa0] sm:$0xff]  ;;  %s6795_s30 = smov (!%p479_p4, %s5134_s30), 1 }
  0x11   : > { %4404 = vmatprep.subr.bf16.mxu1 %v4403_v3  ;;  %v5244_v12 = vpack.c.bf16 %v1391_v10, %v1390_v9  ;;  %v3591_v13 = vld [vmem:[%s6744_s5 + $0xa8] sm:$0xff]  ;;  %v1392_v14 = vld [vmem:[%s6744_s5 + $0x20] sm:$0xff]  ;;  %s5258_s20 = sshll.u32 %s6795_s30, 9  ;;  %v3592_v18 = vld [vmem:[%s6744_s5 + $0xb0] sm:$0xff]  ;;  %s5279_s14 = scalar_lea.vmem %s6742_s3, %s6795_s30 }
  0x12   : > { %v1393_v15 = vld [vmem:[%s6744_s5 + $0x28] sm:$0xff]  ;;  %4406 = vmatpush3.bf16.msra.mxu1 %v4403_v3  ;;  %4436 = vmatprep.subr.bf16.mxu0 %v5231_v7  ;;  %v4411_v16 = vpack.c.bf16 %v3591_v13, %v3590_v11  ;;  %v3593_v19 = vld [vmem:[%s6744_s5 + $0xb8] sm:$0xff]  ;;  %v1394_v20 = vld [vmem:[%s6744_s5 + $0x30] sm:$0xff]  ;;  %s5285_s17 = scalar_lea.vmem %s6739_s0, %s5258_s20  ;;  %s5291_s21 = scalar_lea.vmem %s6743_s4, %s6795_s30 }
  0x13   : > { %4438 = vmatpush3.bf16.msra.mxu0 %v5231_v7  ;;  %4408 = vmatprep.subr.bf16.mxu1 %v4407_v8  ;;  %v5261_v17 = vpack.c.bf16 %v1393_v15, %v1392_v14  ;;  %v1395_v21 = vld [vmem:[%s6744_s5 + $0x38] sm:$0xff]  ;;  %v4415_v22 = vpack.c.bf16 %v3593_v19, %v3592_v18  ;;  %v3594_v23 = vld [vmem:[%s6744_s5 + $0xc0] sm:$0xff]  ;;  %v3595_v24 = vld [vmem:[%s6744_s5 + $0xc8] sm:$0xff]  ;;  %s6118_s19 = scalar_lea.vmem %s6740_s1, %s5258_s20  ;;  %s3680_s22 = sadd.s32 448, %s5258_s20 }
  0x14   : > { %4440 = vmatprep.subr.bf16.mxu0 %v5244_v12  ;;  %v5301_v25 = vpack.c.bf16 %v1395_v21, %v1394_v20  ;;  %v1396_v26 = vld [vmem:[%s6744_s5 + $0x40] sm:$0xff]  ;;  %v1397_v27 = vld [vmem:[%s6744_s5 + $0x48] sm:$0xff]  ;;  %v3596_v32 = vld [vmem:[%s6744_s5 + $0xd0] sm:$0xff]  ;;  %v4419_v37 = vpack.c.bf16 %v3595_v24, %v3594_v23  ;;  %s6196_s25 = scalar_lea.vmem %s6741_s2, %s3680_s22  ;;  %s6422_s29 = scalar_lea.vmem %s6746_s7, %s5258_s20 }
  0x15   : > { %v5310_v28 = vld [vmem:[%s5279_s14] ss:$0 sm:$0xff]  ;;  %v555_v31 = vld [vmem:[%s5285_s17 + $0x8] sm:$0xff]  ;;  %v3597_v33 = vld [vmem:[%s6744_s5 + $0xd8] sm:$0xff]  ;;  %v5327_v38 = vpack.c.bf16 %v1397_v27, %v1396_v26  ;;  %s6457_s15 = scalar_lea.vmem %s6747_s8, %s6795_s30 }
  0x16   : > { %4410 = vmatpush3.bf16.msra.mxu1 %v4407_v8  ;;  %v5313_v29 = vld [vmem:[%s5291_s21] ss:$0 sm:$0xff]  ;;  %v625_v35 = vmul.f32 %v5310_v28, %v555_v31  ;;  %v556_v36 = vld [vmem:[%s5285_s17 + $0x10] sm:$0xff]  ;;  %v557_v40 = vld [vmem:[%s5285_s17 + $0x18] sm:$0xff]  ;;  %v4423_v48 = vpack.c.bf16 %v3597_v33, %v3596_v32 }
  0x17   : > { %4442 = vmatpush3.bf16.msra.mxu0 %v5244_v12  ;;  %4412 = vmatprep.subr.bf16.mxu1 %v4411_v16  ;;  %v554_v30 = vld [vmem:[%s5285_s17] sm:$0xff]  ;;  %v626_v39 = vmul.f32 %v5310_v28, %v556_v36  ;;  %v627_v44 = vmul.f32 %v5310_v28, %v557_v40  ;;  %v559_v46 = vld [vmem:[%s5285_s17 + $0x28] sm:$0xff]  ;;  %v560_v47 = vld [vmem:[%s5285_s17 + $0x30] sm:$0xff] }
  0x18   : > { %4444 = vmatprep.subr.bf16.mxu0 %v5261_v17  ;;  %v624_v34 = vmul.f32 %v5310_v28, %v554_v30  ;;  %v558_v41 = vld [vmem:[%s5285_s17 + $0x20] sm:$0xff]  ;;  %v5337_v43 = vadd.f32 %v5313_v29, %v625_v35  ;;  %v1398_v49 = vld [vmem:[%s6744_s5 + $0x50] sm:$0xff]  ;;  %v1399_v50 = vld [vmem:[%s6744_s5 + $0x58] sm:$0xff]  ;;  %v629_v52 = vmul.f32 %v5310_v28, %v559_v46  ;;  %v630_v53 = vmul.f32 %v5310_v28, %v560_v47 }
  0x19   : > { %v628_v45 = vmul.f32 %v5310_v28, %v558_v41  ;;  %v5350_v51 = vadd.f32 %v5313_v29, %v626_v39  ;;  %v561_v54 = vld [vmem:[%s5285_s17 + $0x38] sm:$0xff]  ;;  %v3598_v55 = vld [vmem:[%s6744_s5 + $0xe0] sm:$0xff]  ;;  %v3599_v56 = vld [vmem:[%s6744_s5 + $0xe8] sm:$0xff]  ;;  %v5364_v59 = vadd.f32 %v5313_v29, %v627_v44  ;;  %v5381_v3 = vpack.c.bf16 %v1399_v50, %v1398_v49 }
  0x1a   : > { %4414 = vmatpush3.bf16.msra.mxu1 %v4411_v16  ;;  %v5334_v42 = vadd.f32 %v5313_v29, %v624_v34  ;;  %v3507_v58 = vmul.f32 -1.442695, %v5337_v43  ;;  %v5372_v62 = vadd.f32 %v5313_v29, %v629_v52  ;;  %v5375_v63 = vadd.f32 %v5313_v29, %v630_v53  ;;  %v562_v1 = vld [vmem:[%s5285_s17 + $0x40] sm:$0xff]  ;;  %v563_v2 = vld [vmem:[%s5285_s17 + $0x48] sm:$0xff]  ;;  %v564_v6 = vld [vmem:[%s5285_s17 + $0x50] sm:$0xff] }
  0x1b   : > { %4446 = vmatpush3.bf16.msra.mxu0 %v5261_v17  ;;  %4416 = vmatprep.subr.bf16.mxu1 %v4415_v22  ;;  %v5367_v60 = vadd.f32 %v5313_v29, %v628_v45  ;;  %v3508_v61 = vmul.f32 -1.442695, %v5350_v51  ;;  %v631_v0 = vmul.f32 %v5310_v28, %v561_v54  ;;  %v3509_v4 = vmul.f32 -1.442695, %v5364_v59  ;;  %v565_v8 = vld [vmem:[%s5285_s17 + $0x58] sm:$0xff]  ;;  %v1400_v10 = vld [vmem:[%s6744_s5 + $0x60] sm:$0xff] }
  0x1c   : > { %4448 = vmatprep.subr.bf16.mxu0 %v5301_v25  ;;  %v3506_v57 = vmul.f32 -1.442695, %v5334_v42  ;;  %v4427_v9 = vpack.c.bf16 %v3599_v56, %v3598_v55  ;;  %v1401_v11 = vld [vmem:[%s6744_s5 + $0x68] sm:$0xff]  ;;  %v3511_v13 = vmul.f32 -1.442695, %v5372_v62  ;;  %v632_v16 = vmul.f32 %v5310_v28, %v562_v1  ;;  %v566_v19 = vld [vmem:[%s5285_s17 + $0x60] sm:$0xff] }
  0x1d   : > { %v3510_v5 = vmul.f32 -1.442695, %v5367_v60  ;;  %v5395_v14 = vadd.f32 %v5313_v29, %v631_v0  ;;  %v3512_v15 = vmul.f32 -1.442695, %v5375_v63  ;;  %v633_v18 = vmul.f32 %v5310_v28, %v563_v2  ;;  %v3600_v20 = vld [vmem:[%s6744_s5 + $0xf0] sm:$0xff]  ;;  %v3601_v21 = vld [vmem:[%s6744_s5 + $0xf8] sm:$0xff] }
  0x1e   : > { %4418 = vmatpush3.bf16.msra.mxu1 %v4415_v22  ;;  %4796 = vpow2.f32 %v3506_v57  ;;  %v634_v23 = vmul.f32 %v5310_v28, %v564_v6  ;;  %v635_v24 = vmul.f32 %v5310_v28, %v565_v8  ;;  %v5412_v26 = vpack.c.bf16 %v1401_v11, %v1400_v10  ;;  %v1402_v31 = vld [vmem:[%s6744_s5 + $0x70] sm:$0xff]  ;;  %v1403_v32 = vld [vmem:[%s6744_s5 + $0x78] sm:$0xff]  ;;  %v567_v45 = vld [vmem:[%s5285_s17 + $0x68] sm:$0xff] }
  0x1f   : > { %4450 = vmatpush3.bf16.msra.mxu0 %v5301_v25  ;;  %4420 = vmatprep.subr.bf16.mxu1 %v4419_v37  ;;  %4798 = vpow2.f32 %v3507_v58  ;;  %v3513_v22 = vmul.f32 -1.442695, %v5395_v14  ;;  %v5415_v27 = vadd.f32 %v5313_v29, %v632_v16  ;;  %v5418_v30 = vadd.f32 %v5313_v29, %v633_v18  ;;  %v568_v47 = vld [vmem:[%s5285_s17 + $0x70] sm:$0xff]  ;;  %v3603_v49 = vld [vmem:[%s6744_s5 + $0x108] sm:$0xff]  ;;  %v569_v52 = vld [vmem:[%s5285_s17 + $0x78] sm:$0xff] }
  0x20   : > { %4452 = vmatprep.subr.bf16.mxu0 %v5327_v38  ;;  %4800 = vpow2.f32 %v3508_v61  ;;  %v5427_v33 = vadd.f32 %v5313_v29, %v634_v23  ;;  %v5430_v34 = vadd.f32 %v5313_v29, %v635_v24  ;;  %v636_v35 = vmul.f32 %v5310_v28, %v566_v19  ;;  %v570_v55 = vld [vmem:[%s5285_s17 + $0x80] sm:$0xff]  ;;  %v571_v61 = vld [vmem:[%s5285_s17 + $0x88] sm:$0xff]  ;;  %v3604_v11 = vld [vmem:[%s6744_s5 + $0x110] sm:$0xff] }
  0x21   : > { %4802 = vpow2.f32 %v3509_v4  ;;  %v4431_v36 = vpack.c.bf16 %v3601_v21, %v3600_v20  ;;  %v3515_v39 = vmul.f32 -1.442695, %v5418_v30  ;;  %v5443_v46 = vpack.c.bf16 %v1403_v32, %v1402_v31  ;;  %v572_v24 = vld [vmem:[%s5285_s17 + $0x90] sm:$0xff] }
  0x22   : > { %4422 = vmatpush3.bf16.msra.mxu1 %v4419_v37  ;;  %4804 = vpow2.f32 %v3510_v5  ;;  %v3514_v37 = vmul.f32 -1.442695, %v5415_v27  ;;  %v3516_v40 = vmul.f32 -1.442695, %v5427_v33  ;;  %v3517_v41 = vmul.f32 -1.442695, %v5430_v34 }
  0x23   : > { %4454 = vmatpush3.bf16.msra.mxu0 %v5327_v38  ;;  %4424 = vmatprep.subr.bf16.mxu1 %v4423_v48  ;;  %4806 = vpow2.f32 %v3511_v13  ;;  %v5439_v44 = vadd.f32 %v5313_v29, %v636_v35  ;;  %v637_v54 = vmul.f32 %v5310_v28, %v567_v45  ;;  %v638_v58 = vmul.f32 %v5310_v28, %v568_v47  ;;  %v3605_v13 = vld [vmem:[%s6744_s5 + $0x118] sm:$0xff]  ;;  %v574_v47 = vld [vmem:[%s5285_s17 + $0xa0] sm:$0xff] }
  0x24   : > { %4456 = vmatprep.subr.bf16.mxu0 %v5381_v3  ;;  %4808 = vpow2.f32 %v3512_v15  ;;  %v639_v4 = vmul.f32 %v5310_v28, %v569_v52  ;;  %v640_v8 = vmul.f32 %v5310_v28, %v570_v55  ;;  %v641_v16 = vmul.f32 %v5310_v28, %v571_v61 }
  0x25   : > { %4810 = vpow2.f32 %v3513_v22  ;;  %v3518_v50 = vmul.f32 -1.442695, %v5439_v44  ;;  %v5471_v15 = vadd.f32 %v5313_v29, %v637_v54  ;;  %v5477_v20 = vadd.f32 %v5313_v29, %v638_v58  ;;  %v576_v58 = vld [vmem:[%s5285_s17 + $0xb0] sm:$0xff] }
  0x26   : > { %4426 = vmatpush3.bf16.msra.mxu1 %v4423_v48  ;;  %4812 = vpow2.f32 %v3514_v37  ;;  %v3602_v48 = vld [vmem:[%s6744_s5 + $0x100] sm:$0xff]  ;;  %v5481_v23 = vadd.f32 %v5313_v29, %v639_v4  ;;  %v5484_v32 = vpack.c.bf16 %v3605_v13, %v3604_v11  ;;  %v573_v37 = vld [vmem:[%s5285_s17 + $0x98] sm:$0xff]  ;;  %v5492_v45 = vadd.f32 %v5313_v29, %v641_v16 }
  0x27   : > { %4458 = vmatpush3.bf16.msra.mxu0 %v5381_v3  ;;  %4428 = vmatprep.subr.bf16.mxu1 %v4427_v9  ;;  %4814 = vpow2.f32 %v3515_v39  ;;  %v5460_v2 = vpack.c.bf16 %v3603_v49, %v3602_v48  ;;  %v642_v52 = vmul.f32 %v5310_v28, %v572_v24  ;;  %v644_v4 = vmul.f32 %v5310_v28, %v574_v47  ;;  %v578_v11 = vld [vmem:[%s5285_s17 + $0xc0] sm:$0xff] }
  0x28   : > { %4460 = vmatprep.subr.bf16.mxu0 %v5412_v26  ;;  %v4797_v53 = vpop.eup %4796  ;;  %4816 = vpow2.f32 %v3516_v40  ;;  %6769 = vst [vmem:[#allocation3_spill] sm:$0xff] %v5484_v32  ;;  %v648_v47 = vmul.f32 %v5310_v28, %v578_v11  ;;  %v3609_v11 = vld [vmem:[%s6744_s5 + $0x138] sm:$0xff] }
  0x29   : > { %v4799_v56 = vpop.eup %4798  ;;  %v950_v57 = vadd.f32 1.0, %v4797_v53  ;;  %4818 = vpow2.f32 %v3517_v41  ;;  %6768 = vst [vmem:[#allocation2_spill] sm:$0xff] %v5460_v2  ;;  %v3519_v41 = vmul.f32 -1.442695, %v5471_v15  ;;  %v575_v53 = vld [vmem:[%s5285_s17 + $0xa8] sm:$0xff] }
  0x2a   : > { %4430 = vmatpush3.bf16.msra.mxu1 %v4427_v9  ;;  %v4801_v0 = vpop.eup %4800  ;;  %v951_v1 = vadd.f32 1.0, %v4799_v56  ;;  %4820 = vpow2.f32 %v3518_v50  ;;  %v3520_v50 = vmul.f32 -1.442695, %v5477_v20  ;;  %v3521_v56 = vmul.f32 -1.442695, %v5481_v23 }
  0x2b   : > { %4462 = vmatpush3.bf16.msra.mxu0 %v5412_v26  ;;  %4432 = vmatprep.subr.bf16.mxu1 %v4431_v36  ;;  %v4803_v5 = vpop.eup %4802  ;;  %4822 = vrcp.f32 %v950_v57  ;;  %v952_v6 = vadd.f32 1.0, %v4801_v0  ;;  %v643_v57 = vmul.f32 %v5310_v28, %v573_v37 }
  0x2c   : > { %4464 = vmatprep.subr.bf16.mxu0 %v5443_v46  ;;  %v4805_v9 = vpop.eup %4804  ;;  %4824 = vrcp.f32 %v951_v1  ;;  %v953_v10 = vadd.f32 1.0, %v4803_v5  ;;  %v577_v5 = vld [vmem:[%s5285_s17 + $0xb8] sm:$0xff] }
  0x2d   : > { %v4807_v18 = vpop.eup %4806  ;;  %4826 = vrcp.f32 %v952_v6  ;;  %v954_v19 = vadd.f32 1.0, %v4805_v9  ;;  %v3523_v9 = vmul.f32 -1.442695, %v5492_v45 }
  0x2e   : > { %4434 = vmatpush3.bf16.msra.mxu1 %v4431_v36  ;;  %v4809_v21 = vpop.eup %4808  ;;  %4828 = vrcp.f32 %v953_v10  ;;  %v955_v22 = vadd.f32 1.0, %v4807_v18  ;;  %v5487_v36 = vadd.f32 %v5313_v29, %v640_v8  ;;  %v645_v10 = vmul.f32 %v5310_v28, %v575_v53 }
  0x2f   : > { %4466 = vmatpush3.bf16.msra.mxu0 %v5443_v46  ;;  %4563 = vmatprep.subr.bf16.mxu1 %v5231_v7  ;;  %v4811_v31 = vpop.eup %4810  ;;  %4830 = vrcp.f32 %v954_v19  ;;  %v956_v35 = vadd.f32 1.0, %v4809_v21  ;;  %v5508_v18 = vadd.f32 %v5313_v29, %v642_v52  ;;  %v646_v19 = vmul.f32 %v5310_v28, %v576_v58  ;;  %v579_v21 = vld [vmem:[%s5285_s17 + $0xc8] sm:$0xff] }
  0x30   : > { %4468 = vmatprep.subr.bf16.mxu0 %v5460_v2  ;;  %v4813_v39 = vpop.eup %4812  ;;  %4832 = vrcp.f32 %v955_v22  ;;  %v957_v40 = vadd.f32 1.0, %v4811_v31  ;;  %v3522_v1 = vmul.f32 -1.442695, %v5487_v36  ;;  %v5514_v31 = vadd.f32 %v5313_v29, %v643_v57 }
  0x31   : > { %v4815_v48 = vpop.eup %4814  ;;  %4834 = vrcp.f32 %v956_v35  ;;  %v958_v49 = vadd.f32 1.0, %v4813_v39  ;;  %v647_v35 = vmul.f32 %v5310_v28, %v577_v5  ;;  %v649_v52 = vmul.f32 %v5310_v28, %v579_v21 }
  0x32   : > { %v4817_v54 = vpop.eup %4816  ;;  %4836 = vrcp.f32 %v957_v40  ;;  %v959_v55 = vadd.f32 1.0, %v4815_v48  ;;  %v5519_v40 = vadd.f32 %v5313_v29, %v644_v4  ;;  %v3525_v58 = vmul.f32 -1.442695, %v5514_v31 }
  0x33   : > { %v4819_v61 = vpop.eup %4818  ;;  %4838 = vrcp.f32 %v958_v49  ;;  %v960_v0 = vadd.f32 1.0, %v4817_v54  ;;  %v5524_v49 = vadd.f32 %v5313_v29, %v645_v10  ;;  %v3606_v54 = vld [vmem:[%s6744_s5 + $0x120] sm:$0xff]  ;;  %v5547_v4 = vadd.f32 %v5313_v29, %v648_v47  ;;  %v3608_v10 = vld [vmem:[%s6744_s5 + $0x130] sm:$0xff] }
  0x34   : > { %v4821_v6 = vpop.eup %4820  ;;  %4840 = vrcp.f32 %v959_v55  ;;  %v961_v8 = vadd.f32 1.0, %v4819_v61  ;;  %v3607_v55 = vld [vmem:[%s6744_s5 + $0x128] sm:$0xff]  ;;  %v5542_v61 = vadd.f32 %v5313_v29, %v647_v35  ;;  %v3613_v35 = vld [vmem:[%s6744_s5 + $0x158] sm:$0xff]  ;;  %v5586_v47 = vpack.c.bf16 %v3609_v11, %v3608_v10 }
  0x35   : > { %v4823_v13 = vpop.eup %4822  ;;  %4842 = vrcp.f32 %v960_v0  ;;  %v962_v16 = vadd.f32 1.0, %v4821_v6  ;;  %v5555_v6 = vadd.f32 %v5313_v29, %v649_v52  ;;  %v581_v52 = vld [vmem:[%s5285_s17 + $0xd8] sm:$0xff] }
  0x36   : > { %v4825_v22 = vpop.eup %4824  ;;  %v1142_v24 = vmul.f32 %v4823_v13, %v5334_v42  ;;  %4844 = vrcp.f32 %v961_v8  ;;  %v580_v13 = vld [vmem:[%s5285_s17 + $0xd0] sm:$0xff]  ;;  %v3529_v21 = vmul.f32 -1.442695, %v5542_v61  ;;  %6771 = vst [vmem:[#allocation5_spill] sm:$0xff] %v5586_v47 }
  0x37   : > { %v4827_v37 = vpop.eup %4826  ;;  %v1143_v39 = vmul.f32 %v4825_v22, %v5337_v43  ;;  %4846 = vrcp.f32 %v962_v16 }
  0x38   : > { %v4829_v48 = vpop.eup %4828  ;;  %3987 = vmatprep.mubr.f32.mxu1 %v1142_v24  ;;  %4115 = vmatprep.mubr.f32.mxu0 %v1142_v24  ;;  %v1144_v42 = vmul.f32 %v4827_v37, %v5350_v51  ;;  %4848 = vpow2.f32 %v3519_v41  ;;  %v3524_v51 = vmul.f32 -1.442695, %v5508_v18  ;;  %v5536_v41 = vadd.f32 %v5313_v29, %v646_v19  ;;  %v3611_v24 = vld [vmem:[%s6744_s5 + $0x148] sm:$0xff] }
  0x39   : > { %v4831_v53 = vpop.eup %4830  ;;  %3988 = vmatmul.mubr.f32.vlgmr.msra.gmra.mrb[0].mxu1 %v1143_v39  ;;  %4116 = vmatmul.mubr.f32.vlgmr.msra.gmra.mrb[0].mxu0 %v1143_v39  ;;  %v1145_v43 = vmul.f32 %v4829_v48, %v5364_v59  ;;  %4850 = vpow2.f32 %v3520_v50  ;;  %v3526_v50 = vmul.f32 -1.442695, %v5519_v40  ;;  %v3530_v37 = vmul.f32 -1.442695, %v5547_v4 }
  0x3a   : > { %v4833_v57 = vpop.eup %4832  ;;  %4571 = vmatpush3.bf16.msra.mxu1 %v5231_v7  ;;  %3990 = vmatprep.mubr.f32.mxu1 %v1144_v42  ;;  %v1146_v59 = vmul.f32 %v4831_v53, %v5367_v60  ;;  %4852 = vpow2.f32 %v3521_v56  ;;  %v5550_v60 = vpack.c.bf16 %v3607_v55, %v3606_v54  ;;  %v3527_v56 = vmul.f32 -1.442695, %v5524_v49  ;;  %v582_v53 = vld [vmem:[%s5285_s17 + $0xe0] sm:$0xff] }
  0x3b   : > { %v4835_v0 = vpop.eup %4834  ;;  %4118 = vmatprep.mubr.f32.mxu0 %v1144_v42  ;;  %4470 = vmatpush3.bf16.msra.mxu0 %v5460_v2  ;;  %4854 = vpow2.f32 %v3522_v1  ;;  %v1147_v8 = vmul.f32 %v4833_v57, %v5372_v62  ;;  %v3610_v62 = vld [vmem:[%s6744_s5 + $0x140] sm:$0xff]  ;;  %v3531_v48 = vmul.f32 -1.442695, %v5555_v6  ;;  %v650_v42 = vmul.f32 %v5310_v28, %v580_v13 }
  0x3c   : > { %v4837_v5 = vpop.eup %4836  ;;  %4472 = vmatprep.subr.bf16.mxu0 %v5484_v32  ;;  %6770 = vst [vmem:[#allocation4_spill] sm:$0xff] %v5550_v60  ;;  %4564 = vmatprep.subr.bf16.mxu1 %v5244_v12  ;;  %4856 = vpow2.f32 %v3523_v9  ;;  %v3528_v9 = vmul.f32 -1.442695, %v5536_v41  ;;  %v1148_v19 = vmul.f32 %v4835_v0, %v5375_v63  ;;  %v3612_v63 = vld [vmem:[%s6744_s5 + $0x150] sm:$0xff]  ;;  %v3614_v55 = vld [vmem:[%s6744_s5 + $0x160] sm:$0xff] }
  0x3d   : > { %v4839_v1 = vpop.eup %4838  ;;  %3991 = vmatmul.mubr.f32.gmra.mrb[2].mxu1 %v1145_v43  ;;  %4119 = vmatmul.mubr.f32.gmra.mrb[2].mxu0 %v1145_v43  ;;  %4858 = vpow2.f32 %v3524_v51  ;;  %v1149_v54 = vmul.f32 %v4837_v5, %v5395_v14  ;;  %v3615_v51 = vld [vmem:[%s6744_s5 + $0x168] sm:$0xff]  ;;  %v5607_v0 = vpack.c.bf16 %v3613_v35, %v3612_v63  ;;  %v5625_v13 = vadd.f32 %v5313_v29, %v650_v42  ;;  %v584_v63 = vld [vmem:[%s5285_s17 + $0xf0] sm:$0xff] }
  0x3e   : > { %v4841_v16 = vpop.eup %4840  ;;  %3993 = vmatprep.mubr.f32.mxu1 %v1146_v59  ;;  %4121 = vmatprep.mubr.f32.mxu0 %v1146_v59  ;;  %4860 = vpow2.f32 %v3525_v58  ;;  %v5603_v59 = vmul.f32 %v4839_v1, %v5415_v27  ;;  %v5605_v58 = vpack.c.bf16 %v3611_v24, %v3610_v62  ;;  %v583_v14 = vld [vmem:[%s5285_s17 + $0xe8] sm:$0xff]  ;;  %v3617_v27 = vld [vmem:[%s6744_s5 + $0x178] sm:$0xff]  ;;  %v651_v1 = vmul.f32 %v5310_v28, %v581_v52 }
  0x3f   : > { %v4843_v22 = vpop.eup %4842  ;;  %4474 = vmatpush3.bf16.msra.mxu0 %v5484_v32  ;;  %4572 = vmatpush3.bf16.msra.mxu1 %v5244_v12  ;;  %4862 = vpow2.f32 %v3526_v50  ;;  %6773 = vst [vmem:[#allocation7_spill] sm:$0xff] %v5607_v0  ;;  %v5628_v62 = vmul.f32 %v4841_v16, %v5418_v30  ;;  %v653_v24 = vmul.f32 %v5310_v28, %v583_v14 }
  0x40   : > { %v5583_v39 = vpop.eup %4844  ;;  %4476 = vmatprep.subr.bf16.mxu0 %v5550_v60  ;;  %4565 = vmatprep.subr.bf16.mxu1 %v5261_v17  ;;  %4864 = vpow2.f32 %v3527_v56  ;;  %6772 = vst [vmem:[#allocation6_spill] sm:$0xff] %v5605_v58  ;;  %v3616_v56 = vld [vmem:[%s6744_s5 + $0x170] sm:$0xff]  ;;  %v5642_v52 = vadd.f32 %v5313_v29, %v651_v1 }
  0x41   : > { %v5593_v43 = vpop.eup %4846  ;;  %3994 = vmatmul.mubr.f32.gmra.mrb[4].mxu1 %v1147_v8  ;;  %4122 = vmatmul.mubr.f32.gmra.mrb[4].mxu0 %v1147_v8  ;;  %4866 = vpow2.f32 %v3528_v9  ;;  %v652_v8 = vmul.f32 %v5310_v28, %v582_v53  ;;  %v5621_v9 = vpack.c.bf16 %v3615_v51, %v3614_v55  ;;  %v5637_v42 = vpack.c.bf16 %v3617_v27, %v3616_v56 }
  0x42   : > { %v4849_v57 = vpop.eup %4848  ;;  %3996 = vmatprep.mubr.f32.mxu1 %v1148_v19  ;;  %4124 = vmatprep.mubr.f32.mxu0 %v1148_v19  ;;  %4868 = vpow2.f32 %v3529_v21  ;;  %v5650_v55 = vmul.f32 -1.442695, %v5625_v13  ;;  %v654_v51 = vmul.f32 %v5310_v28, %v584_v63  ;;  %v5662_v56 = vadd.f32 %v5313_v29, %v653_v24  ;;  %v588_v24 = vld [vmem:[%s5285_s17 + $0x110] sm:$0xff] }
  0x43   : > { %v4851_v50 = vpop.eup %4850  ;;  %4478 = vmatpush3.bf16.msra.mxu0 %v5550_v60  ;;  %v963_v5 = vadd.f32 1.0, %v4849_v57  ;;  %4573 = vmatpush3.bf16.msra.mxu1 %v5261_v17  ;;  %4870 = vpow2.f32 %v3530_v37  ;;  %6774 = vst [vmem:[#allocation8_spill] sm:$0xff] %v5621_v9  ;;  %v5635_v37 = vmul.f32 %v4843_v22, %v5427_v33  ;;  %6775 = vst [vmem:[#allocation9_spill] sm:$0xff] %v5637_v42  ;;  %v585_v33 = vld [vmem:[%s5285_s17 + $0xf8] sm:$0xff]  ;;  %v586_v57 = vld [vmem:[%s5285_s17 + $0x100] sm:$0xff] }
  0x44   : > { %v4853_v10 = vpop.eup %4852  ;;  %4480 = vmatprep.subr.bf16.mxu0 %v5586_v47  ;;  %v964_v11 = vadd.f32 1.0, %v4851_v50  ;;  %4566 = vmatprep.subr.bf16.mxu1 %v5301_v25  ;;  %4872 = vpow2.f32 %v3531_v48  ;;  %v5645_v53 = vadd.f32 %v5313_v29, %v652_v8  ;;  %v5659_v50 = vmul.f32 %v5583_v39, %v5430_v34  ;;  %v587_v39 = vld [vmem:[%s5285_s17 + $0x108] sm:$0xff] }
  0x45   : > { %v4855_v19 = vpop.eup %4854  ;;  %3997 = vmatmul.mubr.f32.gmra.mrb[6].mxu1 %v1149_v54  ;;  %4125 = vmatmul.mubr.f32.gmra.mrb[6].mxu0 %v1149_v54  ;;  %4874 = vrcp.f32 %v963_v5  ;;  %v965_v21 = vadd.f32 1.0, %v4853_v10  ;;  %v5668_v1 = vmul.f32 %v5593_v43, %v5439_v44  ;;  %v655_v34 = vmul.f32 %v5310_v28, %v585_v33 }
  0x46   : > { %v4857_v35 = vpop.eup %4856  ;;  %3999 = vmatprep.mubr.f32.mxu1 %v5603_v59  ;;  %4127 = vmatprep.mubr.f32.mxu0 %v5603_v59  ;;  %4876 = vrcp.f32 %v964_v11  ;;  %v966_v48 = vadd.f32 1.0, %v4855_v19  ;;  %v3533_v19 = vmul.f32 -1.442695, %v5642_v52  ;;  %v3534_v63 = vmul.f32 -1.442695, %v5645_v53 }
  0x47   : > { %v4859_v30 = vpop.eup %4858  ;;  %4482 = vmatpush3.bf16.msra.mxu0 %v5586_v47  ;;  %4878 = vrcp.f32 %v965_v21  ;;  %v967_v16 = vadd.f32 1.0, %v4857_v35  ;;  %4574 = vmatpush3.bf16.msra.mxu1 %v5301_v25  ;;  %v656_v21 = vmul.f32 %v5310_v28, %v586_v57  ;;  %v5680_v35 = vadd.f32 %v5313_v29, %v654_v51  ;;  %v596_v47 = vld [vmem:[%s5285_s17 + $0x150] sm:$0xff] }
  0x48   : > { %v4861_v22 = vpop.eup %4860  ;;  %4484 = vmatprep.subr.bf16.mxu0 %v5605_v58  ;;  %4880 = vrcp.f32 %v966_v48  ;;  %v968_v54 = vadd.f32 1.0, %v4859_v30  ;;  %4567 = vmatprep.subr.bf16.mxu1 %v5327_v38  ;;  %v589_v48 = vld [vmem:[%s5285_s17 + $0x118] sm:$0xff]  ;;  %v3535_v33 = vmul.f32 -1.442695, %v5662_v56 }
  0x49   : > { %v4863_v14 = vpop.eup %4862  ;;  %4000 = vmatmul.mubr.f32.gmra.mrb[8].mxu1 %v5628_v62  ;;  %4128 = vmatmul.mubr.f32.gmra.mrb[8].mxu0 %v5628_v62  ;;  %4882 = vrcp.f32 %v967_v16  ;;  %v969_v5 = vadd.f32 1.0, %v4861_v22  ;;  %v657_v22 = vmul.f32 %v5310_v28, %v587_v39 }
  0x4a   : > { %v4865_v27 = vpop.eup %4864  ;;  %4002 = vmatprep.mubr.f32.mxu1 %v5635_v37  ;;  %4130 = vmatprep.mubr.f32.mxu0 %v5635_v37  ;;  %4884 = vrcp.f32 %v968_v54  ;;  %v970_v8 = vadd.f32 1.0, %v4863_v14  ;;  %v590_v54 = vld [vmem:[%s5285_s17 + $0x120] sm:$0xff]  ;;  %v5692_v14 = vadd.f32 %v5313_v29, %v655_v34 }
  0x4b   : > { %v4867_v10 = vpop.eup %4866  ;;  %4486 = vmatpush3.bf16.msra.mxu0 %v5605_v58  ;;  %4886 = vrcp.f32 %v969_v5  ;;  %v971_v11 = vadd.f32 1.0, %v4865_v27  ;;  %4575 = vmatpush3.bf16.msra.mxu1 %v5327_v38  ;;  %v658_v5 = vmul.f32 %v5310_v28, %v588_v24  ;;  %v591_v27 = vld [vmem:[%s5285_s17 + $0x128] sm:$0xff]  ;;  %v3536_v24 = vmul.f32 -1.442695, %v5680_v35 }
  0x4c   : > { %v4869_v44 = vpop.eup %4868  ;;  %4488 = vmatprep.subr.bf16.mxu0 %v5607_v0  ;;  %4888 = vrcp.f32 %v970_v8  ;;  %v972_v43 = vadd.f32 1.0, %v4867_v10  ;;  %4568 = vmatprep.subr.bf16.mxu1 %v5381_v3  ;;  %v5698_v10 = vadd.f32 %v5313_v29, %v656_v21 }
  0x4d   : > { %v4871_v30 = vpop.eup %4870  ;;  %4003 = vmatmul.mubr.f32.gmra.mrb[10].mxu1 %v5659_v50  ;;  %4131 = vmatmul.mubr.f32.gmra.mrb[10].mxu0 %v5659_v50  ;;  %4890 = vrcp.f32 %v971_v11  ;;  %v973_v16 = vadd.f32 1.0, %v4869_v44  ;;  %v659_v11 = vmul.f32 %v5310_v28, %v589_v48  ;;  %v592_v44 = vld [vmem:[%s5285_s17 + $0x130] sm:$0xff]  ;;  %v5714_v48 = vadd.f32 %v5313_v29, %v657_v22 }
  0x4e   : > { %v4873_v57 = vpop.eup %4872  ;;  %4005 = vmatprep.mubr.f32.mxu1 %v5668_v1  ;;  %4133 = vmatprep.mubr.f32.mxu0 %v5668_v1  ;;  %4892 = vrcp.f32 %v972_v43  ;;  %v974_v51 = vadd.f32 1.0, %v4871_v30  ;;  %v660_v30 = vmul.f32 %v5310_v28, %v590_v54  ;;  %v5724_v54 = vadd.f32 %v5313_v29, %v658_v5 }
  0x4f   : > { %v4875_v8 = vpop.eup %4874  ;;  %4490 = vmatpush3.bf16.msra.mxu0 %v5607_v0  ;;  %4894 = vrcp.f32 %v973_v16  ;;  %v975_v39 = vadd.f32 1.0, %v4873_v57  ;;  %4576 = vmatpush3.bf16.msra.mxu1 %v5381_v3  ;;  %v3538_v5 = vmul.f32 -1.442695, %v5698_v10 }
  0x50   : > { %v4877_v43 = vpop.eup %4876  ;;  %v5704_v34 = vmul.f32 %v4875_v8, %v5471_v15  ;;  %4492 = vmatprep.subr.bf16.mxu0 %v5621_v9  ;;  %4896 = vrcp.f32 %v974_v51  ;;  %4569 = vmatprep.subr.bf16.mxu1 %v5412_v26  ;;  %v661_v15 = vmul.f32 %v5310_v28, %v591_v27  ;;  %v3537_v27 = vmul.f32 -1.442695, %v5692_v14 }
  0x51   : > { %v4879_v21 = vpop.eup %4878  ;;  %v5711_v16 = vmul.f32 %v4877_v43, %v5477_v20  ;;  %4898 = vrcp.f32 %v975_v39  ;;  %v662_v20 = vmul.f32 %v5310_v28, %v592_v44  ;;  %v5739_v39 = vadd.f32 %v5313_v29, %v660_v30 }
  0x52   : > { %v4881_v57 = vpop.eup %4880  ;;  %4006 = vmatmul.mubr.f32.gmra.mrb[12].mxu1 %v5704_v34  ;;  %4134 = vmatmul.mubr.f32.gmra.mrb[12].mxu0 %v5704_v34  ;;  %v5720_v51 = vmul.f32 %v4879_v21, %v5481_v23  ;;  %4900 = vpow2.f32 %v5650_v55  ;;  %v5734_v23 = vadd.f32 %v5313_v29, %v659_v11  ;;  %v3540_v43 = vmul.f32 -1.442695, %v5724_v54 }
  0x53   : > { %v4883_v8 = vpop.eup %4882  ;;  %4008 = vmatprep.mubr.f32.mxu1 %v5711_v16  ;;  %4136 = vmatprep.mubr.f32.mxu0 %v5711_v16  ;;  %v5730_v22 = vmul.f32 %v4881_v57, %v5487_v36  ;;  %4902 = vpow2.f32 %v3533_v19  ;;  %v3539_v36 = vmul.f32 -1.442695, %v5714_v48  ;;  %v5745_v19 = vadd.f32 %v5313_v29, %v661_v15 }
  0x54   : > { %v4885_v55 = vpop.eup %4884  ;;  %4494 = vmatpush3.bf16.msra.mxu0 %v5621_v9  ;;  %4904 = vpow2.f32 %v3534_v63  ;;  %4577 = vmatpush3.bf16.msra.mxu1 %v5412_v26  ;;  %v5751_v11 = vmul.f32 %v4883_v8, %v5492_v45  ;;  %v3541_v15 = vmul.f32 -1.442695, %v5734_v23  ;;  %v593_v45 = vld [vmem:[%s5285_s17 + $0x138] sm:$0xff]  ;;  %v594_v8 = vld [vmem:[%s5285_s17 + $0x140] sm:$0xff]  ;;  %v595_v9 = vld [vmem:[%s5285_s17 + $0x148] sm:$0xff] }
  0x55   : > { %v4887_v44 = vpop.eup %4886  ;;  %4496 = vmatprep.subr.bf16.mxu0 %v5637_v42  ;;  %4906 = vpow2.f32 %v3535_v33  ;;  %4570 = vmatprep.subr.bf16.mxu1 %v5443_v46  ;;  %v5755_v33 = vadd.f32 %v5313_v29, %v662_v20  ;;  %v5760_v21 = vmul.f32 %v4885_v55, %v5508_v18  ;;  %v3543_v18 = vmul.f32 -1.442695, %v5745_v19 }
  0x56   : > { %v4889_v63 = vpop.eup %4888  ;;  %4009 = vmatmul.mubr.f32.gmra.mrb[14].mxu1 %v5720_v51  ;;  %4137 = vmatmul.mubr.f32.gmra.mrb[14].mxu0 %v5720_v51  ;;  %4908 = vpow2.f32 %v3536_v24  ;;  %v3542_v24 = vmul.f32 -1.442695, %v5739_v39  ;;  %v5773_v55 = vmul.f32 %v4887_v44, %v5514_v31  ;;  %v664_v44 = vmul.f32 %v5310_v28, %v594_v8 }
  0x57   : > { %v4891_v30 = vpop.eup %4890  ;;  %4011 = vmatprep.mubr.f32.mxu1 %v5730_v22  ;;  %4139 = vmatprep.mubr.f32.mxu0 %v5730_v22  ;;  %4910 = vpow2.f32 %v3537_v27 }
  0x58   : > { %v4893_v57 = vpop.eup %4892  ;;  %4498 = vmatpush3.bf16.msra.mxu0 %v5637_v42  ;;  %4912 = vpow2.f32 %v3538_v5  ;;  %4578 = vmatpush3.bf16.msra.mxu1 %v5443_v46  ;;  %v3544_v5 = vmul.f32 -1.442695, %v5755_v33  ;;  %v663_v42 = vmul.f32 %v5310_v28, %v593_v45  ;;  %v665_v45 = vmul.f32 %v5310_v28, %v595_v9 }
  0x59   : > { %v4895_v20 = vpop.eup %4894  ;;  %4500 = vmatprep.subr.bf16.mxu0 %v5231_v7  ;;  %4914 = vpow2.f32 %v3539_v36  ;;  %v5783_v36 = vmul.f32 %v4889_v63, %v5519_v40  ;;  %v5791_v40 = vmul.f32 %v4891_v30, %v5524_v49  ;;  %v5800_v9 = vmul.f32 %v4893_v57, %v5536_v41 }
  0x5a   : > { %v4897_v27 = vpop.eup %4896  ;;  %4012 = vmatmul.mubr.f32.gmra.mrb[16].mxu1 %v5751_v11  ;;  %4140 = vmatmul.mubr.f32.gmra.mrb[16].mxu0 %v5751_v11  ;;  %4916 = vpow2.f32 %v3540_v43  ;;  %v5803_v30 = vadd.f32 %v5313_v29, %v664_v44  ;;  %v5808_v2 = vadd.f32 %v5313_v29, %v665_v45 }
  0x5b   : > { %v5778_v0 = vpop.eup %4898  ;;  %4014 = vmatprep.mubr.f32.mxu1 %v5760_v21  ;;  %4142 = vmatprep.mubr.f32.mxu0 %v5760_v21  ;;  %4918 = vpow2.f32 %v3541_v15  ;;  %v5794_v15 = vadd.f32 %v5313_v29, %v663_v42  ;;  %v666_v42 = vmul.f32 %v5310_v28, %v596_v47  ;;  %v5822_v57 = vmul.f32 %v4897_v27, %v5547_v4  ;;  %v600_v4 = vld [vmem:[%s5285_s17 + $0x170] sm:$0xff] }
  0x5c   : > { %v4901_v31 = vpop.eup %4900  ;;  %4920 = vpow2.f32 %v3542_v24  ;;  %v597_v24 = vld [vmem:[%s5285_s17 + $0x158] sm:$0xff]  ;;  %v5837_v27 = vmul.f32 -1.442695, %v5808_v2 }
  0x5d   : > { %v4903_v43 = vpop.eup %4902  ;;  %v976_v58 = vadd.f32 1.0, %v4901_v31  ;;  %4922 = vpow2.f32 %v3543_v18  ;;  %v667_v41 = vmul.f32 %v5310_v28, %v597_v24  ;;  %v5829_v24 = vld [vmem:[%s5291_s21] ss:$0 sm:$0xff] }
  0x5e   : > { %v4905_v60 = vpop.eup %4904  ;;  %4015 = vmatmul.mubr.f32.gmra.mrb[18].mxu1 %v5773_v55  ;;  %4143 = vmatmul.mubr.f32.gmra.mrb[18].mxu0 %v5773_v55  ;;  %v977_v63 = vadd.f32 1.0, %v4903_v43  ;;  %4924 = vpow2.f32 %v3544_v5  ;;  %v598_v5 = vld [vmem:[%s5285_s17 + $0x160] sm:$0xff] }
  0x5f   : > { %v4907_v8 = vpop.eup %4906  ;;  %4017 = vmatprep.mubr.f32.mxu1 %v5783_v36  ;;  %4231 = vmatprep.mubr.f32.mxu0 %v5603_v59  ;;  %4926 = vrcp.f32 %v976_v58  ;;  %v978_v18 = vadd.f32 1.0, %v4905_v60  ;;  %v5814_v60 = vmul.f32 %v4895_v20, %v5542_v61  ;;  %v5817_v58 = vmul.f32 -1.442695, %v5794_v15  ;;  %v599_v20 = vld [vmem:[%s5285_s17 + $0x168] sm:$0xff] }
  0x60   : > { %v4909_v31 = vpop.eup %4908  ;;  %4928 = vrcp.f32 %v977_v63  ;;  %v979_v49 = vadd.f32 1.0, %v4907_v8  ;;  %v668_v61 = vmul.f32 %v5310_v28, %v598_v5  ;;  %v3546_v63 = vmul.f32 -1.442695, %v5803_v30  ;;  %v601_v8 = vld [vmem:[%s5285_s17 + $0x178] sm:$0xff] }
  0x61   : > { %v4911_v43 = vpop.eup %4910  ;;  %4930 = vrcp.f32 %v978_v18  ;;  %v980_v32 = vadd.f32 1.0, %v4909_v31  ;;  %v5847_v31 = vmul.f32 %v5778_v0, %v5555_v6  ;;  %v603_v0 = vld [vmem:[%s5285_s17 + $0x188] sm:$0xff] }
  0x62   : > { %v4913_v59 = vpop.eup %4912  ;;  %4018 = vmatmul.mubr.f32.gmra.mrb[20].mxu1 %v5791_v40  ;;  %4232 = vmatmul.mubr.f32.vlgmr.msra.gmra.mrb[20].mxu0 %v5628_v62  ;;  %4932 = vrcp.f32 %v979_v49  ;;  %v981_v47 = vadd.f32 1.0, %v4911_v43  ;;  %v602_v43 = vld [vmem:[%s5285_s17 + $0x180] sm:$0xff] }
  0x63   : > { %v4915_v29 = vpop.eup %4914  ;;  %4020 = vmatprep.mubr.f32.mxu1 %v5800_v9  ;;  %4234 = vmatprep.mubr.f32.mxu0 %v5635_v37  ;;  %4934 = vrcp.f32 %v980_v32  ;;  %v982_v62 = vadd.f32 1.0, %v4913_v59  ;;  %v5832_v37 = vadd.f32 %v5829_v24, %v666_v42  ;;  %v5850_v42 = vld [vmem:[%s5279_s14] ss:$0 sm:$0xff]  ;;  %s6463_s14 = scalar_lea.vmem %s6748_s9, %s6795_s30 }
  0x64   : > { %v4917_v44 = vpop.eup %4916  ;;  %4502 = vmatpush3.bf16.msra.mxu0 %v5231_v7  ;;  %4936 = vrcp.f32 %v981_v47  ;;  %v983_v45 = vadd.f32 1.0, %v4915_v29  ;;  %v5840_v7 = vadd.f32 %v5829_v24, %v667_v41  ;;  %v669_v5 = vmul.f32 %v5850_v42, %v599_v20 }
  0x65   : > { %v4919_v32 = vpop.eup %4918  ;;  %4504 = vmatprep.subr.bf16.mxu0 %v5244_v12  ;;  %4938 = vrcp.f32 %v982_v62  ;;  %v984_v28 = vadd.f32 1.0, %v4917_v44  ;;  %v670_v6 = vmul.f32 %v5850_v42, %v600_v4  ;;  %v3548_v62 = vmul.f32 -1.442695, %v5832_v37  ;;  %v604_v44 = vld [vmem:[%s5285_s17 + $0x190] sm:$0xff] }
  0x66   : > { %v4921_v18 = vpop.eup %4920  ;;  %4021 = vmatmul.mubr.f32.gmra.mrb[22].mxu1 %v5814_v60  ;;  %4235 = vmatmul.mubr.f32.gmra.mrb[22].mxu0 %v5659_v50  ;;  %4940 = vrcp.f32 %v983_v45  ;;  %v985_v49 = vadd.f32 1.0, %v4919_v32  ;;  %v5857_v50 = vadd.f32 %v5829_v24, %v668_v61  ;;  %v671_v20 = vmul.f32 %v5850_v42, %v601_v8  ;;  %v605_v32 = vld [vmem:[%s5285_s17 + $0x198] sm:$0xff] }
  0x67   : > { %v4923_v41 = vpop.eup %4922  ;;  %4023 = vmatprep.mubr.f32.mxu1 %v5822_v57  ;;  %4237 = vmatprep.mubr.f32.mxu0 %v5668_v1  ;;  %4942 = vrcp.f32 %v984_v28  ;;  %v986_v59 = vadd.f32 1.0, %v4921_v18  ;;  %v3549_v45 = vmul.f32 -1.442695, %v5840_v7  ;;  %v672_v4 = vmul.f32 %v5850_v42, %v602_v43 }
  0x68   : > { %v4925_v47 = vpop.eup %4924  ;;  %4506 = vmatpush3.bf16.msra.mxu0 %v5244_v12  ;;  %4944 = vrcp.f32 %v985_v49  ;;  %v987_v29 = vadd.f32 1.0, %v4923_v41  ;;  %v5875_v8 = vadd.f32 %v5829_v24, %v669_v5  ;;  %v673_v18 = vmul.f32 %v5850_v42, %v603_v0 }
  0x69   : > { %v4927_v1 = vpop.eup %4926  ;;  %4508 = vmatprep.subr.bf16.mxu0 %v5261_v17  ;;  %4946 = vrcp.f32 %v986_v59  ;;  %v988_v61 = vadd.f32 1.0, %v4925_v47  ;;  %v5883_v41 = vadd.f32 %v5829_v24, %v670_v6  ;;  %v3550_v6 = vmul.f32 -1.442695, %v5857_v50 }
  0x6a   : > { %v4929_v28 = vpop.eup %4928  ;;  %4024 = vmatmul.mubr.f32.gmra.mrb[24].mxu1 %v5847_v31  ;;  %4238 = vmatmul.mubr.f32.gmra.mrb[24].mxu0 %v5704_v34  ;;  %v5872_v12 = vmul.f32 %v4927_v1, %v5625_v13  ;;  %4948 = vrcp.f32 %v987_v29  ;;  %v674_v34 = vmul.f32 %v5850_v42, %v604_v44  ;;  %v5899_v0 = vadd.f32 %v5829_v24, %v672_v4 }
  0x6b   : > { %v4931_v49 = vpop.eup %4930  ;;  %4240 = vmatprep.mubr.f32.mxu0 %v5711_v16  ;;  %v5880_v43 = vmul.f32 %v4929_v28, %v5642_v52  ;;  %4950 = vrcp.f32 %v988_v61  ;;  %v5893_v16 = vadd.f32 %v5829_v24, %v671_v20  ;;  %v675_v52 = vmul.f32 %v5850_v42, %v605_v32 }
  0x6c   : > { %v4933_v13 = vpop.eup %4932  ;;  %4026 = vmatprep.mubr.f32.mxu1 %v5872_v12  ;;  %v5888_v5 = vmul.f32 %v4931_v49, %v5645_v53  ;;  %4510 = vmatpush3.bf16.msra.mxu0 %v5261_v17  ;;  %4952 = vpow2.f32 %v5817_v58  ;;  %v3551_v58 = vmul.f32 -1.442695, %v5875_v8 }
  0x6d   : > { %v4935_v59 = vpop.eup %4934  ;;  %4954 = vpow2.f32 %v3546_v63  ;;  %4512 = vmatprep.subr.bf16.mxu0 %v5301_v25  ;;  %v5904_v17 = vmul.f32 %v4933_v13, %v5662_v56  ;;  %v5909_v63 = vadd.f32 %v5829_v24, %v673_v18  ;;  %v3552_v56 = vmul.f32 -1.442695, %v5883_v41 }
  0x6e   : > { %v4937_v53 = vpop.eup %4936  ;;  %4027 = vmatmul.mubr.f32.gmra.mrb[26].mxu1 %v5880_v43  ;;  %4241 = vmatmul.mubr.f32.gmra.mrb[26].mxu0 %v5720_v51  ;;  %4956 = vpow2.f32 %v5837_v27  ;;  %v5914_v29 = vmul.f32 %v4935_v59, %v5680_v35  ;;  %v5918_v51 = vadd.f32 %v5829_v24, %v674_v34  ;;  %v3553_v20 = vmul.f32 -1.442695, %v5893_v16  ;;  %v609_v34 = vld [vmem:[%s5285_s17 + $0x1b8] sm:$0xff] }
  0x6f   : > { %v4939_v47 = vpop.eup %4938  ;;  %4029 = vmatprep.mubr.f32.mxu1 %v5888_v5  ;;  %4243 = vmatprep.mubr.f32.mxu0 %v5730_v22  ;;  %4958 = vpow2.f32 %v3548_v62  ;;  %v5923_v44 = vadd.f32 %v5829_v24, %v675_v52  ;;  %v3554_v35 = vmul.f32 -1.442695, %v5899_v0  ;;  %v606_v22 = vld [vmem:[%s5285_s17 + $0x1a0] sm:$0xff]  ;;  %v5931_v61 = vmul.f32 %v4937_v53, %v5692_v14 }
  0x70   : > { %v4941_v27 = vpop.eup %4940  ;;  %4960 = vpow2.f32 %v3549_v45  ;;  %4514 = vmatpush3.bf16.msra.mxu0 %v5301_v25  ;;  %v3555_v25 = vmul.f32 -1.442695, %v5909_v63  ;;  %v5937_v4 = vmul.f32 %v4939_v47, %v5698_v10  ;;  %v3556_v32 = vmul.f32 -1.442695, %v5918_v51  ;;  %v607_v10 = vld [vmem:[%s5285_s17 + $0x1a8] sm:$0xff] }
  0x71   : > { %v4943_v1 = vpop.eup %4942  ;;  %4962 = vpow2.f32 %v3550_v6  ;;  %4516 = vmatprep.subr.bf16.mxu0 %v5327_v38  ;;  %v3557_v14 = vmul.f32 -1.442695, %v5923_v44  ;;  %v676_v28 = vmul.f32 %v5850_v42, %v606_v22  ;;  %v5952_v49 = vmul.f32 %v4941_v27, %v5714_v48  ;;  %v610_v6 = vld [vmem:[%s5285_s17 + $0x1c0] sm:$0xff] }
  0x72   : > { %v4945_v62 = vpop.eup %4944  ;;  %4030 = vmatmul.mubr.f32.gmra.mrb[28].mxu1 %v5904_v17  ;;  %4244 = vmatmul.mubr.f32.gmra.mrb[0].mxu0 %v5751_v11  ;;  %4964 = vpow2.f32 %v3551_v58  ;;  %v5959_v52 = vmul.f32 %v4943_v1, %v5724_v54  ;;  %v679_v54 = vmul.f32 %v5850_v42, %v609_v34  ;;  %v612_v34 = vld [vmem:[%s5285_s17 + $0x1d0] sm:$0xff] }
  0x73   : > { %v4947_v45 = vpop.eup %4946  ;;  %4032 = vmatprep.mubr.f32.mxu1 %v5914_v29  ;;  %4246 = vmatprep.mubr.f32.mxu0 %v5760_v21  ;;  %4966 = vpow2.f32 %v3552_v56  ;;  %v5963_v48 = vadd.f32 %v5829_v24, %v676_v28  ;;  %v5973_v1 = vmul.f32 %v4945_v62, %v5734_v23 }
  0x74   : > { %v5940_v11 = vpop.eup %4948  ;;  %4968 = vpow2.f32 %v3553_v20  ;;  %4518 = vmatpush3.bf16.msra.mxu0 %v5327_v38  ;;  %v608_v38 = vld [vmem:[%s5285_s17 + $0x1b0] sm:$0xff] }
  0x75   : > { %v5945_v18 = vpop.eup %4950  ;;  %4970 = vpow2.f32 %v3554_v35  ;;  %4520 = vmatprep.subr.bf16.mxu0 %v5381_v3  ;;  %v678_v27 = vmul.f32 %v5850_v42, %v608_v38  ;;  %v680_v35 = vmul.f32 %v5850_v42, %v610_v6  ;;  %v5982_v23 = vmul.f32 -1.442695, %v5963_v48 }
  0x76   : > { %v4953_v21 = vpop.eup %4952  ;;  %4033 = vmatmul.mubr.f32.gmra.mrb[30].mxu1 %v5931_v61  ;;  %4247 = vmatmul.mubr.f32.gmra.mrb[2].mxu0 %v5773_v55  ;;  %4972 = vpow2.f32 %v3555_v25  ;;  %v677_v55 = vmul.f32 %v5850_v42, %v607_v10  ;;  %v5979_v25 = vmul.f32 %v4947_v45, %v5739_v39  ;;  %v611_v10 = vld [vmem:[%s5285_s17 + $0x1c8] sm:$0xff]  ;;  %v5993_v45 = vadd.f32 %v5829_v24, %v679_v54 }
  0x77   : > { %v4955_v13 = vpop.eup %4954  ;;  %4035 = vmatprep.mubr.f32.mxu1 %v5937_v4  ;;  %4249 = vmatprep.mubr.f32.mxu0 %v5783_v36  ;;  %v989_v59 = vadd.f32 1.0, %v4953_v21  ;;  %4974 = vpow2.f32 %v3556_v32  ;;  %v5990_v39 = vadd.f32 %v5829_v24, %v678_v27  ;;  %v6004_v6 = vadd.f32 %v5829_v24, %v680_v35 }
  0x78   : > { %v4957_v53 = vpop.eup %4956  ;;  %v990_v58 = vadd.f32 1.0, %v4955_v13  ;;  %4976 = vpow2.f32 %v3557_v14  ;;  %4522 = vmatpush3.bf16.msra.mxu0 %v5381_v3  ;;  %v5985_v62 = vadd.f32 %v5829_v24, %v677_v55  ;;  %v6011_v55 = vmul.f32 %v5945_v18, %v5755_v33 }
  0x79   : > { %v4959_v47 = vpop.eup %4958  ;;  %4978 = vrcp.f32 %v989_v59  ;;  %v991_v56 = vadd.f32 1.0, %v4957_v53  ;;  %4524 = vmatprep.subr.bf16.mxu0 %v5412_v26  ;;  %v613_v53 = vld [vmem:[%s5285_s17 + $0x1d8] sm:$0xff]  ;;  %v3560_v18 = vmul.f32 -1.442695, %v5990_v39 }
  0x7a   : > { %v4961_v20 = vpop.eup %4960  ;;  %4036 = vmatmul.mubr.f32.gmra.mrb[32].mxu1 %v5952_v49  ;;  %4250 = vmatmul.mubr.f32.gmra.mrb[4].mxu0 %v5791_v40  ;;  %4980 = vrcp.f32 %v990_v58  ;;  %v992_v3 = vadd.f32 1.0, %v4959_v47  ;;  %v3559_v54 = vmul.f32 -1.442695, %v5985_v62  ;;  %v683_v35 = vmul.f32 %v5850_v42, %v613_v53  ;;  %v617_v53 = vld [vmem:[%s5285_s17 + $0x1f8] sm:$0xff] }
  0x7b   : > { %v4963_v22 = vpop.eup %4962  ;;  %4038 = vmatprep.mubr.f32.mxu1 %v5959_v52  ;;  %4252 = vmatprep.mubr.f32.mxu0 %v5800_v9  ;;  %4982 = vrcp.f32 %v991_v56  ;;  %v993_v32 = vadd.f32 1.0, %v4961_v20  ;;  %v682_v20 = vmul.f32 %v5850_v42, %v612_v34 }
  0x7c   : > { %v4965_v14 = vpop.eup %4964  ;;  %4984 = vrcp.f32 %v992_v3  ;;  %v994_v28 = vadd.f32 1.0, %v4963_v22  ;;  %4526 = vmatpush3.bf16.msra.mxu0 %v5412_v26  ;;  %v6001_v26 = vmul.f32 %v5940_v11, %v5745_v19  ;;  %v681_v19 = vmul.f32 %v5850_v42, %v611_v10  ;;  %v614_v11 = vld [vmem:[%s5285_s17 + $0x1e0] sm:$0xff]  ;;  %v615_v22 = vld [vmem:[%s5285_s17 + $0x1e8] sm:$0xff] }
  0x7d   : > { %v4967_v21 = vpop.eup %4966  ;;  %4986 = vrcp.f32 %v993_v32  ;;  %v995_v38 = vadd.f32 1.0, %v4965_v14  ;;  %4528 = vmatprep.subr.bf16.mxu0 %v5443_v46  ;;  %v6776_v32 = vld [vmem:[#allocation2_spill] sm:$0xff]  ;;  %v684_v10 = vmul.f32 %v5850_v42, %v614_v11  ;;  %v6038_v11 = vadd.f32 %v5829_v24, %v682_v20 }
  0x7e   : > { %v4969_v13 = vpop.eup %4968  ;;  %4039 = vmatmul.mubr.f32.gmra.mrb[34].mxu1 %v5973_v1  ;;  %4253 = vmatmul.mubr.f32.gmra.mrb[6].mxu0 %v5814_v60  ;;  %4988 = vrcp.f32 %v994_v28  ;;  %v996_v59 = vadd.f32 1.0, %v4967_v21  ;;  %v616_v21 = vld [vmem:[%s5285_s17 + $0x1f0] sm:$0xff] }
  0x7f   : > { %v4971_v58 = vpop.eup %4970  ;;  %4041 = vmatprep.mubr.f32.mxu1 %v5979_v25  ;;  %4255 = vmatprep.mubr.f32.mxu0 %v5822_v57  ;;  %4990 = vrcp.f32 %v995_v38  ;;  %v997_v47 = vadd.f32 1.0, %v4969_v13  ;;  %v3562_v13 = vmul.f32 -1.442695, %v6004_v6  ;;  %v6055_v20 = vadd.f32 %v5829_v24, %v684_v10 }
  0x80   : > { %v4973_v56 = vpop.eup %4972  ;;  %4992 = vrcp.f32 %v996_v59  ;;  %v998_v27 = vadd.f32 1.0, %v4971_v58  ;;  %4530 = vmatpush3.bf16.msra.mxu0 %v5443_v46  ;;  %v3561_v46 = vmul.f32 -1.442695, %v5993_v45  ;;  %v6031_v59 = vadd.f32 %v5829_v24, %v681_v19 }
  0x81   : > { %v4975_v3 = vpop.eup %4974  ;;  %4994 = vrcp.f32 %v997_v47  ;;  %v999_v33 = vadd.f32 1.0, %v4973_v56  ;;  %4532 = vmatprep.subr.bf16.mxu0 %v6776_v32  ;;  %v685_v56 = vmul.f32 %v5850_v42, %v615_v22  ;;  %v686_v19 = vmul.f32 %v5850_v42, %v616_v21 }
  0x82   : > { %v4977_v14 = vpop.eup %4976  ;;  %4042 = vmatmul.mubr.f32.gmra.mrb[36].mxu1 %v6001_v26  ;;  %4256 = vmatmul.mubr.f32.gmra.mrb[8].mxu0 %v5847_v31  ;;  %4996 = vrcp.f32 %v998_v27  ;;  %v1000_v28 = vadd.f32 1.0, %v4975_v3 }
  0x83   : > { %v4979_v38 = vpop.eup %4978  ;;  %4044 = vmatprep.mubr.f32.mxu1 %v6011_v55  ;;  %4258 = vmatprep.mubr.f32.mxu0 %v5872_v12  ;;  %4998 = vrcp.f32 %v999_v33  ;;  %v1001_v34 = vadd.f32 1.0, %v4977_v14  ;;  %v6045_v33 = vadd.f32 %v5829_v24, %v683_v35  ;;  %v6066_v10 = vadd.f32 %v5829_v24, %v685_v56 }
  0x84   : > { %v4981_v58 = vpop.eup %4980  ;;  %v6035_v47 = vmul.f32 %v4979_v38, %v5794_v15  ;;  %5000 = vrcp.f32 %v1000_v28  ;;  %v3563_v28 = vmul.f32 -1.442695, %v6031_v59 }
  0x85   : > { %v4983_v27 = vpop.eup %4982  ;;  %v6042_v3 = vmul.f32 %v4981_v58, %v5803_v30  ;;  %5002 = vrcp.f32 %v1001_v34  ;;  %v687_v30 = vmul.f32 %v5850_v42, %v617_v53  ;;  %v3565_v38 = vmul.f32 -1.442695, %v6045_v33 }
  0x86   : > { %v4985_v14 = vpop.eup %4984  ;;  %4045 = vmatmul.mubr.f32.gmra.mrb[38].mxu1 %v6035_v47  ;;  %4259 = vmatmul.mubr.f32.gmra.mrb[10].mxu0 %v5880_v43  ;;  %v6051_v15 = vmul.f32 %v4983_v27, %v5808_v2  ;;  %5004 = vpow2.f32 %v5982_v23  ;;  %v3564_v23 = vmul.f32 -1.442695, %v6038_v11  ;;  %v6070_v34 = vadd.f32 %v5829_v24, %v686_v19 }
  0x87   : > { %v4987_v22 = vpop.eup %4986  ;;  %4047 = vmatprep.mubr.f32.mxu1 %v6042_v3  ;;  %4261 = vmatprep.mubr.f32.mxu0 %v5888_v5  ;;  %v6061_v35 = vmul.f32 %v4985_v14, %v5832_v37  ;;  %5006 = vpow2.f32 %v3559_v54  ;;  %v3566_v54 = vmul.f32 -1.442695, %v6055_v20 }
  0x88   : > { %v4989_v2 = vpop.eup %4988  ;;  %5008 = vpow2.f32 %v3560_v18  ;;  %v6075_v37 = vmul.f32 %v4987_v22, %v5840_v7  ;;  %v6079_v18 = vadd.f32 %v5829_v24, %v687_v30  ;;  %v3567_v7 = vmul.f32 -1.442695, %v6066_v10 }
  0x89   : > { %v4991_v21 = vpop.eup %4990  ;;  %5010 = vpow2.f32 %v3561_v46  ;;  %v6084_v58 = vmul.f32 %v4989_v2, %v5857_v50 }
  0x8a   : > { %v4993_v53 = vpop.eup %4992  ;;  %4048 = vmatmul.mubr.f32.gmra.mrb[40].mxu1 %v6051_v15  ;;  %4262 = vmatmul.mubr.f32.gmra.mrb[12].mxu0 %v5904_v17  ;;  %5012 = vpow2.f32 %v3562_v13  ;;  %v3568_v13 = vmul.f32 -1.442695, %v6070_v34  ;;  %v6091_v14 = vmul.f32 %v4991_v21, %v5875_v8  ;;  %v3569_v50 = vmul.f32 -1.442695, %v6079_v18 }
  0x8b   : > { %v4995_v46 = vpop.eup %4994  ;;  %4050 = vmatprep.mubr.f32.mxu1 %v6061_v35  ;;  %4264 = vmatprep.mubr.f32.mxu0 %v5914_v29  ;;  %6777 = vst [vmem:[#allocation2_spill] sm:$0xff] %v6084_v58  ;;  %5014 = vpow2.f32 %v3563_v28  ;;  %v6097_v22 = vmul.f32 %v4993_v53, %v5883_v41 }
  0x8c   : > { %v4997_v56 = vpop.eup %4996  ;;  %5016 = vpow2.f32 %v3564_v23  ;;  %6778 = vst [vmem:[#allocation10_spill] sm:$0xff] %v6091_v14  ;;  %v6102_v8 = vmul.f32 %v4995_v46, %v5893_v16 }
  0x8d   : > { %v4999_v27 = vpop.eup %4998  ;;  %5018 = vpow2.f32 %v3565_v38  ;;  %6779 = vst [vmem:[#allocation11_spill] sm:$0xff] %v6097_v22  ;;  %v6107_v41 = vmul.f32 %v4997_v56, %v5899_v0 }
  0x8e   : > { %v5001_v19 = vpop.eup %5000  ;;  %4051 = vmatmul.mubr.f32.gmra.mrb[42].mxu1 %v6075_v37  ;;  %4265 = vmatmul.mubr.f32.gmra.mrb[14].mxu0 %v5931_v61  ;;  %5020 = vpow2.f32 %v3566_v54 }
  0x8f   : > { %v5003_v30 = vpop.eup %5002  ;;  %4053 = vmatprep.mubr.f32.mxu1 %v6084_v58  ;;  %4267 = vmatprep.mubr.f32.mxu0 %v5937_v4  ;;  %5022 = vpow2.f32 %v3567_v7  ;;  %v6123_v56 = vmul.f32 %v5001_v19, %v5918_v51 }
  0x90   : > { %v5005_v28 = vpop.eup %5004  ;;  %5024 = vpow2.f32 %v3568_v13 }
  0x91   : > { %v5007_v2 = vpop.eup %5006  ;;  %v1002_v23 = vadd.f32 1.0, %v5005_v28  ;;  %5026 = vpow2.f32 %v3569_v50  ;;  %v6112_v50 = vmul.f32 %v4999_v27, %v5909_v63 }
  0x92   : > { %v5009_v38 = vpop.eup %5008  ;;  %4054 = vmatmul.mubr.f32.gmra.mrb[44].mxu1 %v6091_v14  ;;  %4268 = vmatmul.mubr.f32.gmra.mrb[16].mxu0 %v5952_v49  ;;  %v1003_v21 = vadd.f32 1.0, %v5007_v2 }
  0x93   : > { %v5011_v54 = vpop.eup %5010  ;;  %4056 = vmatprep.mubr.f32.mxu1 %v6097_v22  ;;  %4270 = vmatprep.mubr.f32.mxu0 %v5959_v52  ;;  %5028 = vrcp.f32 %v1002_v23  ;;  %v1004_v53 = vadd.f32 1.0, %v5009_v38  ;;  %v1210_v38 = vld [vmem:[%s6118_s19] sm:$0xff] }
  0x94   : > { %v5013_v7 = vpop.eup %5012  ;;  %5030 = vrcp.f32 %v1003_v21  ;;  %v1005_v13 = vadd.f32 1.0, %v5011_v54  ;;  %v6129_v54 = vmul.f32 %v5003_v30, %v5923_v44  ;;  %v1218_v19 = vmul.f32 %v5850_v42, %v1210_v38 }
  0x95   : > { %v5015_v28 = vpop.eup %5014  ;;  %5032 = vrcp.f32 %v1004_v53  ;;  %v1006_v16 = vadd.f32 1.0, %v5013_v7 }
  0x96   : > { %v5017_v46 = vpop.eup %5016  ;;  %4057 = vmatmul.mubr.f32.gmra.mrb[46].mxu1 %v6102_v8  ;;  %4271 = vmatmul.mubr.f32.gmra.mrb[18].mxu0 %v5973_v1  ;;  %5034 = vrcp.f32 %v1005_v13  ;;  %v1007_v2 = vadd.f32 1.0, %v5015_v28  ;;  %v6150_v38 = vadd.f32 %v5829_v24, %v1218_v19  ;;  %v1214_v19 = vld [vmem:[%s6118_s19 + $0x20] sm:$0xff] }
  0x97   : > { %v5019_v0 = vpop.eup %5018  ;;  %4059 = vmatprep.mubr.f32.mxu1 %v6107_v41  ;;  %4273 = vmatprep.mubr.f32.mxu0 %v5979_v25  ;;  %5036 = vrcp.f32 %v1006_v16  ;;  %v1008_v23 = vadd.f32 1.0, %v5017_v46  ;;  %v1211_v16 = vld [vmem:[%s6118_s19 + $0x8] sm:$0xff] }
  0x98   : > { %v5021_v63 = vpop.eup %5020  ;;  %5038 = vrcp.f32 %v1007_v2  ;;  %v1009_v27 = vadd.f32 1.0, %v5019_v0 }
  0x99   : > { %v5023_v21 = vpop.eup %5022  ;;  %5040 = vrcp.f32 %v1008_v23  ;;  %v1010_v53 = vadd.f32 1.0, %v5021_v63  ;;  %v1212_v23 = vld [vmem:[%s6118_s19 + $0x10] sm:$0xff] }
  0x9a   : > { %4060 = vmatmul.mubr.f32.gmra.mrb[48].mxu1 %v6112_v50  ;;  %4274 = vmatmul.mubr.f32.gmra.mrb[28].mxu0 %v6001_v26  ;;  %v5025_v7 = vpop.eup %5024  ;;  %5042 = vrcp.f32 %v1009_v27  ;;  %v1011_v28 = vadd.f32 1.0, %v5023_v21 }
  0x9b   : > { %4062 = vmatprep.mubr.f32.mxu1 %v6123_v56  ;;  %4276 = vmatprep.mubr.f32.mxu0 %v6011_v55  ;;  %v5027_v51 = vpop.eup %5026  ;;  %5044 = vrcp.f32 %v1010_v53  ;;  %v1012_v30 = vadd.f32 1.0, %v5025_v7  ;;  %v1213_v7 = vld [vmem:[%s6118_s19 + $0x18] sm:$0xff] }
  0x9c   : > { %5046 = vrcp.f32 %v1011_v28  ;;  %v1013_v53 = vadd.f32 1.0, %v5027_v51 }
  0x9d   : > { %v5029_v13 = vpop.eup %5028  ;;  %5048 = vrcp.f32 %v1012_v30  ;;  %v1222_v30 = vmul.f32 %v5850_v42, %v1214_v19 }
  0x9e   : > { %v5031_v46 = vpop.eup %5030  ;;  %4063 = vmatmul.mubr.f32.gmra.mrb[50].mxu1 %v6129_v54  ;;  %4277 = vmatmul.mubr.f32.gmra.mrb[30].mxu0 %v6035_v47  ;;  %v6138_v44 = vmul.f32 %v5029_v13, %v5963_v48  ;;  %v1219_v48 = vmul.f32 %v5850_v42, %v1211_v16  ;;  %v3570_v16 = vmul.f32 -1.442695, %v6150_v38  ;;  %5050 = vrcp.f32 %v1013_v53 }
  0x9f   : > { %v5033_v2 = vpop.eup %5032  ;;  %4279 = vmatprep.mubr.f32.mxu0 %v6042_v3  ;;  %v6142_v0 = vmul.f32 %v5031_v46, %v5985_v62 }
  0xa0   : > { %v5035_v63 = vpop.eup %5034  ;;  %4065 = vmatprep.mubr.f32.mxu1 %v6138_v44  ;;  %v6147_v27 = vmul.f32 %v5033_v2, %v5990_v39  ;;  %v1220_v39 = vmul.f32 %v5850_v42, %v1212_v23  ;;  %v6168_v46 = vadd.f32 %v5829_v24, %v1219_v48  ;;  %v1215_v2 = vld [vmem:[%s6118_s19 + $0x28] sm:$0xff]  ;;  %5052 = vpow2.f32 %v3570_v16 }
  0xa1   : > { %v5037_v21 = vpop.eup %5036  ;;  %v6157_v62 = vmul.f32 %v5035_v63, %v5993_v45  ;;  %v1221_v45 = vmul.f32 %v5850_v42, %v1213_v7 }
  0xa2   : > { %4066 = vmatmul.mubr.f32.gmra.mrb[52].mxu1 %v6142_v0  ;;  %4280 = vmatmul.mubr.f32.gmra.mrb[32].mxu0 %v6051_v15  ;;  %v5039_v13 = vpop.eup %5038  ;;  %v6164_v51 = vmul.f32 %v5037_v21, %v6004_v6  ;;  %v6180_v23 = vadd.f32 %v5829_v24, %v1220_v39  ;;  %v1216_v21 = vld [vmem:[%s6118_s19 + $0x30] sm:$0xff]  ;;  %v3571_v7 = vmul.f32 -1.442695, %v6168_v46  ;;  %v6199_v39 = vadd.f32 %v5829_v24, %v1222_v30 }
  0xa3   : > { %4068 = vmatprep.mubr.f32.mxu1 %v6147_v27  ;;  %4282 = vmatprep.mubr.f32.mxu0 %v6061_v35  ;;  %v5041_v28 = vpop.eup %5040  ;;  %v6177_v6 = vmul.f32 %v5039_v13, %v6031_v59  ;;  %v6190_v19 = vadd.f32 %v5829_v24, %v1221_v45  ;;  %v1223_v59 = vmul.f32 %v5850_v42, %v1215_v2  ;;  %v1299_v2 = vld [vmem:[%s6196_s25] sm:$0xff] }
  0xa4   : > { %v5043_v63 = vpop.eup %5042  ;;  %v6185_v48 = vmul.f32 %v5041_v28, %v6038_v11  ;;  %v1217_v11 = vld [vmem:[%s6118_s19 + $0x38] sm:$0xff]  ;;  %v3572_v28 = vmul.f32 -1.442695, %v6180_v23  ;;  %v1224_v16 = vmul.f32 %v5850_v42, %v1216_v21  ;;  %5054 = vpow2.f32 %v3571_v7 }
  0xa5   : > { %v5045_v53 = vpop.eup %5044  ;;  %v6205_v13 = vmul.f32 %v5043_v63, %v6045_v33  ;;  %v6217_v33 = vadd.f32 %v5829_v24, %v1223_v59  ;;  %v1225_v63 = vmul.f32 %v5850_v42, %v1217_v11  ;;  %v3574_v21 = vmul.f32 -1.442695, %v6199_v39 }
  0xa6   : > { %4069 = vmatmul.mubr.f32.gmra.mrb[54].mxu1 %v6157_v62  ;;  %4283 = vmatmul.mubr.f32.gmra.mrb[34].mxu0 %v6075_v37  ;;  %v5047_v45 = vpop.eup %5046  ;;  %v6212_v30 = vmul.f32 %v5045_v53, %v6055_v20  ;;  %5056 = vpow2.f32 %v3572_v28  ;;  %v6227_v20 = vadd.f32 %v5829_v24, %v1224_v16  ;;  %v1307_v53 = vmul.f32 %v5850_v42, %v1299_v2 }
  0xa7   : > { %4071 = vmatprep.mubr.f32.mxu1 %v6164_v51  ;;  %4285 = vmatprep.mubr.f32.mxu0 %v6084_v58  ;;  %v5049_v58 = vpop.eup %5048  ;;  %v3575_v11 = vmul.f32 -1.442695, %v6217_v33 }
  0xa8   : > { %v5051_v7 = vpop.eup %5050  ;;  %v6233_v59 = vmul.f32 %v5049_v58, %v6070_v34  ;;  %v6246_v34 = vadd.f32 %v5829_v24, %v1307_v53 }
  0xa9   : > { %v6242_v16 = vmul.f32 %v5051_v7, %v6079_v18 }
  0xaa   : > { %4072 = vmatmul.mubr.f32.gmra.mrb[56].mxu1 %v6177_v6  ;;  %4286 = vmatmul.mubr.f32.gmra.mrb[36].mxu0 %v6091_v14  ;;  %v3573_v14 = vmul.f32 -1.442695, %v6190_v19  ;;  %v5053_v28 = vpop.eup %5052  ;;  %v3578_v18 = vmul.f32 -1.442695, %v6246_v34 }
  0xab   : > { %4074 = vmatprep.mubr.f32.mxu1 %v6185_v48  ;;  %4288 = vmatprep.mubr.f32.mxu0 %v6097_v22  ;;  %v6224_v22 = vmul.f32 %v5047_v45, %v6066_v10  ;;  %v6237_v10 = vadd.f32 %v5829_v24, %v1225_v63  ;;  %v3576_v45 = vmul.f32 -1.442695, %v6227_v20 }
  0xac   : > { %5058 = vpow2.f32 %v3573_v14  ;;  %v1258_v14 = vadd.f32 1.0, %v5053_v28  ;;  %v1300_v28 = vld [vmem:[%s6196_s25 + $0x8] sm:$0xff] }
  0xad   : > { %5060 = vpow2.f32 %v3574_v21  ;;  %v3577_v58 = vmul.f32 -1.442695, %v6237_v10 }
  0xae   : > { %4075 = vmatmul.mubr.f32.gmra.mrb[58].mxu1 %v6205_v13  ;;  %4289 = vmatmul.mubr.f32.gmra.mrb[38].mxu0 %v6102_v8  ;;  %5062 = vpow2.f32 %v3575_v11  ;;  %v5055_v2 = vpop.eup %5054 }
  0xaf   : > { %4077 = vmatprep.mubr.f32.mxu1 %v6212_v30  ;;  %4291 = vmatprep.mubr.f32.mxu0 %v6107_v41  ;;  %5064 = vpow2.f32 %v3576_v45  ;;  %v1259_v21 = vadd.f32 1.0, %v5055_v2 }
  0xb0   : > { %v5057_v63 = vpop.eup %5056  ;;  %5066 = vpow2.f32 %v3577_v58 }
  0xb1   : > { %5068 = vrcp.f32 %v1258_v14  ;;  %v1260_v7 = vadd.f32 1.0, %v5057_v63  ;;  %v1308_v14 = vmul.f32 %v5850_v42, %v1300_v28  ;;  %v1302_v63 = vld [vmem:[%s6196_s25 + $0x18] sm:$0xff] }
  0xb2   : > { %4078 = vmatmul.mubr.f32.gmra.mrb[60].mxu1 %v6224_v22  ;;  %4292 = vmatmul.mubr.f32.gmra.mrb[40].mxu0 %v6112_v50  ;;  %5070 = vpow2.f32 %v3578_v18 }
  0xb3   : > { %4080 = vmatprep.mubr.f32.mxu1 %v6233_v59  ;;  %4294 = vmatprep.mubr.f32.mxu0 %v6123_v56  ;;  %5072 = vrcp.f32 %v1259_v21  ;;  %v1303_v21 = vld [vmem:[%s6196_s25 + $0x20] sm:$0xff] }
  0xb4   : > { %5074 = vrcp.f32 %v1260_v7  ;;  %v6275_v7 = vadd.f32 %v5829_v24, %v1308_v14  ;;  %v1311_v28 = vmul.f32 %v5850_v42, %v1303_v21 }
  0xb6   : > { %4081 = vmatmul.mubr.f32.gmra.mrb[62].mxu1 %v6242_v16  ;;  %4295 = vmatmul.mubr.f32.gmra.mrb[42].mxu0 %v6129_v54  ;;  %v5059_v53 = vpop.eup %5058 }
  0xb7   : > { %4145 = vmatprep.mubr.f32.mxu1 %v5783_v36  ;;  %4297 = vmatprep.mubr.f32.mxu0 %v6138_v44  ;;  %v5061_v36 = vpop.eup %5060  ;;  %v1261_v11 = vadd.f32 1.0, %v5059_v53 }
  0xb8   : > { %v5063_v45 = vpop.eup %5062 }
  0xb9   : > { %v5065_v58 = vpop.eup %5064  ;;  %5076 = vrcp.f32 %v1261_v11  ;;  %v1263_v2 = vadd.f32 1.0, %v5063_v45  ;;  %v1304_v11 = vld [vmem:[%s6196_s25 + $0x28] sm:$0xff] }
  0xba   : > { %4146 = vmatmul.mubr.f32.vlgmr.msra.gmra.mrb[28].mxu1 %v5791_v40  ;;  %4298 = vmatmul.mubr.f32.gmra.mrb[44].mxu0 %v6142_v0  ;;  %v1301_v40 = vld [vmem:[%s6196_s25 + $0x10] sm:$0xff] }
  0xbb   : > { %4148 = vmatprep.mubr.f32.mxu1 %v5800_v9  ;;  %4300 = vmatprep.mubr.f32.mxu0 %v6147_v27  ;;  %v1262_v9 = vadd.f32 1.0, %v5061_v36  ;;  %v1309_v18 = vmul.f32 %v5850_v42, %v1301_v40  ;;  %v1310_v36 = vmul.f32 %v5850_v42, %v1302_v63 }
  0xbd   : > { %5078 = vrcp.f32 %v1262_v9  ;;  %v1312_v9 = vmul.f32 %v5850_v42, %v1304_v11  ;;  %v6292_v14 = vadd.f32 %v5829_v24, %v1310_v36  ;;  %v5118_v11 = vld [vmem:[%s5291_s21] ss:$0 sm:$0xff] }
  0xbe   : > { %4149 = vmatmul.mubr.f32.gmra.mrb[30].mxu1 %v5814_v60  ;;  %4301 = vmatmul.mubr.f32.gmra.mrb[46].mxu0 %v6157_v62  ;;  %v5067_v60 = vpop.eup %5066  ;;  %5080 = vrcp.f32 %v1263_v2  ;;  %v6296_v2 = vadd.f32 %v5829_v24, %v1311_v28 }
  0xbf   : > { %4151 = vmatprep.mubr.f32.mxu1 %v5822_v57  ;;  %4303 = vmatprep.mubr.f32.mxu0 %v6164_v51  ;;  %v5069_v57 = vpop.eup %5068  ;;  %v1264_v51 = vadd.f32 1.0, %v5065_v58  ;;  %v3579_v58 = vmul.f32 -1.442695, %v6275_v7 }
  0xc0   : > { %v5071_v53 = vpop.eup %5070  ;;  %v1282_v45 = vmul.f32 %v5069_v57, %v6150_v38  ;;  %v3581_v57 = vmul.f32 -1.442695, %v6292_v14 }
  0xc1   : > { %5082 = vrcp.f32 %v1264_v51  ;;  %v1347_v40 = vadd.f32 1.0, %v5071_v53 }
  0xc2   : > { %4152 = vmatmul.mubr.f32.gmra.mrb[32].mxu1 %v5847_v31  ;;  %4304 = vmatmul.mubr.f32.gmra.mrb[48].mxu0 %v6177_v6  ;;  %v1265_v31 = vadd.f32 1.0, %v5067_v60  ;;  %v6280_v6 = vadd.f32 %v5829_v24, %v1309_v18  ;;  %v1291_v63 = vmul.f32 0.0, %v1282_v45  ;;  %v6306_v60 = vadd.f32 %v5829_v24, %v1312_v9 }
  0xc3   : > { %4154 = vmatprep.mubr.f32.mxu1 %v5872_v12  ;;  %4306 = vmatprep.mubr.f32.mxu0 %v6185_v48  ;;  %v1305_v12 = vld [vmem:[%s6196_s25 + $0x30] sm:$0xff]  ;;  %v5073_v48 = vpop.eup %5072 }
  0xc4   : > { %5084 = vrcp.f32 %v1265_v31  ;;  %v1283_v38 = vmul.f32 %v5073_v48, %v6168_v46  ;;  %v3582_v46 = vmul.f32 -1.442695, %v6296_v2 }
  0xc5   : > { %5086 = vrcp.f32 %v1347_v40 }
  0xc6   : > { %4155 = vmatmul.mubr.f32.gmra.mrb[34].mxu1 %v5880_v43  ;;  %4307 = vmatmul.mubr.f32.gmra.mrb[50].mxu0 %v6205_v13  ;;  %v5075_v43 = vpop.eup %5074  ;;  %v3580_v13 = vmul.f32 -1.442695, %v6280_v6  ;;  %5088 = vpow2.f32 %v3579_v58 }
  0xc7   : > { %4157 = vmatprep.mubr.f32.mxu1 %v5888_v5  ;;  %4309 = vmatprep.mubr.f32.mxu0 %v6212_v30  ;;  %v1313_v5 = vmul.f32 %v5850_v42, %v1305_v12  ;;  %v1306_v30 = vld [vmem:[%s6196_s25 + $0x38] sm:$0xff]  ;;  %v5077_v18 = vpop.eup %5076  ;;  %v1284_v21 = vmul.f32 %v5075_v43, %v6180_v23 }
  0xc8   : > { %5090 = vpow2.f32 %v3580_v13  ;;  %v1285_v23 = vmul.f32 %v5077_v18, %v6190_v19  ;;  %v6783_v18 = vld [vmem:[#allocation6_spill] sm:$0xff] }
  0xc9   : > { %v1293_v53 = vmul.f32 0.0, %v1284_v21  ;;  %5092 = vpow2.f32 %v3581_v57 }
  0xca   : > { %4158 = vmatmul.mubr.f32.gmra.mrb[36].mxu1 %v5904_v17  ;;  %4310 = vmatmul.mubr.f32.gmra.mrb[52].mxu0 %v6224_v22  ;;  %v1314_v17 = vmul.f32 %v5850_v42, %v1306_v30  ;;  %v5079_v22 = vpop.eup %5078  ;;  %v3583_v42 = vmul.f32 -1.442695, %v6306_v60  ;;  %5094 = vpow2.f32 %v3582_v46  ;;  %v1294_v19 = vmul.f32 0.0, %v1285_v23  ;;  %v6787_v46 = vld [vmem:[#allocation10_spill] sm:$0xff]  ;;  %v6788_v23 = vld [vmem:[#allocation11_spill] sm:$0xff] }
  0xcb   : > { %4160 = vmatprep.mubr.f32.mxu1 %v5914_v29  ;;  %4312 = vmatprep.mubr.f32.mxu0 %v6233_v59  ;;  %v6313_v29 = vadd.f32 %v5829_v24, %v1313_v5  ;;  %v1292_v59 = vmul.f32 0.0, %v1283_v38  ;;  %v5081_v51 = vpop.eup %5080  ;;  %v1286_v36 = vmul.f32 %v5079_v22, %v6199_v39  ;;  %v6780_v39 = vld [vmem:[#allocation3_spill] sm:$0xff] }
  0xcc   : > { %v6322_v24 = vadd.f32 %v5118_v11, %v1314_v17  ;;  %v5083_v31 = vpop.eup %5082  ;;  %5096 = vpow2.f32 %v3583_v42  ;;  %v6785_v17 = vld [vmem:[#allocation2_spill] sm:$0xff]  ;;  %v6789_v42 = vld [vmem:[#allocation9_spill] sm:$0xff] }
  0xcd   : > { %v1295_v28 = vmul.f32 0.0, %v1286_v36  ;;  %v1288_v12 = vmul.f32 %v5083_v31, %v6227_v20 }
  0xce   : > { %4161 = vmatmul.mubr.f32.gmra.mrb[38].mxu1 %v5931_v61  ;;  %4313 = vmatmul.mubr.f32.gmra.mrb[54].mxu0 %v6242_v16  ;;  %v3584_v61 = vmul.f32 -1.442695, %v6313_v29  ;;  %v5085_v16 = vpop.eup %5084  ;;  %v3585_v48 = vmul.f32 -1.442695, %v6322_v24 }
  0xcf   : > { %4163 = vmatprep.mubr.f32.mxu1 %v5937_v4  ;;  %4347 = vmatprep.mubr.f32.mxu0 %v1291_v63  ;;  %v1287_v4 = vmul.f32 %v5081_v51, %v6217_v33  ;;  %v5087_v45 = vpop.eup %5086  ;;  %v1297_v20 = vmul.f32 0.0, %v1288_v12 }
  0xd0   : > { %5098 = vpow2.f32 %v3584_v61  ;;  %v1371_v9 = vmul.f32 %v5087_v45, %v6246_v34 }
  0xd1   : > { %v1296_v33 = vmul.f32 0.0, %v1287_v4  ;;  %5100 = vpow2.f32 %v3585_v48 }
  0xd2   : > { %4164 = vmatmul.mubr.f32.gmra.mrb[40].mxu1 %v5952_v49  ;;  %4348 = vmatmul.mubr.f32.vlgmr.msra.gmra.mrb[20].mxu0 %v1292_v59  ;;  %v5089_v49 = vpop.eup %5088  ;;  %v1380_v5 = vmul.f32 0.0, %v1371_v9 }
  0xd3   : > { %4534 = vmatpush3.bf16.msra.mxu0 %v6776_v32  ;;  %4166 = vmatprep.mubr.f32.mxu1 %v5959_v52  ;;  %v1289_v32 = vmul.f32 %v5085_v16, %v6237_v10  ;;  %v5091_v40 = vpop.eup %5090  ;;  %v6781_v52 = vld [vmem:[#allocation4_spill] sm:$0xff]  ;;  %v1348_v58 = vadd.f32 1.0, %v5089_v49 }
  0xd4   : > { %4350 = vmatprep.mubr.f32.mxu0 %v1293_v53  ;;  %4536 = vmatprep.subr.bf16.mxu0 %v6780_v39  ;;  %v5093_v43 = vpop.eup %5092  ;;  %v1349_v13 = vadd.f32 1.0, %v5091_v40 }
  0xd5   : > { %v5095_v10 = vpop.eup %5094  ;;  %5102 = vrcp.f32 %v1348_v58  ;;  %v1350_v30 = vadd.f32 1.0, %v5093_v43 }
  0xd6   : > { %4167 = vmatmul.mubr.f32.gmra.mrb[42].mxu1 %v5973_v1  ;;  %4351 = vmatmul.mubr.f32.gmra.mrb[22].mxu0 %v1294_v19  ;;  %v1298_v1 = vmul.f32 0.0, %v1289_v32  ;;  %v5097_v34 = vpop.eup %5096  ;;  %5104 = vrcp.f32 %v1349_v13 }
  0xd7   : > { %4538 = vmatpush3.bf16.msra.mxu0 %v6780_v39  ;;  %4169 = vmatprep.mubr.f32.mxu1 %v5979_v25  ;;  %v6782_v25 = vld [vmem:[#allocation5_spill] sm:$0xff]  ;;  %5106 = vrcp.f32 %v1350_v30  ;;  %v6414_v30 = vld [vmem:[%s6745_s6] ss:$0 sm:$0xff] }
  0xd8   : > { %4353 = vmatprep.mubr.f32.mxu0 %v1295_v28  ;;  %4540 = vmatprep.subr.bf16.mxu0 %v6781_v52 }
  0xda   : > { %4170 = vmatmul.mubr.f32.gmra.mrb[44].mxu1 %v6001_v26  ;;  %4354 = vmatmul.mubr.f32.gmra.mrb[24].mxu0 %v1296_v33  ;;  %v1351_v26 = vadd.f32 1.0, %v5095_v10  ;;  %v5099_v38 = vpop.eup %5098 }
  0xdb   : > { %4542 = vmatpush3.bf16.msra.mxu0 %v6781_v52  ;;  %4172 = vmatprep.mubr.f32.mxu1 %v6011_v55  ;;  %v1352_v55 = vadd.f32 1.0, %v5097_v34  ;;  %v5101_v63 = vpop.eup %5100  ;;  %v1353_v21 = vadd.f32 1.0, %v5099_v38 }
  0xdc   : > { %4356 = vmatprep.mubr.f32.mxu0 %v1297_v20  ;;  %4544 = vmatprep.subr.bf16.mxu0 %v6782_v25  ;;  %5108 = vrcp.f32 %v1351_v26  ;;  %v1354_v57 = vadd.f32 1.0, %v5101_v63 }
  0xdd   : > { %5110 = vrcp.f32 %v1352_v55 }
  0xde   : > { %4173 = vmatmul.mubr.f32.gmra.mrb[46].mxu1 %v6035_v47  ;;  %4357 = vmatmul.mubr.f32.gmra.mrb[26].mxu0 %v1298_v1  ;;  %v6784_v47 = vld [vmem:[#allocation7_spill] sm:$0xff]  ;;  %5112 = vrcp.f32 %v1353_v21 }
  0xdf   : > { %4546 = vmatpush3.bf16.msra.mxu0 %v6782_v25  ;;  %4175 = vmatprep.mubr.f32.mxu1 %v6042_v3  ;;  %v5103_v3 = vpop.eup %5102  ;;  %5114 = vrcp.f32 %v1354_v57 }
  0xe0   : > { %4548 = vmatprep.subr.bf16.mxu0 %v6783_v18  ;;  %4391 = vmatprep.mubr.f32.mxu0 %v1380_v5  ;;  %v5105_v22 = vpop.eup %5104 }
  0xe1   : > { %v5107_v59 = vpop.eup %5106 }
  0xe2   : > { %4176 = vmatmul.mubr.f32.gmra.mrb[48].mxu1 %v6051_v15  ;;  %v6786_v15 = vld [vmem:[#allocation8_spill] sm:$0xff]  ;;  %v1374_v36 = vmul.f32 %v5107_v59, %v6292_v14 }
  0xe3   : > { %4550 = vmatpush3.bf16.msra.mxu0 %v6783_v18  ;;  %4178 = vmatprep.mubr.f32.mxu1 %v6061_v35  ;;  %v1372_v35 = vmul.f32 %v5103_v3, %v6275_v7 }
  0xe4   : > { %4552 = vmatprep.subr.bf16.mxu0 %v6784_v47 }
  0xe5   : > { %v1381_v53 = vmul.f32 0.0, %v1372_v35 }
  0xe6   : > { %4179 = vmatmul.mubr.f32.gmra.mrb[50].mxu1 %v6075_v37  ;;  %v1373_v37 = vmul.f32 %v5105_v22, %v6280_v6  ;;  %v5109_v51 = vpop.eup %5108  ;;  %v1383_v6 = vmul.f32 0.0, %v1374_v36 }
  0xe7   : > { %4554 = vmatpush3.bf16.msra.mxu0 %v6784_v47  ;;  %4181 = vmatprep.mubr.f32.mxu1 %v6785_v17  ;;  %v5111_v11 = vpop.eup %5110  ;;  %v1375_v31 = vmul.f32 %v5109_v51, %v6296_v2 }
  0xe8   : > { %4556 = vmatprep.subr.bf16.mxu0 %v6786_v15  ;;  %v1382_v7 = vmul.f32 0.0, %v1373_v37  ;;  %v5113_v61 = vpop.eup %5112  ;;  %v1376_v19 = vmul.f32 %v5111_v11, %v6306_v60 }
  0xe9   : > { %v5115_v4 = vpop.eup %5114  ;;  %v1377_v14 = vmul.f32 %v5113_v61, %v6313_v29 }
  0xea   : > { %4182 = vmatmul.mubr.f32.gmra.mrb[52].mxu1 %v6787_v46  ;;  %v1378_v2 = vmul.f32 %v5115_v4, %v6322_v24 }
  0xeb   : > { %4558 = vmatpush3.bf16.msra.mxu0 %v6786_v15  ;;  %4184 = vmatprep.mubr.f32.mxu1 %v6788_v23 }
  0xec   : > { %4560 = vmatprep.subr.bf16.mxu0 %v6789_v42  ;;  %v1387_v60 = vmul.f32 0.0, %v1378_v2 }
  0xee   : > { %4185 = vmatmul.mubr.f32.gmra.mrb[54].mxu1 %v6102_v8  ;;  %v1384_v8 = vmul.f32 0.0, %v1375_v31 }
  0xef   : > { %4562 = vmatpush3.bf16.msra.mxu0 %v6789_v42  ;;  %4187 = vmatprep.mubr.f32.mxu1 %v6107_v41  ;;  %v1385_v41 = vmul.f32 0.0, %v1376_v19 }
  0xf2   : > { %4188 = vmatmul.mubr.f32.gmra.mrb[56].mxu1 %v6112_v50  ;;  %4392 = vmatmul.mubr.f32.vlgmr.msra.gmra.mrb[56].mxu0 %v1381_v53  ;;  %v1386_v50 = vmul.f32 0.0, %v1377_v14 }
  0xf3   : > { %4190 = vmatprep.mubr.f32.mxu1 %v6123_v56  ;;  %4394 = vmatprep.mubr.f32.mxu0 %v1382_v7 }
  0xf6   : > { %4191 = vmatmul.mubr.f32.gmra.mrb[58].mxu1 %v6129_v54  ;;  %4395 = vmatmul.mubr.f32.gmra.mrb[58].mxu0 %v1383_v6 }
  0xf7   : > { %4193 = vmatprep.mubr.f32.mxu1 %v6138_v44  ;;  %4397 = vmatprep.mubr.f32.mxu0 %v1384_v8 }
  0xfa   : > { %4194 = vmatmul.mubr.f32.gmra.mrb[60].mxu1 %v6142_v0  ;;  %4398 = vmatmul.mubr.f32.gmra.mrb[60].mxu0 %v1385_v41 }
  0xfb   : > { %4196 = vmatprep.mubr.f32.mxu1 %v6147_v27  ;;  %4400 = vmatprep.mubr.f32.mxu0 %v1386_v50 }
  0xfe   : > { %4197 = vmatmul.mubr.f32.gmra.mrb[62].mxu1 %v6157_v62  ;;  %4401 = vmatmul.mubr.f32.gmra.mrb[62].mxu0 %v1387_v60 }
 0x10c   : > { %v6375_v56 = vpop.f32.mrb[0].mxu1 }
 0x10d   : > { %v6377_v54 = vpop.f32.mrb[1].mxu1 }
 0x110   : > { %v6379_v29 = vpop.f32.mrb[2].mxu1 }
 0x111   : > { %v6381_v24 = vpop.f32.mrb[3].mxu1 }
 0x114   : > { %v6383_v44 = vpop.f32.mrb[4].mxu1 }
 0x115   : > { %v6385_v16 = vpop.f32.mrb[5].mxu1 }
 0x118   : > { %v6387_v0 = vpop.f32.mrb[6].mxu1 }
 0x119   : > { %v6389_v39 = vpop.f32.mrb[7].mxu1 }
 0x11c   : > { %v4001_v27 = vpop.f32.mrb[8].mxu1 }
 0x11d   : > { %v1545_v28 = vpop.f32.mrb[9].mxu1  ;;  %v2797_v34 = vadd.f32 %v4001_v27, %v6414_v30 }
 0x11e   : > { %v2796_v26 = vadd.f32 %v6414_v30, %v1545_v28 }
 0x120   : > { %v4004_v62 = vpop.f32.mrb[10].mxu1 }
 0x121   : > { %v1555_v12 = vpop.f32.mrb[11].mxu1  ;;  %v2799_v21 = vadd.f32 %v4004_v62, %v6414_v30 }
 0x122   : > { %v2798_v57 = vadd.f32 %v6414_v30, %v1555_v12 }
 0x125   : > { %v4007_v48 = vpop.f32.mrb[12].mxu1 }
 0x126   : > { %v1565_v45 = vpop.f32.mrb[13].mxu1  ;;  %v2801_v23 = vadd.f32 %v4007_v48, %v6414_v30 }
 0x127   : > { %v2800_v37 = vadd.f32 %v6414_v30, %v1565_v45 }
 0x129   : > { %v4010_v49 = vpop.f32.mrb[14].mxu1 }
 0x12a   : > { %v1575_v33 = vpop.f32.mrb[15].mxu1  ;;  %v2803_v19 = vadd.f32 %v4010_v49, %v6414_v30 }
 0x12b   : > { %v2802_v4 = vadd.f32 %v6414_v30, %v1575_v33 }
 0x12d   : > { %v4013_v32 = vpop.f32.mrb[16].mxu1 }
 0x12e   : > { %v1585_v40 = vpop.f32.mrb[17].mxu1  ;;  %v2866_v48 = vadd.f32 %v4013_v32, %v6414_v30 }
 0x12f   : > { %v2865_v45 = vadd.f32 %v6414_v30, %v1585_v40 }
 0x131   : > { %v6391_v52 = vpop.f32.mrb[18].mxu1 }
 0x132   : > { %v6393_v20 = vpop.f32.mrb[19].mxu1  ;;  %v2868_v32 = vadd.f32 %v6391_v52, %v6414_v30 }
 0x135   : > { %v6395_v9 = vpop.f32.mrb[20].mxu1 }
 0x136   : > { %v6397_v58 = vpop.f32.mrb[21].mxu1  ;;  %v2870_v52 = vadd.f32 %v6395_v9, %v6414_v30 }
 0x139   : > { %v6399_v43 = vpop.f32.mrb[22].mxu1 }
 0x13a   : > { %v6401_v1 = vpop.f32.mrb[23].mxu1 }
 0x13d   : > { %v6403_v13 = vpop.f32.mrb[24].mxu1 }
 0x13e   : > { %v6405_v10 = vpop.f32.mrb[25].mxu1 }
 0x141   : > { %v6407_v25 = vpop.f32.mrb[26].mxu1 }
 0x142   : > { %v6409_v5 = vpop.f32.mrb[27].mxu1 }
 0x145   : > { %v4245_v38 = vpop.f32.mrb[0].mxu0 }
 0x146   : > { %v4596_v18 = vadd.f32 %v4245_v38, %v2797_v34  ;;  %v2275_v55 = vpop.f32.mrb[1].mxu0 }
 0x147   : > { %v4598_v63 = vadd.f32 %v2796_v26, %v2275_v55 }
 0x148   : > { %3620 = vst [vmem:[%s6422_s29 + $0x48] sm:$0xff] %v4596_v18  ;;  %v2843_v47 = vmul.f32 %v4596_v18, %v4596_v18 }
 0x149   : > { %3619 = vst [vmem:[%s6422_s29 + $0x40] sm:$0xff] %v4598_v63  ;;  %v2829_v3 = vadd.f32 %v4598_v63, %v4596_v18  ;;  %v2842_v17 = vmul.f32 %v4598_v63, %v4598_v63  ;;  %v4248_v22 = vpop.f32.mrb[2].mxu0 }
 0x14a   : > { %v4600_v15 = vadd.f32 %v4248_v22, %v2799_v21  ;;  %v2285_v46 = vpop.f32.mrb[3].mxu0 }
 0x14b   : > { %v2850_v35 = vadd.f32 %v2843_v47, %v2842_v17  ;;  %v4602_v59 = vadd.f32 %v2798_v57, %v2285_v46  ;;  %v2867_v57 = vadd.f32 %v6414_v30, %v6393_v20  ;;  %v2869_v20 = vadd.f32 %v6414_v30, %v6397_v58 }
 0x14c   : > { %3622 = vst [vmem:[%s6422_s29 + $0x58] sm:$0xff] %v4600_v15  ;;  %v2845_v7 = vmul.f32 %v4600_v15, %v4600_v15  ;;  %v2871_v58 = vadd.f32 %v6414_v30, %v6401_v1 }
 0x14d   : > { %3621 = vst [vmem:[%s6422_s29 + $0x50] sm:$0xff] %v4602_v59  ;;  %v2830_v51 = vadd.f32 %v4602_v59, %v2829_v3  ;;  %v2844_v42 = vmul.f32 %v4602_v59, %v4602_v59  ;;  %v4251_v53 = vpop.f32.mrb[4].mxu0 }
 0x14e   : > { %v4604_v36 = vadd.f32 %v4251_v53, %v2801_v23  ;;  %v2295_v11 = vpop.f32.mrb[5].mxu0 }
 0x14f   : > { %v2851_v31 = vadd.f32 %v2850_v35, %v2844_v42  ;;  %v4606_v61 = vadd.f32 %v2800_v37, %v2295_v11  ;;  %v2831_v6 = vadd.f32 %v4600_v15, %v2830_v51  ;;  %v5144_v42 = vmov 0.0  }
 0x150   : > { %3624 = vst [vmem:[%s6422_s29 + $0x68] sm:$0xff] %v4604_v36  ;;  %v2847_v27 = vmul.f32 %v4604_v36, %v4604_v36  ;;  %550 = vst [vmem:[%s6457_s15] sm:$0x1] %v5144_v42 }
 0x151   : > { %3623 = vst [vmem:[%s6422_s29 + $0x60] sm:$0xff] %v4606_v61  ;;  %v2832_v8 = vadd.f32 %v4606_v61, %v2831_v6  ;;  %v2846_v14 = vmul.f32 %v4606_v61, %v4606_v61  ;;  %v2852_v41 = vadd.f32 %v2851_v31, %v2845_v7  ;;  %v4254_v2 = vpop.f32.mrb[6].mxu0  ;;  %551 = vst [vmem:[%s6463_s14] sm:$0x1] %v5144_v42 }
 0x152   : > { %v4608_v50 = vadd.f32 %v4254_v2, %v2803_v19  ;;  %v2305_v60 = vpop.f32.mrb[7].mxu0  ;;  %v2872_v61 = vadd.f32 %v6399_v43, %v6414_v30 }
 0x153   : > { %v2853_v28 = vadd.f32 %v2852_v41, %v2846_v14  ;;  %v4610_v62 = vadd.f32 %v2802_v4, %v2305_v60  ;;  %v2833_v12 = vadd.f32 %v4604_v36, %v2832_v8 }
 0x154   : > { %3626 = vst [vmem:[%s6422_s29 + $0x78] sm:$0xff] %v4608_v50  ;;  %v2849_v55 = vmul.f32 %v4608_v50, %v4608_v50 }
 0x155   : > { %3625 = vst [vmem:[%s6422_s29 + $0x70] sm:$0xff] %v4610_v62  ;;  %v2834_v49 = vadd.f32 %v4610_v62, %v2833_v12  ;;  %v2848_v33 = vmul.f32 %v4610_v62, %v4610_v62  ;;  %v2854_v34 = vadd.f32 %v2853_v28, %v2847_v27  ;;  %v4257_v26 = vpop.f32.mrb[8].mxu0  ;;  %v2935_v28 = vadd.f32 %v6403_v13, %v6414_v30 }
 0x156   : > { %v4612_v38 = vadd.f32 %v4257_v26, %v2866_v48  ;;  %v2315_v18 = vpop.f32.mrb[9].mxu0  ;;  %v2934_v62 = vadd.f32 %v6414_v30, %v6405_v10  ;;  %v2937_v13 = vadd.f32 %v6407_v25, %v6414_v30 }
 0x157   : > { %v6440_v63 = vadd.f32 %v4608_v50, %v2834_v49  ;;  %v2855_v21 = vadd.f32 %v2854_v34, %v2848_v33  ;;  %v4614_v47 = vadd.f32 %v2865_v45, %v2315_v18 }
 0x158   : > { %3628 = vst [vmem:[%s6422_s29 + $0x88] sm:$0xff] %v4612_v38  ;;  %v2912_v40 = vmul.f32 %v4612_v38, %v4612_v38 }
 0x159   : > { %v6447_v3 = vadd.f32 %v2855_v21, %v2849_v55  ;;  %3627 = vst [vmem:[%s6422_s29 + $0x80] sm:$0xff] %v4614_v47  ;;  %v2898_v17 = vadd.f32 %v4614_v47, %v4612_v38  ;;  %v2911_v22 = vmul.f32 %v4614_v47, %v4614_v47  ;;  %v4260_v15 = vpop.f32.mrb[10].mxu0  ;;  %v2936_v55 = vadd.f32 %v6414_v30, %v6409_v5 }
 0x15a   : > { %v4616_v46 = vadd.f32 %v4260_v15, %v2868_v32  ;;  %v2325_v35 = vpop.f32.mrb[11].mxu0 }
 0x15b   : > { %v2919_v59 = vadd.f32 %v2912_v40, %v2911_v22  ;;  %v4618_v23 = vadd.f32 %v2867_v57, %v2325_v35 }
 0x15c   : > { %3630 = vst [vmem:[%s6422_s29 + $0x98] sm:$0xff] %v4616_v46  ;;  %v2914_v11 = vmul.f32 %v4616_v46, %v4616_v46 }
 0x15d   : > { %3629 = vst [vmem:[%s6422_s29 + $0x90] sm:$0xff] %v4618_v23  ;;  %v2899_v9 = vadd.f32 %v4618_v23, %v2898_v17  ;;  %v2913_v37 = vmul.f32 %v4618_v23, %v4618_v23  ;;  %v4263_v51 = vpop.f32.mrb[12].mxu0 }
 0x15e   : > { %v4620_v53 = vadd.f32 %v4263_v51, %v2870_v52  ;;  %v2335_v36 = vpop.f32.mrb[13].mxu0 }
 0x15f   : > { %v2920_v7 = vadd.f32 %v2919_v59, %v2913_v37  ;;  %v4622_v31 = vadd.f32 %v2869_v20, %v2335_v36  ;;  %v2900_v6 = vadd.f32 %v4616_v46, %v2899_v9 }
 0x160   : > { %3632 = vst [vmem:[%s6422_s29 + $0xa8] sm:$0xff] %v4620_v53  ;;  %v2916_v50 = vmul.f32 %v4620_v53, %v4620_v53 }
 0x161   : > { %3631 = vst [vmem:[%s6422_s29 + $0xa0] sm:$0xff] %v4622_v31  ;;  %v2915_v19 = vmul.f32 %v4622_v31, %v4622_v31  ;;  %v2921_v4 = vadd.f32 %v2920_v7, %v2914_v11  ;;  %v4266_v8 = vpop.f32.mrb[14].mxu0  ;;  %v2901_v14 = vadd.f32 %v4622_v31, %v2900_v6 }
 0x162   : > { %v4624_v41 = vadd.f32 %v4266_v8, %v2872_v61  ;;  %v2345_v2 = vpop.f32.mrb[15].mxu0 }
 0x163   : > { %v2922_v60 = vadd.f32 %v2921_v4, %v2915_v19  ;;  %v4626_v27 = vadd.f32 %v2871_v58, %v2345_v2  ;;  %v2902_v43 = vadd.f32 %v4620_v53, %v2901_v14  ;;  %v2857_v2 = vrot.slane %v6447_v3, 4 }
 0x164   : > { %3634 = vst [vmem:[%s6422_s29 + $0xb8] sm:$0xff] %v4624_v41  ;;  %v2918_v34 = vmul.f32 %v4624_v41, %v4624_v41 }
 0x165   : > { %3633 = vst [vmem:[%s6422_s29 + $0xb0] sm:$0xff] %v4626_v27  ;;  %v2917_v1 = vmul.f32 %v4626_v27, %v4626_v27  ;;  %v2923_v12 = vadd.f32 %v2922_v60, %v2916_v50  ;;  %v4269_v48 = vpop.f32.mrb[16].mxu0  ;;  %v2903_v45 = vadd.f32 %v4626_v27, %v2902_v43 }
 0x166   : > { %v4628_v49 = vadd.f32 %v4269_v48, %v2935_v28  ;;  %v2355_v33 = vpop.f32.mrb[17].mxu0 }
 0x167   : > { %v2924_v26 = vadd.f32 %v2923_v12, %v2917_v1  ;;  %v4630_v38 = vadd.f32 %v2934_v62, %v2355_v33  ;;  %v6484_v18 = vadd.f32 %v4624_v41, %v2903_v45  ;;  %v2836_v41 = vrot.slane %v6440_v63, 4 }
 0x168   : > { %3636 = vst [vmem:[%s6422_s29 + $0xc8] sm:$0xff] %v4628_v49  ;;  %v2981_v10 = vmul.f32 %v4628_v49, %v4628_v49  ;;  %v6527_v12 = vadd.f32 %v6375_v56, %v6414_v30  ;;  %v6533_v33 = vadd.f32 %v6414_v30, %v6377_v54  ;;  %v6543_v56 = vadd.f32 %v6379_v29, %v6414_v30 }
 0x169   : > { %v2925_v21 = vadd.f32 %v2924_v26, %v2918_v34  ;;  %3635 = vst [vmem:[%s6422_s29 + $0xc0] sm:$0xff] %v4630_v38  ;;  %v2967_v47 = vadd.f32 %v4630_v38, %v4628_v49  ;;  %v2980_v32 = vmul.f32 %v4630_v38, %v4630_v38  ;;  %v4272_v40 = vpop.f32.mrb[18].mxu0  ;;  %v2905_v43 = vrot.slane %v6484_v18, 4 }
 0x16a   : > { %v4632_v57 = vadd.f32 %v4272_v40, %v2937_v13  ;;  %v2365_v17 = vpop.f32.mrb[19].mxu0  ;;  %v2837_v34 = vadd.f32 %v2836_v41, %v6440_v63  ;;  %v2858_v26 = vadd.f32 %v2857_v2, %v6447_v3  ;;  %v6549_v63 = vadd.f32 %v6414_v30, %v6381_v24 }
 0x16b   : > { %v2988_v22 = vadd.f32 %v2981_v10, %v2980_v32  ;;  %v4634_v15 = vadd.f32 %v2936_v55, %v2365_v17  ;;  %v2926_v62 = vrot.slane %v2925_v21, 4  ;;  %v2906_v3 = vadd.f32 %v2905_v43, %v6484_v18 }
 0x16c   : > { %3638 = vst [vmem:[%s6422_s29 + $0xd8] sm:$0xff] %v4632_v57  ;;  %v2983_v23 = vmul.f32 %v4632_v57, %v4632_v57 }
 0x16d   : > { %3637 = vst [vmem:[%s6422_s29 + $0xd0] sm:$0xff] %v4634_v15  ;;  %v2968_v46 = vadd.f32 %v4634_v15, %v2967_v47  ;;  %v2982_v25 = vmul.f32 %v4634_v15, %v4634_v15  ;;  %v4275_v35 = vpop.f32.mrb[28].mxu0  ;;  %v2927_v32 = vadd.f32 %v2926_v62, %v2925_v21 }
 0x16e   : > { %v2375_v59 = vpop.f32.mrb[29].mxu0 }
 0x16f   : > { %v2969_v52 = vadd.f32 %v4632_v57, %v2968_v46  ;;  %v2989_v20 = vadd.f32 %v2988_v22, %v2982_v25  ;;  %v6556_v25 = vadd.f32 %v6383_v44, %v6414_v30  ;;  %v2907_v44 = vrot.slane %v2906_v3, 2 }
 0x171   : > { %v2990_v9 = vadd.f32 %v2989_v20, %v2983_v23  ;;  %v4278_v5 = vpop.f32.mrb[30].mxu0 }
 0x172   : > { %v2385_v37 = vpop.f32.mrb[31].mxu0 }
 0x175   : > { %v6492_v51 = vpop.f32.mrb[32].mxu0 }
 0x176   : > { %v6494_v42 = vpop.f32.mrb[33].mxu0 }
 0x179   : > { %v6496_v53 = vpop.f32.mrb[34].mxu0 }
 0x17a   : > { %v6498_v36 = vpop.f32.mrb[35].mxu0 }
 0x17d   : > { %v6500_v11 = vpop.f32.mrb[36].mxu0 }
 0x17e   : > { %v6502_v7 = vpop.f32.mrb[37].mxu0 }
 0x181   : > { %v6504_v31 = vpop.f32.mrb[38].mxu0 }
 0x182   : > { %v6506_v61 = vpop.f32.mrb[39].mxu0 }
 0x185   : > { %v6508_v6 = vpop.f32.mrb[40].mxu0 }
 0x186   : > { %v6510_v58 = vpop.f32.mrb[41].mxu0 }
 0x189   : > { %v6512_v19 = vpop.f32.mrb[42].mxu0 }
 0x18a   : > { %v6514_v4 = vpop.f32.mrb[43].mxu0 }
 0x18d   : > { %v4147_v8 = vpop.f32.mrb[28].mxu1  ;;  %v6516_v14 = vpop.f32.mrb[44].mxu0 }
 0x18e   : > { %v4635_v50 = vadd.f32 %v4147_v8, %v6414_v30  ;;  %v1990_v60 = vpop.f32.mrb[29].mxu1  ;;  %v6521_v27 = vpop.f32.mrb[45].mxu0 }
 0x18f   : > { %v4637_v28 = vadd.f32 %v6414_v30, %v1990_v60 }
 0x190   : > { %v4636_v1 = vadd.f32 %v4635_v50, %v4275_v35  ;;  %v2838_v35 = vrot.slane %v2837_v34, 2 }
 0x191   : > { %v4638_v48 = vadd.f32 %v4637_v28, %v2375_v59  ;;  %v4150_v45 = vpop.f32.mrb[30].mxu1  ;;  %v6529_v49 = vpop.f32.mrb[46].mxu0  ;;  %v2859_v59 = vrot.slane %v2858_v26, 2 }
 0x192   : > { %3640 = vst [vmem:[%s6422_s29 + $0xe8] sm:$0xff] %v4636_v1  ;;  %v4639_v38 = vadd.f32 %v4150_v45, %v6414_v30  ;;  %v2000_v13 = vpop.f32.mrb[31].mxu1  ;;  %v6539_v10 = vpop.f32.mrb[47].mxu0  ;;  %v2985_v57 = vmul.f32 %v4636_v1, %v4636_v1  ;;  %v2839_v62 = vadd.f32 %v2838_v35, %v2837_v34  ;;  %v6587_v35 = vadd.f32 %v6414_v30, %v6389_v39 }
 0x193   : > { %3639 = vst [vmem:[%s6422_s29 + $0xe0] sm:$0xff] %v4638_v48  ;;  %v2970_v55 = vadd.f32 %v4638_v48, %v2969_v52  ;;  %v2984_v47 = vmul.f32 %v4638_v48, %v4638_v48  ;;  %v4641_v54 = vadd.f32 %v6414_v30, %v2000_v13 }
 0x194   : > { %v4640_v40 = vadd.f32 %v4639_v38, %v4278_v5  ;;  %v6566_v5 = vadd.f32 %v6414_v30, %v6385_v16 }
 0x195   : > { %v2991_v17 = vadd.f32 %v2990_v9, %v2984_v47  ;;  %v4642_v22 = vadd.f32 %v4641_v54, %v2385_v37  ;;  %v2971_v29 = vadd.f32 %v4636_v1, %v2970_v55  ;;  %v4153_v15 = vpop.f32.mrb[32].mxu1  ;;  %v6552_v46 = vpop.f32.mrb[48].mxu0  ;;  %v2928_v37 = vrot.slane %v2927_v32, 2 }
 0x196   : > { %3642 = vst [vmem:[%s6422_s29 + $0xf8] sm:$0xff] %v4640_v40  ;;  %v4643_v24 = vadd.f32 %v4153_v15, %v6414_v30  ;;  %v2010_v18 = vpop.f32.mrb[33].mxu1  ;;  %v6560_v23 = vpop.f32.mrb[49].mxu0  ;;  %v2987_v41 = vmul.f32 %v4640_v40, %v4640_v40  ;;  %v2860_v1 = vadd.f32 %v2859_v59, %v2858_v26  ;;  %v2908_v54 = vadd.f32 %v2907_v44, %v2906_v3 }
 0x197   : > { %3641 = vst [vmem:[%s6422_s29 + $0xf0] sm:$0xff] %v4642_v22  ;;  %v2972_v21 = vadd.f32 %v4642_v22, %v2971_v29  ;;  %v2986_v52 = vmul.f32 %v4642_v22, %v4642_v22  ;;  %v2992_v20 = vadd.f32 %v2991_v17, %v2985_v57  ;;  %v4645_v9 = vadd.f32 %v6414_v30, %v2010_v18 }
 0x198   : > { %v4644_v8 = vadd.f32 %v4643_v24, %v6492_v51  ;;  %v2840_v59 = vrot.slane %v2839_v62, 1 }
 0x199   : > { %v2973_v2 = vadd.f32 %v4640_v40, %v2972_v21  ;;  %v2993_v50 = vadd.f32 %v2992_v20, %v2986_v52  ;;  %v4646_v60 = vadd.f32 %v4645_v9, %v6494_v42  ;;  %v4156_v28 = vpop.f32.mrb[34].mxu1  ;;  %v6570_v43 = vpop.f32.mrb[50].mxu0  ;;  %v6579_v42 = vadd.f32 %v6387_v0, %v6414_v30 }
 0x19a   : > { %3644 = vst [vmem:[%s6422_s29 + $0x108] sm:$0xff] %v4644_v8  ;;  %v3050_v48 = vmul.f32 %v4644_v8, %v4644_v8  ;;  %v4647_v16 = vadd.f32 %v4156_v28, %v6414_v30  ;;  %v2020_v45 = vpop.f32.mrb[35].mxu1  ;;  %v6574_v38 = vpop.f32.mrb[51].mxu0  ;;  %v2929_v40 = vadd.f32 %v2928_v37, %v2927_v32  ;;  %v2861_v32 = vrot.slane %v2860_v1, 1 }
 0x19b   : > { %v2974_v13 = vrot.slane %v2973_v2, 4  ;;  %v2994_v51 = vadd.f32 %v2993_v50, %v2987_v41  ;;  %3643 = vst [vmem:[%s6422_s29 + $0x100] sm:$0xff] %v4646_v60  ;;  %v3036_v55 = vadd.f32 %v4646_v60, %v4644_v8  ;;  %v3049_v47 = vmul.f32 %v4646_v60, %v4646_v60 }
 0x19c   : > { %v4648_v34 = vadd.f32 %v4647_v16, %v6496_v53  ;;  %v4649_v26 = vadd.f32 %v6414_v30, %v2020_v45  ;;  %v2909_v20 = vrot.slane %v2908_v54, 1  ;;  %v2930_v37 = vrot.slane %v2929_v40, 1 }
 0x19d   : > { %v2975_v57 = vadd.f32 %v2974_v13, %v2973_v2  ;;  %v2995_v17 = vrot.slane %v2994_v51, 4  ;;  %v3057_v22 = vadd.f32 %v3050_v48, %v3049_v47  ;;  %v4159_v29 = vpop.f32.mrb[36].mxu1  ;;  %v6583_v15 = vpop.f32.mrb[52].mxu0  ;;  %v6608_v47 = vadd.f32 %v2861_v32, %v2860_v1 }
 0x19e   : > { %3646 = vst [vmem:[%s6422_s29 + $0x118] sm:$0xff] %v4648_v34  ;;  %v4650_v0 = vadd.f32 %v4649_v26, %v6498_v36  ;;  %v4651_v53 = vadd.f32 %v4159_v29, %v6414_v30  ;;  %v2030_v3 = vpop.f32.mrb[37].mxu1  ;;  %v6592_v24 = vpop.f32.mrb[53].mxu0  ;;  %v3052_v60 = vmul.f32 %v4648_v34, %v4648_v34 }
 0x19f   : > { %v2976_v18 = vrot.slane %v2975_v57, 2  ;;  %v2996_v21 = vadd.f32 %v2995_v17, %v2994_v51  ;;  %v4653_v52 = vadd.f32 %v6414_v30, %v2030_v3  ;;  %v6604_v51 = vadd.f32 %v2840_v59, %v2839_v62 }
 0x1a0   : > { %3645 = vst [vmem:[%s6422_s29 + $0x110] sm:$0xff] %v4650_v0  ;;  %v3037_v9 = vadd.f32 %v4650_v0, %v3036_v55  ;;  %v3051_v39 = vmul.f32 %v4650_v0, %v4650_v0  ;;  %v4652_v44 = vadd.f32 %v4651_v53, %v6500_v11  ;;  %v6611_v17 = vadd.f32 %v2909_v20, %v2908_v54 }
 0x1a1   : > { %v2977_v36 = vadd.f32 %v2976_v18, %v2975_v57  ;;  %v2997_v8 = vrot.slane %v2996_v21, 2  ;;  %v4654_v41 = vadd.f32 %v4653_v52, %v6502_v7  ;;  %v4162_v2 = vpop.f32.mrb[38].mxu1  ;;  %v6598_v50 = vpop.f32.mrb[54].mxu0 }
 0x1a2   : > { %v3058_v28 = vadd.f32 %v3057_v22, %v3051_v39  ;;  %3648 = vst [vmem:[%s6422_s29 + $0x128] sm:$0xff] %v4652_v44  ;;  %v3038_v48 = vadd.f32 %v4648_v34, %v3037_v9  ;;  %v4655_v16 = vadd.f32 %v4162_v2, %v6414_v30  ;;  %v2040_v45 = vpop.f32.mrb[39].mxu1  ;;  %v6602_v13 = vpop.f32.mrb[55].mxu0  ;;  %v6613_v22 = vadd.f32 %v2930_v37, %v2929_v40 }
 0x1a3   : > { %v2978_v11 = vrot.slane %v2977_v36, 1  ;;  %3647 = vst [vmem:[%s6422_s29 + $0x120] sm:$0xff] %v4654_v41  ;;  %v3053_v55 = vmul.f32 %v4654_v41, %v4654_v41  ;;  %v4657_v7 = vadd.f32 %v6414_v30, %v2040_v45  ;;  %v2998_v29 = vadd.f32 %v2997_v8, %v2996_v21 }
 0x1a4   : > { %v3039_v26 = vadd.f32 %v4654_v41, %v3038_v48  ;;  %v3059_v57 = vadd.f32 %v3058_v28, %v3052_v60  ;;  %v4656_v34 = vadd.f32 %v4655_v16, %v6504_v31  ;;  %v3054_v53 = vmul.f32 %v4652_v44, %v4652_v44 }
 0x1a5   : > { %v4658_v62 = vadd.f32 %v4657_v7, %v6506_v61  ;;  %v4165_v59 = vpop.f32.mrb[40].mxu1  ;;  %v4349_v0 = vpop.f32.mrb[20].mxu0  ;;  %v6618_v9 = vadd.f32 %v2978_v11, %v2977_v36 }
 0x1a6   : > { %v3060_v3 = vadd.f32 %v3059_v57, %v3053_v55  ;;  %3650 = vst [vmem:[%s6422_s29 + $0x138] sm:$0xff] %v4656_v34  ;;  %v3040_v1 = vadd.f32 %v4652_v44, %v3039_v26  ;;  %v4659_v32 = vadd.f32 %v4165_v59, %v6414_v30  ;;  %v2050_v18 = vpop.f32.mrb[41].mxu1  ;;  %v2580_v52 = vpop.f32.mrb[21].mxu0  ;;  %v2739_v54 = vadd.f32 %v4349_v0, %v6527_v12 }
 0x1a7   : > { %3649 = vst [vmem:[%s6422_s29 + $0x130] sm:$0xff] %v4658_v62  ;;  %v3055_v31 = vmul.f32 %v4658_v62, %v4658_v62  ;;  %v4661_v61 = vadd.f32 %v6414_v30, %v2050_v18  ;;  %v2738_v39 = vadd.f32 %v6533_v33, %v2580_v52  ;;  %v2999_v44 = vrot.slane %v2998_v29, 1 }
 0x1a8   : > { %v3041_v40 = vadd.f32 %v4658_v62, %v3040_v1  ;;  %v3061_v21 = vadd.f32 %v3060_v3, %v3054_v53  ;;  %v4660_v20 = vadd.f32 %v4659_v32, %v6508_v6  ;;  %v3056_v37 = vmul.f32 %v4656_v34, %v4656_v34  ;;  %2755 = vst [vmem:[%s6422_s29 + $0x8] sm:$0xff] %v2739_v54 }
 0x1a9   : > { %v2776_v36 = vmul.f32 %v2739_v54, %v2739_v54  ;;  %v4662_v8 = vadd.f32 %v4661_v61, %v6510_v58  ;;  %v4168_v41 = vpop.f32.mrb[42].mxu1  ;;  %v4352_v2 = vpop.f32.mrb[22].mxu0  ;;  %2754 = vst [vmem:[%s6422_s29] sm:$0xff] %v2738_v39  ;;  %v2762_v48 = vadd.f32 %v2739_v54, %v2738_v39  ;;  %v2775_v11 = vmul.f32 %v2738_v39, %v2738_v39 }
 0x1aa   : > { %v3042_v60 = vadd.f32 %v4656_v34, %v3041_v40  ;;  %v3062_v12 = vadd.f32 %v3061_v21, %v3055_v31  ;;  %3652 = vst [vmem:[%s6422_s29 + $0x148] sm:$0xff] %v4660_v20  ;;  %v3119_v28 = vmul.f32 %v4660_v20, %v4660_v20  ;;  %v2060_v16 = vpop.f32.mrb[43].mxu1  ;;  %v2590_v45 = vpop.f32.mrb[23].mxu0  ;;  %v4663_v55 = vadd.f32 %v4168_v41, %v6414_v30 }
 0x1ab   : > { %3651 = vst [vmem:[%s6422_s29 + $0x140] sm:$0xff] %v4662_v8  ;;  %v3105_v6 = vadd.f32 %v4662_v8, %v4660_v20  ;;  %v3118_v33 = vmul.f32 %v4662_v8, %v4662_v8  ;;  %v2741_v58 = vadd.f32 %v4352_v2, %v6543_v56  ;;  %v4665_v57 = vadd.f32 %v6414_v30, %v2060_v16 }
 0x1ac   : > { %v3043_v7 = vrot.slane %v3042_v60, 4  ;;  %v3063_v26 = vadd.f32 %v3062_v12, %v3056_v37  ;;  %v2783_v62 = vadd.f32 %v2776_v36, %v2775_v11  ;;  %v4664_v59 = vadd.f32 %v4663_v55, %v6512_v19 }
 0x1ad   : > { %v3126_v34 = vadd.f32 %v3119_v28, %v3118_v33  ;;  %v2740_v0 = vadd.f32 %v6549_v63, %v2590_v45  ;;  %v4171_v53 = vpop.f32.mrb[44].mxu1  ;;  %v4355_v3 = vpop.f32.mrb[24].mxu0  ;;  %v6635_v1 = vadd.f32 %v2999_v44, %v2998_v29  ;;  %2757 = vst [vmem:[%s6422_s29 + $0x18] sm:$0xff] %v2741_v58  ;;  %v4666_v52 = vadd.f32 %v4665_v57, %v6514_v4 }
 0x1ae   : > { %v3044_v32 = vadd.f32 %v3043_v7, %v3042_v60  ;;  %v3064_v18 = vrot.slane %v3063_v26, 4  ;;  %v2070_v56 = vpop.f32.mrb[45].mxu1  ;;  %v2600_v31 = vpop.f32.mrb[25].mxu0  ;;  %3654 = vst [vmem:[%s6422_s29 + $0x158] sm:$0xff] %v4664_v59  ;;  %v3121_v54 = vmul.f32 %v4664_v59, %v4664_v59  ;;  %v4667_v19 = vadd.f32 %v4171_v53, %v6414_v30 }
 0x1af   : > { %2756 = vst [vmem:[%s6422_s29 + $0x10] sm:$0xff] %v2740_v0  ;;  %v2763_v61 = vadd.f32 %v2762_v48, %v2740_v0  ;;  %v2777_v40 = vmul.f32 %v2740_v0, %v2740_v0  ;;  %3653 = vst [vmem:[%s6422_s29 + $0x150] sm:$0xff] %v4666_v52  ;;  %v3106_v29 = vadd.f32 %v4666_v52, %v3105_v6 }
 0x1b0   : > { %v3045_v63 = vrot.slane %v3044_v32, 2  ;;  %v3065_v21 = vadd.f32 %v3064_v18, %v3063_v26  ;;  %v3120_v20 = vmul.f32 %v4666_v52, %v4666_v52  ;;  %v4668_v44 = vadd.f32 %v4667_v19, %v6516_v14 }
 0x1b1   : > { %v2784_v39 = vadd.f32 %v2783_v62, %v2777_v40  ;;  %v2743_v4 = vadd.f32 %v4355_v3, %v6556_v25  ;;  %v4669_v37 = vadd.f32 %v6414_v30, %v2070_v56  ;;  %v4174_v36 = vpop.f32.mrb[46].mxu1  ;;  %v4358_v8 = vpop.f32.mrb[26].mxu0  ;;  %v3107_v12 = vadd.f32 %v4664_v59, %v3106_v29 }
 0x1b2   : > { %v3046_v41 = vadd.f32 %v3045_v63, %v3044_v32  ;;  %v3066_v2 = vrot.slane %v3065_v21, 2  ;;  %v3127_v60 = vadd.f32 %v3126_v34, %v3120_v20  ;;  %v2080_v28 = vpop.f32.mrb[47].mxu1  ;;  %v2610_v48 = vpop.f32.mrb[27].mxu0  ;;  %v2778_v16 = vmul.f32 %v2741_v58, %v2741_v58  ;;  %3656 = vst [vmem:[%s6422_s29 + $0x168] sm:$0xff] %v4668_v44 }
 0x1b3   : > { %v3123_v45 = vmul.f32 %v4668_v44, %v4668_v44  ;;  %2759 = vst [vmem:[%s6422_s29 + $0x28] sm:$0xff] %v2743_v4  ;;  %v4670_v14 = vadd.f32 %v4669_v37, %v6521_v27  ;;  %v2742_v25 = vadd.f32 %v6566_v5, %v2600_v31  ;;  %v2764_v55 = vadd.f32 %v2763_v61, %v2741_v58 }
 0x1b4   : > { %v3047_v6 = vrot.slane %v3046_v41, 1  ;;  %v6650_v33 = vadd.f32 %v3066_v2, %v3065_v21  ;;  %v3128_v11 = vadd.f32 %v3127_v60, %v3121_v54  ;;  %v2785_v34 = vadd.f32 %v2784_v39, %v2778_v16 }
 0x1b5   : > { %3655 = vst [vmem:[%s6422_s29 + $0x160] sm:$0xff] %v4670_v14  ;;  %v3108_v7 = vadd.f32 %v4670_v14, %v3107_v12  ;;  %v3122_v26 = vmul.f32 %v4670_v14, %v4670_v14  ;;  %2758 = vst [vmem:[%s6422_s29 + $0x20] sm:$0xff] %v2742_v25  ;;  %v2779_v57 = vmul.f32 %v2742_v25, %v2742_v25  ;;  %v4177_v62 = vpop.f32.mrb[48].mxu1 }
 0x1b6   : > { %v6654_v59 = vadd.f32 %v3047_v6, %v3046_v41  ;;  %v2780_v0 = vmul.f32 %v2743_v4, %v2743_v4  ;;  %v2765_v53 = vadd.f32 %v2764_v55, %v2742_v25  ;;  %v4671_v27 = vadd.f32 %v4174_v36, %v6414_v30  ;;  %v2090_v5 = vpop.f32.mrb[49].mxu1 }
 0x1b7   : > { %v3129_v3 = vadd.f32 %v3128_v11, %v3122_v26  ;;  %v2786_v32 = vadd.f32 %v2785_v34, %v2779_v57  ;;  %v2745_v58 = vadd.f32 %v4358_v8, %v6579_v42  ;;  %v4673_v18 = vadd.f32 %v6414_v30, %v2080_v28 }
 0x1b8   : > { %v3068_v52 = vrot.slane %v6650_v33, 1  ;;  %v4672_v56 = vadd.f32 %v4671_v27, %v6529_v49  ;;  %v3109_v31 = vadd.f32 %v4668_v44, %v3108_v7  ;;  %v2744_v54 = vadd.f32 %v6587_v35, %v2610_v48 }
 0x1b9   : > { %2761 = vst [vmem:[%s6422_s29 + $0x38] sm:$0xff] %v2745_v58  ;;  %v2782_v61 = vmul.f32 %v2745_v58, %v2745_v58  ;;  %v4674_v40 = vadd.f32 %v4673_v18, %v6539_v10  ;;  %v3130_v19 = vadd.f32 %v3129_v3, %v3123_v45  ;;  %v2766_v63 = vadd.f32 %v2765_v53, %v2743_v4  ;;  %v4180_v21 = vpop.f32.mrb[50].mxu1 }
 0x1ba   : > { %3658 = vst [vmem:[%s6422_s29 + $0x178] sm:$0xff] %v4672_v56  ;;  %v3125_v29 = vmul.f32 %v4672_v56, %v4672_v56  ;;  %2760 = vst [vmem:[%s6422_s29 + $0x30] sm:$0xff] %v2744_v54  ;;  %v2781_v42 = vmul.f32 %v2744_v54, %v2744_v54  ;;  %v2787_v20 = vadd.f32 %v2786_v32, %v2780_v0  ;;  %v2100_v37 = vpop.f32.mrb[51].mxu1 }
 0x1bb   : > { %v4675_v39 = vadd.f32 %v4177_v62, %v6414_v30  ;;  %3657 = vst [vmem:[%s6422_s29 + $0x170] sm:$0xff] %v4674_v40  ;;  %v3110_v49 = vadd.f32 %v4674_v40, %v3109_v31  ;;  %v3124_v44 = vmul.f32 %v4674_v40, %v4674_v40  ;;  %v2767_v35 = vadd.f32 %v2766_v63, %v2744_v54 }
 0x1bc   : > { %v4677_v36 = vadd.f32 %v6414_v30, %v2090_v5  ;;  %v2788_v8 = vadd.f32 %v2787_v20, %v2781_v42  ;;  %v4679_v4 = vadd.f32 %v4180_v21, %v6414_v30  ;;  %v4681_v41 = vadd.f32 %v6414_v30, %v2100_v37 }
 0x1bd   : > { %v4676_v10 = vadd.f32 %v4675_v39, %v6552_v46  ;;  %v3111_v2 = vadd.f32 %v4672_v56, %v3110_v49  ;;  %v3131_v60 = vadd.f32 %v3130_v19, %v3124_v44  ;;  %v2768_v12 = vadd.f32 %v2767_v35, %v2745_v58  ;;  %v4183_v48 = vpop.f32.mrb[52].mxu1 }
 0x1be   : > { %v4678_v28 = vadd.f32 %v4677_v36, %v6560_v23  ;;  %v2789_v16 = vadd.f32 %v2788_v8, %v2782_v61  ;;  %v4680_v14 = vadd.f32 %v4679_v4, %v6570_v43  ;;  %v4682_v46 = vadd.f32 %v4681_v41, %v6574_v38  ;;  %v2110_v25 = vpop.f32.mrb[53].mxu1 }
 0x1bf   : > { %3660 = vst [vmem:[%s6422_s29 + $0x188] sm:$0xff] %v4676_v10  ;;  %v3188_v45 = vmul.f32 %v4676_v10, %v4676_v10  ;;  %v3112_v6 = vrot.slane %v3111_v2, 4  ;;  %v3132_v11 = vadd.f32 %v3131_v60, %v3125_v29  ;;  %v2769_v55 = vrot.slane %v2768_v12, 4 }
 0x1c0   : > { %3659 = vst [vmem:[%s6422_s29 + $0x180] sm:$0xff] %v4678_v28  ;;  %v3174_v7 = vadd.f32 %v4678_v28, %v4676_v10  ;;  %v2790_v26 = vrot.slane %v2789_v16, 4  ;;  %v3187_v57 = vmul.f32 %v4678_v28, %v4678_v28  ;;  %3662 = vst [vmem:[%s6422_s29 + $0x198] sm:$0xff] %v4680_v14  ;;  %v3190_v34 = vmul.f32 %v4680_v14, %v4680_v14 }
 0x1c1   : > { %3661 = vst [vmem:[%s6422_s29 + $0x190] sm:$0xff] %v4682_v46  ;;  %v3189_v23 = vmul.f32 %v4682_v46, %v4682_v46  ;;  %v3113_v62 = vadd.f32 %v3112_v6, %v3111_v2  ;;  %v3133_v0 = vrot.slane %v3132_v11, 4  ;;  %v2770_v53 = vadd.f32 %v2769_v55, %v2768_v12  ;;  %v4186_v5 = vpop.f32.mrb[54].mxu1 }
 0x1c2   : > { %v3175_v27 = vadd.f32 %v4682_v46, %v3174_v7  ;;  %v2791_v43 = vadd.f32 %v2790_v26, %v2789_v16  ;;  %v3195_v3 = vadd.f32 %v3188_v45, %v3187_v57  ;;  %v4683_v38 = vadd.f32 %v4183_v48, %v6414_v30  ;;  %v2120_v58 = vpop.f32.mrb[55].mxu1 }
 0x1c3   : > { %v4685_v32 = vadd.f32 %v6414_v30, %v2110_v25  ;;  %v3114_v18 = vrot.slane %v3113_v62, 2  ;;  %v3134_v56 = vadd.f32 %v3133_v0, %v3132_v11  ;;  %v2771_v31 = vrot.slane %v2770_v53, 2 }
 0x1c4   : > { %v3176_v54 = vadd.f32 %v4680_v14, %v3175_v27  ;;  %v2792_v61 = vrot.slane %v2791_v43, 2  ;;  %v3196_v40 = vadd.f32 %v3195_v3, %v3189_v23  ;;  %v4684_v19 = vadd.f32 %v4683_v38, %v6583_v15 }
 0x1c5   : > { %v4686_v63 = vadd.f32 %v4685_v32, %v6592_v24  ;;  %v3115_v21 = vadd.f32 %v3114_v18, %v3113_v62  ;;  %v3135_v29 = vrot.slane %v3134_v56, 2  ;;  %v2772_v42 = vadd.f32 %v2771_v31, %v2770_v53  ;;  %v4189_v39 = vpop.f32.mrb[56].mxu1  ;;  %v4393_v37 = vpop.f32.mrb[56].mxu0 }
 0x1c6   : > { %v4687_v20 = vadd.f32 %v4186_v5, %v6414_v30  ;;  %v6687_v49 = vadd.f32 %v3068_v52, %v6650_v33  ;;  %v2793_v44 = vadd.f32 %v2792_v61, %v2791_v43  ;;  %3664 = vst [vmem:[%s6422_s29 + $0x1a8] sm:$0xff] %v4684_v19  ;;  %v2130_v15 = vpop.f32.mrb[57].mxu1  ;;  %v2685_v8 = vpop.f32.mrb[57].mxu0  ;;  %v3197_v41 = vadd.f32 %v3196_v40, %v3190_v34 }
 0x1c7   : > { %3663 = vst [vmem:[%s6422_s29 + $0x1a0] sm:$0xff] %v4686_v63  ;;  %v3177_v35 = vadd.f32 %v4686_v63, %v3176_v54  ;;  %v3191_v36 = vmul.f32 %v4686_v63, %v4686_v63  ;;  %v3116_v24 = vrot.slane %v3115_v21, 1  ;;  %v6691_v10 = vadd.f32 %v3135_v29, %v3134_v56  ;;  %v5119_v29 = vld [vmem:[%s6745_s6] ss:$0 sm:$0xff] }
 0x1c8   : > { %v2773_v4 = vrot.slane %v2772_v42, 1  ;;  %v2794_v2 = vrot.slane %v2793_v44, 1  ;;  %v4688_v60 = vadd.f32 %v4687_v20, %v6598_v50  ;;  %v4689_v12 = vadd.f32 %v6414_v30, %v2120_v58 }
 0x1c9   : > { %v3178_v33 = vadd.f32 %v4684_v19, %v3177_v35  ;;  %v6695_v52 = vadd.f32 %v3116_v24, %v3115_v21  ;;  %v3192_v48 = vmul.f32 %v4684_v19, %v4684_v19  ;;  %v3198_v16 = vadd.f32 %v3197_v41, %v3191_v36  ;;  %v4192_v45 = vpop.f32.mrb[58].mxu1  ;;  %v4396_v14 = vpop.f32.mrb[58].mxu0 }
 0x1ca   : > { %v2774_v28 = vadd.f32 %v2773_v4, %v2772_v42  ;;  %v3137_v46 = vrot.slane %v6691_v10, 1  ;;  %v2795_v25 = vadd.f32 %v2794_v2, %v2793_v44  ;;  %3666 = vst [vmem:[%s6422_s29 + $0x1b8] sm:$0xff] %v4688_v60  ;;  %v4690_v6 = vadd.f32 %v4689_v12, %v6602_v13  ;;  %v2140_v50 = vpop.f32.mrb[59].mxu1  ;;  %v2695_v55 = vpop.f32.mrb[59].mxu0 }
 0x1cb   : > { %v4691_v11 = vadd.f32 %v4189_v39, %v6414_v30  ;;  %v3194_v26 = vmul.f32 %v4688_v60, %v4688_v60  ;;  %v3199_v57 = vadd.f32 %v3198_v16, %v3192_v48  ;;  %v4693_v34 = vadd.f32 %v6414_v30, %v2130_v15 }
 0x1cc   : > { %v2863_v7 = vadd.f32 %v6604_v51, %v2774_v28  ;;  %v2864_v23 = vadd.f32 %v6608_v47, %v2795_v25  ;;  %3665 = vst [vmem:[%s6422_s29 + $0x1b0] sm:$0xff] %v4690_v6  ;;  %v3179_v62 = vadd.f32 %v4690_v6, %v3178_v33  ;;  %v3193_v0 = vmul.f32 %v4690_v6, %v4690_v6 }
 0x1cd   : > { %v4692_v53 = vadd.f32 %v4691_v11, %v4393_v37  ;;  %v4694_v27 = vadd.f32 %v4693_v34, %v2685_v8  ;;  %v4695_v5 = vadd.f32 %v4192_v45, %v6414_v30  ;;  %v4697_v43 = vadd.f32 %v6414_v30, %v2140_v50  ;;  %v4195_v51 = vpop.f32.mrb[60].mxu1  ;;  %v4399_v3 = vpop.f32.mrb[60].mxu0 }
 0x1ce   : > { %v2932_v13 = vadd.f32 %v6611_v17, %v2863_v7  ;;  %v2933_v38 = vadd.f32 %v6613_v22, %v2864_v23  ;;  %v3180_v32 = vadd.f32 %v4688_v60, %v3179_v62  ;;  %v3200_v58 = vadd.f32 %v3199_v57, %v3193_v0  ;;  %v2150_v18 = vpop.f32.mrb[61].mxu1  ;;  %v2705_v56 = vpop.f32.mrb[61].mxu0 }
 0x1cf   : > { %3668 = vst [vmem:[%s6422_s29 + $0x1c8] sm:$0xff] %v4692_v53  ;;  %v3257_v47 = vmul.f32 %v4692_v53, %v4692_v53  ;;  %3667 = vst [vmem:[%s6422_s29 + $0x1c0] sm:$0xff] %v4694_v27  ;;  %v3243_v17 = vadd.f32 %v4694_v27, %v4692_v53  ;;  %v3256_v54 = vmul.f32 %v4694_v27, %v4694_v27 }
 0x1d0   : > { %v3001_v31 = vadd.f32 %v6618_v9, %v2932_v13  ;;  %v4696_v61 = vadd.f32 %v4695_v5, %v4396_v14  ;;  %v3002_v30 = vadd.f32 %v6635_v1, %v2933_v38  ;;  %v3181_v40 = vrot.slane %v3180_v32, 4 }
 0x1d1   : > { %v3201_v19 = vadd.f32 %v3200_v58, %v3194_v26  ;;  %v4698_v63 = vadd.f32 %v4697_v43, %v2695_v55  ;;  %v3264_v22 = vadd.f32 %v3257_v47, %v3256_v54  ;;  %v4699_v42 = vadd.f32 %v5119_v29, %v4195_v51  ;;  %v4198_v9 = vpop.f32.mrb[62].mxu1  ;;  %v4402_v39 = vpop.f32.mrb[62].mxu0 }
 0x1d2   : > { %3670 = vst [vmem:[%s6422_s29 + $0x1d8] sm:$0xff] %v4696_v61  ;;  %v3259_v21 = vmul.f32 %v4696_v61, %v4696_v61  ;;  %v4701_v20 = vadd.f32 %v5119_v29, %v2150_v18  ;;  %v3182_v37 = vadd.f32 %v3181_v40, %v3180_v32  ;;  %v2160_v36 = vpop.f32.mrb[63].mxu1  ;;  %v2715_v15 = vpop.f32.mrb[63].mxu0  ;;  %v4703_v4 = vadd.f32 %v5119_v29, %v4198_v9  ;;  %v3279_v40 = vld [vmem:[%s6457_s15] sm:$0x1] }
 0x1d3   : > { %v3202_v44 = vrot.slane %v3201_v19, 4  ;;  %3669 = vst [vmem:[%s6422_s29 + $0x1d0] sm:$0xff] %v4698_v63  ;;  %v3244_v1 = vadd.f32 %v4698_v63, %v3243_v17  ;;  %v3258_v35 = vmul.f32 %v4698_v63, %v4698_v63  ;;  %v4700_v8 = vadd.f32 %v4699_v42, %v4399_v3 }
 0x1d4   : > { %v4702_v24 = vadd.f32 %v4701_v20, %v2705_v56  ;;  %v4705_v41 = vadd.f32 %v5119_v29, %v2160_v36  ;;  %v3183_v2 = vrot.slane %v3182_v37, 2  ;;  %v3138_v28 = vadd.f32 %v3137_v46, %v6691_v10 }
 0x1d5   : > { %v3203_v60 = vadd.f32 %v3202_v44, %v3201_v19  ;;  %v3265_v12 = vadd.f32 %v3264_v22, %v3258_v35  ;;  %v3245_v33 = vadd.f32 %v4696_v61, %v3244_v1  ;;  %3672 = vst [vmem:[%s6422_s29 + $0x1e8] sm:$0xff] %v4700_v8  ;;  %v4704_v16 = vadd.f32 %v4703_v4, %v4402_v39  ;;  %v3282_v22 = vld [vmem:[%s6463_s14] sm:$0x1] }
 0x1d6   : > { %3671 = vst [vmem:[%s6422_s29 + $0x1e0] sm:$0xff] %v4702_v24  ;;  %v3260_v48 = vmul.f32 %v4702_v24, %v4702_v24  ;;  %v3070_v45 = vadd.f32 %v6654_v59, %v3001_v31  ;;  %v3184_v14 = vadd.f32 %v3183_v2, %v3182_v37  ;;  %v3261_v50 = vmul.f32 %v4700_v8, %v4700_v8 }
 0x1d7   : > { %v3204_v25 = vrot.slane %v3203_v60, 2  ;;  %v3246_v6 = vadd.f32 %v4702_v24, %v3245_v33  ;;  %v3266_v11 = vadd.f32 %v3265_v12, %v3259_v21  ;;  %3674 = vst [vmem:[%s6422_s29 + $0x1f8] sm:$0xff] %v4704_v16  ;;  %v3071_v55 = vadd.f32 %v6687_v49, %v3002_v30 }
 0x1d8   : > { %v3139_v7 = vadd.f32 %v6695_v52, %v3070_v45  ;;  %v4706_v26 = vadd.f32 %v4705_v41, %v2715_v15  ;;  %v3185_v57 = vrot.slane %v3184_v14, 1  ;;  %v3263_v27 = vmul.f32 %v4704_v16, %v4704_v16 }
 0x1d9   : > { %v3205_v10 = vadd.f32 %v3204_v25, %v3203_v60  ;;  %v3267_v46 = vadd.f32 %v3266_v11, %v3260_v48  ;;  %v3247_v34 = vadd.f32 %v4700_v8, %v3246_v6  ;;  %v3140_v23 = vadd.f32 %v3138_v28, %v3071_v55 }
 0x1da   : > { %3673 = vst [vmem:[%s6422_s29 + $0x1f0] sm:$0xff] %v4706_v26  ;;  %v3262_v62 = vmul.f32 %v4706_v26, %v4706_v26  ;;  %v3186_v0 = vadd.f32 %v3185_v57, %v3184_v14 }
 0x1db   : > { %v3206_v59 = vrot.slane %v3205_v10, 1  ;;  %v3248_v53 = vadd.f32 %v4706_v26, %v3247_v34  ;;  %v3268_v13 = vadd.f32 %v3267_v46, %v3261_v50 }
 0x1dc   : > { %v3208_v43 = vadd.f32 %v3186_v0, %v3139_v7 }
 0x1dd   : > { %v3207_v5 = vadd.f32 %v3206_v59, %v3205_v10  ;;  %v3249_v51 = vadd.f32 %v4704_v16, %v3248_v53  ;;  %v3269_v49 = vadd.f32 %v3268_v13, %v3262_v62 }
 0x1df   : > { %v3209_v3 = vadd.f32 %v3207_v5, %v3140_v23  ;;  %v3250_v52 = vrot.slane %v3249_v51, 4  ;;  %v3270_v38 = vadd.f32 %v3269_v49, %v3263_v27 }
 0x1e1   : > { %v3251_v32 = vadd.f32 %v3250_v52, %v3249_v51  ;;  %v3271_v58 = vrot.slane %v3270_v38, 4 }
 0x1e3   : > { %v3252_v47 = vrot.slane %v3251_v32, 2  ;;  %v3272_v18 = vadd.f32 %v3271_v58, %v3270_v38 }
 0x1e5   : > { %v3253_v56 = vadd.f32 %v3252_v47, %v3251_v32  ;;  %v3273_v31 = vrot.slane %v3272_v18, 2 }
 0x1e7   : > { %v3254_v17 = vrot.slane %v3253_v56, 1  ;;  %v3274_v54 = vadd.f32 %v3273_v31, %v3272_v18 }
 0x1e9   : > { %v3255_v61 = vadd.f32 %v3254_v17, %v3253_v56  ;;  %v3275_v30 = vrot.slane %v3274_v54, 1 }
 0x1eb   : > { %v3276_v19 = vadd.f32 %v3275_v30, %v3274_v54  ;;  %v3277_v63 = vadd.f32 %v3255_v61, %v3208_v43 }
 0x1ed   : > { %v3278_v21 = vadd.f32 %v3276_v19, %v3209_v3  ;;  %v3280_v29 = vadd.f32 %v3279_v40, %v3277_v63 }
 0x1ef   : > { %3281 = vst [vmem:[%s6457_s15] sm:$0x1] %v3280_v29  ;;  %v3283_v42 = vadd.f32 %v3282_v22, %v3278_v21 }
 0x1f1   : > { %3284 = vst [vmem:[%s6463_s14] sm:$0x1] %v3283_v42 }
 0x1f2 PF: > { %s20_s11 = sadd.s32 1, %s5142_s11   ;;  %s6790_s30 = smov %s5138_s10 }
 0x1f3   : > { %p17_p5 = scmp.ge.s32.totalorder %s20_s11, 4   ;;  %s6791_s10 = smov %s6793_s12 }
 0x1f5   :  { %19 = sbr.rel (!%p17_p5) target bundleno = 2 (0x2), region = 127 }

</bundles_post_ra>
